<compile_context>
chip_gen: v5e
topology: v5e:2x2
jax: 0.10.0
libtpu: 0.0.40
codegen_flags: <defaults>
</compile_context>

<pallas_src>
import functools

import jax
import jax.numpy as jnp
from jax.experimental import pallas as pl
from jax.experimental.pallas import tpu as pltpu


def _round_up(x, m):
    return (x + m - 1) // m * m


def _pick_tile(m):
    for t in (256, 128, 64, 32, 16, 8):
        if m % t == 0:
            return t
    return m


def _pick_tc(T):
    for tc in (32, 16, 8, 4, 2, 1):
        if T % tc == 0:
            return tc
    return 1


# ----------------------------------------------------------------------------
# Kernel 1: flat GEMM  out = x @ w + b   (hoisted input projection)
# ----------------------------------------------------------------------------
def _linear_kernel(x_ref, w_ref, b_ref, out_ref):
    out_ref[...] = (jnp.dot(x_ref[...], w_ref[...],
                            preferred_element_type=jnp.float32)
                    + b_ref[...]).astype(out_ref.dtype)


def linear_pallas(x, w, b, *, tm):
    M, K = x.shape
    N = w.shape[1]
    return pl.pallas_call(
        _linear_kernel,
        out_shape=jax.ShapeDtypeStruct((M, N), jnp.float32),
        grid_spec=pltpu.PrefetchScalarGridSpec(
            num_scalar_prefetch=0,
            grid=(M // tm,),
            in_specs=[
                pl.BlockSpec((tm, K), lambda i: (i, 0)),
                pl.BlockSpec((K, N), lambda i: (0, 0)),
                pl.BlockSpec((1, N), lambda i: (0, 0)),
            ],
            out_specs=pl.BlockSpec((tm, N), lambda i: (i, 0)),
        ),
        compiler_params=pltpu.CompilerParams(
            dimension_semantics=("parallel",)),
    )(x, w, b)


# ----------------------------------------------------------------------------
# Kernel 2: time-chunked bidirectional LSTM recurrence
#   gx (T, b_pad, 8*Hp):  [..., :4Hp] = forward gate pre-activations,
#                         [..., 4Hp:] = backward gate pre-activations
#   per grid step: forward reads chunk c, backward reads chunk n_chunks-1-c
# ----------------------------------------------------------------------------
def _make_bilstm_kernel(TC, Hp):
    def kernel(gx_f_ref, gx_b_ref, whh_f_ref, whh_b_ref,
               hf_out_ref, hb_out_ref,
               h_f, c_f, h_b, c_b):
        @pl.when(pl.program_id(0) == 0)
        def _():
            h_f[...] = jnp.zeros_like(h_f)
            c_f[...] = jnp.zeros_like(c_f)
            h_b[...] = jnp.zeros_like(h_b)
            c_b[...] = jnp.zeros_like(c_b)

        whh_f = whh_f_ref[...]
        whh_b = whh_b_ref[...]

        def cell(gx, whh, h, c):
            gates = gx + jnp.dot(h, whh, preferred_element_type=jnp.float32)
            # lane-aligned gate slices (each a whole Hp-wide block)
            i = jax.nn.sigmoid(gates[:, 0 * Hp:1 * Hp])
            f = jax.nn.sigmoid(gates[:, 1 * Hp:2 * Hp])
            g = jnp.tanh(gates[:, 2 * Hp:3 * Hp])
            o = jax.nn.sigmoid(gates[:, 3 * Hp:4 * Hp])
            c_new = f * c + i * g
            h_new = o * jnp.tanh(c_new)
            return h_new, c_new

        hf, cf = h_f[...], c_f[...]
        hb, cb = h_b[...], c_b[...]
        # TC is static and small: the Python loop fully unrolls with static
        # (lane/sublane-aligned) slice offsets; fwd/bwd cells interleave.
        for j in range(TC):
            hf, cf = cell(gx_f_ref[j], whh_f, hf, cf)
            hf_out_ref[j] = hf
            jr = TC - 1 - j
            hb, cb = cell(gx_b_ref[jr], whh_b, hb, cb)
            hb_out_ref[jr] = hb
        h_f[...], c_f[...] = hf, cf
        h_b[...], c_b[...] = hb, cb

    return kernel


def bilstm_pallas(gx, whh_f, whh_b, *, T, b_pad, Hp, TC):
    n_chunks = T // TC
    grid_spec = pltpu.PrefetchScalarGridSpec(
        num_scalar_prefetch=0,
        grid=(n_chunks,),
        in_specs=[
            # forward chunk: lane-block 0 of the 8*Hp gate axis
            pl.BlockSpec((TC, b_pad, 4 * Hp), lambda c: (c, 0, 0)),
            # backward chunk (reversed time order): lane-block 1
            pl.BlockSpec((TC, b_pad, 4 * Hp),
                         lambda c: (n_chunks - 1 - c, 0, 1)),
            # recurrent weights: block index never changes -> fetched once
            pl.BlockSpec((Hp, 4 * Hp), lambda c: (0, 0)),
            pl.BlockSpec((Hp, 4 * Hp), lambda c: (0, 0)),
        ],
        out_specs=[
            pl.BlockSpec((TC, b_pad, Hp), lambda c: (c, 0, 0)),
            pl.BlockSpec((TC, b_pad, Hp), lambda c: (n_chunks - 1 - c, 0, 0)),
        ],
        scratch_shapes=[pltpu.VMEM((b_pad, Hp), jnp.float32)
                        for _ in range(4)],
    )
    return pl.pallas_call(
        _make_bilstm_kernel(TC, Hp),
        out_shape=(jax.ShapeDtypeStruct((T, b_pad, Hp), jnp.float32),
                   jax.ShapeDtypeStruct((T, b_pad, Hp), jnp.float32)),
        grid_spec=grid_spec,
        compiler_params=pltpu.CompilerParams(
            dimension_semantics=("arbitrary",)),
    )(gx, gx, whh_f, whh_b)


# ----------------------------------------------------------------------------
# Kernel 3: embedding as one flat GEMM, reading fwd/bwd halves separately
#   out = h_fwd @ W_emb_f + h_bwd @ W_emb_b + b   (no concat in HBM)
# ----------------------------------------------------------------------------
def _embed_kernel(hf_ref, hb_ref, wf_ref, wb_ref, b_ref, out_ref):
    out_ref[...] = (jnp.dot(hf_ref[...], wf_ref[...],
                            preferred_element_type=jnp.float32)
                    + jnp.dot(hb_ref[...], wb_ref[...],
                              preferred_element_type=jnp.float32)
                    + b_ref[...]).astype(out_ref.dtype)


def embed_pallas(h_fwd, h_bwd, w_f, w_b, bias, *, tm):
    M, Hp = h_fwd.shape
    N = w_f.shape[1]
    return pl.pallas_call(
        _embed_kernel,
        out_shape=jax.ShapeDtypeStruct((M, N), jnp.float32),
        grid_spec=pltpu.PrefetchScalarGridSpec(
            num_scalar_prefetch=0,
            grid=(M // tm,),
            in_specs=[
                pl.BlockSpec((tm, Hp), lambda i: (i, 0)),
                pl.BlockSpec((tm, Hp), lambda i: (i, 0)),
                pl.BlockSpec((Hp, N), lambda i: (0, 0)),
                pl.BlockSpec((Hp, N), lambda i: (0, 0)),
                pl.BlockSpec((1, N), lambda i: (0, 0)),
            ],
            out_specs=pl.BlockSpec((tm, N), lambda i: (i, 0)),
        ),
        compiler_params=pltpu.CompilerParams(
            dimension_semantics=("parallel",)),
    )(h_fwd, h_bwd, w_f, w_b, bias)


# ----------------------------------------------------------------------------
# Full module forward
# ----------------------------------------------------------------------------
@functools.partial(jax.jit, static_argnames=("nOut",))
def bidirectional_lstm_forward(x, params, *, nOut):
    T, b, nIn = x.shape
    Hp = params["whh_f"].shape[0]
    b_pad = _round_up(max(b, 8), 8)
    TC = _pick_tc(T)
    M = T * b_pad
    tm = _pick_tile(M)

    # pad batch to fp32 sublane granularity (padded rows are never read back)
    x_p = jnp.pad(x, ((0, 0), (0, b_pad - b), (0, 0)))

    # 1) hoisted input projection (bias folded): one MXU-friendly GEMM
    gx = linear_pallas(x_p.reshape(M, nIn), params["w_ih_cat"],
                       params["b_cat"], tm=tm)
    gx = gx.reshape(T, b_pad, 8 * Hp)

    # 2) bidirectional recurrence, time-chunked grid
    h_fwd, h_bwd = bilstm_pallas(gx, params["whh_f"], params["whh_b"],
                                 T=T, b_pad=b_pad, Hp=Hp, TC=TC)

    # 3) embedding GEMM over flattened (T*b_pad) rows, lane-dense padded nOut
    out_p = embed_pallas(h_fwd.reshape(M, Hp), h_bwd.reshape(M, Hp),
                         params["w_emb_f"], params["w_emb_b"],
                         params["b_emb"], tm=tm)
    out = out_p.reshape(T, b_pad, -1)
    return out[:, :b, :nOut]


# ----------------------------------------------------------------------------
# Deterministic parameter init (PyTorch-style ranges) + kernel-layout packing
# ----------------------------------------------------------------------------
def init_params(key, nIn, nHidden, nOut):
    ks = jax.random.split(key, 10)
    kH = 1.0 / jnp.sqrt(nHidden)
    kL = 1.0 / jnp.sqrt(2 * nHidden)
    u = lambda k, shape, lim: jax.random.uniform(k, shape, jnp.float32, -lim, lim)

    # raw PyTorch-shaped params (gate order i, f, g, o)
    wih_f = u(ks[0], (4 * nHidden, nIn), kH)
    whh_f = u(ks[1], (4 * nHidden, nHidden), kH)
    bih_f = u(ks[2], (4 * nHidden,), kH)
    bhh_f = u(ks[3], (4 * nHidden,), kH)
    wih_b = u(ks[4], (4 * nHidden, nIn), kH)
    whh_b = u(ks[5], (4 * nHidden, nHidden), kH)
    bih_b = u(ks[6], (4 * nHidden,), kH)
    bhh_b = u(ks[7], (4 * nHidden,), kH)
    w_emb = u(ks[8], (nOut, 2 * nHidden), kL)
    b_emb = u(ks[9], (nOut,), kL)

    raw = dict(wih_f=wih_f, whh_f=whh_f, bih_f=bih_f, bhh_f=bhh_f,
               wih_b=wih_b, whh_b=whh_b, bih_b=bih_b, bhh_b=bhh_b,
               w_emb=w_emb, b_emb=b_emb)

    H = nHidden
    Hp = _round_up(H, 128)          # lane-aligned per-gate block width
    nOut_p = _round_up(nOut, 128)   # lane-dense embed output

    def gate_pad_T(w):  # (4H, X) -> (X, 4Hp): transpose + lane-block per gate
        X = w.shape[1]
        out = jnp.zeros((X, 4 * Hp), jnp.float32)
        for k in range(4):
            out = out.at[:, k * Hp:k * Hp + H].set(w[k * H:(k + 1) * H, :].T)
        return out

    def gate_pad_vec(v):  # (4H,) -> (4Hp,)
        out = jnp.zeros((4 * Hp,), jnp.float32)
        for k in range(4):
            out = out.at[k * Hp:k * Hp + H].set(v[k * H:(k + 1) * H])
        return out

    def pad_2d(w, r, c):
        return jnp.zeros((r, c), jnp.float32).at[:w.shape[0], :w.shape[1]].set(w)

    params = dict(
        # hoisted input projection: [fwd gates | bwd gates], biases folded
        w_ih_cat=jnp.concatenate([gate_pad_T(wih_f), gate_pad_T(wih_b)], axis=1),
        b_cat=jnp.concatenate([gate_pad_vec(bih_f + bhh_f),
                               gate_pad_vec(bih_b + bhh_b)])[None, :],
        # recurrent weights, (Hp, 4Hp), padded hidden rows are zero
        whh_f=pad_2d(gate_pad_T(whh_f), Hp, 4 * Hp),
        whh_b=pad_2d(gate_pad_T(whh_b), Hp, 4 * Hp),
        # embedding split into fwd/bwd halves -> no concat of hidden states
        w_emb_f=pad_2d(w_emb[:, :H].T, Hp, nOut_p),
        w_emb_b=pad_2d(w_emb[:, H:].T, Hp, nOut_p),
        b_emb=jnp.zeros((1, nOut_p), jnp.float32).at[0, :nOut].set(b_emb),
    )
    return params, raw


# ----------------------------------------------------------------------------
# Pure-JAX reference (PyTorch semantics) for verification
# ----------------------------------------------------------------------------
def _lstm_dir_ref(x, w_ih, w_hh, b_ih, b_hh, reverse):
    T, b, _ = x.shape
    H = w_hh.shape[1]
    xs = x[::-1] if reverse else x

    def step(carry, xt):
        h, c = carry
        gates = xt @ w_ih.T + h @ w_hh.T + b_ih + b_hh
        i = jax.nn.sigmoid(gates[:, :H])
        f = jax.nn.sigmoid(gates[:, H:2 * H])
        g = jnp.tanh(gates[:, 2 * H:3 * H])
        o = jax.nn.sigmoid(gates[:, 3 * H:])
        c = f * c + i * g
        h = o * jnp.tanh(c)
        return (h, c), h

    init = (jnp.zeros((b, H), jnp.float32), jnp.zeros((b, H), jnp.float32))
    _, hs = jax.lax.scan(step, init, xs)
    return hs[::-1] if reverse else hs


def reference_forward(x, raw):
    h_f = _lstm_dir_ref(x, raw["wih_f"], raw["whh_f"], raw["bih_f"], raw["bhh_f"], False)
    h_b = _lstm_dir_ref(x, raw["wih_b"], raw["whh_b"], raw["bih_b"], raw["bhh_b"], True)
    rec = jnp.concatenate([h_f, h_b], axis=-1)
    T, b, h2 = rec.shape
    out = rec.reshape(T * b, h2) @ raw["w_emb"].T + raw["b_emb"]
    return out.reshape(T, b, -1)


if __name__ == "__main__":
    T, b = 8, 2
    nIn, nHidden, nOut = 16, 32, 8

    key = jax.random.PRNGKey(0)
    k_x, k_p = jax.random.split(key)
    x = jax.random.normal(k_x, (T, b, nIn), dtype=jnp.float32)
    params, raw = init_params(k_p, nIn, nHidden, nOut)

    out = bidirectional_lstm_forward(x, params, nOut=nOut)
    out = jax.block_until_ready(out)

    ref = reference_forward(x, raw)
    assert out.shape == (T, b, nOut), out.shape
    err = jnp.max(jnp.abs(out - ref))
    assert jnp.allclose(out, ref, atol=1e-4, rtol=1e-4), f"max err {err}"

    print("KERNEL_OK")
</pallas_src>

<mosaic_0001>
module attributes {stable_mosaic.version = 11 : i64} {
  func.func @_linear_kernel(%arg0: i32, %arg1: memref<64x16xf32, #tpu.memory_space<vmem>>, %arg2: memref<16x1024xf32, #tpu.memory_space<vmem>>, %arg3: memref<1x1024xf32, #tpu.memory_space<vmem>>, %arg4: memref<64x1024xf32, #tpu.memory_space<vmem>>) attributes {dimension_semantics = [#tpu.dimension_semantics<parallel>], iteration_bounds = array<i64: 1>, scalar_prefetch = 0 : i64, scratch_operands = 0 : i64, tpu.core_type = #tpu.core_type<tc>, window_params = [{transform_indices = @transform_0, window_bounds = array<i64: 64, 16>}, {pipeline_mode = #tpu.pipeline_mode<synchronous>, transform_indices = @transform_1, window_bounds = array<i64: 16, 1024>}, {pipeline_mode = #tpu.pipeline_mode<synchronous>, transform_indices = @transform_2, window_bounds = array<i64: 1, 1024>}, {transform_indices = @transform_3, window_bounds = array<i64: 64, 1024>}]} {
    %c0 = arith.constant 0 : index
    %c0_0 = arith.constant 0 : index
    %0 = vector.load %arg1[%c0, %c0_0] : memref<64x16xf32, #tpu.memory_space<vmem>>, vector<64x16xf32>
    %c0_1 = arith.constant 0 : index
    %c0_2 = arith.constant 0 : index
    %1 = vector.load %arg2[%c0_1, %c0_2] : memref<16x1024xf32, #tpu.memory_space<vmem>>, vector<16x1024xf32>
    %cst = arith.constant dense<0.000000e+00> : vector<64x1024xf32>
    %2 = tpu.matmul %0, %1, %cst {dimension_numbers = #tpu.dot_dimension_numbers<[1], [0], [0], [1], [0, 0, 1, 1], [], []>} : vector<64x16xf32>, vector<16x1024xf32>, vector<64x1024xf32> -> vector<64x1024xf32>
    %c0_3 = arith.constant 0 : index
    %c0_4 = arith.constant 0 : index
    %3 = vector.load %arg3[%c0_3, %c0_4] : memref<1x1024xf32, #tpu.memory_space<vmem>>, vector<1x1024xf32>
    %4 = vector.broadcast %3 : vector<1x1024xf32> to vector<64x1024xf32>
    %5 = arith.addf %2, %4 : vector<64x1024xf32>
    %c0_5 = arith.constant 0 : index
    %c0_6 = arith.constant 0 : index
    %6 = vector.load %arg4[%c0_5, %c0_6] : memref<64x1024xf32, #tpu.memory_space<vmem>>, vector<64x1024xf32>
    tpu.vector_store %arg4[%c0_5, %c0_6], %5 {strides = array<i32>} : memref<64x1024xf32, #tpu.memory_space<vmem>>, vector<64x1024xf32>,
    return
  }
  func.func @transform_0(%arg0: i32) -> (i32, i32) {
    %c0_i32 = arith.constant 0 : i32
    %c0_i32_0 = arith.constant 0 : i32
    return %arg0, %c0_i32 : i32, i32
  }
  func.func @transform_1(%arg0: i32) -> (i32, i32) {
    %c0_i32 = arith.constant 0 : i32
    %c0_i32_0 = arith.constant 0 : i32
    %c0_i32_1 = arith.constant 0 : i32
    return %c0_i32, %c0_i32_0 : i32, i32
  }
  func.func @transform_2(%arg0: i32) -> (i32, i32) {
    %c0_i32 = arith.constant 0 : i32
    %c0_i32_0 = arith.constant 0 : i32
    %c0_i32_1 = arith.constant 0 : i32
    return %c0_i32, %c0_i32_0 : i32, i32
  }
  func.func @transform_3(%arg0: i32) -> (i32, i32) {
    %c0_i32 = arith.constant 0 : i32
    %c0_i32_0 = arith.constant 0 : i32
    return %arg0, %c0_i32 : i32, i32
  }
}

module attributes {stable_mosaic.version = 11 : i64} {
  func.func @_embed_kernel(%arg0: i32, %arg1: memref<64x128xf32, #tpu.memory_space<vmem>>, %arg2: memref<64x128xf32, #tpu.memory_space<vmem>>, %arg3: memref<128x128xf32, #tpu.memory_space<vmem>>, %arg4: memref<128x128xf32, #tpu.memory_space<vmem>>, %arg5: memref<1x128xf32, #tpu.memory_space<vmem>>, %arg6: memref<64x128xf32, #tpu.memory_space<vmem>>) attributes {dimension_semantics = [#tpu.dimension_semantics<parallel>], iteration_bounds = array<i64: 1>, scalar_prefetch = 0 : i64, scratch_operands = 0 : i64, tpu.core_type = #tpu.core_type<tc>, window_params = [{transform_indices = @transform_0, window_bounds = array<i64: 64, 128>}, {transform_indices = @transform_1, window_bounds = array<i64: 64, 128>}, {pipeline_mode = #tpu.pipeline_mode<synchronous>, transform_indices = @transform_2, window_bounds = array<i64: 128, 128>}, {pipeline_mode = #tpu.pipeline_mode<synchronous>, transform_indices = @transform_3, window_bounds = array<i64: 128, 128>}, {pipeline_mode = #tpu.pipeline_mode<synchronous>, transform_indices = @transform_4, window_bounds = array<i64: 1, 128>}, {transform_indices = @transform_5, window_bounds = array<i64: 64, 128>}]} {
    %c0 = arith.constant 0 : index
    %c0_0 = arith.constant 0 : index
    %0 = vector.load %arg1[%c0, %c0_0] : memref<64x128xf32, #tpu.memory_space<vmem>>, vector<64x128xf32>
    %c0_1 = arith.constant 0 : index
    %c0_2 = arith.constant 0 : index
    %1 = vector.load %arg3[%c0_1, %c0_2] : memref<128x128xf32, #tpu.memory_space<vmem>>, vector<128x128xf32>
    %cst = arith.constant dense<0.000000e+00> : vector<64x128xf32>
    %2 = tpu.matmul %0, %1, %cst {dimension_numbers = #tpu.dot_dimension_numbers<[1], [0], [0], [1], [0, 0, 1, 1], [], []>} : vector<64x128xf32>, vector<128x128xf32>, vector<64x128xf32> -> vector<64x128xf32>
    %c0_3 = arith.constant 0 : index
    %c0_4 = arith.constant 0 : index
    %3 = vector.load %arg2[%c0_3, %c0_4] : memref<64x128xf32, #tpu.memory_space<vmem>>, vector<64x128xf32>
    %c0_5 = arith.constant 0 : index
    %c0_6 = arith.constant 0 : index
    %4 = vector.load %arg4[%c0_5, %c0_6] : memref<128x128xf32, #tpu.memory_space<vmem>>, vector<128x128xf32>
    %cst_7 = arith.constant dense<0.000000e+00> : vector<64x128xf32>
    %5 = tpu.matmul %3, %4, %cst_7 {dimension_numbers = #tpu.dot_dimension_numbers<[1], [0], [0], [1], [0, 0, 1, 1], [], []>} : vector<64x128xf32>, vector<128x128xf32>, vector<64x128xf32> -> vector<64x128xf32>
    %6 = arith.addf %2, %5 : vector<64x128xf32>
    %c0_8 = arith.constant 0 : index
    %c0_9 = arith.constant 0 : index
    %7 = vector.load %arg5[%c0_8, %c0_9] : memref<1x128xf32, #tpu.memory_space<vmem>>, vector<1x128xf32>
    %8 = vector.broadcast %7 : vector<1x128xf32> to vector<64x128xf32>
    %9 = arith.addf %6, %8 : vector<64x128xf32>
    %c0_10 = arith.constant 0 : index
    %c0_11 = arith.constant 0 : index
    %10 = vector.load %arg6[%c0_10, %c0_11] : memref<64x128xf32, #tpu.memory_space<vmem>>, vector<64x128xf32>
    tpu.vector_store %arg6[%c0_10, %c0_11], %9 {strides = array<i32>} : memref<64x128xf32, #tpu.memory_space<vmem>>, vector<64x128xf32>,
    return
  }
  func.func @transform_0(%arg0: i32) -> (i32, i32) {
    %c0_i32 = arith.constant 0 : i32
    %c0_i32_0 = arith.constant 0 : i32
    return %arg0, %c0_i32 : i32, i32
  }
  func.func @transform_1(%arg0: i32) -> (i32, i32) {
    %c0_i32 = arith.constant 0 : i32
    %c0_i32_0 = arith.constant 0 : i32
    return %arg0, %c0_i32 : i32, i32
  }
  func.func @transform_2(%arg0: i32) -> (i32, i32) {
    %c0_i32 = arith.constant 0 : i32
    %c0_i32_0 = arith.constant 0 : i32
    %c0_i32_1 = arith.constant 0 : i32
    return %c0_i32, %c0_i32_0 : i32, i32
  }
  func.func @transform_3(%arg0: i32) -> (i32, i32) {
    %c0_i32 = arith.constant 0 : i32
    %c0_i32_0 = arith.constant 0 : i32
    %c0_i32_1 = arith.constant 0 : i32
    return %c0_i32, %c0_i32_0 : i32, i32
  }
  func.func @transform_4(%arg0: i32) -> (i32, i32) {
    %c0_i32 = arith.constant 0 : i32
    %c0_i32_0 = arith.constant 0 : i32
    %c0_i32_1 = arith.constant 0 : i32
    return %c0_i32, %c0_i32_0 : i32, i32
  }
  func.func @transform_5(%arg0: i32) -> (i32, i32) {
    %c0_i32 = arith.constant 0 : i32
    %c0_i32_0 = arith.constant 0 : i32
    return %arg0, %c0_i32 : i32, i32
  }
}

module attributes {stable_mosaic.version = 11 : i64} {
  func.func @kernel(%arg0: i32, %arg1: memref<8x8x512xf32, #tpu.memory_space<vmem>>, %arg2: memref<8x8x512xf32, #tpu.memory_space<vmem>>, %arg3: memref<128x512xf32, #tpu.memory_space<vmem>>, %arg4: memref<128x512xf32, #tpu.memory_space<vmem>>, %arg5: memref<8x8x128xf32, #tpu.memory_space<vmem>>, %arg6: memref<8x8x128xf32, #tpu.memory_space<vmem>>, %arg7: memref<8x128xf32, #tpu.memory_space<vmem>>, %arg8: memref<8x128xf32, #tpu.memory_space<vmem>>, %arg9: memref<8x128xf32, #tpu.memory_space<vmem>>, %arg10: memref<8x128xf32, #tpu.memory_space<vmem>>) attributes {dimension_semantics = [#tpu.dimension_semantics<arbitrary>], iteration_bounds = array<i64: 1>, scalar_prefetch = 0 : i64, scratch_operands = 4 : i64, tpu.core_type = #tpu.core_type<tc>, window_params = [{transform_indices = @transform_0, window_bounds = array<i64: 8, 8, 512>}, {transform_indices = @transform_1, window_bounds = array<i64: 8, 8, 512>}, {pipeline_mode = #tpu.pipeline_mode<synchronous>, transform_indices = @transform_2, window_bounds = array<i64: 128, 512>}, {pipeline_mode = #tpu.pipeline_mode<synchronous>, transform_indices = @transform_3, window_bounds = array<i64: 128, 512>}, {transform_indices = @transform_4, window_bounds = array<i64: 8, 8, 128>}, {transform_indices = @transform_5, window_bounds = array<i64: 8, 8, 128>}]} {
    %c0_i32 = arith.constant 0 : i32
    %0 = arith.cmpi eq, %arg0, %c0_i32 : i32
    %1 = arith.extui %0 : i1 to i32
    %c0_i32_0 = arith.constant 0 : i32
    %2 = arith.cmpi ne, %1, %c0_i32_0 : i32
    scf.if %2 {
      %cst_172 = arith.constant 0.000000e+00 : f32
      %525 = vector.broadcast %cst_172 : f32 to vector<8x128xf32>
      %c0_173 = arith.constant 0 : index
      %c0_174 = arith.constant 0 : index
      %526 = vector.load %arg7[%c0_173, %c0_174] : memref<8x128xf32, #tpu.memory_space<vmem>>, vector<8x128xf32>
      tpu.vector_store %arg7[%c0_173, %c0_174], %525 {strides = array<i32>} : memref<8x128xf32, #tpu.memory_space<vmem>>, vector<8x128xf32>,
      %cst_175 = arith.constant 0.000000e+00 : f32
      %527 = vector.broadcast %cst_175 : f32 to vector<8x128xf32>
      %c0_176 = arith.constant 0 : index
      %c0_177 = arith.constant 0 : index
      %528 = vector.load %arg8[%c0_176, %c0_177] : memref<8x128xf32, #tpu.memory_space<vmem>>, vector<8x128xf32>
      tpu.vector_store %arg8[%c0_176, %c0_177], %527 {strides = array<i32>} : memref<8x128xf32, #tpu.memory_space<vmem>>, vector<8x128xf32>,
      %cst_178 = arith.constant 0.000000e+00 : f32
      %529 = vector.broadcast %cst_178 : f32 to vector<8x128xf32>
      %c0_179 = arith.constant 0 : index
      %c0_180 = arith.constant 0 : index
      %530 = vector.load %arg9[%c0_179, %c0_180] : memref<8x128xf32, #tpu.memory_space<vmem>>, vector<8x128xf32>
      tpu.vector_store %arg9[%c0_179, %c0_180], %529 {strides = array<i32>} : memref<8x128xf32, #tpu.memory_space<vmem>>, vector<8x128xf32>,
      %cst_181 = arith.constant 0.000000e+00 : f32
      %531 = vector.broadcast %cst_181 : f32 to vector<8x128xf32>
      %c0_182 = arith.constant 0 : index
      %c0_183 = arith.constant 0 : index
      %532 = vector.load %arg10[%c0_182, %c0_183] : memref<8x128xf32, #tpu.memory_space<vmem>>, vector<8x128xf32>
      tpu.vector_store %arg10[%c0_182, %c0_183], %531 {strides = array<i32>} : memref<8x128xf32, #tpu.memory_space<vmem>>, vector<8x128xf32>,
    } else {
    }
    %c0 = arith.constant 0 : index
    %c0_1 = arith.constant 0 : index
    %3 = vector.load %arg3[%c0, %c0_1] : memref<128x512xf32, #tpu.memory_space<vmem>>, vector<128x512xf32>
    %c0_2 = arith.constant 0 : index
    %c0_3 = arith.constant 0 : index
    %4 = vector.load %arg4[%c0_2, %c0_3] : memref<128x512xf32, #tpu.memory_space<vmem>>, vector<128x512xf32>
    %c0_4 = arith.constant 0 : index
    %c0_5 = arith.constant 0 : index
    %5 = vector.load %arg7[%c0_4, %c0_5] : memref<8x128xf32, #tpu.memory_space<vmem>>, vector<8x128xf32>
    %c0_6 = arith.constant 0 : index
    %c0_7 = arith.constant 0 : index
    %6 = vector.load %arg8[%c0_6, %c0_7] : memref<8x128xf32, #tpu.memory_space<vmem>>, vector<8x128xf32>
    %c0_8 = arith.constant 0 : index
    %c0_9 = arith.constant 0 : index
    %7 = vector.load %arg9[%c0_8, %c0_9] : memref<8x128xf32, #tpu.memory_space<vmem>>, vector<8x128xf32>
    %c0_10 = arith.constant 0 : index
    %c0_11 = arith.constant 0 : index
    %8 = vector.load %arg10[%c0_10, %c0_11] : memref<8x128xf32, #tpu.memory_space<vmem>>, vector<8x128xf32>
    %c0_12 = arith.constant 0 : index
    %c0_13 = arith.constant 0 : index
    %c0_14 = arith.constant 0 : index
    %9 = vector.load %arg1[%c0_12, %c0_13, %c0_14] : memref<8x8x512xf32, #tpu.memory_space<vmem>>, vector<1x8x512xf32>
    %10 = vector.shape_cast %9 : vector<1x8x512xf32> to vector<8x512xf32>
    %cst = arith.constant dense<0.000000e+00> : vector<8x512xf32>
    %11 = tpu.matmul %5, %3, %cst {dimension_numbers = #tpu.dot_dimension_numbers<[1], [0], [0], [1], [0, 0, 1, 1], [], []>} : vector<8x128xf32>, vector<128x512xf32>, vector<8x512xf32> -> vector<8x512xf32>
    %12 = arith.addf %10, %11 : vector<8x512xf32>
    %13 = vector.extract_strided_slice %12 {offsets = [0, 0], sizes = [8, 128], strides = [1, 1]} : vector<8x512xf32> to vector<8x128xf32>
    %14 = arith.negf %13 : vector<8x128xf32>
    %15 = math.exp %14 : vector<8x128xf32>
    %cst_15 = arith.constant 1.000000e+00 : f32
    %16 = vector.broadcast %cst_15 : f32 to vector<8x128xf32>
    %17 = arith.addf %16, %15 : vector<8x128xf32>
    %18 = arith.divf %16, %17 : vector<8x128xf32>
    %19 = vector.extract_strided_slice %12 {offsets = [0, 128], sizes = [8, 128], strides = [1, 1]} : vector<8x512xf32> to vector<8x128xf32>
    %20 = arith.negf %19 : vector<8x128xf32>
    %21 = math.exp %20 : vector<8x128xf32>
    %cst_16 = arith.constant 1.000000e+00 : f32
    %22 = vector.broadcast %cst_16 : f32 to vector<8x128xf32>
    %23 = arith.addf %22, %21 : vector<8x128xf32>
    %24 = arith.divf %22, %23 : vector<8x128xf32>
    %25 = vector.extract_strided_slice %12 {offsets = [0, 256], sizes = [8, 128], strides = [1, 1]} : vector<8x512xf32> to vector<8x128xf32>
    %26 = math.tanh %25 : vector<8x128xf32>
    %27 = vector.extract_strided_slice %12 {offsets = [0, 384], sizes = [8, 128], strides = [1, 1]} : vector<8x512xf32> to vector<8x128xf32>
    %28 = arith.negf %27 : vector<8x128xf32>
    %29 = math.exp %28 : vector<8x128xf32>
    %cst_17 = arith.constant 1.000000e+00 : f32
    %30 = vector.broadcast %cst_17 : f32 to vector<8x128xf32>
    %31 = arith.addf %30, %29 : vector<8x128xf32>
    %32 = arith.divf %30, %31 : vector<8x128xf32>
    %33 = arith.mulf %24, %6 : vector<8x128xf32>
    %34 = arith.mulf %18, %26 : vector<8x128xf32>
    %35 = arith.addf %33, %34 : vector<8x128xf32>
    %36 = math.tanh %35 : vector<8x128xf32>
    %37 = arith.mulf %32, %36 : vector<8x128xf32>
    %c0_18 = arith.constant 0 : index
    %c0_19 = arith.constant 0 : index
    %c0_20 = arith.constant 0 : index
    %38 = vector.load %arg5[%c0_18, %c0_19, %c0_20] : memref<8x8x128xf32, #tpu.memory_space<vmem>>, vector<1x8x128xf32>
    %39 = vector.shape_cast %38 : vector<1x8x128xf32> to vector<8x128xf32>
    %40 = vector.shape_cast %37 : vector<8x128xf32> to vector<1x8x128xf32>
    tpu.vector_store %arg5[%c0_18, %c0_19, %c0_20], %40 {strides = array<i32>} : memref<8x8x128xf32, #tpu.memory_space<vmem>>, vector<1x8x128xf32>,
    %c7 = arith.constant 7 : index
    %c0_21 = arith.constant 0 : index
    %c0_22 = arith.constant 0 : index
    %41 = vector.load %arg2[%c7, %c0_21, %c0_22] : memref<8x8x512xf32, #tpu.memory_space<vmem>>, vector<1x8x512xf32>
    %42 = vector.shape_cast %41 : vector<1x8x512xf32> to vector<8x512xf32>
    %cst_23 = arith.constant dense<0.000000e+00> : vector<8x512xf32>
    %43 = tpu.matmul %7, %4, %cst_23 {dimension_numbers = #tpu.dot_dimension_numbers<[1], [0], [0], [1], [0, 0, 1, 1], [], []>} : vector<8x128xf32>, vector<128x512xf32>, vector<8x512xf32> -> vector<8x512xf32>
    %44 = arith.addf %42, %43 : vector<8x512xf32>
    %45 = vector.extract_strided_slice %44 {offsets = [0, 0], sizes = [8, 128], strides = [1, 1]} : vector<8x512xf32> to vector<8x128xf32>
    %46 = arith.negf %45 : vector<8x128xf32>
    %47 = math.exp %46 : vector<8x128xf32>
    %cst_24 = arith.constant 1.000000e+00 : f32
    %48 = vector.broadcast %cst_24 : f32 to vector<8x128xf32>
    %49 = arith.addf %48, %47 : vector<8x128xf32>
    %50 = arith.divf %48, %49 : vector<8x128xf32>
    %51 = vector.extract_strided_slice %44 {offsets = [0, 128], sizes = [8, 128], strides = [1, 1]} : vector<8x512xf32> to vector<8x128xf32>
    %52 = arith.negf %51 : vector<8x128xf32>
    %53 = math.exp %52 : vector<8x128xf32>
    %cst_25 = arith.constant 1.000000e+00 : f32
    %54 = vector.broadcast %cst_25 : f32 to vector<8x128xf32>
    %55 = arith.addf %54, %53 : vector<8x128xf32>
    %56 = arith.divf %54, %55 : vector<8x128xf32>
    %57 = vector.extract_strided_slice %44 {offsets = [0, 256], sizes = [8, 128], strides = [1, 1]} : vector<8x512xf32> to vector<8x128xf32>
    %58 = math.tanh %57 : vector<8x128xf32>
    %59 = vector.extract_strided_slice %44 {offsets = [0, 384], sizes = [8, 128], strides = [1, 1]} : vector<8x512xf32> to vector<8x128xf32>
    %60 = arith.negf %59 : vector<8x128xf32>
    %61 = math.exp %60 : vector<8x128xf32>
    %cst_26 = arith.constant 1.000000e+00 : f32
    %62 = vector.broadcast %cst_26 : f32 to vector<8x128xf32>
    %63 = arith.addf %62, %61 : vector<8x128xf32>
    %64 = arith.divf %62, %63 : vector<8x128xf32>
    %65 = arith.mulf %56, %8 : vector<8x128xf32>
    %66 = arith.mulf %50, %58 : vector<8x128xf32>
    %67 = arith.addf %65, %66 : vector<8x128xf32>
    %68 = math.tanh %67 : vector<8x128xf32>
    %69 = arith.mulf %64, %68 : vector<8x128xf32>
    %c7_27 = arith.constant 7 : index
    %c0_28 = arith.constant 0 : index
    %c0_29 = arith.constant 0 : index
    %70 = vector.load %arg6[%c7_27, %c0_28, %c0_29] : memref<8x8x128xf32, #tpu.memory_space<vmem>>, vector<1x8x128xf32>
    %71 = vector.shape_cast %70 : vector<1x8x128xf32> to vector<8x128xf32>
    %72 = vector.shape_cast %69 : vector<8x128xf32> to vector<1x8x128xf32>
    tpu.vector_store %arg6[%c7_27, %c0_28, %c0_29], %72 {strides = array<i32>} : memref<8x8x128xf32, #tpu.memory_space<vmem>>, vector<1x8x128xf32>,
    %c1 = arith.constant 1 : index
    %c0_30 = arith.constant 0 : index
    %c0_31 = arith.constant 0 : index
    %73 = vector.load %arg1[%c1, %c0_30, %c0_31] : memref<8x8x512xf32, #tpu.memory_space<vmem>>, vector<1x8x512xf32>
    %74 = vector.shape_cast %73 : vector<1x8x512xf32> to vector<8x512xf32>
    %cst_32 = arith.constant dense<0.000000e+00> : vector<8x512xf32>
    %75 = tpu.matmul %37, %3, %cst_32 {dimension_numbers = #tpu.dot_dimension_numbers<[1], [0], [0], [1], [0, 0, 1, 1], [], []>} : vector<8x128xf32>, vector<128x512xf32>, vector<8x512xf32> -> vector<8x512xf32>
    %76 = arith.addf %74, %75 : vector<8x512xf32>
    %77 = vector.extract_strided_slice %76 {offsets = [0, 0], sizes = [8, 128], strides = [1, 1]} : vector<8x512xf32> to vector<8x128xf32>
    %78 = arith.negf %77 : vector<8x128xf32>
    %79 = math.exp %78 : vector<8x128xf32>
    %cst_33 = arith.constant 1.000000e+00 : f32
    %80 = vector.broadcast %cst_33 : f32 to vector<8x128xf32>
    %81 = arith.addf %80, %79 : vector<8x128xf32>
    %82 = arith.divf %80, %81 : vector<8x128xf32>
    %83 = vector.extract_strided_slice %76 {offsets = [0, 128], sizes = [8, 128], strides = [1, 1]} : vector<8x512xf32> to vector<8x128xf32>
    %84 = arith.negf %83 : vector<8x128xf32>
    %85 = math.exp %84 : vector<8x128xf32>
    %cst_34 = arith.constant 1.000000e+00 : f32
    %86 = vector.broadcast %cst_34 : f32 to vector<8x128xf32>
    %87 = arith.addf %86, %85 : vector<8x128xf32>
    %88 = arith.divf %86, %87 : vector<8x128xf32>
    %89 = vector.extract_strided_slice %76 {offsets = [0, 256], sizes = [8, 128], strides = [1, 1]} : vector<8x512xf32> to vector<8x128xf32>
    %90 = math.tanh %89 : vector<8x128xf32>
    %91 = vector.extract_strided_slice %76 {offsets = [0, 384], sizes = [8, 128], strides = [1, 1]} : vector<8x512xf32> to vector<8x128xf32>
    %92 = arith.negf %91 : vector<8x128xf32>
    %93 = math.exp %92 : vector<8x128xf32>
    %cst_35 = arith.constant 1.000000e+00 : f32
    %94 = vector.broadcast %cst_35 : f32 to vector<8x128xf32>
    %95 = arith.addf %94, %93 : vector<8x128xf32>
    %96 = arith.divf %94, %95 : vector<8x128xf32>
    %97 = arith.mulf %88, %35 : vector<8x128xf32>
    %98 = arith.mulf %82, %90 : vector<8x128xf32>
    %99 = arith.addf %97, %98 : vector<8x128xf32>
    %100 = math.tanh %99 : vector<8x128xf32>
    %101 = arith.mulf %96, %100 : vector<8x128xf32>
    %c1_36 = arith.constant 1 : index
    %c0_37 = arith.constant 0 : index
    %c0_38 = arith.constant 0 : index
    %102 = vector.load %arg5[%c1_36, %c0_37, %c0_38] : memref<8x8x128xf32, #tpu.memory_space<vmem>>, vector<1x8x128xf32>
    %103 = vector.shape_cast %102 : vector<1x8x128xf32> to vector<8x128xf32>
    %104 = vector.shape_cast %101 : vector<8x128xf32> to vector<1x8x128xf32>
    tpu.vector_store %arg5[%c1_36, %c0_37, %c0_38], %104 {strides = array<i32>} : memref<8x8x128xf32, #tpu.memory_space<vmem>>, vector<1x8x128xf32>,
    %c6 = arith.constant 6 : index
    %c0_39 = arith.constant 0 : index
    %c0_40 = arith.constant 0 : index
    %105 = vector.load %arg2[%c6, %c0_39, %c0_40] : memref<8x8x512xf32, #tpu.memory_space<vmem>>, vector<1x8x512xf32>
    %106 = vector.shape_cast %105 : vector<1x8x512xf32> to vector<8x512xf32>
    %cst_41 = arith.constant dense<0.000000e+00> : vector<8x512xf32>
    %107 = tpu.matmul %69, %4, %cst_41 {dimension_numbers = #tpu.dot_dimension_numbers<[1], [0], [0], [1], [0, 0, 1, 1], [], []>} : vector<8x128xf32>, vector<128x512xf32>, vector<8x512xf32> -> vector<8x512xf32>
    %108 = arith.addf %106, %107 : vector<8x512xf32>
    %109 = vector.extract_strided_slice %108 {offsets = [0, 0], sizes = [8, 128], strides = [1, 1]} : vector<8x512xf32> to vector<8x128xf32>
    %110 = arith.negf %109 : vector<8x128xf32>
    %111 = math.exp %110 : vector<8x128xf32>
    %cst_42 = arith.constant 1.000000e+00 : f32
    %112 = vector.broadcast %cst_42 : f32 to vector<8x128xf32>
    %113 = arith.addf %112, %111 : vector<8x128xf32>
    %114 = arith.divf %112, %113 : vector<8x128xf32>
    %115 = vector.extract_strided_slice %108 {offsets = [0, 128], sizes = [8, 128], strides = [1, 1]} : vector<8x512xf32> to vector<8x128xf32>
    %116 = arith.negf %115 : vector<8x128xf32>
    %117 = math.exp %116 : vector<8x128xf32>
    %cst_43 = arith.constant 1.000000e+00 : f32
    %118 = vector.broadcast %cst_43 : f32 to vector<8x128xf32>
    %119 = arith.addf %118, %117 : vector<8x128xf32>
    %120 = arith.divf %118, %119 : vector<8x128xf32>
    %121 = vector.extract_strided_slice %108 {offsets = [0, 256], sizes = [8, 128], strides = [1, 1]} : vector<8x512xf32> to vector<8x128xf32>
    %122 = math.tanh %121 : vector<8x128xf32>
    %123 = vector.extract_strided_slice %108 {offsets = [0, 384], sizes = [8, 128], strides = [1, 1]} : vector<8x512xf32> to vector<8x128xf32>
    %124 = arith.negf %123 : vector<8x128xf32>
    %125 = math.exp %124 : vector<8x128xf32>
    %cst_44 = arith.constant 1.000000e+00 : f32
    %126 = vector.broadcast %cst_44 : f32 to vector<8x128xf32>
    %127 = arith.addf %126, %125 : vector<8x128xf32>
    %128 = arith.divf %126, %127 : vector<8x128xf32>
    %129 = arith.mulf %120, %67 : vector<8x128xf32>
    %130 = arith.mulf %114, %122 : vector<8x128xf32>
    %131 = arith.addf %129, %130 : vector<8x128xf32>
    %132 = math.tanh %131 : vector<8x128xf32>
    %133 = arith.mulf %128, %132 : vector<8x128xf32>
    %c6_45 = arith.constant 6 : index
    %c0_46 = arith.constant 0 : index
    %c0_47 = arith.constant 0 : index
    %134 = vector.load %arg6[%c6_45, %c0_46, %c0_47] : memref<8x8x128xf32, #tpu.memory_space<vmem>>, vector<1x8x128xf32>
    %135 = vector.shape_cast %134 : vector<1x8x128xf32> to vector<8x128xf32>
    %136 = vector.shape_cast %133 : vector<8x128xf32> to vector<1x8x128xf32>
    tpu.vector_store %arg6[%c6_45, %c0_46, %c0_47], %136 {strides = array<i32>} : memref<8x8x128xf32, #tpu.memory_space<vmem>>, vector<1x8x128xf32>,
    %c2 = arith.constant 2 : index
    %c0_48 = arith.constant 0 : index
    %c0_49 = arith.constant 0 : index
    %137 = vector.load %arg1[%c2, %c0_48, %c0_49] : memref<8x8x512xf32, #tpu.memory_space<vmem>>, vector<1x8x512xf32>
    %138 = vector.shape_cast %137 : vector<1x8x512xf32> to vector<8x512xf32>
    %cst_50 = arith.constant dense<0.000000e+00> : vector<8x512xf32>
    %139 = tpu.matmul %101, %3, %cst_50 {dimension_numbers = #tpu.dot_dimension_numbers<[1], [0], [0], [1], [0, 0, 1, 1], [], []>} : vector<8x128xf32>, vector<128x512xf32>, vector<8x512xf32> -> vector<8x512xf32>
    %140 = arith.addf %138, %139 : vector<8x512xf32>
    %141 = vector.extract_strided_slice %140 {offsets = [0, 0], sizes = [8, 128], strides = [1, 1]} : vector<8x512xf32> to vector<8x128xf32>
    %142 = arith.negf %141 : vector<8x128xf32>
    %143 = math.exp %142 : vector<8x128xf32>
    %cst_51 = arith.constant 1.000000e+00 : f32
    %144 = vector.broadcast %cst_51 : f32 to vector<8x128xf32>
    %145 = arith.addf %144, %143 : vector<8x128xf32>
    %146 = arith.divf %144, %145 : vector<8x128xf32>
    %147 = vector.extract_strided_slice %140 {offsets = [0, 128], sizes = [8, 128], strides = [1, 1]} : vector<8x512xf32> to vector<8x128xf32>
    %148 = arith.negf %147 : vector<8x128xf32>
    %149 = math.exp %148 : vector<8x128xf32>
    %cst_52 = arith.constant 1.000000e+00 : f32
    %150 = vector.broadcast %cst_52 : f32 to vector<8x128xf32>
    %151 = arith.addf %150, %149 : vector<8x128xf32>
    %152 = arith.divf %150, %151 : vector<8x128xf32>
    %153 = vector.extract_strided_slice %140 {offsets = [0, 256], sizes = [8, 128], strides = [1, 1]} : vector<8x512xf32> to vector<8x128xf32>
    %154 = math.tanh %153 : vector<8x128xf32>
    %155 = vector.extract_strided_slice %140 {offsets = [0, 384], sizes = [8, 128], strides = [1, 1]} : vector<8x512xf32> to vector<8x128xf32>
    %156 = arith.negf %155 : vector<8x128xf32>
    %157 = math.exp %156 : vector<8x128xf32>
    %cst_53 = arith.constant 1.000000e+00 : f32
    %158 = vector.broadcast %cst_53 : f32 to vector<8x128xf32>
    %159 = arith.addf %158, %157 : vector<8x128xf32>
    %160 = arith.divf %158, %159 : vector<8x128xf32>
    %161 = arith.mulf %152, %99 : vector<8x128xf32>
    %162 = arith.mulf %146, %154 : vector<8x128xf32>
    %163 = arith.addf %161, %162 : vector<8x128xf32>
    %164 = math.tanh %163 : vector<8x128xf32>
    %165 = arith.mulf %160, %164 : vector<8x128xf32>
    %c2_54 = arith.constant 2 : index
    %c0_55 = arith.constant 0 : index
    %c0_56 = arith.constant 0 : index
    %166 = vector.load %arg5[%c2_54, %c0_55, %c0_56] : memref<8x8x128xf32, #tpu.memory_space<vmem>>, vector<1x8x128xf32>
    %167 = vector.shape_cast %166 : vector<1x8x128xf32> to vector<8x128xf32>
    %168 = vector.shape_cast %165 : vector<8x128xf32> to vector<1x8x128xf32>
    tpu.vector_store %arg5[%c2_54, %c0_55, %c0_56], %168 {strides = array<i32>} : memref<8x8x128xf32, #tpu.memory_space<vmem>>, vector<1x8x128xf32>,
    %c5 = arith.constant 5 : index
    %c0_57 = arith.constant 0 : index
    %c0_58 = arith.constant 0 : index
    %169 = vector.load %arg2[%c5, %c0_57, %c0_58] : memref<8x8x512xf32, #tpu.memory_space<vmem>>, vector<1x8x512xf32>
    %170 = vector.shape_cast %169 : vector<1x8x512xf32> to vector<8x512xf32>
    %cst_59 = arith.constant dense<0.000000e+00> : vector<8x512xf32>
    %171 = tpu.matmul %133, %4, %cst_59 {dimension_numbers = #tpu.dot_dimension_numbers<[1], [0], [0], [1], [0, 0, 1, 1], [], []>} : vector<8x128xf32>, vector<128x512xf32>, vector<8x512xf32> -> vector<8x512xf32>
    %172 = arith.addf %170, %171 : vector<8x512xf32>
    %173 = vector.extract_strided_slice %172 {offsets = [0, 0], sizes = [8, 128], strides = [1, 1]} : vector<8x512xf32> to vector<8x128xf32>
    %174 = arith.negf %173 : vector<8x128xf32>
    %175 = math.exp %174 : vector<8x128xf32>
    %cst_60 = arith.constant 1.000000e+00 : f32
    %176 = vector.broadcast %cst_60 : f32 to vector<8x128xf32>
    %177 = arith.addf %176, %175 : vector<8x128xf32>
    %178 = arith.divf %176, %177 : vector<8x128xf32>
    %179 = vector.extract_strided_slice %172 {offsets = [0, 128], sizes = [8, 128], strides = [1, 1]} : vector<8x512xf32> to vector<8x128xf32>
    %180 = arith.negf %179 : vector<8x128xf32>
    %181 = math.exp %180 : vector<8x128xf32>
    %cst_61 = arith.constant 1.000000e+00 : f32
    %182 = vector.broadcast %cst_61 : f32 to vector<8x128xf32>
    %183 = arith.addf %182, %181 : vector<8x128xf32>
    %184 = arith.divf %182, %183 : vector<8x128xf32>
    %185 = vector.extract_strided_slice %172 {offsets = [0, 256], sizes = [8, 128], strides = [1, 1]} : vector<8x512xf32> to vector<8x128xf32>
    %186 = math.tanh %185 : vector<8x128xf32>
    %187 = vector.extract_strided_slice %172 {offsets = [0, 384], sizes = [8, 128], strides = [1, 1]} : vector<8x512xf32> to vector<8x128xf32>
    %188 = arith.negf %187 : vector<8x128xf32>
    %189 = math.exp %188 : vector<8x128xf32>
    %cst_62 = arith.constant 1.000000e+00 : f32
    %190 = vector.broadcast %cst_62 : f32 to vector<8x128xf32>
    %191 = arith.addf %190, %189 : vector<8x128xf32>
    %192 = arith.divf %190, %191 : vector<8x128xf32>
    %193 = arith.mulf %184, %131 : vector<8x128xf32>
    %194 = arith.mulf %178, %186 : vector<8x128xf32>
    %195 = arith.addf %193, %194 : vector<8x128xf32>
    %196 = math.tanh %195 : vector<8x128xf32>
    %197 = arith.mulf %192, %196 : vector<8x128xf32>
    %c5_63 = arith.constant 5 : index
    %c0_64 = arith.constant 0 : index
    %c0_65 = arith.constant 0 : index
    %198 = vector.load %arg6[%c5_63, %c0_64, %c0_65] : memref<8x8x128xf32, #tpu.memory_space<vmem>>, vector<1x8x128xf32>
    %199 = vector.shape_cast %198 : vector<1x8x128xf32> to vector<8x128xf32>
    %200 = vector.shape_cast %197 : vector<8x128xf32> to vector<1x8x128xf32>
    tpu.vector_store %arg6[%c5_63, %c0_64, %c0_65], %200 {strides = array<i32>} : memref<8x8x128xf32, #tpu.memory_space<vmem>>, vector<1x8x128xf32>,
    %c3 = arith.constant 3 : index
    %c0_66 = arith.constant 0 : index
    %c0_67 = arith.constant 0 : index
    %201 = vector.load %arg1[%c3, %c0_66, %c0_67] : memref<8x8x512xf32, #tpu.memory_space<vmem>>, vector<1x8x512xf32>
    %202 = vector.shape_cast %201 : vector<1x8x512xf32> to vector<8x512xf32>
    %cst_68 = arith.constant dense<0.000000e+00> : vector<8x512xf32>
    %203 = tpu.matmul %165, %3, %cst_68 {dimension_numbers = #tpu.dot_dimension_numbers<[1], [0], [0], [1], [0, 0, 1, 1], [], []>} : vector<8x128xf32>, vector<128x512xf32>, vector<8x512xf32> -> vector<8x512xf32>
    %204 = arith.addf %202, %203 : vector<8x512xf32>
    %205 = vector.extract_strided_slice %204 {offsets = [0, 0], sizes = [8, 128], strides = [1, 1]} : vector<8x512xf32> to vector<8x128xf32>
    %206 = arith.negf %205 : vector<8x128xf32>
    %207 = math.exp %206 : vector<8x128xf32>
    %cst_69 = arith.constant 1.000000e+00 : f32
    %208 = vector.broadcast %cst_69 : f32 to vector<8x128xf32>
    %209 = arith.addf %208, %207 : vector<8x128xf32>
    %210 = arith.divf %208, %209 : vector<8x128xf32>
    %211 = vector.extract_strided_slice %204 {offsets = [0, 128], sizes = [8, 128], strides = [1, 1]} : vector<8x512xf32> to vector<8x128xf32>
    %212 = arith.negf %211 : vector<8x128xf32>
    %213 = math.exp %212 : vector<8x128xf32>
    %cst_70 = arith.constant 1.000000e+00 : f32
    %214 = vector.broadcast %cst_70 : f32 to vector<8x128xf32>
    %215 = arith.addf %214, %213 : vector<8x128xf32>
    %216 = arith.divf %214, %215 : vector<8x128xf32>
    %217 = vector.extract_strided_slice %204 {offsets = [0, 256], sizes = [8, 128], strides = [1, 1]} : vector<8x512xf32> to vector<8x128xf32>
    %218 = math.tanh %217 : vector<8x128xf32>
    %219 = vector.extract_strided_slice %204 {offsets = [0, 384], sizes = [8, 128], strides = [1, 1]} : vector<8x512xf32> to vector<8x128xf32>
    %220 = arith.negf %219 : vector<8x128xf32>
    %221 = math.exp %220 : vector<8x128xf32>
    %cst_71 = arith.constant 1.000000e+00 : f32
    %222 = vector.broadcast %cst_71 : f32 to vector<8x128xf32>
    %223 = arith.addf %222, %221 : vector<8x128xf32>
    %224 = arith.divf %222, %223 : vector<8x128xf32>
    %225 = arith.mulf %216, %163 : vector<8x128xf32>
    %226 = arith.mulf %210, %218 : vector<8x128xf32>
    %227 = arith.addf %225, %226 : vector<8x128xf32>
    %228 = math.tanh %227 : vector<8x128xf32>
    %229 = arith.mulf %224, %228 : vector<8x128xf32>
    %c3_72 = arith.constant 3 : index
    %c0_73 = arith.constant 0 : index
    %c0_74 = arith.constant 0 : index
    %230 = vector.load %arg5[%c3_72, %c0_73, %c0_74] : memref<8x8x128xf32, #tpu.memory_space<vmem>>, vector<1x8x128xf32>
    %231 = vector.shape_cast %230 : vector<1x8x128xf32> to vector<8x128xf32>
    %232 = vector.shape_cast %229 : vector<8x128xf32> to vector<1x8x128xf32>
    tpu.vector_store %arg5[%c3_72, %c0_73, %c0_74], %232 {strides = array<i32>} : memref<8x8x128xf32, #tpu.memory_space<vmem>>, vector<1x8x128xf32>,
    %c4 = arith.constant 4 : index
    %c0_75 = arith.constant 0 : index
    %c0_76 = arith.constant 0 : index
    %233 = vector.load %arg2[%c4, %c0_75, %c0_76] : memref<8x8x512xf32, #tpu.memory_space<vmem>>, vector<1x8x512xf32>
    %234 = vector.shape_cast %233 : vector<1x8x512xf32> to vector<8x512xf32>
    %cst_77 = arith.constant dense<0.000000e+00> : vector<8x512xf32>
    %235 = tpu.matmul %197, %4, %cst_77 {dimension_numbers = #tpu.dot_dimension_numbers<[1], [0], [0], [1], [0, 0, 1, 1], [], []>} : vector<8x128xf32>, vector<128x512xf32>, vector<8x512xf32> -> vector<8x512xf32>
    %236 = arith.addf %234, %235 : vector<8x512xf32>
    %237 = vector.extract_strided_slice %236 {offsets = [0, 0], sizes = [8, 128], strides = [1, 1]} : vector<8x512xf32> to vector<8x128xf32>
    %238 = arith.negf %237 : vector<8x128xf32>
    %239 = math.exp %238 : vector<8x128xf32>
    %cst_78 = arith.constant 1.000000e+00 : f32
    %240 = vector.broadcast %cst_78 : f32 to vector<8x128xf32>
    %241 = arith.addf %240, %239 : vector<8x128xf32>
    %242 = arith.divf %240, %241 : vector<8x128xf32>
    %243 = vector.extract_strided_slice %236 {offsets = [0, 128], sizes = [8, 128], strides = [1, 1]} : vector<8x512xf32> to vector<8x128xf32>
    %244 = arith.negf %243 : vector<8x128xf32>
    %245 = math.exp %244 : vector<8x128xf32>
    %cst_79 = arith.constant 1.000000e+00 : f32
    %246 = vector.broadcast %cst_79 : f32 to vector<8x128xf32>
    %247 = arith.addf %246, %245 : vector<8x128xf32>
    %248 = arith.divf %246, %247 : vector<8x128xf32>
    %249 = vector.extract_strided_slice %236 {offsets = [0, 256], sizes = [8, 128], strides = [1, 1]} : vector<8x512xf32> to vector<8x128xf32>
    %250 = math.tanh %249 : vector<8x128xf32>
    %251 = vector.extract_strided_slice %236 {offsets = [0, 384], sizes = [8, 128], strides = [1, 1]} : vector<8x512xf32> to vector<8x128xf32>
    %252 = arith.negf %251 : vector<8x128xf32>
    %253 = math.exp %252 : vector<8x128xf32>
    %cst_80 = arith.constant 1.000000e+00 : f32
    %254 = vector.broadcast %cst_80 : f32 to vector<8x128xf32>
    %255 = arith.addf %254, %253 : vector<8x128xf32>
    %256 = arith.divf %254, %255 : vector<8x128xf32>
    %257 = arith.mulf %248, %195 : vector<8x128xf32>
    %258 = arith.mulf %242, %250 : vector<8x128xf32>
    %259 = arith.addf %257, %258 : vector<8x128xf32>
    %260 = math.tanh %259 : vector<8x128xf32>
    %261 = arith.mulf %256, %260 : vector<8x128xf32>
    %c4_81 = arith.constant 4 : index
    %c0_82 = arith.constant 0 : index
    %c0_83 = arith.constant 0 : index
    %262 = vector.load %arg6[%c4_81, %c0_82, %c0_83] : memref<8x8x128xf32, #tpu.memory_space<vmem>>, vector<1x8x128xf32>
    %263 = vector.shape_cast %262 : vector<1x8x128xf32> to vector<8x128xf32>
    %264 = vector.shape_cast %261 : vector<8x128xf32> to vector<1x8x128xf32>
    tpu.vector_store %arg6[%c4_81, %c0_82, %c0_83], %264 {strides = array<i32>} : memref<8x8x128xf32, #tpu.memory_space<vmem>>, vector<1x8x128xf32>,
    %c4_84 = arith.constant 4 : index
    %c0_85 = arith.constant 0 : index
    %c0_86 = arith.constant 0 : index
    %265 = vector.load %arg1[%c4_84, %c0_85, %c0_86] : memref<8x8x512xf32, #tpu.memory_space<vmem>>, vector<1x8x512xf32>
    %266 = vector.shape_cast %265 : vector<1x8x512xf32> to vector<8x512xf32>
    %cst_87 = arith.constant dense<0.000000e+00> : vector<8x512xf32>
    %267 = tpu.matmul %229, %3, %cst_87 {dimension_numbers = #tpu.dot_dimension_numbers<[1], [0], [0], [1], [0, 0, 1, 1], [], []>} : vector<8x128xf32>, vector<128x512xf32>, vector<8x512xf32> -> vector<8x512xf32>
    %268 = arith.addf %266, %267 : vector<8x512xf32>
    %269 = vector.extract_strided_slice %268 {offsets = [0, 0], sizes = [8, 128], strides = [1, 1]} : vector<8x512xf32> to vector<8x128xf32>
    %270 = arith.negf %269 : vector<8x128xf32>
    %271 = math.exp %270 : vector<8x128xf32>
    %cst_88 = arith.constant 1.000000e+00 : f32
    %272 = vector.broadcast %cst_88 : f32 to vector<8x128xf32>
    %273 = arith.addf %272, %271 : vector<8x128xf32>
    %274 = arith.divf %272, %273 : vector<8x128xf32>
    %275 = vector.extract_strided_slice %268 {offsets = [0, 128], sizes = [8, 128], strides = [1, 1]} : vector<8x512xf32> to vector<8x128xf32>
    %276 = arith.negf %275 : vector<8x128xf32>
    %277 = math.exp %276 : vector<8x128xf32>
    %cst_89 = arith.constant 1.000000e+00 : f32
    %278 = vector.broadcast %cst_89 : f32 to vector<8x128xf32>
    %279 = arith.addf %278, %277 : vector<8x128xf32>
    %280 = arith.divf %278, %279 : vector<8x128xf32>
    %281 = vector.extract_strided_slice %268 {offsets = [0, 256], sizes = [8, 128], strides = [1, 1]} : vector<8x512xf32> to vector<8x128xf32>
    %282 = math.tanh %281 : vector<8x128xf32>
    %283 = vector.extract_strided_slice %268 {offsets = [0, 384], sizes = [8, 128], strides = [1, 1]} : vector<8x512xf32> to vector<8x128xf32>
    %284 = arith.negf %283 : vector<8x128xf32>
    %285 = math.exp %284 : vector<8x128xf32>
    %cst_90 = arith.constant 1.000000e+00 : f32
    %286 = vector.broadcast %cst_90 : f32 to vector<8x128xf32>
    %287 = arith.addf %286, %285 : vector<8x128xf32>
    %288 = arith.divf %286, %287 : vector<8x128xf32>
    %289 = arith.mulf %280, %227 : vector<8x128xf32>
    %290 = arith.mulf %274, %282 : vector<8x128xf32>
    %291 = arith.addf %289, %290 : vector<8x128xf32>
    %292 = math.tanh %291 : vector<8x128xf32>
    %293 = arith.mulf %288, %292 : vector<8x128xf32>
    %c4_91 = arith.constant 4 : index
    %c0_92 = arith.constant 0 : index
    %c0_93 = arith.constant 0 : index
    %294 = vector.load %arg5[%c4_91, %c0_92, %c0_93] : memref<8x8x128xf32, #tpu.memory_space<vmem>>, vector<1x8x128xf32>
    %295 = vector.shape_cast %294 : vector<1x8x128xf32> to vector<8x128xf32>
    %296 = vector.shape_cast %293 : vector<8x128xf32> to vector<1x8x128xf32>
    tpu.vector_store %arg5[%c4_91, %c0_92, %c0_93], %296 {strides = array<i32>} : memref<8x8x128xf32, #tpu.memory_space<vmem>>, vector<1x8x128xf32>,
    %c3_94 = arith.constant 3 : index
    %c0_95 = arith.constant 0 : index
    %c0_96 = arith.constant 0 : index
    %297 = vector.load %arg2[%c3_94, %c0_95, %c0_96] : memref<8x8x512xf32, #tpu.memory_space<vmem>>, vector<1x8x512xf32>
    %298 = vector.shape_cast %297 : vector<1x8x512xf32> to vector<8x512xf32>
    %cst_97 = arith.constant dense<0.000000e+00> : vector<8x512xf32>
    %299 = tpu.matmul %261, %4, %cst_97 {dimension_numbers = #tpu.dot_dimension_numbers<[1], [0], [0], [1], [0, 0, 1, 1], [], []>} : vector<8x128xf32>, vector<128x512xf32>, vector<8x512xf32> -> vector<8x512xf32>
    %300 = arith.addf %298, %299 : vector<8x512xf32>
    %301 = vector.extract_strided_slice %300 {offsets = [0, 0], sizes = [8, 128], strides = [1, 1]} : vector<8x512xf32> to vector<8x128xf32>
    %302 = arith.negf %301 : vector<8x128xf32>
    %303 = math.exp %302 : vector<8x128xf32>
    %cst_98 = arith.constant 1.000000e+00 : f32
    %304 = vector.broadcast %cst_98 : f32 to vector<8x128xf32>
    %305 = arith.addf %304, %303 : vector<8x128xf32>
    %306 = arith.divf %304, %305 : vector<8x128xf32>
    %307 = vector.extract_strided_slice %300 {offsets = [0, 128], sizes = [8, 128], strides = [1, 1]} : vector<8x512xf32> to vector<8x128xf32>
    %308 = arith.negf %307 : vector<8x128xf32>
    %309 = math.exp %308 : vector<8x128xf32>
    %cst_99 = arith.constant 1.000000e+00 : f32
    %310 = vector.broadcast %cst_99 : f32 to vector<8x128xf32>
    %311 = arith.addf %310, %309 : vector<8x128xf32>
    %312 = arith.divf %310, %311 : vector<8x128xf32>
    %313 = vector.extract_strided_slice %300 {offsets = [0, 256], sizes = [8, 128], strides = [1, 1]} : vector<8x512xf32> to vector<8x128xf32>
    %314 = math.tanh %313 : vector<8x128xf32>
    %315 = vector.extract_strided_slice %300 {offsets = [0, 384], sizes = [8, 128], strides = [1, 1]} : vector<8x512xf32> to vector<8x128xf32>
    %316 = arith.negf %315 : vector<8x128xf32>
    %317 = math.exp %316 : vector<8x128xf32>
    %cst_100 = arith.constant 1.000000e+00 : f32
    %318 = vector.broadcast %cst_100 : f32 to vector<8x128xf32>
    %319 = arith.addf %318, %317 : vector<8x128xf32>
    %320 = arith.divf %318, %319 : vector<8x128xf32>
    %321 = arith.mulf %312, %259 : vector<8x128xf32>
    %322 = arith.mulf %306, %314 : vector<8x128xf32>
    %323 = arith.addf %321, %322 : vector<8x128xf32>
    %324 = math.tanh %323 : vector<8x128xf32>
    %325 = arith.mulf %320, %324 : vector<8x128xf32>
    %c3_101 = arith.constant 3 : index
    %c0_102 = arith.constant 0 : index
    %c0_103 = arith.constant 0 : index
    %326 = vector.load %arg6[%c3_101, %c0_102, %c0_103] : memref<8x8x128xf32, #tpu.memory_space<vmem>>, vector<1x8x128xf32>
    %327 = vector.shape_cast %326 : vector<1x8x128xf32> to vector<8x128xf32>
    %328 = vector.shape_cast %325 : vector<8x128xf32> to vector<1x8x128xf32>
    tpu.vector_store %arg6[%c3_101, %c0_102, %c0_103], %328 {strides = array<i32>} : memref<8x8x128xf32, #tpu.memory_space<vmem>>, vector<1x8x128xf32>,
    %c5_104 = arith.constant 5 : index
    %c0_105 = arith.constant 0 : index
    %c0_106 = arith.constant 0 : index
    %329 = vector.load %arg1[%c5_104, %c0_105, %c0_106] : memref<8x8x512xf32, #tpu.memory_space<vmem>>, vector<1x8x512xf32>
    %330 = vector.shape_cast %329 : vector<1x8x512xf32> to vector<8x512xf32>
    %cst_107 = arith.constant dense<0.000000e+00> : vector<8x512xf32>
    %331 = tpu.matmul %293, %3, %cst_107 {dimension_numbers = #tpu.dot_dimension_numbers<[1], [0], [0], [1], [0, 0, 1, 1], [], []>} : vector<8x128xf32>, vector<128x512xf32>, vector<8x512xf32> -> vector<8x512xf32>
    %332 = arith.addf %330, %331 : vector<8x512xf32>
    %333 = vector.extract_strided_slice %332 {offsets = [0, 0], sizes = [8, 128], strides = [1, 1]} : vector<8x512xf32> to vector<8x128xf32>
    %334 = arith.negf %333 : vector<8x128xf32>
    %335 = math.exp %334 : vector<8x128xf32>
    %cst_108 = arith.constant 1.000000e+00 : f32
    %336 = vector.broadcast %cst_108 : f32 to vector<8x128xf32>
    %337 = arith.addf %336, %335 : vector<8x128xf32>
    %338 = arith.divf %336, %337 : vector<8x128xf32>
    %339 = vector.extract_strided_slice %332 {offsets = [0, 128], sizes = [8, 128], strides = [1, 1]} : vector<8x512xf32> to vector<8x128xf32>
    %340 = arith.negf %339 : vector<8x128xf32>
    %341 = math.exp %340 : vector<8x128xf32>
    %cst_109 = arith.constant 1.000000e+00 : f32
    %342 = vector.broadcast %cst_109 : f32 to vector<8x128xf32>
    %343 = arith.addf %342, %341 : vector<8x128xf32>
    %344 = arith.divf %342, %343 : vector<8x128xf32>
    %345 = vector.extract_strided_slice %332 {offsets = [0, 256], sizes = [8, 128], strides = [1, 1]} : vector<8x512xf32> to vector<8x128xf32>
    %346 = math.tanh %345 : vector<8x128xf32>
    %347 = vector.extract_strided_slice %332 {offsets = [0, 384], sizes = [8, 128], strides = [1, 1]} : vector<8x512xf32> to vector<8x128xf32>
    %348 = arith.negf %347 : vector<8x128xf32>
    %349 = math.exp %348 : vector<8x128xf32>
    %cst_110 = arith.constant 1.000000e+00 : f32
    %350 = vector.broadcast %cst_110 : f32 to vector<8x128xf32>
    %351 = arith.addf %350, %349 : vector<8x128xf32>
    %352 = arith.divf %350, %351 : vector<8x128xf32>
    %353 = arith.mulf %344, %291 : vector<8x128xf32>
    %354 = arith.mulf %338, %346 : vector<8x128xf32>
    %355 = arith.addf %353, %354 : vector<8x128xf32>
    %356 = math.tanh %355 : vector<8x128xf32>
    %357 = arith.mulf %352, %356 : vector<8x128xf32>
    %c5_111 = arith.constant 5 : index
    %c0_112 = arith.constant 0 : index
    %c0_113 = arith.constant 0 : index
    %358 = vector.load %arg5[%c5_111, %c0_112, %c0_113] : memref<8x8x128xf32, #tpu.memory_space<vmem>>, vector<1x8x128xf32>
    %359 = vector.shape_cast %358 : vector<1x8x128xf32> to vector<8x128xf32>
    %360 = vector.shape_cast %357 : vector<8x128xf32> to vector<1x8x128xf32>
    tpu.vector_store %arg5[%c5_111, %c0_112, %c0_113], %360 {strides = array<i32>} : memref<8x8x128xf32, #tpu.memory_space<vmem>>, vector<1x8x128xf32>,
    %c2_114 = arith.constant 2 : index
    %c0_115 = arith.constant 0 : index
    %c0_116 = arith.constant 0 : index
    %361 = vector.load %arg2[%c2_114, %c0_115, %c0_116] : memref<8x8x512xf32, #tpu.memory_space<vmem>>, vector<1x8x512xf32>
    %362 = vector.shape_cast %361 : vector<1x8x512xf32> to vector<8x512xf32>
    %cst_117 = arith.constant dense<0.000000e+00> : vector<8x512xf32>
    %363 = tpu.matmul %325, %4, %cst_117 {dimension_numbers = #tpu.dot_dimension_numbers<[1], [0], [0], [1], [0, 0, 1, 1], [], []>} : vector<8x128xf32>, vector<128x512xf32>, vector<8x512xf32> -> vector<8x512xf32>
    %364 = arith.addf %362, %363 : vector<8x512xf32>
    %365 = vector.extract_strided_slice %364 {offsets = [0, 0], sizes = [8, 128], strides = [1, 1]} : vector<8x512xf32> to vector<8x128xf32>
    %366 = arith.negf %365 : vector<8x128xf32>
    %367 = math.exp %366 : vector<8x128xf32>
    %cst_118 = arith.constant 1.000000e+00 : f32
    %368 = vector.broadcast %cst_118 : f32 to vector<8x128xf32>
    %369 = arith.addf %368, %367 : vector<8x128xf32>
    %370 = arith.divf %368, %369 : vector<8x128xf32>
    %371 = vector.extract_strided_slice %364 {offsets = [0, 128], sizes = [8, 128], strides = [1, 1]} : vector<8x512xf32> to vector<8x128xf32>
    %372 = arith.negf %371 : vector<8x128xf32>
    %373 = math.exp %372 : vector<8x128xf32>
    %cst_119 = arith.constant 1.000000e+00 : f32
    %374 = vector.broadcast %cst_119 : f32 to vector<8x128xf32>
    %375 = arith.addf %374, %373 : vector<8x128xf32>
    %376 = arith.divf %374, %375 : vector<8x128xf32>
    %377 = vector.extract_strided_slice %364 {offsets = [0, 256], sizes = [8, 128], strides = [1, 1]} : vector<8x512xf32> to vector<8x128xf32>
    %378 = math.tanh %377 : vector<8x128xf32>
    %379 = vector.extract_strided_slice %364 {offsets = [0, 384], sizes = [8, 128], strides = [1, 1]} : vector<8x512xf32> to vector<8x128xf32>
    %380 = arith.negf %379 : vector<8x128xf32>
    %381 = math.exp %380 : vector<8x128xf32>
    %cst_120 = arith.constant 1.000000e+00 : f32
    %382 = vector.broadcast %cst_120 : f32 to vector<8x128xf32>
    %383 = arith.addf %382, %381 : vector<8x128xf32>
    %384 = arith.divf %382, %383 : vector<8x128xf32>
    %385 = arith.mulf %376, %323 : vector<8x128xf32>
    %386 = arith.mulf %370, %378 : vector<8x128xf32>
    %387 = arith.addf %385, %386 : vector<8x128xf32>
    %388 = math.tanh %387 : vector<8x128xf32>
    %389 = arith.mulf %384, %388 : vector<8x128xf32>
    %c2_121 = arith.constant 2 : index
    %c0_122 = arith.constant 0 : index
    %c0_123 = arith.constant 0 : index
    %390 = vector.load %arg6[%c2_121, %c0_122, %c0_123] : memref<8x8x128xf32, #tpu.memory_space<vmem>>, vector<1x8x128xf32>
    %391 = vector.shape_cast %390 : vector<1x8x128xf32> to vector<8x128xf32>
    %392 = vector.shape_cast %389 : vector<8x128xf32> to vector<1x8x128xf32>
    tpu.vector_store %arg6[%c2_121, %c0_122, %c0_123], %392 {strides = array<i32>} : memref<8x8x128xf32, #tpu.memory_space<vmem>>, vector<1x8x128xf32>,
    %c6_124 = arith.constant 6 : index
    %c0_125 = arith.constant 0 : index
    %c0_126 = arith.constant 0 : index
    %393 = vector.load %arg1[%c6_124, %c0_125, %c0_126] : memref<8x8x512xf32, #tpu.memory_space<vmem>>, vector<1x8x512xf32>
    %394 = vector.shape_cast %393 : vector<1x8x512xf32> to vector<8x512xf32>
    %cst_127 = arith.constant dense<0.000000e+00> : vector<8x512xf32>
    %395 = tpu.matmul %357, %3, %cst_127 {dimension_numbers = #tpu.dot_dimension_numbers<[1], [0], [0], [1], [0, 0, 1, 1], [], []>} : vector<8x128xf32>, vector<128x512xf32>, vector<8x512xf32> -> vector<8x512xf32>
    %396 = arith.addf %394, %395 : vector<8x512xf32>
    %397 = vector.extract_strided_slice %396 {offsets = [0, 0], sizes = [8, 128], strides = [1, 1]} : vector<8x512xf32> to vector<8x128xf32>
    %398 = arith.negf %397 : vector<8x128xf32>
    %399 = math.exp %398 : vector<8x128xf32>
    %cst_128 = arith.constant 1.000000e+00 : f32
    %400 = vector.broadcast %cst_128 : f32 to vector<8x128xf32>
    %401 = arith.addf %400, %399 : vector<8x128xf32>
    %402 = arith.divf %400, %401 : vector<8x128xf32>
    %403 = vector.extract_strided_slice %396 {offsets = [0, 128], sizes = [8, 128], strides = [1, 1]} : vector<8x512xf32> to vector<8x128xf32>
    %404 = arith.negf %403 : vector<8x128xf32>
    %405 = math.exp %404 : vector<8x128xf32>
    %cst_129 = arith.constant 1.000000e+00 : f32
    %406 = vector.broadcast %cst_129 : f32 to vector<8x128xf32>
    %407 = arith.addf %406, %405 : vector<8x128xf32>
    %408 = arith.divf %406, %407 : vector<8x128xf32>
    %409 = vector.extract_strided_slice %396 {offsets = [0, 256], sizes = [8, 128], strides = [1, 1]} : vector<8x512xf32> to vector<8x128xf32>
    %410 = math.tanh %409 : vector<8x128xf32>
    %411 = vector.extract_strided_slice %396 {offsets = [0, 384], sizes = [8, 128], strides = [1, 1]} : vector<8x512xf32> to vector<8x128xf32>
    %412 = arith.negf %411 : vector<8x128xf32>
    %413 = math.exp %412 : vector<8x128xf32>
    %cst_130 = arith.constant 1.000000e+00 : f32
    %414 = vector.broadcast %cst_130 : f32 to vector<8x128xf32>
    %415 = arith.addf %414, %413 : vector<8x128xf32>
    %416 = arith.divf %414, %415 : vector<8x128xf32>
    %417 = arith.mulf %408, %355 : vector<8x128xf32>
    %418 = arith.mulf %402, %410 : vector<8x128xf32>
    %419 = arith.addf %417, %418 : vector<8x128xf32>
    %420 = math.tanh %419 : vector<8x128xf32>
    %421 = arith.mulf %416, %420 : vector<8x128xf32>
    %c6_131 = arith.constant 6 : index
    %c0_132 = arith.constant 0 : index
    %c0_133 = arith.constant 0 : index
    %422 = vector.load %arg5[%c6_131, %c0_132, %c0_133] : memref<8x8x128xf32, #tpu.memory_space<vmem>>, vector<1x8x128xf32>
    %423 = vector.shape_cast %422 : vector<1x8x128xf32> to vector<8x128xf32>
    %424 = vector.shape_cast %421 : vector<8x128xf32> to vector<1x8x128xf32>
    tpu.vector_store %arg5[%c6_131, %c0_132, %c0_133], %424 {strides = array<i32>} : memref<8x8x128xf32, #tpu.memory_space<vmem>>, vector<1x8x128xf32>,
    %c1_134 = arith.constant 1 : index
    %c0_135 = arith.constant 0 : index
    %c0_136 = arith.constant 0 : index
    %425 = vector.load %arg2[%c1_134, %c0_135, %c0_136] : memref<8x8x512xf32, #tpu.memory_space<vmem>>, vector<1x8x512xf32>
    %426 = vector.shape_cast %425 : vector<1x8x512xf32> to vector<8x512xf32>
    %cst_137 = arith.constant dense<0.000000e+00> : vector<8x512xf32>
    %427 = tpu.matmul %389, %4, %cst_137 {dimension_numbers = #tpu.dot_dimension_numbers<[1], [0], [0], [1], [0, 0, 1, 1], [], []>} : vector<8x128xf32>, vector<128x512xf32>, vector<8x512xf32> -> vector<8x512xf32>
    %428 = arith.addf %426, %427 : vector<8x512xf32>
    %429 = vector.extract_strided_slice %428 {offsets = [0, 0], sizes = [8, 128], strides = [1, 1]} : vector<8x512xf32> to vector<8x128xf32>
    %430 = arith.negf %429 : vector<8x128xf32>
    %431 = math.exp %430 : vector<8x128xf32>
    %cst_138 = arith.constant 1.000000e+00 : f32
    %432 = vector.broadcast %cst_138 : f32 to vector<8x128xf32>
    %433 = arith.addf %432, %431 : vector<8x128xf32>
    %434 = arith.divf %432, %433 : vector<8x128xf32>
    %435 = vector.extract_strided_slice %428 {offsets = [0, 128], sizes = [8, 128], strides = [1, 1]} : vector<8x512xf32> to vector<8x128xf32>
    %436 = arith.negf %435 : vector<8x128xf32>
    %437 = math.exp %436 : vector<8x128xf32>
    %cst_139 = arith.constant 1.000000e+00 : f32
    %438 = vector.broadcast %cst_139 : f32 to vector<8x128xf32>
    %439 = arith.addf %438, %437 : vector<8x128xf32>
    %440 = arith.divf %438, %439 : vector<8x128xf32>
    %441 = vector.extract_strided_slice %428 {offsets = [0, 256], sizes = [8, 128], strides = [1, 1]} : vector<8x512xf32> to vector<8x128xf32>
    %442 = math.tanh %441 : vector<8x128xf32>
    %443 = vector.extract_strided_slice %428 {offsets = [0, 384], sizes = [8, 128], strides = [1, 1]} : vector<8x512xf32> to vector<8x128xf32>
    %444 = arith.negf %443 : vector<8x128xf32>
    %445 = math.exp %444 : vector<8x128xf32>
    %cst_140 = arith.constant 1.000000e+00 : f32
    %446 = vector.broadcast %cst_140 : f32 to vector<8x128xf32>
    %447 = arith.addf %446, %445 : vector<8x128xf32>
    %448 = arith.divf %446, %447 : vector<8x128xf32>
    %449 = arith.mulf %440, %387 : vector<8x128xf32>
    %450 = arith.mulf %434, %442 : vector<8x128xf32>
    %451 = arith.addf %449, %450 : vector<8x128xf32>
    %452 = math.tanh %451 : vector<8x128xf32>
    %453 = arith.mulf %448, %452 : vector<8x128xf32>
    %c1_141 = arith.constant 1 : index
    %c0_142 = arith.constant 0 : index
    %c0_143 = arith.constant 0 : index
    %454 = vector.load %arg6[%c1_141, %c0_142, %c0_143] : memref<8x8x128xf32, #tpu.memory_space<vmem>>, vector<1x8x128xf32>
    %455 = vector.shape_cast %454 : vector<1x8x128xf32> to vector<8x128xf32>
    %456 = vector.shape_cast %453 : vector<8x128xf32> to vector<1x8x128xf32>
    tpu.vector_store %arg6[%c1_141, %c0_142, %c0_143], %456 {strides = array<i32>} : memref<8x8x128xf32, #tpu.memory_space<vmem>>, vector<1x8x128xf32>,
    %c7_144 = arith.constant 7 : index
    %c0_145 = arith.constant 0 : index
    %c0_146 = arith.constant 0 : index
    %457 = vector.load %arg1[%c7_144, %c0_145, %c0_146] : memref<8x8x512xf32, #tpu.memory_space<vmem>>, vector<1x8x512xf32>
    %458 = vector.shape_cast %457 : vector<1x8x512xf32> to vector<8x512xf32>
    %cst_147 = arith.constant dense<0.000000e+00> : vector<8x512xf32>
    %459 = tpu.matmul %421, %3, %cst_147 {dimension_numbers = #tpu.dot_dimension_numbers<[1], [0], [0], [1], [0, 0, 1, 1], [], []>} : vector<8x128xf32>, vector<128x512xf32>, vector<8x512xf32> -> vector<8x512xf32>
    %460 = arith.addf %458, %459 : vector<8x512xf32>
    %461 = vector.extract_strided_slice %460 {offsets = [0, 0], sizes = [8, 128], strides = [1, 1]} : vector<8x512xf32> to vector<8x128xf32>
    %462 = arith.negf %461 : vector<8x128xf32>
    %463 = math.exp %462 : vector<8x128xf32>
    %cst_148 = arith.constant 1.000000e+00 : f32
    %464 = vector.broadcast %cst_148 : f32 to vector<8x128xf32>
    %465 = arith.addf %464, %463 : vector<8x128xf32>
    %466 = arith.divf %464, %465 : vector<8x128xf32>
    %467 = vector.extract_strided_slice %460 {offsets = [0, 128], sizes = [8, 128], strides = [1, 1]} : vector<8x512xf32> to vector<8x128xf32>
    %468 = arith.negf %467 : vector<8x128xf32>
    %469 = math.exp %468 : vector<8x128xf32>
    %cst_149 = arith.constant 1.000000e+00 : f32
    %470 = vector.broadcast %cst_149 : f32 to vector<8x128xf32>
    %471 = arith.addf %470, %469 : vector<8x128xf32>
    %472 = arith.divf %470, %471 : vector<8x128xf32>
    %473 = vector.extract_strided_slice %460 {offsets = [0, 256], sizes = [8, 128], strides = [1, 1]} : vector<8x512xf32> to vector<8x128xf32>
    %474 = math.tanh %473 : vector<8x128xf32>
    %475 = vector.extract_strided_slice %460 {offsets = [0, 384], sizes = [8, 128], strides = [1, 1]} : vector<8x512xf32> to vector<8x128xf32>
    %476 = arith.negf %475 : vector<8x128xf32>
    %477 = math.exp %476 : vector<8x128xf32>
    %cst_150 = arith.constant 1.000000e+00 : f32
    %478 = vector.broadcast %cst_150 : f32 to vector<8x128xf32>
    %479 = arith.addf %478, %477 : vector<8x128xf32>
    %480 = arith.divf %478, %479 : vector<8x128xf32>
    %481 = arith.mulf %472, %419 : vector<8x128xf32>
    %482 = arith.mulf %466, %474 : vector<8x128xf32>
    %483 = arith.addf %481, %482 : vector<8x128xf32>
    %484 = math.tanh %483 : vector<8x128xf32>
    %485 = arith.mulf %480, %484 : vector<8x128xf32>
    %c7_151 = arith.constant 7 : index
    %c0_152 = arith.constant 0 : index
    %c0_153 = arith.constant 0 : index
    %486 = vector.load %arg5[%c7_151, %c0_152, %c0_153] : memref<8x8x128xf32, #tpu.memory_space<vmem>>, vector<1x8x128xf32>
    %487 = vector.shape_cast %486 : vector<1x8x128xf32> to vector<8x128xf32>
    %488 = vector.shape_cast %485 : vector<8x128xf32> to vector<1x8x128xf32>
    tpu.vector_store %arg5[%c7_151, %c0_152, %c0_153], %488 {strides = array<i32>} : memref<8x8x128xf32, #tpu.memory_space<vmem>>, vector<1x8x128xf32>,
    %c0_154 = arith.constant 0 : index
    %c0_155 = arith.constant 0 : index
    %c0_156 = arith.constant 0 : index
    %489 = vector.load %arg2[%c0_154, %c0_155, %c0_156] : memref<8x8x512xf32, #tpu.memory_space<vmem>>, vector<1x8x512xf32>
    %490 = vector.shape_cast %489 : vector<1x8x512xf32> to vector<8x512xf32>
    %cst_157 = arith.constant dense<0.000000e+00> : vector<8x512xf32>
    %491 = tpu.matmul %453, %4, %cst_157 {dimension_numbers = #tpu.dot_dimension_numbers<[1], [0], [0], [1], [0, 0, 1, 1], [], []>} : vector<8x128xf32>, vector<128x512xf32>, vector<8x512xf32> -> vector<8x512xf32>
    %492 = arith.addf %490, %491 : vector<8x512xf32>
    %493 = vector.extract_strided_slice %492 {offsets = [0, 0], sizes = [8, 128], strides = [1, 1]} : vector<8x512xf32> to vector<8x128xf32>
    %494 = arith.negf %493 : vector<8x128xf32>
    %495 = math.exp %494 : vector<8x128xf32>
    %cst_158 = arith.constant 1.000000e+00 : f32
    %496 = vector.broadcast %cst_158 : f32 to vector<8x128xf32>
    %497 = arith.addf %496, %495 : vector<8x128xf32>
    %498 = arith.divf %496, %497 : vector<8x128xf32>
    %499 = vector.extract_strided_slice %492 {offsets = [0, 128], sizes = [8, 128], strides = [1, 1]} : vector<8x512xf32> to vector<8x128xf32>
    %500 = arith.negf %499 : vector<8x128xf32>
    %501 = math.exp %500 : vector<8x128xf32>
    %cst_159 = arith.constant 1.000000e+00 : f32
    %502 = vector.broadcast %cst_159 : f32 to vector<8x128xf32>
    %503 = arith.addf %502, %501 : vector<8x128xf32>
    %504 = arith.divf %502, %503 : vector<8x128xf32>
    %505 = vector.extract_strided_slice %492 {offsets = [0, 256], sizes = [8, 128], strides = [1, 1]} : vector<8x512xf32> to vector<8x128xf32>
    %506 = math.tanh %505 : vector<8x128xf32>
    %507 = vector.extract_strided_slice %492 {offsets = [0, 384], sizes = [8, 128], strides = [1, 1]} : vector<8x512xf32> to vector<8x128xf32>
    %508 = arith.negf %507 : vector<8x128xf32>
    %509 = math.exp %508 : vector<8x128xf32>
    %cst_160 = arith.constant 1.000000e+00 : f32
    %510 = vector.broadcast %cst_160 : f32 to vector<8x128xf32>
    %511 = arith.addf %510, %509 : vector<8x128xf32>
    %512 = arith.divf %510, %511 : vector<8x128xf32>
    %513 = arith.mulf %504, %451 : vector<8x128xf32>
    %514 = arith.mulf %498, %506 : vector<8x128xf32>
    %515 = arith.addf %513, %514 : vector<8x128xf32>
    %516 = math.tanh %515 : vector<8x128xf32>
    %517 = arith.mulf %512, %516 : vector<8x128xf32>
    %c0_161 = arith.constant 0 : index
    %c0_162 = arith.constant 0 : index
    %c0_163 = arith.constant 0 : index
    %518 = vector.load %arg6[%c0_161, %c0_162, %c0_163] : memref<8x8x128xf32, #tpu.memory_space<vmem>>, vector<1x8x128xf32>
    %519 = vector.shape_cast %518 : vector<1x8x128xf32> to vector<8x128xf32>
    %520 = vector.shape_cast %517 : vector<8x128xf32> to vector<1x8x128xf32>
    tpu.vector_store %arg6[%c0_161, %c0_162, %c0_163], %520 {strides = array<i32>} : memref<8x8x128xf32, #tpu.memory_space<vmem>>, vector<1x8x128xf32>,
    %c0_164 = arith.constant 0 : index
    %c0_165 = arith.constant 0 : index
    %521 = vector.load %arg7[%c0_164, %c0_165] : memref<8x128xf32, #tpu.memory_space<vmem>>, vector<8x128xf32>
    tpu.vector_store %arg7[%c0_164, %c0_165], %485 {strides = array<i32>} : memref<8x128xf32, #tpu.memory_space<vmem>>, vector<8x128xf32>,
    %c0_166 = arith.constant 0 : index
    %c0_167 = arith.constant 0 : index
    %522 = vector.load %arg8[%c0_166, %c0_167] : memref<8x128xf32, #tpu.memory_space<vmem>>, vector<8x128xf32>
    tpu.vector_store %arg8[%c0_166, %c0_167], %483 {strides = array<i32>} : memref<8x128xf32, #tpu.memory_space<vmem>>, vector<8x128xf32>,
    %c0_168 = arith.constant 0 : index
    %c0_169 = arith.constant 0 : index
    %523 = vector.load %arg9[%c0_168, %c0_169] : memref<8x128xf32, #tpu.memory_space<vmem>>, vector<8x128xf32>
    tpu.vector_store %arg9[%c0_168, %c0_169], %517 {strides = array<i32>} : memref<8x128xf32, #tpu.memory_space<vmem>>, vector<8x128xf32>,
    %c0_170 = arith.constant 0 : index
    %c0_171 = arith.constant 0 : index
    %524 = vector.load %arg10[%c0_170, %c0_171] : memref<8x128xf32, #tpu.memory_space<vmem>>, vector<8x128xf32>
    tpu.vector_store %arg10[%c0_170, %c0_171], %515 {strides = array<i32>} : memref<8x128xf32, #tpu.memory_space<vmem>>, vector<8x128xf32>,
    return
  }
  func.func @transform_0(%arg0: i32) -> (i32, i32, i32) {
    %c0_i32 = arith.constant 0 : i32
    %c0_i32_0 = arith.constant 0 : i32
    %c0_i32_1 = arith.constant 0 : i32
    return %arg0, %c0_i32, %c0_i32_0 : i32, i32, i32
  }
  func.func @transform_1(%arg0: i32) -> (i32, i32, i32) {
    %c0_i32 = arith.constant 0 : i32
    %0 = arith.subi %c0_i32, %arg0 : i32
    %c0_i32_0 = arith.constant 0 : i32
    %c1_i32 = arith.constant 1 : i32
    %c0_i32_1 = arith.constant 0 : i32
    return %0, %c0_i32_0, %c1_i32 : i32, i32, i32
  }
  func.func @transform_2(%arg0: i32) -> (i32, i32) {
    %c0_i32 = arith.constant 0 : i32
    %c0_i32_0 = arith.constant 0 : i32
    %c0_i32_1 = arith.constant 0 : i32
    return %c0_i32, %c0_i32_0 : i32, i32
  }
  func.func @transform_3(%arg0: i32) -> (i32, i32) {
    %c0_i32 = arith.constant 0 : i32
    %c0_i32_0 = arith.constant 0 : i32
    %c0_i32_1 = arith.constant 0 : i32
    return %c0_i32, %c0_i32_0 : i32, i32
  }
  func.func @transform_4(%arg0: i32) -> (i32, i32, i32) {
    %c0_i32 = arith.constant 0 : i32
    %c0_i32_0 = arith.constant 0 : i32
    %c0_i32_1 = arith.constant 0 : i32
    return %arg0, %c0_i32, %c0_i32_0 : i32, i32, i32
  }
  func.func @transform_5(%arg0: i32) -> (i32, i32, i32) {
    %c0_i32 = arith.constant 0 : i32
    %0 = arith.subi %c0_i32, %arg0 : i32
    %c0_i32_0 = arith.constant 0 : i32
    %c0_i32_1 = arith.constant 0 : i32
    %c0_i32_2 = arith.constant 0 : i32
    return %0, %c0_i32_0, %c0_i32_1 : i32, i32, i32
  }
}

</mosaic_0001>

<bundles_post_ra>
// kernel: bidirectional_lstm_forward.5
= control target key start
LH: loop header
LB: loop body
LE: loop exit
PB: predicated region body
PF: predicated region fallthrough
CT: control target
= control target key end

     0   :  { %10 = vsyncpa [#allocation3], 0  ;;  %s412_s0 = inlined_call_operand.vmem [shape: f32[64,128], index: 0, kind: input, shape index: {}]   ;;  %s413_s1 = inlined_call_operand.vmem [shape: f32[64,128], index: 1, kind: input, shape index: {}]   ;;  %s414_s2 = inlined_call_operand.hbm [shape: f32[128,128], index: 2, kind: input, shape index: {}]   ;;  %s415_s3 = inlined_call_operand.hbm [shape: f32[128,128], index: 3, kind: input, shape index: {}]   ;;  %s416_s4 = inlined_call_operand.vmem [shape: f32[1,128], index: 4, kind: input, shape index: {}]   ;;  %s417_s5 = inlined_call_operand.vmem [shape: f32[64,128], index: 5, kind: output, shape index: {}]  }
   0x1   :  { %s20_s20 = sshll.u32 %s414_s2, 4  ;;  %s21_s20 = int_to_ptr.hbm [resolvable:$true] %s20_s20 }
   0x2   :  { %11 = vsyncpa [#allocation5], 0  ;;  %s297_s21 = smov [#allocation2]   ;;  %s33_s25 = sshll.u32 %s415_s3, 4  ;;  %s34_s25 = int_to_ptr.hbm [resolvable:$true] %s33_s25 }
   0x3   :  { %s22_s22 = sshll.u32 %s297_s21, 4  ;;  %s298_s26 = smov 128   ;;  %s23_s22 = int_to_ptr.vmem [resolvable:$true] %s22_s22 }
   0x4   :  { %s299_s27 = smov 8   ;;  %s300_s28 = smov [#allocation4]  }
   0x5   :  { %28 = dma.hbm_to_vmem [thread:$0]  %s21_s20, 2048, %s23_s22, [#allocation3], %s298_s26, %s298_s26, %s299_s27  }
   0x6   :  { %s35_s29 = sshll.u32 %s300_s28, 4  ;;  %s36_s29 = int_to_ptr.vmem [resolvable:$true] %s35_s29 }
   0x7   :  { %41 = dma.hbm_to_vmem [thread:$0]  %s34_s25, 2048, %s36_s29, [#allocation5], %s298_s26, %s298_s26, %s299_s27  }
   0x8   :  { %293 = dma.done.wait [#allocation3], 2048  }
   0x9   :  { %294 = vsyncadd [#allocation3], 4294965248 }
   0xa   :  { %295 = dma.done.wait [#allocation5], 2048  }
   0xb   :  { %296 = vsyncadd [#allocation5], 4294965248  ;;  %v99_v0 = vld [vmem:[#allocation4 + $0x78] sm:$0xff]  ;;  %v98_v2 = vld [vmem:[#allocation4 + $0x70] sm:$0xff] }
   0xc   :  { %v75_v1 = vld [vmem:[#allocation2 + $0x78] sm:$0xff]  ;;  %208 = vmatpush.msra.mxu2 %v99_v0  ;;  %v74_v3 = vld [vmem:[#allocation2 + $0x70] sm:$0xff]  ;;  %v97_v4 = vld [vmem:[#allocation4 + $0x68] sm:$0xff]  ;;  %100 = vmatpush.msra.mxu0 %v99_v0 }
   0xd   :  { %224 = vmatpush.msra.mxu3 %v75_v1  ;;  %v73_v5 = vld [vmem:[#allocation2 + $0x68] sm:$0xff]  ;;  %141 = vmatpush.msra.mxu1 %v75_v1  ;;  %v96_v6 = vld [vmem:[#allocation4 + $0x60] sm:$0xff]  ;;  %v95_v8 = vld [vmem:[#allocation4 + $0x58] sm:$0xff] }
   0xe   :  { %209 = vmatpush.msra.mxu2 %v98_v2  ;;  %v72_v7 = vld [vmem:[#allocation2 + $0x60] sm:$0xff]  ;;  %101 = vmatpush.msra.mxu0 %v98_v2  ;;  %v71_v9 = vld [vmem:[#allocation2 + $0x58] sm:$0xff]  ;;  %v94_v10 = vld [vmem:[#allocation4 + $0x50] sm:$0xff] }
   0xf   :  { %225 = vmatpush.msra.mxu3 %v74_v3  ;;  %142 = vmatpush.msra.mxu1 %v74_v3  ;;  %v70_v11 = vld [vmem:[#allocation2 + $0x50] sm:$0xff]  ;;  %v93_v12 = vld [vmem:[#allocation4 + $0x48] sm:$0xff]  ;;  %v92_v14 = vld [vmem:[#allocation4 + $0x40] sm:$0xff] }
  0x10   :  { %210 = vmatpush.msra.mxu2 %v97_v4  ;;  %102 = vmatpush.msra.mxu0 %v97_v4  ;;  %v69_v13 = vld [vmem:[#allocation2 + $0x48] sm:$0xff]  ;;  %v68_v15 = vld [vmem:[#allocation2 + $0x40] sm:$0xff]  ;;  %v91_v16 = vld [vmem:[#allocation4 + $0x38] sm:$0xff] }
  0x11   :  { %226 = vmatpush.msra.mxu3 %v73_v5  ;;  %143 = vmatpush.msra.mxu1 %v73_v5  ;;  %v67_v17 = vld [vmem:[#allocation2 + $0x38] sm:$0xff]  ;;  %v90_v18 = vld [vmem:[#allocation4 + $0x30] sm:$0xff]  ;;  %v89_v20 = vld [vmem:[#allocation4 + $0x28] sm:$0xff] }
  0x12   :  { %211 = vmatpush.msra.mxu2 %v96_v6  ;;  %103 = vmatpush.msra.mxu0 %v96_v6  ;;  %v66_v19 = vld [vmem:[#allocation2 + $0x30] sm:$0xff]  ;;  %v65_v21 = vld [vmem:[#allocation2 + $0x28] sm:$0xff]  ;;  %v88_v22 = vld [vmem:[#allocation4 + $0x20] sm:$0xff] }
  0x13   :  { %227 = vmatpush.msra.mxu3 %v72_v7  ;;  %144 = vmatpush.msra.mxu1 %v72_v7  ;;  %v64_v23 = vld [vmem:[#allocation2 + $0x20] sm:$0xff]  ;;  %v87_v24 = vld [vmem:[#allocation4 + $0x18] sm:$0xff]  ;;  %v86_v26 = vld [vmem:[#allocation4 + $0x10] sm:$0xff] }
  0x14   :  { %212 = vmatpush.msra.mxu2 %v95_v8  ;;  %104 = vmatpush.msra.mxu0 %v95_v8  ;;  %v63_v25 = vld [vmem:[#allocation2 + $0x18] sm:$0xff]  ;;  %v62_v27 = vld [vmem:[#allocation2 + $0x10] sm:$0xff]  ;;  %v85_v28 = vld [vmem:[#allocation4 + $0x8] sm:$0xff] }
  0x15   :  { %228 = vmatpush.msra.mxu3 %v71_v9  ;;  %145 = vmatpush.msra.mxu1 %v71_v9  ;;  %v61_v29 = vld [vmem:[#allocation2 + $0x8] sm:$0xff]  ;;  %v84_v30 = vld [vmem:[#allocation4] sm:$0xff]  ;;  %v82_v40 = vld [vmem:[%s413_s1 + $0x30] sm:$0xff] }
  0x16   :  { %213 = vmatpush.msra.mxu2 %v94_v10  ;;  %105 = vmatpush.msra.mxu0 %v94_v10  ;;  %v60_v31 = vld [vmem:[#allocation2] sm:$0xff]  ;;  %v81_v36 = vld [vmem:[%s413_s1 + $0x28] sm:$0xff]  ;;  %v58_v41 = vld [vmem:[%s412_s0 + $0x30] sm:$0xff] }
  0x17   :  { %229 = vmatpush.msra.mxu3 %v70_v11  ;;  %146 = vmatpush.msra.mxu1 %v70_v11  ;;  %v80_v32 = vld [vmem:[%s413_s1 + $0x20] sm:$0xff]  ;;  %v57_v37 = vld [vmem:[%s412_s0 + $0x28] sm:$0xff]  ;;  %v78_v42 = vld [vmem:[%s413_s1 + $0x10] sm:$0xff] }
  0x18   :  { %214 = vmatpush.msra.mxu2 %v93_v12  ;;  %106 = vmatpush.msra.mxu0 %v93_v12  ;;  %v56_v33 = vld [vmem:[%s412_s0 + $0x20] sm:$0xff]  ;;  %v77_v38 = vld [vmem:[%s413_s1 + $0x8] sm:$0xff]  ;;  %v54_v43 = vld [vmem:[%s412_s0 + $0x10] sm:$0xff] }
  0x19   :  { %230 = vmatpush.msra.mxu3 %v69_v13  ;;  %147 = vmatpush.msra.mxu1 %v69_v13  ;;  %v76_v34 = vld [vmem:[%s413_s1] sm:$0xff]  ;;  %v53_v39 = vld [vmem:[%s412_s0 + $0x8] sm:$0xff]  ;;  %v83_v44 = vld [vmem:[%s413_s1 + $0x38] sm:$0xff] }
  0x1a   :  { %215 = vmatpush.msra.mxu2 %v92_v14  ;;  %107 = vmatpush.msra.mxu0 %v92_v14  ;;  %v52_v35 = vld [vmem:[%s412_s0] sm:$0xff]  ;;  %v59_v45 = vld [vmem:[%s412_s0 + $0x38] sm:$0xff] }
  0x1b   :  { %231 = vmatpush.msra.mxu3 %v68_v15  ;;  %148 = vmatpush.msra.mxu1 %v68_v15  ;;  %v79_v46 = vld [vmem:[%s413_s1 + $0x18] sm:$0xff]  ;;  %v244_v48 = vld [vmem:[%s416_s4] ss:$0 sm:$0xff] }
  0x1c   :  { %216 = vmatpush.msra.mxu2 %v91_v16  ;;  %108 = vmatpush.msra.mxu0 %v91_v16  ;;  %v55_v47 = vld [vmem:[%s412_s0 + $0x18] sm:$0xff] }
  0x1d   :  { %232 = vmatpush.msra.mxu3 %v67_v17  ;;  %149 = vmatpush.msra.mxu1 %v67_v17 }
  0x1e   :  { %217 = vmatpush.msra.mxu2 %v90_v18  ;;  %109 = vmatpush.msra.mxu0 %v90_v18 }
  0x1f   :  { %233 = vmatpush.msra.mxu3 %v66_v19  ;;  %150 = vmatpush.msra.mxu1 %v66_v19 }
  0x20   :  { %218 = vmatpush.msra.mxu2 %v89_v20  ;;  %110 = vmatpush.msra.mxu0 %v89_v20 }
  0x21   :  { %234 = vmatpush.msra.mxu3 %v65_v21  ;;  %151 = vmatpush.msra.mxu1 %v65_v21 }
  0x22   :  { %219 = vmatpush.msra.mxu2 %v88_v22  ;;  %111 = vmatpush.msra.mxu0 %v88_v22 }
  0x23   :  { %235 = vmatpush.msra.mxu3 %v64_v23  ;;  %152 = vmatpush.msra.mxu1 %v64_v23 }
  0x24   :  { %220 = vmatpush.msra.mxu2 %v87_v24  ;;  %112 = vmatpush.msra.mxu0 %v87_v24 }
  0x25   :  { %236 = vmatpush.msra.mxu3 %v63_v25  ;;  %153 = vmatpush.msra.mxu1 %v63_v25 }
  0x26   :  { %221 = vmatpush.msra.mxu2 %v86_v26  ;;  %113 = vmatpush.msra.mxu0 %v86_v26 }
  0x27   :  { %237 = vmatpush.msra.mxu3 %v62_v27  ;;  %154 = vmatpush.msra.mxu1 %v62_v27 }
  0x28   :  { %222 = vmatpush.msra.mxu2 %v85_v28  ;;  %114 = vmatpush.msra.mxu0 %v85_v28 }
  0x29   :  { %238 = vmatpush.msra.mxu3 %v61_v29  ;;  %155 = vmatpush.msra.mxu1 %v61_v29 }
  0x2a   :  { %223 = vmatpush.msra.mxu2 %v84_v30  ;;  %115 = vmatpush.msra.mxu0 %v84_v30 }
  0x2b   :  { %239 = vmatpush.msra.mxu3 %v60_v31  ;;  %128 = vmatmul.f32.vlgmr.msra.gmra.mxu2 %v80_v32 }
  0x2c   :  { %169 = vmatmul.f32.vlgmr.msra.gmra.mxu3 %v56_v33  ;;  %156 = vmatpush.msra.mxu1 %v60_v31 }
  0x2d   :  { %116 = vmatmul.f32.vlgmr.msra.gmra.mxu0 %v76_v34  ;;  %157 = vmatmul.f32.vlgmr.msra.gmra.mxu1 %v52_v35 }
  0x33   :  { %131 = vmatmul.f32.gmra.mxu2 %v81_v36 }
  0x34   :  { %172 = vmatmul.f32.gmra.mxu3 %v57_v37 }
  0x35   :  { %119 = vmatmul.f32.gmra.mxu0 %v77_v38  ;;  %160 = vmatmul.f32.gmra.mxu1 %v53_v39 }
  0x3b   :  { %134 = vmatmul.f32.gmra.mxu2 %v82_v40 }
  0x3c   :  { %175 = vmatmul.f32.gmra.mxu3 %v58_v41 }
  0x3d   :  { %122 = vmatmul.f32.gmra.mxu0 %v78_v42  ;;  %163 = vmatmul.f32.gmra.mxu1 %v54_v43 }
  0x43   :  { %137 = vmatmul.f32.gmra.mxu2 %v83_v44 }
  0x44   :  { %178 = vmatmul.f32.gmra.mxu3 %v59_v45 }
  0x45   :  { %125 = vmatmul.f32.gmra.mxu0 %v79_v46  ;;  %166 = vmatmul.f32.gmra.mxu1 %v55_v47 }
  0xaa   :  { %v117_v49 = vpop.f32.mrf.mxu0  ;;  %v158_v50 = vpop.f32.mrf.mxu1 }
  0xab   :  { %v159_v51 = vadd.f32 %v158_v50, %v117_v49 }
  0xad   :  { %v186_v52 = vadd.f32 %v244_v48, %v159_v51 }
  0xae   :  { %v129_v53 = vpop.f32.mrf.mxu2 }
  0xaf   :  { %v170_v54 = vpop.f32.mrf.mxu3  ;;  %194 = vst [vmem:[%s417_s5] sm:$0xff] %v186_v52 }
  0xb0   :  { %v171_v55 = vadd.f32 %v170_v54, %v129_v53 }
  0xb2   :  { %v190_v56 = vadd.f32 %v244_v48, %v171_v55  ;;  %v120_v57 = vpop.f32.mrf.mxu0  ;;  %v161_v58 = vpop.f32.mrf.mxu1 }
  0xb3   :  { %v162_v59 = vadd.f32 %v161_v58, %v120_v57 }
  0xb4   :  { %198 = vst [vmem:[%s417_s5 + $0x20] sm:$0xff] %v190_v56 }
  0xb5   :  { %v187_v60 = vadd.f32 %v244_v48, %v162_v59 }
  0xb6   :  { %v132_v61 = vpop.f32.mrf.mxu2 }
  0xb7   :  { %v173_v62 = vpop.f32.mrf.mxu3  ;;  %195 = vst [vmem:[%s417_s5 + $0x8] sm:$0xff] %v187_v60 }
  0xb8   :  { %v174_v63 = vadd.f32 %v173_v62, %v132_v61 }
  0xba   :  { %v191_v0 = vadd.f32 %v244_v48, %v174_v63  ;;  %v123_v1 = vpop.f32.mrf.mxu0  ;;  %v164_v2 = vpop.f32.mrf.mxu1 }
  0xbb   :  { %v165_v3 = vadd.f32 %v164_v2, %v123_v1 }
  0xbc   :  { %199 = vst [vmem:[%s417_s5 + $0x28] sm:$0xff] %v191_v0 }
  0xbd   :  { %v188_v4 = vadd.f32 %v244_v48, %v165_v3 }
  0xbe   :  { %v135_v5 = vpop.f32.mrf.mxu2 }
  0xbf   :  { %v176_v6 = vpop.f32.mrf.mxu3  ;;  %196 = vst [vmem:[%s417_s5 + $0x10] sm:$0xff] %v188_v4 }
  0xc0   :  { %v177_v7 = vadd.f32 %v176_v6, %v135_v5 }
  0xc2   :  { %v192_v8 = vadd.f32 %v244_v48, %v177_v7  ;;  %v126_v9 = vpop.f32.mrf.mxu0  ;;  %v167_v10 = vpop.f32.mrf.mxu1 }
  0xc3   :  { %v168_v11 = vadd.f32 %v167_v10, %v126_v9 }
  0xc4   :  { %200 = vst [vmem:[%s417_s5 + $0x30] sm:$0xff] %v192_v8 }
  0xc5   :  { %v189_v12 = vadd.f32 %v244_v48, %v168_v11 }
  0xc6   :  { %v138_v13 = vpop.f32.mrf.mxu2 }
  0xc7   :  { %v179_v14 = vpop.f32.mrf.mxu3  ;;  %197 = vst [vmem:[%s417_s5 + $0x18] sm:$0xff] %v189_v12 }
  0xc8   :  { %v180_v15 = vadd.f32 %v179_v14, %v138_v13 }
  0xca   :  { %v193_v16 = vadd.f32 %v244_v48, %v180_v15 }
  0xcc   :  { %201 = vst [vmem:[%s417_s5 + $0x38] sm:$0xff] %v193_v16 }
  0xcd   :  { %206 = vsyncpa [#allocation3], 1 }
  0xce   :  { %207 = vsyncpa [#allocation5], 1 }

// kernel: bidirectional_lstm_forward.3
= control target key start
LH: loop header
LB: loop body
LE: loop exit
PB: predicated region body
PF: predicated region fallthrough
CT: control target
= control target key end

     0   :  { %8 = vsyncpa [#allocation3], 0  ;;  %s587_s15 = smov [#allocation2]   ;;  %s588_s17 = smov 1024   ;;  %s996_s0 = inlined_call_operand.vmem [shape: f32[64,16], index: 0, kind: input, shape index: {}]   ;;  %s997_s1 = inlined_call_operand.hbm [shape: f32[16,1024], index: 1, kind: input, shape index: {}]   ;;  %s998_s2 = inlined_call_operand.vmem [shape: f32[1,1024], index: 2, kind: input, shape index: {}]   ;;  %s999_s3 = inlined_call_operand.vmem [shape: f32[64,1024], index: 3, kind: output, shape index: {}]  }
   0x1   :  { %s15_s14 = sshll.u32 %s997_s1, 4  ;;  %s17_s16 = sshll.u32 %s587_s15, 4  ;;  %s16_s14 = int_to_ptr.hbm [resolvable:$true] %s15_s14  ;;  %s18_s16 = int_to_ptr.vmem [resolvable:$true] %s17_s16 }
   0x2   :  { %s589_s18 = smov 64  }
   0x3   :  { %23 = dma.hbm_to_vmem [thread:$0]  %s16_s14, 2048, %s18_s16, [#allocation3], %s588_s17, %s588_s17, %s589_s18  }
   0x4   :  { %585 = dma.done.wait [#allocation3], 2048  }
   0x5   :  { %586 = vsyncadd [#allocation3], 4294965248  ;;  %v48_v0 = vld [vmem:[#allocation2 + $0x50] sm:$0xff]  ;;  %v49_v1 = vld [vmem:[#allocation2 + $0x58] sm:$0xff]  ;;  %vm72_vm0 = vcmask 130048  }
   0x6   :  { %v40_v2 = vld [vmem:[#allocation2 + $0x10] sm:$0xff]  ;;  %193 = vmatpush.msra.mxu2 %v48_v0  ;;  %234 = vmatpush.msra.mxu3 %v49_v1  ;;  %v41_v3 = vld [vmem:[#allocation2 + $0x18] sm:$0xff]  ;;  %v616_v4 = vld [vmem:[%s996_s0] sm:$0xff] }
   0x7   :  { %v52_v5 = vld [vmem:[#allocation2 + $0x70] sm:$0xff]  ;;  %v53_v6 = vld [vmem:[#allocation2 + $0x78] sm:$0xff]  ;;  %v46_v7 = vld [vmem:[#allocation2 + $0x40] sm:$0xff] }
   0x8   :  { %194 = vmatpush.msra.mxu2 %v40_v2  ;;  %235 = vmatpush.msra.mxu3 %v41_v3  ;;  %v47_v8 = vld [vmem:[#allocation2 + $0x48] sm:$0xff]  ;;  %v38_v9 = vld [vmem:[#allocation2] sm:$0xff]  ;;  %v44_v11 = vld [vmem:[#allocation2 + $0x30] sm:$0xff] }
   0x9   :  { %510 = vmatmul.msk.f32.vlgmr.msra.gmra.mxu2 %vm72_vm0, %v616_v4  ;;  %518 = vmatmul.msk.f32.vlgmr.msra.gmra.mxu3 %vm72_vm0, %v616_v4  ;;  %v39_v10 = vld [vmem:[#allocation2 + $0x8] sm:$0xff]  ;;  %v45_v12 = vld [vmem:[#allocation2 + $0x38] sm:$0xff]  ;;  %v50_v13 = vld [vmem:[#allocation2 + $0x60] sm:$0xff] }
   0xa   :  { %357 = vmatpush.msrb.mxu2 %v52_v5  ;;  %398 = vmatpush.msrb.mxu3 %v53_v6  ;;  %v51_v14 = vld [vmem:[#allocation2 + $0x68] sm:$0xff]  ;;  %v42_v16 = vld [vmem:[#allocation2 + $0x20] sm:$0xff]  ;;  %v32_v18 = vld [vmem:[%s996_s0 + $0x10] sm:$0xff] }
   0xb   :  { %111 = vmatpush.msra.mxu0 %v46_v7  ;;  %152 = vmatpush.msra.mxu1 %v47_v8  ;;  %v31_v15 = vld [vmem:[%s996_s0 + $0x8] sm:$0xff]  ;;  %v33_v19 = vld [vmem:[%s996_s0 + $0x18] sm:$0xff]  ;;  %v34_v20 = vld [vmem:[%s996_s0 + $0x20] sm:$0xff] }
   0xc   :  { %358 = vmatpush.msrb.mxu2 %v44_v11  ;;  %399 = vmatpush.msrb.mxu3 %v45_v12  ;;  %v43_v17 = vld [vmem:[#allocation2 + $0x28] sm:$0xff]  ;;  %v36_v22 = vld [vmem:[%s996_s0 + $0x30] sm:$0xff]  ;;  %v37_v23 = vld [vmem:[%s996_s0 + $0x38] sm:$0xff] }
   0xd   :  { %112 = vmatpush.msra.mxu0 %v38_v9  ;;  %153 = vmatpush.msra.mxu1 %v39_v10  ;;  %v35_v21 = vld [vmem:[%s996_s0 + $0x28] sm:$0xff]  ;;  %v712_v24 = vld [vmem:[%s998_s2] sm:$0xff] }
   0xe   :  { %494 = vmatmul.msk.f32.vlgmr.msra.gmra.mxu0 %vm72_vm0, %v616_v4  ;;  %502 = vmatmul.msk.f32.vlgmr.msra.gmra.mxu1 %vm72_vm0, %v616_v4  ;;  %v717_v25 = vperm.slane %v712_v24, 0  ;;  %v720_v26 = vperm.slane %v712_v24, 1  ;;  %v723_v27 = vperm.slane %v712_v24, 2  ;;  %v726_v28 = vperm.slane %v712_v24, 3 }
   0xf   :  { %275 = vmatpush.msrb.mxu0 %v50_v13  ;;  %316 = vmatpush.msrb.mxu1 %v51_v14 }
  0x11   :  { %511 = vmatmul.msk.f32.gmra.mxu2 %vm72_vm0, %v31_v15  ;;  %519 = vmatmul.msk.f32.gmra.mxu3 %vm72_vm0, %v31_v15 }
  0x12   :  { %276 = vmatpush.msrb.mxu0 %v42_v16  ;;  %317 = vmatpush.msrb.mxu1 %v43_v17 }
  0x16   :  { %495 = vmatmul.msk.f32.gmra.mxu0 %vm72_vm0, %v31_v15  ;;  %503 = vmatmul.msk.f32.gmra.mxu1 %vm72_vm0, %v31_v15 }
  0x19   :  { %512 = vmatmul.msk.f32.gmra.mxu2 %vm72_vm0, %v32_v18  ;;  %520 = vmatmul.msk.f32.gmra.mxu3 %vm72_vm0, %v32_v18 }
  0x1e   :  { %496 = vmatmul.msk.f32.gmra.mxu0 %vm72_vm0, %v32_v18  ;;  %504 = vmatmul.msk.f32.gmra.mxu1 %vm72_vm0, %v32_v18 }
  0x21   :  { %513 = vmatmul.msk.f32.gmra.mxu2 %vm72_vm0, %v33_v19  ;;  %521 = vmatmul.msk.f32.gmra.mxu3 %vm72_vm0, %v33_v19 }
  0x26   :  { %497 = vmatmul.msk.f32.gmra.mxu0 %vm72_vm0, %v33_v19  ;;  %505 = vmatmul.msk.f32.gmra.mxu1 %vm72_vm0, %v33_v19 }
  0x29   :  { %514 = vmatmul.msk.f32.gmra.mxu2 %vm72_vm0, %v34_v20  ;;  %522 = vmatmul.msk.f32.gmra.mxu3 %vm72_vm0, %v34_v20 }
  0x2e   :  { %498 = vmatmul.msk.f32.gmra.mxu0 %vm72_vm0, %v34_v20  ;;  %506 = vmatmul.msk.f32.gmra.mxu1 %vm72_vm0, %v34_v20 }
  0x31   :  { %515 = vmatmul.msk.f32.gmra.mxu2 %vm72_vm0, %v35_v21  ;;  %523 = vmatmul.msk.f32.gmra.mxu3 %vm72_vm0, %v35_v21 }
  0x36   :  { %499 = vmatmul.msk.f32.gmra.mxu0 %vm72_vm0, %v35_v21  ;;  %507 = vmatmul.msk.f32.gmra.mxu1 %vm72_vm0, %v35_v21 }
  0x39   :  { %516 = vmatmul.msk.f32.gmra.mxu2 %vm72_vm0, %v36_v22  ;;  %524 = vmatmul.msk.f32.gmra.mxu3 %vm72_vm0, %v36_v22 }
  0x3e   :  { %500 = vmatmul.msk.f32.gmra.mxu0 %vm72_vm0, %v36_v22  ;;  %508 = vmatmul.msk.f32.gmra.mxu1 %vm72_vm0, %v36_v22 }
  0x41   :  { %517 = vmatmul.msk.f32.gmra.mxu2 %vm72_vm0, %v37_v23  ;;  %525 = vmatmul.msk.f32.gmra.mxu3 %vm72_vm0, %v37_v23 }
  0x46   :  { %501 = vmatmul.msk.f32.gmra.mxu0 %vm72_vm0, %v37_v23  ;;  %509 = vmatmul.msk.f32.gmra.mxu1 %vm72_vm0, %v37_v23 }
  0x49   :  { %542 = vmatmul.msk.f32.vlgmr.msrb.gmra.mxu2 %vm72_vm0, %v616_v4  ;;  %550 = vmatmul.msk.f32.vlgmr.msrb.gmra.mxu3 %vm72_vm0, %v616_v4 }
  0x4e   :  { %526 = vmatmul.msk.f32.vlgmr.msrb.gmra.mxu0 %vm72_vm0, %v616_v4  ;;  %534 = vmatmul.msk.f32.vlgmr.msrb.gmra.mxu1 %vm72_vm0, %v616_v4 }
  0x51   :  { %543 = vmatmul.msk.f32.gmra.mxu2 %vm72_vm0, %v31_v15  ;;  %551 = vmatmul.msk.f32.gmra.mxu3 %vm72_vm0, %v31_v15 }
  0x56   :  { %527 = vmatmul.msk.f32.gmra.mxu0 %vm72_vm0, %v31_v15  ;;  %535 = vmatmul.msk.f32.gmra.mxu1 %vm72_vm0, %v31_v15 }
  0x59   :  { %544 = vmatmul.msk.f32.gmra.mxu2 %vm72_vm0, %v32_v18  ;;  %552 = vmatmul.msk.f32.gmra.mxu3 %vm72_vm0, %v32_v18 }
  0x5e   :  { %528 = vmatmul.msk.f32.gmra.mxu0 %vm72_vm0, %v32_v18  ;;  %536 = vmatmul.msk.f32.gmra.mxu1 %vm72_vm0, %v32_v18 }
  0x61   :  { %545 = vmatmul.msk.f32.gmra.mxu2 %vm72_vm0, %v33_v19  ;;  %553 = vmatmul.msk.f32.gmra.mxu3 %vm72_vm0, %v33_v19 }
  0x66   :  { %529 = vmatmul.msk.f32.gmra.mxu0 %vm72_vm0, %v33_v19  ;;  %537 = vmatmul.msk.f32.gmra.mxu1 %vm72_vm0, %v33_v19 }
  0x69   :  { %546 = vmatmul.msk.f32.gmra.mxu2 %vm72_vm0, %v34_v20  ;;  %554 = vmatmul.msk.f32.gmra.mxu3 %vm72_vm0, %v34_v20 }
  0x6e   :  { %530 = vmatmul.msk.f32.gmra.mxu0 %vm72_vm0, %v34_v20  ;;  %538 = vmatmul.msk.f32.gmra.mxu1 %vm72_vm0, %v34_v20 }
  0x71   :  { %547 = vmatmul.msk.f32.gmra.mxu2 %vm72_vm0, %v35_v21  ;;  %555 = vmatmul.msk.f32.gmra.mxu3 %vm72_vm0, %v35_v21 }
  0x76   :  { %531 = vmatmul.msk.f32.gmra.mxu0 %vm72_vm0, %v35_v21  ;;  %539 = vmatmul.msk.f32.gmra.mxu1 %vm72_vm0, %v35_v21 }
  0x79   :  { %548 = vmatmul.msk.f32.gmra.mxu2 %vm72_vm0, %v36_v22  ;;  %556 = vmatmul.msk.f32.gmra.mxu3 %vm72_vm0, %v36_v22 }
  0x7e   :  { %532 = vmatmul.msk.f32.gmra.mxu0 %vm72_vm0, %v36_v22  ;;  %540 = vmatmul.msk.f32.gmra.mxu1 %vm72_vm0, %v36_v22 }
  0x81   :  { %549 = vmatmul.msk.f32.gmra.mxu2 %vm72_vm0, %v37_v23  ;;  %557 = vmatmul.msk.f32.gmra.mxu3 %vm72_vm0, %v37_v23 }
  0x86   :  { %533 = vmatmul.msk.f32.gmra.mxu0 %vm72_vm0, %v37_v23  ;;  %541 = vmatmul.msk.f32.gmra.mxu1 %vm72_vm0, %v37_v23 }
  0x8b   :  { %v114_v29 = vpop.f32.mrf.mxu0  ;;  %v155_v30 = vpop.f32.mrf.mxu1 }
  0x8c   :  { %v115_v31 = vadd.f32 %v114_v29, %v717_v25  ;;  %v156_v32 = vadd.f32 %v155_v30, %v720_v26  ;;  %v196_v33 = vpop.f32.mrf.mxu2  ;;  %v237_v34 = vpop.f32.mrf.mxu3 }
  0x8d   :  { %v197_v35 = vadd.f32 %v196_v33, %v723_v27  ;;  %v238_v36 = vadd.f32 %v237_v34, %v726_v28 }
  0x8e   :  { %425 = vst [vmem:[%s999_s3] sm:$0xff] %v115_v31 }
  0x8f   :  { %426 = vst [vmem:[%s999_s3 + $0x8] sm:$0xff] %v156_v32 }
  0x90   :  { %427 = vst [vmem:[%s999_s3 + $0x10] sm:$0xff] %v197_v35 }
  0x91   :  { %428 = vst [vmem:[%s999_s3 + $0x18] sm:$0xff] %v238_v36 }
  0x93   :  { %v117_v37 = vpop.f32.mrf.mxu0  ;;  %v158_v38 = vpop.f32.mrf.mxu1 }
  0x94   :  { %v118_v39 = vadd.f32 %v117_v37, %v717_v25  ;;  %v159_v40 = vadd.f32 %v158_v38, %v720_v26  ;;  %v199_v41 = vpop.f32.mrf.mxu2  ;;  %v240_v42 = vpop.f32.mrf.mxu3 }
  0x95   :  { %v200_v43 = vadd.f32 %v199_v41, %v723_v27  ;;  %v241_v44 = vadd.f32 %v240_v42, %v726_v28 }
  0x96   :  { %433 = vst [vmem:[%s999_s3 + $0x40] sm:$0xff] %v118_v39 }
  0x97   :  { %434 = vst [vmem:[%s999_s3 + $0x48] sm:$0xff] %v159_v40 }
  0x98   :  { %435 = vst [vmem:[%s999_s3 + $0x50] sm:$0xff] %v200_v43 }
  0x99   :  { %436 = vst [vmem:[%s999_s3 + $0x58] sm:$0xff] %v241_v44 }
  0x9b   :  { %v120_v45 = vpop.f32.mrf.mxu0  ;;  %v161_v46 = vpop.f32.mrf.mxu1 }
  0x9c   :  { %v121_v47 = vadd.f32 %v120_v45, %v717_v25  ;;  %v162_v48 = vadd.f32 %v161_v46, %v720_v26  ;;  %v202_v49 = vpop.f32.mrf.mxu2  ;;  %v243_v50 = vpop.f32.mrf.mxu3 }
  0x9d   :  { %v203_v51 = vadd.f32 %v202_v49, %v723_v27  ;;  %v244_v52 = vadd.f32 %v243_v50, %v726_v28 }
  0x9e   :  { %441 = vst [vmem:[%s999_s3 + $0x80] sm:$0xff] %v121_v47 }
  0x9f   :  { %442 = vst [vmem:[%s999_s3 + $0x88] sm:$0xff] %v162_v48 }
  0xa0   :  { %443 = vst [vmem:[%s999_s3 + $0x90] sm:$0xff] %v203_v51 }
  0xa1   :  { %444 = vst [vmem:[%s999_s3 + $0x98] sm:$0xff] %v244_v52 }
  0xa3   :  { %v123_v53 = vpop.f32.mrf.mxu0  ;;  %v164_v54 = vpop.f32.mrf.mxu1 }
  0xa4   :  { %v124_v55 = vadd.f32 %v123_v53, %v717_v25  ;;  %v165_v56 = vadd.f32 %v164_v54, %v720_v26  ;;  %v205_v57 = vpop.f32.mrf.mxu2  ;;  %v246_v58 = vpop.f32.mrf.mxu3 }
  0xa5   :  { %v206_v59 = vadd.f32 %v205_v57, %v723_v27  ;;  %v247_v60 = vadd.f32 %v246_v58, %v726_v28 }
  0xa6   :  { %449 = vst [vmem:[%s999_s3 + $0xc0] sm:$0xff] %v124_v55 }
  0xa7   :  { %450 = vst [vmem:[%s999_s3 + $0xc8] sm:$0xff] %v165_v56 }
  0xa8   :  { %451 = vst [vmem:[%s999_s3 + $0xd0] sm:$0xff] %v206_v59 }
  0xa9   :  { %452 = vst [vmem:[%s999_s3 + $0xd8] sm:$0xff] %v247_v60 }
  0xab   :  { %v126_v61 = vpop.f32.mrf.mxu0  ;;  %v167_v62 = vpop.f32.mrf.mxu1 }
  0xac   :  { %v127_v63 = vadd.f32 %v126_v61, %v717_v25  ;;  %v168_v0 = vadd.f32 %v167_v62, %v720_v26  ;;  %v208_v1 = vpop.f32.mrf.mxu2  ;;  %v249_v2 = vpop.f32.mrf.mxu3 }
  0xad   :  { %v209_v3 = vadd.f32 %v208_v1, %v723_v27  ;;  %v250_v4 = vadd.f32 %v249_v2, %v726_v28 }
  0xae   :  { %457 = vst [vmem:[%s999_s3 + $0x100] sm:$0xff] %v127_v63 }
  0xaf   :  { %458 = vst [vmem:[%s999_s3 + $0x108] sm:$0xff] %v168_v0 }
  0xb0   :  { %459 = vst [vmem:[%s999_s3 + $0x110] sm:$0xff] %v209_v3 }
  0xb1   :  { %460 = vst [vmem:[%s999_s3 + $0x118] sm:$0xff] %v250_v4 }
  0xb3   :  { %v129_v5 = vpop.f32.mrf.mxu0  ;;  %v170_v6 = vpop.f32.mrf.mxu1 }
  0xb4   :  { %v130_v7 = vadd.f32 %v129_v5, %v717_v25  ;;  %v171_v8 = vadd.f32 %v170_v6, %v720_v26  ;;  %v211_v9 = vpop.f32.mrf.mxu2  ;;  %v252_v10 = vpop.f32.mrf.mxu3 }
  0xb5   :  { %v212_v11 = vadd.f32 %v211_v9, %v723_v27  ;;  %v253_v12 = vadd.f32 %v252_v10, %v726_v28 }
  0xb6   :  { %465 = vst [vmem:[%s999_s3 + $0x140] sm:$0xff] %v130_v7 }
  0xb7   :  { %466 = vst [vmem:[%s999_s3 + $0x148] sm:$0xff] %v171_v8 }
  0xb8   :  { %467 = vst [vmem:[%s999_s3 + $0x150] sm:$0xff] %v212_v11 }
  0xb9   :  { %468 = vst [vmem:[%s999_s3 + $0x158] sm:$0xff] %v253_v12 }
  0xbb   :  { %v132_v13 = vpop.f32.mrf.mxu0  ;;  %v173_v14 = vpop.f32.mrf.mxu1 }
  0xbc   :  { %v133_v15 = vadd.f32 %v132_v13, %v717_v25  ;;  %v174_v16 = vadd.f32 %v173_v14, %v720_v26  ;;  %v214_v17 = vpop.f32.mrf.mxu2  ;;  %v255_v18 = vpop.f32.mrf.mxu3 }
  0xbd   :  { %v215_v19 = vadd.f32 %v214_v17, %v723_v27  ;;  %v256_v20 = vadd.f32 %v255_v18, %v726_v28 }
  0xbe   :  { %473 = vst [vmem:[%s999_s3 + $0x180] sm:$0xff] %v133_v15 }
  0xbf   :  { %474 = vst [vmem:[%s999_s3 + $0x188] sm:$0xff] %v174_v16 }
  0xc0   :  { %475 = vst [vmem:[%s999_s3 + $0x190] sm:$0xff] %v215_v19 }
  0xc1   :  { %476 = vst [vmem:[%s999_s3 + $0x198] sm:$0xff] %v256_v20 }
  0xc3   :  { %v135_v21 = vpop.f32.mrf.mxu0  ;;  %v176_v22 = vpop.f32.mrf.mxu1 }
  0xc4   :  { %v136_v23 = vadd.f32 %v135_v21, %v717_v25  ;;  %v177_v29 = vadd.f32 %v176_v22, %v720_v26  ;;  %v217_v30 = vpop.f32.mrf.mxu2  ;;  %v258_v31 = vpop.f32.mrf.mxu3  ;;  %v854_v25 = vperm.slane %v712_v24, 4  ;;  %v857_v26 = vperm.slane %v712_v24, 5 }
  0xc5   :  { %v218_v32 = vadd.f32 %v217_v30, %v723_v27  ;;  %v259_v33 = vadd.f32 %v258_v31, %v726_v28  ;;  %v863_v27 = vperm.slane %v712_v24, 6  ;;  %v866_v28 = vperm.slane %v712_v24, 7 }
  0xc6   :  { %481 = vst [vmem:[%s999_s3 + $0x1c0] sm:$0xff] %v136_v23 }
  0xc7   :  { %482 = vst [vmem:[%s999_s3 + $0x1c8] sm:$0xff] %v177_v29 }
  0xc8   :  { %483 = vst [vmem:[%s999_s3 + $0x1d0] sm:$0xff] %v218_v32 }
  0xc9   :  { %484 = vst [vmem:[%s999_s3 + $0x1d8] sm:$0xff] %v259_v33 }
  0xcb   :  { %v278_v34 = vpop.f32.mrf.mxu0  ;;  %v319_v35 = vpop.f32.mrf.mxu1 }
  0xcc   :  { %v279_v36 = vadd.f32 %v278_v34, %v854_v25  ;;  %v320_v37 = vadd.f32 %v319_v35, %v857_v26  ;;  %v360_v38 = vpop.f32.mrf.mxu2  ;;  %v401_v39 = vpop.f32.mrf.mxu3 }
  0xcd   :  { %v361_v40 = vadd.f32 %v360_v38, %v863_v27  ;;  %v402_v41 = vadd.f32 %v401_v39, %v866_v28 }
  0xce   :  { %429 = vst [vmem:[%s999_s3 + $0x20] sm:$0xff] %v279_v36 }
  0xcf   :  { %430 = vst [vmem:[%s999_s3 + $0x28] sm:$0xff] %v320_v37 }
  0xd0   :  { %431 = vst [vmem:[%s999_s3 + $0x30] sm:$0xff] %v361_v40 }
  0xd1   :  { %432 = vst [vmem:[%s999_s3 + $0x38] sm:$0xff] %v402_v41 }
  0xd3   :  { %v281_v24 = vpop.f32.mrf.mxu0  ;;  %v322_v42 = vpop.f32.mrf.mxu1 }
  0xd4   :  { %v282_v43 = vadd.f32 %v281_v24, %v854_v25  ;;  %v323_v44 = vadd.f32 %v322_v42, %v857_v26  ;;  %v363_v45 = vpop.f32.mrf.mxu2  ;;  %v404_v46 = vpop.f32.mrf.mxu3 }
  0xd5   :  { %v364_v47 = vadd.f32 %v363_v45, %v863_v27  ;;  %v405_v48 = vadd.f32 %v404_v46, %v866_v28 }
  0xd6   :  { %437 = vst [vmem:[%s999_s3 + $0x60] sm:$0xff] %v282_v43 }
  0xd7   :  { %438 = vst [vmem:[%s999_s3 + $0x68] sm:$0xff] %v323_v44 }
  0xd8   :  { %439 = vst [vmem:[%s999_s3 + $0x70] sm:$0xff] %v364_v47 }
  0xd9   :  { %440 = vst [vmem:[%s999_s3 + $0x78] sm:$0xff] %v405_v48 }
  0xdb   :  { %v284_v49 = vpop.f32.mrf.mxu0  ;;  %v325_v50 = vpop.f32.mrf.mxu1 }
  0xdc   :  { %v285_v51 = vadd.f32 %v284_v49, %v854_v25  ;;  %v326_v52 = vadd.f32 %v325_v50, %v857_v26  ;;  %v366_v53 = vpop.f32.mrf.mxu2  ;;  %v407_v54 = vpop.f32.mrf.mxu3 }
  0xdd   :  { %v367_v55 = vadd.f32 %v366_v53, %v863_v27  ;;  %v408_v56 = vadd.f32 %v407_v54, %v866_v28 }
  0xde   :  { %445 = vst [vmem:[%s999_s3 + $0xa0] sm:$0xff] %v285_v51 }
  0xdf   :  { %446 = vst [vmem:[%s999_s3 + $0xa8] sm:$0xff] %v326_v52 }
  0xe0   :  { %447 = vst [vmem:[%s999_s3 + $0xb0] sm:$0xff] %v367_v55 }
  0xe1   :  { %448 = vst [vmem:[%s999_s3 + $0xb8] sm:$0xff] %v408_v56 }
  0xe3   :  { %v287_v57 = vpop.f32.mrf.mxu0  ;;  %v328_v58 = vpop.f32.mrf.mxu1 }
  0xe4   :  { %v288_v59 = vadd.f32 %v287_v57, %v854_v25  ;;  %v329_v60 = vadd.f32 %v328_v58, %v857_v26  ;;  %v369_v61 = vpop.f32.mrf.mxu2  ;;  %v410_v62 = vpop.f32.mrf.mxu3 }
  0xe5   :  { %v370_v63 = vadd.f32 %v369_v61, %v863_v27  ;;  %v411_v0 = vadd.f32 %v410_v62, %v866_v28 }
  0xe6   :  { %453 = vst [vmem:[%s999_s3 + $0xe0] sm:$0xff] %v288_v59 }
  0xe7   :  { %454 = vst [vmem:[%s999_s3 + $0xe8] sm:$0xff] %v329_v60 }
  0xe8   :  { %455 = vst [vmem:[%s999_s3 + $0xf0] sm:$0xff] %v370_v63 }
  0xe9   :  { %456 = vst [vmem:[%s999_s3 + $0xf8] sm:$0xff] %v411_v0 }
  0xeb   :  { %v290_v1 = vpop.f32.mrf.mxu0  ;;  %v331_v2 = vpop.f32.mrf.mxu1 }
  0xec   :  { %v291_v3 = vadd.f32 %v290_v1, %v854_v25  ;;  %v332_v4 = vadd.f32 %v331_v2, %v857_v26  ;;  %v372_v5 = vpop.f32.mrf.mxu2  ;;  %v413_v6 = vpop.f32.mrf.mxu3 }
  0xed   :  { %v373_v7 = vadd.f32 %v372_v5, %v863_v27  ;;  %v414_v8 = vadd.f32 %v413_v6, %v866_v28 }
  0xee   :  { %461 = vst [vmem:[%s999_s3 + $0x120] sm:$0xff] %v291_v3 }
  0xef   :  { %462 = vst [vmem:[%s999_s3 + $0x128] sm:$0xff] %v332_v4 }
  0xf0   :  { %463 = vst [vmem:[%s999_s3 + $0x130] sm:$0xff] %v373_v7 }
  0xf1   :  { %464 = vst [vmem:[%s999_s3 + $0x138] sm:$0xff] %v414_v8 }
  0xf3   :  { %v293_v9 = vpop.f32.mrf.mxu0  ;;  %v334_v10 = vpop.f32.mrf.mxu1 }
  0xf4   :  { %v294_v11 = vadd.f32 %v293_v9, %v854_v25  ;;  %v335_v12 = vadd.f32 %v334_v10, %v857_v26  ;;  %v375_v13 = vpop.f32.mrf.mxu2  ;;  %v416_v14 = vpop.f32.mrf.mxu3 }
  0xf5   :  { %v376_v15 = vadd.f32 %v375_v13, %v863_v27  ;;  %v417_v16 = vadd.f32 %v416_v14, %v866_v28 }
  0xf6   :  { %469 = vst [vmem:[%s999_s3 + $0x160] sm:$0xff] %v294_v11 }
  0xf7   :  { %470 = vst [vmem:[%s999_s3 + $0x168] sm:$0xff] %v335_v12 }
  0xf8   :  { %471 = vst [vmem:[%s999_s3 + $0x170] sm:$0xff] %v376_v15 }
  0xf9   :  { %472 = vst [vmem:[%s999_s3 + $0x178] sm:$0xff] %v417_v16 }
  0xfb   :  { %v296_v17 = vpop.f32.mrf.mxu0  ;;  %v337_v18 = vpop.f32.mrf.mxu1 }
  0xfc   :  { %v297_v19 = vadd.f32 %v296_v17, %v854_v25  ;;  %v338_v20 = vadd.f32 %v337_v18, %v857_v26  ;;  %v378_v21 = vpop.f32.mrf.mxu2  ;;  %v419_v22 = vpop.f32.mrf.mxu3 }
  0xfd   :  { %v379_v23 = vadd.f32 %v378_v21, %v863_v27  ;;  %v420_v29 = vadd.f32 %v419_v22, %v866_v28 }
  0xfe   :  { %477 = vst [vmem:[%s999_s3 + $0x1a0] sm:$0xff] %v297_v19 }
  0xff   :  { %478 = vst [vmem:[%s999_s3 + $0x1a8] sm:$0xff] %v338_v20 }
 0x100   :  { %479 = vst [vmem:[%s999_s3 + $0x1b0] sm:$0xff] %v379_v23 }
 0x101   :  { %480 = vst [vmem:[%s999_s3 + $0x1b8] sm:$0xff] %v420_v29 }
 0x103   :  { %v299_v30 = vpop.f32.mrf.mxu0  ;;  %v340_v31 = vpop.f32.mrf.mxu1 }
 0x104   :  { %v300_v32 = vadd.f32 %v299_v30, %v854_v25  ;;  %v341_v33 = vadd.f32 %v340_v31, %v857_v26  ;;  %v381_v34 = vpop.f32.mrf.mxu2  ;;  %v422_v35 = vpop.f32.mrf.mxu3 }
 0x105   :  { %v382_v36 = vadd.f32 %v381_v34, %v863_v27  ;;  %v423_v37 = vadd.f32 %v422_v35, %v866_v28 }
 0x106   :  { %485 = vst [vmem:[%s999_s3 + $0x1e0] sm:$0xff] %v300_v32 }
 0x107   :  { %486 = vst [vmem:[%s999_s3 + $0x1e8] sm:$0xff] %v341_v33 }
 0x108   :  { %487 = vst [vmem:[%s999_s3 + $0x1f0] sm:$0xff] %v382_v36 }
 0x109   :  { %488 = vst [vmem:[%s999_s3 + $0x1f8] sm:$0xff] %v423_v37 }
 0x10a   :  { %493 = vsyncpa [#allocation3], 1 }

// kernel: bidirectional_lstm_forward.4
= control target key start
LH: loop header
LB: loop body
LE: loop exit
PB: predicated region body
PF: predicated region fallthrough
CT: control target
= control target key end

     0   :  { %11 = vsyncpa [#allocation9], 0  ;;  %s3674_s15 = smov [#allocation8]   ;;  %s3675_s6 = smov [#allocation10]   ;;  %s6168_s0 = inlined_call_operand.vmem [shape: f32[8,8,1024], index: 0, kind: input, shape index: {}, may-alias: {0,1}]   ;;  %s6169_s1 = inlined_call_operand.vmem [shape: f32[8,8,1024], index: 1, kind: input, shape index: {}, may-alias: {0,1}]   ;;  %s6170_s2 = inlined_call_operand.hbm [shape: f32[128,512], index: 2, kind: input, shape index: {}]   ;;  %s6171_s3 = inlined_call_operand.hbm [shape: f32[128,512], index: 3, kind: input, shape index: {}]   ;;  %s6172_s4 = inlined_call_operand.vmem [shape: f32[8,8,128], index: 4, kind: output, shape index: {0}]   ;;  %s6173_s5 = inlined_call_operand.vmem [shape: f32[8,8,128], index: 5, kind: output, shape index: {1}]  }
   0x1   :  { %v3712_v0 = vld [vmem:[%s6168_s0] sm:$0xff]  ;;  %v3717_v1 = vld [vmem:[%s6168_s0 + $0x8] sm:$0xff]  ;;  %v3722_v2 = vld [vmem:[%s6168_s0 + $0x10] sm:$0xff]  ;;  %s3952_s16 = sshll.u32 %s3674_s15, 4  ;;  %s198_s30 = sshll.u32 %s6171_s3, 4  ;;  %s188_s16 = int_to_ptr.vmem [resolvable:$true] %s3952_s16  ;;  %s199_s30 = int_to_ptr.hbm [resolvable:$true] %s198_s30 }
   0x2   :  { %6515 = vst [vmem:[#allocation14_spill] sm:$0xff] %v3712_v0  ;;  %v3727_v3 = vld [vmem:[%s6168_s0 + $0x18] sm:$0xff]  ;;  %v3732_v4 = vld [vmem:[%s6168_s0 + $0x40] sm:$0xff]  ;;  %v3737_v5 = vld [vmem:[%s6168_s0 + $0x48] sm:$0xff]  ;;  %s200_s7 = sshll.u32 %s3675_s6, 4  ;;  %s201_s7 = int_to_ptr.vmem [resolvable:$true] %s200_s7 }
   0x3   :  { %6516 = vst [vmem:[#allocation15_spill] sm:$0xff] %v3717_v1  ;;  %v3742_v6 = vld [vmem:[%s6168_s0 + $0x50] sm:$0xff]  ;;  %v3747_v7 = vld [vmem:[%s6168_s0 + $0x58] sm:$0xff]  ;;  %v3752_v8 = vld [vmem:[%s6168_s0 + $0x80] sm:$0xff] }
   0x4   :  { %6517 = vst [vmem:[#allocation16_spill] sm:$0xff] %v3722_v2  ;;  %v3757_v9 = vld [vmem:[%s6168_s0 + $0x88] sm:$0xff]  ;;  %v3762_v10 = vld [vmem:[%s6168_s0 + $0x90] sm:$0xff]  ;;  %v3767_v11 = vld [vmem:[%s6168_s0 + $0x98] sm:$0xff] }
   0x5   :  { %6518 = vst [vmem:[#allocation17_spill] sm:$0xff] %v3727_v3  ;;  %v3772_v12 = vld [vmem:[%s6168_s0 + $0xc0] sm:$0xff]  ;;  %v3777_v13 = vld [vmem:[%s6168_s0 + $0xc8] sm:$0xff]  ;;  %v3782_v14 = vld [vmem:[%s6168_s0 + $0xd0] sm:$0xff] }
   0x6   :  { %6519 = vst [vmem:[#allocation18_spill] sm:$0xff] %v3732_v4  ;;  %v3787_v15 = vld [vmem:[%s6168_s0 + $0xd8] sm:$0xff]  ;;  %v3792_v16 = vld [vmem:[%s6168_s0 + $0x100] sm:$0xff]  ;;  %v3797_v17 = vld [vmem:[%s6168_s0 + $0x108] sm:$0xff] }
   0x7   :  { %6520 = vst [vmem:[#allocation19_spill] sm:$0xff] %v3737_v5  ;;  %v3802_v18 = vld [vmem:[%s6168_s0 + $0x110] sm:$0xff]  ;;  %v3807_v19 = vld [vmem:[%s6168_s0 + $0x118] sm:$0xff]  ;;  %v3812_v20 = vld [vmem:[%s6168_s0 + $0x140] sm:$0xff] }
   0x8   :  { %6521 = vst [vmem:[#allocation20_spill] sm:$0xff] %v3742_v6  ;;  %v3817_v21 = vld [vmem:[%s6168_s0 + $0x148] sm:$0xff]  ;;  %v3822_v22 = vld [vmem:[%s6168_s0 + $0x150] sm:$0xff]  ;;  %v3827_v23 = vld [vmem:[%s6168_s0 + $0x158] sm:$0xff] }
   0x9   :  { %6522 = vst [vmem:[#allocation21_spill] sm:$0xff] %v3747_v7  ;;  %v3832_v24 = vld [vmem:[%s6168_s0 + $0x180] sm:$0xff]  ;;  %v3837_v25 = vld [vmem:[%s6168_s0 + $0x188] sm:$0xff]  ;;  %v3842_v26 = vld [vmem:[%s6168_s0 + $0x190] sm:$0xff] }
   0xa   :  { %6523 = vst [vmem:[#allocation22_spill] sm:$0xff] %v3752_v8  ;;  %v3847_v27 = vld [vmem:[%s6168_s0 + $0x198] sm:$0xff]  ;;  %v3852_v28 = vld [vmem:[%s6168_s0 + $0x1c0] sm:$0xff]  ;;  %v3857_v29 = vld [vmem:[%s6168_s0 + $0x1c8] sm:$0xff] }
   0xb   :  { %6524 = vst [vmem:[#allocation23_spill] sm:$0xff] %v3757_v9  ;;  %v3862_v30 = vld [vmem:[%s6168_s0 + $0x1d0] sm:$0xff]  ;;  %v3867_v31 = vld [vmem:[%s6168_s0 + $0x1d8] sm:$0xff]  ;;  %v3872_v32 = vld [vmem:[%s6169_s1 + $0x20] sm:$0xff]  ;;  %s185_s0 = sshll.u32 %s6170_s2, 4  ;;  %s186_s0 = int_to_ptr.hbm [resolvable:$true] %s185_s0 }
   0xc   :  { %6525 = vst [vmem:[#allocation24_spill] sm:$0xff] %v3762_v10  ;;  %v3877_v33 = vld [vmem:[%s6169_s1 + $0x28] sm:$0xff]  ;;  %v3882_v34 = vld [vmem:[%s6169_s1 + $0x30] sm:$0xff]  ;;  %v3887_v35 = vld [vmem:[%s6169_s1 + $0x38] sm:$0xff] }
   0xd   :  { %6526 = vst [vmem:[#allocation25_spill] sm:$0xff] %v3767_v11  ;;  %v3892_v36 = vld [vmem:[%s6169_s1 + $0x60] sm:$0xff]  ;;  %v3897_v37 = vld [vmem:[%s6169_s1 + $0x68] sm:$0xff]  ;;  %v3902_v38 = vld [vmem:[%s6169_s1 + $0x70] sm:$0xff] }
   0xe   :  { %6527 = vst [vmem:[#allocation26_spill] sm:$0xff] %v3772_v12  ;;  %v3907_v39 = vld [vmem:[%s6169_s1 + $0x78] sm:$0xff]  ;;  %v3912_v40 = vld [vmem:[%s6169_s1 + $0xa0] sm:$0xff]  ;;  %v3917_v41 = vld [vmem:[%s6169_s1 + $0xa8] sm:$0xff] }
   0xf   :  { %6528 = vst [vmem:[#allocation27_spill] sm:$0xff] %v3777_v13  ;;  %v3922_v42 = vld [vmem:[%s6169_s1 + $0xb0] sm:$0xff]  ;;  %v3927_v43 = vld [vmem:[%s6169_s1 + $0xb8] sm:$0xff]  ;;  %v3932_v44 = vld [vmem:[%s6169_s1 + $0xe0] sm:$0xff] }
  0x10   :  { %6529 = vst [vmem:[#allocation28_spill] sm:$0xff] %v3782_v14  ;;  %v3937_v45 = vld [vmem:[%s6169_s1 + $0xe8] sm:$0xff]  ;;  %v3942_v46 = vld [vmem:[%s6169_s1 + $0xf0] sm:$0xff]  ;;  %v3947_v47 = vld [vmem:[%s6169_s1 + $0xf8] sm:$0xff] }
  0x11   :  { %6530 = vst [vmem:[#allocation29_spill] sm:$0xff] %v3787_v15  ;;  %v3957_v48 = vld [vmem:[%s6169_s1 + $0x120] sm:$0xff]  ;;  %v3962_v49 = vld [vmem:[%s6169_s1 + $0x128] sm:$0xff]  ;;  %v3967_v50 = vld [vmem:[%s6169_s1 + $0x130] sm:$0xff] }
  0x12   :  { %6531 = vst [vmem:[#allocation30_spill] sm:$0xff] %v3792_v16  ;;  %v3972_v51 = vld [vmem:[%s6169_s1 + $0x138] sm:$0xff]  ;;  %v3977_v52 = vld [vmem:[%s6169_s1 + $0x160] sm:$0xff]  ;;  %v3982_v53 = vld [vmem:[%s6169_s1 + $0x168] sm:$0xff] }
  0x13   :  { %6532 = vst [vmem:[#allocation31_spill] sm:$0xff] %v3797_v17  ;;  %v3990_v54 = vld [vmem:[%s6169_s1 + $0x170] sm:$0xff]  ;;  %v3995_v55 = vld [vmem:[%s6169_s1 + $0x178] sm:$0xff]  ;;  %v4000_v56 = vld [vmem:[%s6169_s1 + $0x1a0] sm:$0xff] }
  0x14   :  { %6533 = vst [vmem:[#allocation32_spill] sm:$0xff] %v3802_v18  ;;  %v4006_v57 = vld [vmem:[%s6169_s1 + $0x1a8] sm:$0xff]  ;;  %v4011_v58 = vld [vmem:[%s6169_s1 + $0x1b0] sm:$0xff]  ;;  %v4016_v59 = vld [vmem:[%s6169_s1 + $0x1b8] sm:$0xff] }
  0x15   :  { %6534 = vst [vmem:[#allocation33_spill] sm:$0xff] %v3807_v19  ;;  %v4021_v60 = vld [vmem:[%s6169_s1 + $0x1e0] sm:$0xff]  ;;  %v4026_v61 = vld [vmem:[%s6169_s1 + $0x1e8] sm:$0xff]  ;;  %v4031_v62 = vld [vmem:[%s6169_s1 + $0x1f0] sm:$0xff] }
  0x16   :  { %6535 = vst [vmem:[#allocation34_spill] sm:$0xff] %v3812_v20  ;;  %v4036_v63 = vld [vmem:[%s6169_s1 + $0x1f8] sm:$0xff] }
  0x17   :  { %6536 = vst [vmem:[#allocation35_spill] sm:$0xff] %v3817_v21 }
  0x18   :  { %6537 = vst [vmem:[#allocation36_spill] sm:$0xff] %v3822_v22 }
  0x19   :  { %6538 = vst [vmem:[#allocation37_spill] sm:$0xff] %v3827_v23 }
  0x1a   :  { %6539 = vst [vmem:[#allocation38_spill] sm:$0xff] %v3832_v24 }
  0x1b   :  { %6540 = vst [vmem:[#allocation39_spill] sm:$0xff] %v3837_v25 }
  0x1c   :  { %6541 = vst [vmem:[#allocation40_spill] sm:$0xff] %v3842_v26 }
  0x1d   :  { %6542 = vst [vmem:[#allocation41_spill] sm:$0xff] %v3847_v27 }
  0x1e   :  { %6543 = vst [vmem:[#allocation42_spill] sm:$0xff] %v3852_v28 }
  0x1f   :  { %6544 = vst [vmem:[#allocation43_spill] sm:$0xff] %v3857_v29 }
  0x20   :  { %6545 = vst [vmem:[#allocation44_spill] sm:$0xff] %v3862_v30 }
  0x21   :  { %6546 = vst [vmem:[#allocation45_spill] sm:$0xff] %v3867_v31 }
  0x22   :  { %6547 = vst [vmem:[#allocation46_spill] sm:$0xff] %v3872_v32 }
  0x23   :  { %6548 = vst [vmem:[#allocation47_spill] sm:$0xff] %v3877_v33 }
  0x24   :  { %6549 = vst [vmem:[#allocation48_spill] sm:$0xff] %v3882_v34 }
  0x25   :  { %6550 = vst [vmem:[#allocation49_spill] sm:$0xff] %v3887_v35 }
  0x26   :  { %6551 = vst [vmem:[#allocation50_spill] sm:$0xff] %v3892_v36 }
  0x27   :  { %6552 = vst [vmem:[#allocation51_spill] sm:$0xff] %v3897_v37 }
  0x28   :  { %6553 = vst [vmem:[#allocation52_spill] sm:$0xff] %v3902_v38 }
  0x29   :  { %6554 = vst [vmem:[#allocation53_spill] sm:$0xff] %v3907_v39 }
  0x2a   :  { %6555 = vst [vmem:[#allocation54_spill] sm:$0xff] %v3912_v40 }
  0x2b   :  { %6556 = vst [vmem:[#allocation55_spill] sm:$0xff] %v3917_v41 }
  0x2c   :  { %6557 = vst [vmem:[#allocation56_spill] sm:$0xff] %v3922_v42 }
  0x2d   :  { %6558 = vst [vmem:[#allocation57_spill] sm:$0xff] %v3927_v43 }
  0x2e   :  { %6559 = vst [vmem:[#allocation58_spill] sm:$0xff] %v3932_v44 }
  0x2f   :  { %6560 = vst [vmem:[#allocation59_spill] sm:$0xff] %v3937_v45 }
  0x30   :  { %6561 = vst [vmem:[#allocation60_spill] sm:$0xff] %v3942_v46 }
  0x31   :  { %6562 = vst [vmem:[#allocation61_spill] sm:$0xff] %v3947_v47 }
  0x32   :  { %6563 = vst [vmem:[#allocation62_spill] sm:$0xff] %v3957_v48 }
  0x33   :  { %6564 = vst [vmem:[#allocation63_spill] sm:$0xff] %v3962_v49 }
  0x34   :  { %6565 = vst [vmem:[#allocation64_spill] sm:$0xff] %v3967_v50 }
  0x35   :  { %6566 = vst [vmem:[#allocation65_spill] sm:$0xff] %v3972_v51 }
  0x36   :  { %6567 = vst [vmem:[#allocation66_spill] sm:$0xff] %v3977_v52 }
  0x37   :  { %6568 = vst [vmem:[#allocation67_spill] sm:$0xff] %v3982_v53 }
  0x38   :  { %6569 = vst [vmem:[#allocation68_spill] sm:$0xff] %v3990_v54 }
  0x39   :  { %6570 = vst [vmem:[#allocation69_spill] sm:$0xff] %v3995_v55 }
  0x3a   :  { %6571 = vst [vmem:[#allocation70_spill] sm:$0xff] %v4000_v56 }
  0x3b   :  { %6572 = vst [vmem:[#allocation71_spill] sm:$0xff] %v4006_v57 }
  0x3c   :  { %6573 = vst [vmem:[#allocation72_spill] sm:$0xff] %v4011_v58 }
  0x3d   :  { %6574 = vst [vmem:[#allocation73_spill] sm:$0xff] %v4016_v59 }
  0x3e   :  { %6575 = vst [vmem:[#allocation74_spill] sm:$0xff] %v4021_v60 }
  0x3f   :  { %6576 = vst [vmem:[#allocation75_spill] sm:$0xff] %v4026_v61 }
  0x40   :  { %6577 = vst [vmem:[#allocation76_spill] sm:$0xff] %v4031_v62 }
  0x41   :  { %6578 = vst [vmem:[#allocation77_spill] sm:$0xff] %v4036_v63 }
  0x42   :  { %12 = vsyncpa [#allocation11], 0  ;;  %s3676_s27 = smov 512   ;;  %s3677_s28 = smov 32  }
  0x43   :  { %193 = dma.hbm_to_vmem [thread:$0]  %s186_s0, 8192, %s188_s16, [#allocation9], %s3676_s27, %s3676_s27, %s3677_s28  }
  0x44   :  { %206 = dma.hbm_to_vmem [thread:$0]  %s199_s30, 8192, %s201_s7, [#allocation11], %s3676_s27, %s3676_s27, %s3677_s28  }
  0x45   :  { %3670 = dma.done.wait [#allocation9], 8192  }
  0x46   :  { %3671 = vsyncadd [#allocation9], 4294959104 }
  0x47   :  { %3672 = dma.done.wait [#allocation11], 8192  }
  0x48   :  { %3673 = vsyncadd [#allocation11], 4294959104  ;;  %v4038_v34 = vld [vmem:[#allocation8 + $0x1e0] sm:$0xff]  ;;  %v4040_v35 = vld [vmem:[#allocation8 + $0x1e8] sm:$0xff]  ;;  %v6194_v1 = vmov 0.0  }
  0x49   :  { %v4042_v33 = vld [vmem:[#allocation8 + $0x1f8] sm:$0xff]  ;;  %379 = vmatpush.msra.mxu0 %v4038_v34  ;;  %399 = vmatpush.msra.mxu1 %v4040_v35  ;;  %v4046_v32 = vld [vmem:[#allocation8 + $0x1c0] sm:$0xff]  ;;  %v4048_v30 = vld [vmem:[#allocation8 + $0x1c8] sm:$0xff] }
  0x4a   :  { %6579 = vst [vmem:[#allocation78_spill] sm:$0xff] %v4042_v33  ;;  %v4050_v31 = vld [vmem:[#allocation8 + $0x1d8] sm:$0xff]  ;;  %439 = vmatpush.msra.mxu3 %v4042_v33  ;;  %v4053_v29 = vld [vmem:[#allocation8 + $0x1a0] sm:$0xff]  ;;  %v4055_v28 = vld [vmem:[#allocation8 + $0x1a8] sm:$0xff] }
  0x4b   :  { %6580 = vst [vmem:[#allocation79_spill] sm:$0xff] %v4050_v31  ;;  %380 = vmatpush.msra.mxu0 %v4046_v32  ;;  %400 = vmatpush.msra.mxu1 %v4048_v30  ;;  %v4059_v38 = vld [vmem:[#allocation8 + $0x1b8] sm:$0xff]  ;;  %v4062_v39 = vld [vmem:[#allocation8 + $0x180] sm:$0xff]  ;;  %v4064_v37 = vld [vmem:[#allocation8 + $0x188] sm:$0xff] }
  0x4c   :  { %6581 = vst [vmem:[#allocation80_spill] sm:$0xff] %v4059_v38  ;;  %440 = vmatpush.msra.mxu3 %v4050_v31  ;;  %v4068_v36 = vld [vmem:[#allocation8 + $0x198] sm:$0xff]  ;;  %v4071_v26 = vld [vmem:[#allocation8 + $0x160] sm:$0xff]  ;;  %v4073_v27 = vld [vmem:[#allocation8 + $0x168] sm:$0xff] }
  0x4d   :  { %381 = vmatpush.msra.mxu0 %v4053_v29  ;;  %401 = vmatpush.msra.mxu1 %v4055_v28  ;;  %v4077_v25 = vld [vmem:[#allocation8 + $0x178] sm:$0xff]  ;;  %v4080_v24 = vld [vmem:[#allocation8 + $0x140] sm:$0xff]  ;;  %v4082_v42 = vld [vmem:[#allocation8 + $0x148] sm:$0xff] }
  0x4e   :  { %441 = vmatpush.msra.mxu3 %v4059_v38  ;;  %v4084_v43 = vld [vmem:[#allocation8 + $0x1f0] sm:$0xff]  ;;  %v4088_v41 = vld [vmem:[#allocation8 + $0x158] sm:$0xff]  ;;  %v4093_v22 = vld [vmem:[#allocation8 + $0x120] sm:$0xff] }
  0x4f   :  { %382 = vmatpush.msra.mxu0 %v4062_v39  ;;  %402 = vmatpush.msra.mxu1 %v4064_v37  ;;  %v4090_v40 = vld [vmem:[#allocation8 + $0x1d0] sm:$0xff]  ;;  %v4095_v23 = vld [vmem:[#allocation8 + $0x128] sm:$0xff]  ;;  %v4100_v21 = vld [vmem:[#allocation8 + $0x138] sm:$0xff] }
  0x50   :  { %442 = vmatpush.msra.mxu3 %v4068_v36  ;;  %419 = vmatpush.msra.mxu2 %v4084_v43  ;;  %v4102_v20 = vld [vmem:[#allocation8 + $0x1b0] sm:$0xff]  ;;  %v4105_v46 = vld [vmem:[#allocation8 + $0x100] sm:$0xff]  ;;  %v4107_v47 = vld [vmem:[#allocation8 + $0x108] sm:$0xff] }
  0x51   :  { %383 = vmatpush.msra.mxu0 %v4071_v26  ;;  %403 = vmatpush.msra.mxu1 %v4073_v27  ;;  %v4112_v45 = vld [vmem:[#allocation8 + $0x118] sm:$0xff]  ;;  %v4114_v44 = vld [vmem:[#allocation8 + $0x190] sm:$0xff]  ;;  %v4117_v18 = vld [vmem:[#allocation8 + $0xe0] sm:$0xff] }
  0x52   :  { %443 = vmatpush.msra.mxu3 %v4077_v25  ;;  %420 = vmatpush.msra.mxu2 %v4090_v40  ;;  %v4119_v19 = vld [vmem:[#allocation8 + $0xe8] sm:$0xff]  ;;  %v4124_v17 = vld [vmem:[#allocation8 + $0xf8] sm:$0xff]  ;;  %v4126_v16 = vld [vmem:[#allocation8 + $0x170] sm:$0xff] }
  0x53   :  { %384 = vmatpush.msra.mxu0 %v4080_v24  ;;  %404 = vmatpush.msra.mxu1 %v4082_v42  ;;  %v4129_v50 = vld [vmem:[#allocation8 + $0xc0] sm:$0xff]  ;;  %v4131_v51 = vld [vmem:[#allocation8 + $0xc8] sm:$0xff]  ;;  %v4136_v49 = vld [vmem:[#allocation8 + $0xd8] sm:$0xff] }
  0x54   :  { %444 = vmatpush.msra.mxu3 %v4088_v41  ;;  %421 = vmatpush.msra.mxu2 %v4102_v20  ;;  %v4138_v48 = vld [vmem:[#allocation8 + $0x150] sm:$0xff]  ;;  %v4141_v14 = vld [vmem:[#allocation8 + $0xa0] sm:$0xff]  ;;  %v4143_v15 = vld [vmem:[#allocation8 + $0xa8] sm:$0xff] }
  0x55   :  { %385 = vmatpush.msra.mxu0 %v4093_v22  ;;  %405 = vmatpush.msra.mxu1 %v4095_v23  ;;  %v4148_v13 = vld [vmem:[#allocation8 + $0xb8] sm:$0xff]  ;;  %v4150_v12 = vld [vmem:[#allocation8 + $0x130] sm:$0xff]  ;;  %v4153_v54 = vld [vmem:[#allocation8 + $0x80] sm:$0xff] }
  0x56   :  { %445 = vmatpush.msra.mxu3 %v4100_v21  ;;  %422 = vmatpush.msra.mxu2 %v4114_v44  ;;  %6582 = vst [vmem:[#allocation81_spill] sm:$0xff] %v4148_v13  ;;  %v4155_v55 = vld [vmem:[#allocation8 + $0x88] sm:$0xff]  ;;  %v4160_v53 = vld [vmem:[#allocation8 + $0x98] sm:$0xff]  ;;  %v4162_v52 = vld [vmem:[#allocation8 + $0x110] sm:$0xff] }
  0x57   :  { %386 = vmatpush.msra.mxu0 %v4105_v46  ;;  %406 = vmatpush.msra.mxu1 %v4107_v47  ;;  %6583 = vst [vmem:[#allocation82_spill] sm:$0xff] %v4153_v54  ;;  %v4165_v10 = vld [vmem:[#allocation8 + $0x60] sm:$0xff]  ;;  %v4167_v11 = vld [vmem:[#allocation8 + $0x68] sm:$0xff]  ;;  %v4172_v9 = vld [vmem:[#allocation8 + $0x78] sm:$0xff] }
  0x58   :  { %446 = vmatpush.msra.mxu3 %v4112_v45  ;;  %423 = vmatpush.msra.mxu2 %v4126_v16  ;;  %6584 = vst [vmem:[#allocation83_spill] sm:$0xff] %v4155_v55  ;;  %v4174_v8 = vld [vmem:[#allocation8 + $0xf0] sm:$0xff]  ;;  %v4177_v58 = vld [vmem:[#allocation8 + $0x40] sm:$0xff]  ;;  %v4179_v59 = vld [vmem:[#allocation8 + $0x48] sm:$0xff] }
  0x59   :  { %387 = vmatpush.msra.mxu0 %v4117_v18  ;;  %407 = vmatpush.msra.mxu1 %v4119_v19  ;;  %6585 = vst [vmem:[#allocation84_spill] sm:$0xff] %v4160_v53  ;;  %v4184_v57 = vld [vmem:[#allocation8 + $0x58] sm:$0xff]  ;;  %v4186_v56 = vld [vmem:[#allocation8 + $0xd0] sm:$0xff]  ;;  %v4189_v6 = vld [vmem:[#allocation8 + $0x20] sm:$0xff] }
  0x5a   :  { %447 = vmatpush.msra.mxu3 %v4124_v17  ;;  %424 = vmatpush.msra.mxu2 %v4138_v48  ;;  %6586 = vst [vmem:[#allocation85_spill] sm:$0xff] %v4165_v10  ;;  %v4191_v7 = vld [vmem:[#allocation8 + $0x28] sm:$0xff]  ;;  %v4196_v5 = vld [vmem:[#allocation8 + $0x38] sm:$0xff]  ;;  %v4198_v4 = vld [vmem:[#allocation8 + $0xb0] sm:$0xff] }
  0x5b   :  { %388 = vmatpush.msra.mxu0 %v4129_v50  ;;  %408 = vmatpush.msra.mxu1 %v4131_v51  ;;  %6587 = vst [vmem:[#allocation86_spill] sm:$0xff] %v4167_v11  ;;  %v4201_v62 = vld [vmem:[#allocation8] sm:$0xff]  ;;  %v4203_v63 = vld [vmem:[#allocation8 + $0x8] sm:$0xff]  ;;  %v4208_v61 = vld [vmem:[#allocation8 + $0x18] sm:$0xff] }
  0x5c   :  { %448 = vmatpush.msra.mxu3 %v4136_v49  ;;  %425 = vmatpush.msra.mxu2 %v4150_v12  ;;  %6588 = vst [vmem:[#allocation87_spill] sm:$0xff] %v4172_v9  ;;  %v4211_v60 = vld [vmem:[#allocation10 + $0x1e0] sm:$0xff]  ;;  %v4216_v2 = vld [vmem:[#allocation10 + $0x1e8] sm:$0xff]  ;;  %v4218_v3 = vld [vmem:[#allocation10 + $0x1f8] sm:$0xff] }
  0x5d   :  { %389 = vmatpush.msra.mxu0 %v4141_v14  ;;  %409 = vmatpush.msra.mxu1 %v4143_v15  ;;  %6589 = vst [vmem:[#allocation88_spill] sm:$0xff] %v4174_v8  ;;  %v4222_v0 = vld [vmem:[#allocation10 + $0x1c0] sm:$0xff] }
  0x5e   :  { %449 = vmatpush.msra.mxu3 %v4148_v13  ;;  %6590 = vst [vmem:[#allocation89_spill] sm:$0xff] %v4177_v58  ;;  %426 = vmatpush.msra.mxu2 %v4162_v52 }
  0x5f   :  { %390 = vmatpush.msra.mxu0 %v4153_v54  ;;  %410 = vmatpush.msra.mxu1 %v4155_v55  ;;  %6591 = vst [vmem:[#allocation90_spill] sm:$0xff] %v4179_v59 }
  0x60   :  { %450 = vmatpush.msra.mxu3 %v4160_v53  ;;  %6592 = vst [vmem:[#allocation91_spill] sm:$0xff] %v4184_v57  ;;  %427 = vmatpush.msra.mxu2 %v4174_v8  ;;  %v4237_v8 = vld [vmem:[#allocation10 + $0x1a8] sm:$0xff] }
  0x61   :  { %391 = vmatpush.msra.mxu0 %v4165_v10  ;;  %411 = vmatpush.msra.mxu1 %v4167_v11  ;;  %6593 = vst [vmem:[#allocation92_spill] sm:$0xff] %v4186_v56 }
  0x62   :  { %451 = vmatpush.msra.mxu3 %v4172_v9  ;;  %6594 = vst [vmem:[#allocation93_spill] sm:$0xff] %v4189_v6  ;;  %428 = vmatpush.msra.mxu2 %v4186_v56  ;;  %v4228_v56 = vld [vmem:[#allocation10 + $0x1d8] sm:$0xff] }
  0x63   :  { %6595 = vst [vmem:[#allocation94_spill] sm:$0xff] %v4191_v7  ;;  %392 = vmatpush.msra.mxu0 %v4177_v58  ;;  %412 = vmatpush.msra.mxu1 %v4179_v59 }
  0x64   :  { %6596 = vst [vmem:[#allocation95_spill] sm:$0xff] %v4196_v5  ;;  %452 = vmatpush.msra.mxu3 %v4184_v57  ;;  %429 = vmatpush.msra.mxu2 %v4198_v4 }
  0x65   :  { %6597 = vst [vmem:[#allocation96_spill] sm:$0xff] %v4198_v4  ;;  %393 = vmatpush.msra.mxu0 %v4189_v6  ;;  %413 = vmatpush.msra.mxu1 %v4191_v7  ;;  %v4226_v4 = vld [vmem:[#allocation10 + $0x1c8] sm:$0xff] }
  0x66   :  { %6598 = vst [vmem:[#allocation97_spill] sm:$0xff] %v4201_v62  ;;  %453 = vmatpush.msra.mxu3 %v4196_v5  ;;  %v4326_v5 = vld [vmem:[#allocation10 + $0x1b0] sm:$0xff] }
  0x67   :  { %6599 = vst [vmem:[#allocation98_spill] sm:$0xff] %v4203_v63  ;;  %394 = vmatpush.msra.mxu0 %v4201_v62  ;;  %414 = vmatpush.msra.mxu1 %v4203_v63  ;;  %v4232_v63 = vld [vmem:[#allocation10 + $0x1a0] sm:$0xff]  ;;  %v4239_v62 = vld [vmem:[#allocation10 + $0x1b8] sm:$0xff] }
  0x68   :  { %6600 = vst [vmem:[#allocation99_spill] sm:$0xff] %v4208_v61  ;;  %454 = vmatpush.msra.mxu3 %v4208_v61  ;;  %395 = vmatmul.f32.vlgmr.msra.gmra.mxu0 %v6194_v1  ;;  %v4234_v61 = vld [vmem:[#allocation8 + $0x90] sm:$0xff] }
  0x69   :  { %6601 = vst [vmem:[#allocation100_spill] sm:$0xff] %v4211_v60  ;;  %415 = vmatmul.f32.vlgmr.msra.gmra.mxu1 %v6194_v1  ;;  %532 = vmatpush.msrb.mxu0 %v4211_v60  ;;  %v4244_v60 = vld [vmem:[#allocation10 + $0x180] sm:$0xff] }
  0x6a   :  { %6602 = vst [vmem:[#allocation101_spill] sm:$0xff] %v4216_v2  ;;  %552 = vmatpush.msrb.mxu1 %v4216_v2  ;;  %592 = vmatpush.msrb.mxu3 %v4218_v3  ;;  %v4246_v2 = vld [vmem:[#allocation8 + $0x70] sm:$0xff] }
  0x6b   :  { %6603 = vst [vmem:[#allocation102_spill] sm:$0xff] %v4218_v3  ;;  %533 = vmatpush.msrb.mxu0 %v4222_v0  ;;  %455 = vmatmul.f32.vlgmr.msra.gmra.mxu3 %v6194_v1  ;;  %v4250_v3 = vld [vmem:[#allocation10 + $0x188] sm:$0xff]  ;;  %v4256_v1 = vld [vmem:[#allocation10 + $0x160] sm:$0xff] }
  0x6c   :  { %6604 = vst [vmem:[#allocation103_spill] sm:$0xff] %v4222_v0  ;;  %553 = vmatpush.msrb.mxu1 %v4226_v4  ;;  %593 = vmatpush.msrb.mxu3 %v4228_v56  ;;  %v4252_v0 = vld [vmem:[#allocation10 + $0x198] sm:$0xff] }
  0x6d   :  { %6605 = vst [vmem:[#allocation104_spill] sm:$0xff] %v4226_v4  ;;  %534 = vmatpush.msrb.mxu0 %v4232_v63  ;;  %430 = vmatpush.msra.mxu2 %v4234_v61  ;;  %v4258_v4 = vld [vmem:[#allocation8 + $0x50] sm:$0xff] }
  0x6e   :  { %6606 = vst [vmem:[#allocation105_spill] sm:$0xff] %v4228_v56  ;;  %554 = vmatpush.msrb.mxu1 %v4237_v8  ;;  %594 = vmatpush.msrb.mxu3 %v4239_v62  ;;  %v4262_v56 = vld [vmem:[#allocation10 + $0x168] sm:$0xff] }
  0x6f   :  { %6607 = vst [vmem:[#allocation106_spill] sm:$0xff] %v4232_v63  ;;  %535 = vmatpush.msrb.mxu0 %v4244_v60  ;;  %431 = vmatpush.msra.mxu2 %v4246_v2  ;;  %v4264_v63 = vld [vmem:[#allocation10 + $0x178] sm:$0xff] }
  0x70   :  { %6608 = vst [vmem:[#allocation107_spill] sm:$0xff] %v4234_v61  ;;  %555 = vmatpush.msrb.mxu1 %v4250_v3  ;;  %595 = vmatpush.msrb.mxu3 %v4252_v0  ;;  %v4268_v61 = vld [vmem:[#allocation10 + $0x140] sm:$0xff] }
  0x71   :  { %6609 = vst [vmem:[#allocation108_spill] sm:$0xff] %v4237_v8  ;;  %v4270_v8 = vld [vmem:[#allocation8 + $0x30] sm:$0xff]  ;;  %536 = vmatpush.msrb.mxu0 %v4256_v1  ;;  %432 = vmatpush.msra.mxu2 %v4258_v4 }
  0x72   :  { %6610 = vst [vmem:[#allocation109_spill] sm:$0xff] %v4239_v62  ;;  %v4274_v62 = vld [vmem:[#allocation10 + $0x148] sm:$0xff]  ;;  %556 = vmatpush.msrb.mxu1 %v4262_v56  ;;  %596 = vmatpush.msrb.mxu3 %v4264_v63 }
  0x73   :  { %6611 = vst [vmem:[#allocation110_spill] sm:$0xff] %v4244_v60  ;;  %v4276_v60 = vld [vmem:[#allocation10 + $0x158] sm:$0xff]  ;;  %537 = vmatpush.msrb.mxu0 %v4268_v61  ;;  %433 = vmatpush.msra.mxu2 %v4270_v8 }
  0x74   :  { %6612 = vst [vmem:[#allocation111_spill] sm:$0xff] %v4246_v2  ;;  %v4280_v2 = vld [vmem:[#allocation10 + $0x120] sm:$0xff]  ;;  %557 = vmatpush.msrb.mxu1 %v4274_v62  ;;  %597 = vmatpush.msrb.mxu3 %v4276_v60 }
  0x75   :  { %6613 = vst [vmem:[#allocation112_spill] sm:$0xff] %v4250_v3  ;;  %v4282_v3 = vld [vmem:[#allocation8 + $0x10] sm:$0xff]  ;;  %538 = vmatpush.msrb.mxu0 %v4280_v2 }
  0x76   :  { %6614 = vst [vmem:[#allocation113_spill] sm:$0xff] %v4252_v0  ;;  %v4286_v0 = vld [vmem:[#allocation10 + $0x128] sm:$0xff]  ;;  %434 = vmatpush.msra.mxu2 %v4282_v3 }
  0x77   :  { %6615 = vst [vmem:[#allocation114_spill] sm:$0xff] %v4256_v1  ;;  %v4288_v1 = vld [vmem:[#allocation10 + $0x138] sm:$0xff]  ;;  %558 = vmatpush.msrb.mxu1 %v4286_v0 }
  0x78   :  { %6616 = vst [vmem:[#allocation115_spill] sm:$0xff] %v4258_v4  ;;  %v4292_v4 = vld [vmem:[#allocation10 + $0x100] sm:$0xff]  ;;  %598 = vmatpush.msrb.mxu3 %v4288_v1 }
  0x79   :  { %6617 = vst [vmem:[#allocation116_spill] sm:$0xff] %v4262_v56  ;;  %v4298_v56 = vld [vmem:[#allocation10 + $0x118] sm:$0xff]  ;;  %539 = vmatpush.msrb.mxu0 %v4292_v4 }
  0x7a   :  { %6618 = vst [vmem:[#allocation117_spill] sm:$0xff] %v4264_v63  ;;  %v4296_v63 = vld [vmem:[#allocation10 + $0x108] sm:$0xff]  ;;  %599 = vmatpush.msrb.mxu3 %v4298_v56 }
  0x7b   :  { %6619 = vst [vmem:[#allocation118_spill] sm:$0xff] %v4268_v61  ;;  %v4304_v61 = vld [vmem:[#allocation10 + $0xe0] sm:$0xff]  ;;  %559 = vmatpush.msrb.mxu1 %v4296_v63 }
  0x7c   :  { %6620 = vst [vmem:[#allocation119_spill] sm:$0xff] %v4270_v8  ;;  %v4302_v8 = vld [vmem:[#allocation10 + $0x1f0] sm:$0xff]  ;;  %540 = vmatpush.msrb.mxu0 %v4304_v61 }
  0x7d   :  { %6621 = vst [vmem:[#allocation120_spill] sm:$0xff] %v4274_v62  ;;  %v4308_v62 = vld [vmem:[#allocation10 + $0xe8] sm:$0xff]  ;;  %572 = vmatpush.msrb.mxu2 %v4302_v8 }
  0x7e   :  { %6622 = vst [vmem:[#allocation121_spill] sm:$0xff] %v4276_v60  ;;  %v6632_v60 = vmov 0.0   ;;  %560 = vmatpush.msrb.mxu1 %v4308_v62 }
  0x7f   :  { %6623 = vst [vmem:[#allocation122_spill] sm:$0xff] %v4280_v2  ;;  %435 = vmatmul.f32.vlgmr.msra.gmra.mxu2 %v6632_v60  ;;  %v4310_v2 = vld [vmem:[#allocation10 + $0xf8] sm:$0xff] }
  0x80   :  { %6624 = vst [vmem:[#allocation123_spill] sm:$0xff] %v4282_v3  ;;  %v4314_v3 = vld [vmem:[#allocation10 + $0x1d0] sm:$0xff]  ;;  %600 = vmatpush.msrb.mxu3 %v4310_v2 }
  0x81   :  { %6625 = vst [vmem:[#allocation124_spill] sm:$0xff] %v4286_v0  ;;  %v4316_v0 = vld [vmem:[#allocation10 + $0xc0] sm:$0xff]  ;;  %573 = vmatpush.msrb.mxu2 %v4314_v3 }
  0x82   :  { %6626 = vst [vmem:[#allocation125_spill] sm:$0xff] %v4288_v1  ;;  %v4320_v1 = vld [vmem:[#allocation10 + $0xc8] sm:$0xff]  ;;  %541 = vmatpush.msrb.mxu0 %v4316_v0 }
  0x83   :  { %6627 = vst [vmem:[#allocation126_spill] sm:$0xff] %v4292_v4  ;;  %v4322_v4 = vld [vmem:[#allocation10 + $0xd8] sm:$0xff]  ;;  %561 = vmatpush.msrb.mxu1 %v4320_v1  ;;  %574 = vmatpush.msrb.mxu2 %v4326_v5 }
  0x84   :  { %6628 = vst [vmem:[#allocation127_spill] sm:$0xff] %v4296_v63  ;;  %v4328_v63 = vld [vmem:[#allocation10 + $0xa0] sm:$0xff]  ;;  %601 = vmatpush.msrb.mxu3 %v4322_v4 }
  0x85   :  { %6629 = vst [vmem:[#allocation128_spill] sm:$0xff] %v4298_v56  ;;  %v4332_v56 = vld [vmem:[#allocation10 + $0xa8] sm:$0xff]  ;;  %542 = vmatpush.msrb.mxu0 %v4328_v63 }
  0x86   :  { %6630 = vst [vmem:[#allocation129_spill] sm:$0xff] %v4302_v8  ;;  %v4334_v8 = vld [vmem:[#allocation10 + $0xb8] sm:$0xff]  ;;  %562 = vmatpush.msrb.mxu1 %v4332_v56 }
  0x87   :  { %6631 = vst [vmem:[#allocation130_spill] sm:$0xff] %v4304_v61  ;;  %v4338_v61 = vld [vmem:[#allocation10 + $0x190] sm:$0xff]  ;;  %602 = vmatpush.msrb.mxu3 %v4334_v8 }
  0x88   :  { %6633 = vst [vmem:[#allocation131_spill] sm:$0xff] %v4308_v62  ;;  %v4340_v62 = vld [vmem:[#allocation10 + $0x80] sm:$0xff]  ;;  %575 = vmatpush.msrb.mxu2 %v4338_v61 }
  0x89   :  { %6634 = vst [vmem:[#allocation132_spill] sm:$0xff] %v4310_v2  ;;  %v4344_v2 = vld [vmem:[#allocation10 + $0x88] sm:$0xff]  ;;  %543 = vmatpush.msrb.mxu0 %v4340_v62 }
  0x8a   :  { %6635 = vst [vmem:[#allocation133_spill] sm:$0xff] %v4314_v3  ;;  %v4346_v3 = vld [vmem:[#allocation10 + $0x98] sm:$0xff]  ;;  %563 = vmatpush.msrb.mxu1 %v4344_v2 }
  0x8b   :  { %6636 = vst [vmem:[#allocation134_spill] sm:$0xff] %v4316_v0  ;;  %v4350_v0 = vld [vmem:[#allocation10 + $0x170] sm:$0xff]  ;;  %603 = vmatpush.msrb.mxu3 %v4346_v3 }
  0x8c   :  { %6637 = vst [vmem:[#allocation135_spill] sm:$0xff] %v4320_v1  ;;  %v4352_v1 = vld [vmem:[#allocation10 + $0x60] sm:$0xff]  ;;  %576 = vmatpush.msrb.mxu2 %v4350_v0 }
  0x8d   :  { %6638 = vst [vmem:[#allocation136_spill] sm:$0xff] %v4322_v4  ;;  %v4356_v4 = vld [vmem:[#allocation10 + $0x68] sm:$0xff]  ;;  %544 = vmatpush.msrb.mxu0 %v4352_v1 }
  0x8e   :  { %6639 = vst [vmem:[#allocation137_spill] sm:$0xff] %v4326_v5  ;;  %v4358_v5 = vld [vmem:[#allocation10 + $0x78] sm:$0xff]  ;;  %564 = vmatpush.msrb.mxu1 %v4356_v4 }
  0x8f   :  { %6640 = vst [vmem:[#allocation138_spill] sm:$0xff] %v4328_v63  ;;  %v4362_v63 = vld [vmem:[#allocation10 + $0x150] sm:$0xff]  ;;  %604 = vmatpush.msrb.mxu3 %v4358_v5 }
  0x90   :  { %6641 = vst [vmem:[#allocation139_spill] sm:$0xff] %v4332_v56  ;;  %v4364_v56 = vld [vmem:[#allocation10 + $0x40] sm:$0xff]  ;;  %577 = vmatpush.msrb.mxu2 %v4362_v63 }
  0x91   :  { %6642 = vst [vmem:[#allocation140_spill] sm:$0xff] %v4334_v8  ;;  %v4368_v8 = vld [vmem:[#allocation10 + $0x48] sm:$0xff]  ;;  %545 = vmatpush.msrb.mxu0 %v4364_v56 }
  0x92   :  { %6643 = vst [vmem:[#allocation141_spill] sm:$0xff] %v4338_v61  ;;  %v4370_v61 = vld [vmem:[#allocation10 + $0x58] sm:$0xff]  ;;  %565 = vmatpush.msrb.mxu1 %v4368_v8 }
  0x93   :  { %6644 = vst [vmem:[#allocation142_spill] sm:$0xff] %v4340_v62  ;;  %v4374_v62 = vld [vmem:[#allocation10 + $0x130] sm:$0xff]  ;;  %605 = vmatpush.msrb.mxu3 %v4370_v61 }
  0x94   :  { %6645 = vst [vmem:[#allocation143_spill] sm:$0xff] %v4344_v2  ;;  %v4376_v2 = vld [vmem:[#allocation10 + $0x20] sm:$0xff]  ;;  %578 = vmatpush.msrb.mxu2 %v4374_v62 }
  0x95   :  { %6646 = vst [vmem:[#allocation144_spill] sm:$0xff] %v4346_v3  ;;  %v4380_v3 = vld [vmem:[#allocation10 + $0x28] sm:$0xff]  ;;  %546 = vmatpush.msrb.mxu0 %v4376_v2 }
  0x96   :  { %6647 = vst [vmem:[#allocation145_spill] sm:$0xff] %v4350_v0  ;;  %v4382_v0 = vld [vmem:[#allocation10 + $0x38] sm:$0xff]  ;;  %566 = vmatpush.msrb.mxu1 %v4380_v3 }
  0x97   :  { %6648 = vst [vmem:[#allocation146_spill] sm:$0xff] %v4352_v1  ;;  %v4386_v1 = vld [vmem:[#allocation10 + $0x110] sm:$0xff]  ;;  %606 = vmatpush.msrb.mxu3 %v4382_v0 }
  0x98   :  { %6649 = vst [vmem:[#allocation147_spill] sm:$0xff] %v4356_v4  ;;  %v4388_v4 = vld [vmem:[#allocation10] sm:$0xff]  ;;  %579 = vmatpush.msrb.mxu2 %v4386_v1 }
  0x99   :  { %6650 = vst [vmem:[#allocation148_spill] sm:$0xff] %v4358_v5  ;;  %v4392_v5 = vld [vmem:[#allocation10 + $0x8] sm:$0xff]  ;;  %547 = vmatpush.msrb.mxu0 %v4388_v4 }
  0x9a   :  { %6651 = vst [vmem:[#allocation149_spill] sm:$0xff] %v4362_v63  ;;  %v4394_v63 = vld [vmem:[#allocation10 + $0x18] sm:$0xff]  ;;  %567 = vmatpush.msrb.mxu1 %v4392_v5  ;;  %548 = vmatmul.f32.vlgmr.msrb.gmra.mxu0 %v6632_v60 }
  0x9b   :  { %6652 = vst [vmem:[#allocation150_spill] sm:$0xff] %v4364_v56  ;;  %607 = vmatpush.msrb.mxu3 %v4394_v63  ;;  %568 = vmatmul.f32.vlgmr.msrb.gmra.mxu1 %v6632_v60 }
  0x9c   :  { %6653 = vst [vmem:[#allocation151_spill] sm:$0xff] %v4368_v8  ;;  %608 = vmatmul.f32.vlgmr.msrb.gmra.mxu3 %v6632_v60  ;;  %686 = vmatpush.msra.mxu0 %v4038_v34 }
  0x9d   :  { %6654 = vst [vmem:[#allocation152_spill] sm:$0xff] %v4370_v61  ;;  %v4400_v61 = vld [vmem:[#allocation10 + $0xf0] sm:$0xff]  ;;  %706 = vmatpush.msra.mxu1 %v4040_v35  ;;  %746 = vmatpush.msra.mxu3 %v4042_v33 }
  0x9e   :  { %6655 = vst [vmem:[#allocation153_spill] sm:$0xff] %v4374_v62  ;;  %580 = vmatpush.msrb.mxu2 %v4400_v61  ;;  %687 = vmatpush.msra.mxu0 %v4046_v32  ;;  %v4428_v33 = vld [vmem:[#allocation10 + $0x50] sm:$0xff] }
  0x9f   :  { %6656 = vst [vmem:[#allocation154_spill] sm:$0xff] %v4376_v2  ;;  %v4406_v2 = vld [vmem:[#allocation10 + $0xd0] sm:$0xff]  ;;  %707 = vmatpush.msra.mxu1 %v4048_v30  ;;  %747 = vmatpush.msra.mxu3 %v4050_v31 }
  0xa0   :  { %6657 = vst [vmem:[#allocation155_spill] sm:$0xff] %v4380_v3  ;;  %581 = vmatpush.msrb.mxu2 %v4406_v2  ;;  %688 = vmatpush.msra.mxu0 %v4053_v29  ;;  %v4434_v31 = vld [vmem:[#allocation10 + $0x30] sm:$0xff] }
  0xa1   :  { %6658 = vst [vmem:[#allocation156_spill] sm:$0xff] %v4382_v0  ;;  %v4410_v0 = vld [vmem:[#allocation10 + $0xb0] sm:$0xff]  ;;  %708 = vmatpush.msra.mxu1 %v4055_v28  ;;  %748 = vmatpush.msra.mxu3 %v4059_v38 }
  0xa2   :  { %6659 = vst [vmem:[#allocation157_spill] sm:$0xff] %v4386_v1  ;;  %582 = vmatpush.msrb.mxu2 %v4410_v0  ;;  %689 = vmatpush.msra.mxu0 %v4062_v39  ;;  %v4440_v38 = vld [vmem:[#allocation10 + $0x10] sm:$0xff] }
  0xa3   :  { %6660 = vst [vmem:[#allocation158_spill] sm:$0xff] %v4388_v4  ;;  %709 = vmatpush.msra.mxu1 %v4064_v37  ;;  %749 = vmatpush.msra.mxu3 %v4068_v36 }
  0xa4   :  { %6661 = vst [vmem:[#allocation159_spill] sm:$0xff] %v4392_v5  ;;  %v4422_v5 = vld [vmem:[#allocation10 + $0x70] sm:$0xff]  ;;  %690 = vmatpush.msra.mxu0 %v4071_v26 }
  0xa5   :  { %6662 = vst [vmem:[#allocation160_spill] sm:$0xff] %v4394_v63  ;;  %v4416_v63 = vld [vmem:[#allocation10 + $0x90] sm:$0xff]  ;;  %710 = vmatpush.msra.mxu1 %v4073_v27  ;;  %750 = vmatpush.msra.mxu3 %v4077_v25 }
  0xa6   :  { %6663 = vst [vmem:[#allocation161_spill] sm:$0xff] %v4400_v61  ;;  %583 = vmatpush.msrb.mxu2 %v4416_v63  ;;  %691 = vmatpush.msra.mxu0 %v4080_v24 }
  0xa7   :  { %6664 = vst [vmem:[#allocation162_spill] sm:$0xff] %v4406_v2  ;;  %711 = vmatpush.msra.mxu1 %v4082_v42  ;;  %751 = vmatpush.msra.mxu3 %v4088_v41 }
  0xa8   :  { %6665 = vst [vmem:[#allocation163_spill] sm:$0xff] %v4410_v0  ;;  %584 = vmatpush.msrb.mxu2 %v4422_v5  ;;  %692 = vmatpush.msra.mxu0 %v4093_v22 }
  0xa9   :  { %6666 = vst [vmem:[#allocation164_spill] sm:$0xff] %v4416_v63  ;;  %712 = vmatpush.msra.mxu1 %v4095_v23  ;;  %752 = vmatpush.msra.mxu3 %v4100_v21 }
  0xaa   :  { %6667 = vst [vmem:[#allocation165_spill] sm:$0xff] %v4422_v5  ;;  %585 = vmatpush.msrb.mxu2 %v4428_v33  ;;  %693 = vmatpush.msra.mxu0 %v4105_v46 }
  0xab   :  { %6668 = vst [vmem:[#allocation166_spill] sm:$0xff] %v4428_v33  ;;  %713 = vmatpush.msra.mxu1 %v4107_v47  ;;  %753 = vmatpush.msra.mxu3 %v4112_v45 }
  0xac   :  { %6669 = vst [vmem:[#allocation167_spill] sm:$0xff] %v4434_v31  ;;  %586 = vmatpush.msrb.mxu2 %v4434_v31  ;;  %694 = vmatpush.msra.mxu0 %v4117_v18 }
  0xad   :  { %6670 = vst [vmem:[#allocation168_spill] sm:$0xff] %v4440_v38  ;;  %714 = vmatpush.msra.mxu1 %v4119_v19  ;;  %754 = vmatpush.msra.mxu3 %v4124_v17 }
  0xae   :  { %587 = vmatpush.msrb.mxu2 %v4440_v38  ;;  %695 = vmatpush.msra.mxu0 %v4129_v50 }
  0xaf   :  { %588 = vmatmul.f32.vlgmr.msrb.gmra.mxu2 %v6632_v60  ;;  %715 = vmatpush.msra.mxu1 %v4131_v51  ;;  %v6671_v60 = vld [vmem:[#allocation95_spill] sm:$0xff] }
  0xb0   :  { %726 = vmatpush.msra.mxu2 %v4084_v43  ;;  %755 = vmatpush.msra.mxu3 %v4136_v49 }
  0xb1   :  { %696 = vmatpush.msra.mxu0 %v4141_v14  ;;  %716 = vmatpush.msra.mxu1 %v4143_v15 }
  0xb2   :  { %727 = vmatpush.msra.mxu2 %v4090_v40  ;;  %756 = vmatpush.msra.mxu3 %v4148_v13  ;;  %v6688_v13 = vld [vmem:[#allocation110_spill] sm:$0xff] }
  0xb3   :  { %697 = vmatpush.msra.mxu0 %v4153_v54  ;;  %717 = vmatpush.msra.mxu1 %v4155_v55  ;;  %v6680_v55 = vld [vmem:[#allocation103_spill] sm:$0xff]  ;;  %v6684_v54 = vld [vmem:[#allocation106_spill] sm:$0xff] }
  0xb4   :  { %728 = vmatpush.msra.mxu2 %v4102_v20  ;;  %757 = vmatpush.msra.mxu3 %v4160_v53  ;;  %v6676_v53 = vld [vmem:[#allocation100_spill] sm:$0xff] }
  0xb5   :  { %698 = vmatpush.msra.mxu0 %v4165_v10  ;;  %718 = vmatpush.msra.mxu1 %v4167_v11  ;;  %v6672_v10 = vld [vmem:[#allocation97_spill] sm:$0xff]  ;;  %v6673_v11 = vld [vmem:[#allocation88_spill] sm:$0xff] }
  0xb6   :  { %729 = vmatpush.msra.mxu2 %v4114_v44  ;;  %758 = vmatpush.msra.mxu3 %v4172_v9  ;;  %v6674_v9 = vld [vmem:[#allocation98_spill] sm:$0xff] }
  0xb7   :  { %699 = vmatpush.msra.mxu0 %v4177_v58  ;;  %719 = vmatpush.msra.mxu1 %v4179_v59  ;;  %v6675_v58 = vld [vmem:[#allocation99_spill] sm:$0xff]  ;;  %v6677_v59 = vld [vmem:[#allocation92_spill] sm:$0xff] }
  0xb8   :  { %730 = vmatpush.msra.mxu2 %v4126_v16  ;;  %759 = vmatpush.msra.mxu3 %v4184_v57  ;;  %v6678_v57 = vld [vmem:[#allocation101_spill] sm:$0xff] }
  0xb9   :  { %700 = vmatpush.msra.mxu0 %v4189_v6  ;;  %720 = vmatpush.msra.mxu1 %v4191_v7  ;;  %v6679_v6 = vld [vmem:[#allocation102_spill] sm:$0xff]  ;;  %v6681_v7 = vld [vmem:[#allocation96_spill] sm:$0xff] }
  0xba   :  { %731 = vmatpush.msra.mxu2 %v4138_v48  ;;  %760 = vmatpush.msra.mxu3 %v6671_v60  ;;  %v6682_v60 = vld [vmem:[#allocation104_spill] sm:$0xff] }
  0xbb   :  { %701 = vmatpush.msra.mxu0 %v6672_v10  ;;  %721 = vmatpush.msra.mxu1 %v6674_v9  ;;  %v6683_v10 = vld [vmem:[#allocation105_spill] sm:$0xff]  ;;  %v6685_v9 = vld [vmem:[#allocation107_spill] sm:$0xff] }
  0xbc   :  { %732 = vmatpush.msra.mxu2 %v4150_v12  ;;  %761 = vmatpush.msra.mxu3 %v6675_v58  ;;  %v6686_v58 = vld [vmem:[#allocation108_spill] sm:$0xff] }
  0xbd   :  { %840 = vmatpush.msrb.mxu0 %v6676_v53  ;;  %860 = vmatpush.msrb.mxu1 %v6678_v57  ;;  %v6687_v53 = vld [vmem:[#allocation109_spill] sm:$0xff]  ;;  %v6689_v57 = vld [vmem:[#allocation111_spill] sm:$0xff] }
  0xbe   :  { %733 = vmatpush.msra.mxu2 %v4162_v52  ;;  %900 = vmatpush.msrb.mxu3 %v6679_v6  ;;  %v6690_v6 = vld [vmem:[#allocation112_spill] sm:$0xff] }
  0xbf   :  { %841 = vmatpush.msrb.mxu0 %v6680_v55  ;;  %861 = vmatpush.msrb.mxu1 %v6682_v60  ;;  %v6691_v55 = vld [vmem:[#allocation113_spill] sm:$0xff]  ;;  %v6693_v60 = vld [vmem:[#allocation115_spill] sm:$0xff] }
  0xc0   :  { %734 = vmatpush.msra.mxu2 %v6673_v11  ;;  %901 = vmatpush.msrb.mxu3 %v6683_v10  ;;  %v6694_v10 = vld [vmem:[#allocation116_spill] sm:$0xff] }
  0xc1   :  { %842 = vmatpush.msrb.mxu0 %v6684_v54  ;;  %862 = vmatpush.msrb.mxu1 %v6686_v58  ;;  %v6695_v54 = vld [vmem:[#allocation117_spill] sm:$0xff]  ;;  %v6697_v58 = vld [vmem:[#allocation119_spill] sm:$0xff] }
  0xc2   :  { %735 = vmatpush.msra.mxu2 %v6677_v59  ;;  %902 = vmatpush.msrb.mxu3 %v6687_v53  ;;  %v6698_v53 = vld [vmem:[#allocation120_spill] sm:$0xff] }
  0xc3   :  { %843 = vmatpush.msrb.mxu0 %v6688_v13  ;;  %863 = vmatpush.msrb.mxu1 %v6690_v6  ;;  %v6699_v13 = vld [vmem:[#allocation121_spill] sm:$0xff]  ;;  %v6701_v6 = vld [vmem:[#allocation123_spill] sm:$0xff] }
  0xc4   :  { %736 = vmatpush.msra.mxu2 %v6681_v7  ;;  %903 = vmatpush.msrb.mxu3 %v6691_v55  ;;  %v6692_v7 = vld [vmem:[#allocation114_spill] sm:$0xff]  ;;  %v6702_v55 = vld [vmem:[#allocation124_spill] sm:$0xff] }
  0xc5   :  { %844 = vmatpush.msrb.mxu0 %v6692_v7  ;;  %864 = vmatpush.msrb.mxu1 %v6694_v10  ;;  %v6703_v7 = vld [vmem:[#allocation129_spill] sm:$0xff]  ;;  %v6705_v10 = vld [vmem:[#allocation126_spill] sm:$0xff] }
  0xc6   :  { %737 = vmatpush.msra.mxu2 %v6685_v9  ;;  %904 = vmatpush.msrb.mxu3 %v6695_v54  ;;  %v6696_v9 = vld [vmem:[#allocation118_spill] sm:$0xff]  ;;  %v6706_v54 = vld [vmem:[#allocation127_spill] sm:$0xff] }
  0xc7   :  { %845 = vmatpush.msrb.mxu0 %v6696_v9  ;;  %865 = vmatpush.msrb.mxu1 %v6698_v53  ;;  %v6707_v9 = vld [vmem:[#allocation133_spill] sm:$0xff]  ;;  %v6709_v53 = vld [vmem:[#allocation130_spill] sm:$0xff] }
  0xc8   :  { %738 = vmatpush.msra.mxu2 %v6689_v57  ;;  %905 = vmatpush.msrb.mxu3 %v6699_v13  ;;  %v6700_v57 = vld [vmem:[#allocation122_spill] sm:$0xff]  ;;  %v6710_v13 = vld [vmem:[#allocation131_spill] sm:$0xff] }
  0xc9   :  { %846 = vmatpush.msrb.mxu0 %v6700_v57  ;;  %866 = vmatpush.msrb.mxu1 %v6702_v55  ;;  %v6711_v57 = vld [vmem:[#allocation137_spill] sm:$0xff]  ;;  %v6713_v55 = vld [vmem:[#allocation134_spill] sm:$0xff] }
  0xca   :  { %739 = vmatpush.msra.mxu2 %v6693_v60  ;;  %v6704_v60 = vld [vmem:[#allocation125_spill] sm:$0xff] }
  0xcb   :  { %906 = vmatpush.msrb.mxu3 %v6704_v60  ;;  %847 = vmatpush.msrb.mxu0 %v6705_v10  ;;  %v6715_v60 = vld [vmem:[#allocation141_spill] sm:$0xff]  ;;  %v6716_v10 = vld [vmem:[#allocation136_spill] sm:$0xff] }
  0xcc   :  { %740 = vmatpush.msra.mxu2 %v6697_v58  ;;  %867 = vmatpush.msrb.mxu1 %v6706_v54  ;;  %v6708_v58 = vld [vmem:[#allocation128_spill] sm:$0xff]  ;;  %v6717_v54 = vld [vmem:[#allocation138_spill] sm:$0xff] }
  0xcd   :  { %907 = vmatpush.msrb.mxu3 %v6708_v58  ;;  %848 = vmatpush.msrb.mxu0 %v6709_v53  ;;  %v6719_v58 = vld [vmem:[#allocation145_spill] sm:$0xff]  ;;  %v6720_v53 = vld [vmem:[#allocation140_spill] sm:$0xff] }
  0xce   :  { %741 = vmatpush.msra.mxu2 %v6701_v6  ;;  %868 = vmatpush.msrb.mxu1 %v6710_v13  ;;  %v6712_v6 = vld [vmem:[#allocation132_spill] sm:$0xff]  ;;  %v6721_v13 = vld [vmem:[#allocation142_spill] sm:$0xff] }
  0xcf   :  { %908 = vmatpush.msrb.mxu3 %v6712_v6  ;;  %849 = vmatpush.msrb.mxu0 %v6713_v55  ;;  %v6723_v6 = vld [vmem:[#allocation149_spill] sm:$0xff]  ;;  %v6724_v55 = vld [vmem:[#allocation144_spill] sm:$0xff] }
  0xd0   :  { %880 = vmatpush.msrb.mxu2 %v6703_v7  ;;  %v6714_v7 = vld [vmem:[#allocation135_spill] sm:$0xff] }
  0xd1   :  { %869 = vmatpush.msrb.mxu1 %v6714_v7  ;;  %909 = vmatpush.msrb.mxu3 %v6716_v10  ;;  %v6725_v7 = vld [vmem:[#allocation146_spill] sm:$0xff] }
  0xd2   :  { %881 = vmatpush.msrb.mxu2 %v6707_v9  ;;  %850 = vmatpush.msrb.mxu0 %v6717_v54  ;;  %v6718_v9 = vld [vmem:[#allocation139_spill] sm:$0xff]  ;;  %v6727_v54 = vld [vmem:[#allocation148_spill] sm:$0xff] }
  0xd3   :  { %870 = vmatpush.msrb.mxu1 %v6718_v9  ;;  %910 = vmatpush.msrb.mxu3 %v6720_v53 }
  0xd4   :  { %882 = vmatpush.msrb.mxu2 %v6711_v57  ;;  %851 = vmatpush.msrb.mxu0 %v6721_v13  ;;  %v6722_v57 = vld [vmem:[#allocation143_spill] sm:$0xff]  ;;  %v6728_v13 = vld [vmem:[#allocation152_spill] sm:$0xff] }
  0xd5   :  { %871 = vmatpush.msrb.mxu1 %v6722_v57  ;;  %911 = vmatpush.msrb.mxu3 %v6724_v55  ;;  %v6729_v57 = vld [vmem:[#allocation154_spill] sm:$0xff]  ;;  %v6735_v55 = vld [vmem:[#allocation17_spill] sm:$0xff] }
  0xd6   :  { %883 = vmatpush.msrb.mxu2 %v6715_v60  ;;  %852 = vmatpush.msrb.mxu0 %v6725_v7  ;;  %v6726_v60 = vld [vmem:[#allocation147_spill] sm:$0xff]  ;;  %v6730_v7 = vld [vmem:[#allocation156_spill] sm:$0xff] }
  0xd7   :  { %872 = vmatpush.msrb.mxu1 %v6726_v60  ;;  %912 = vmatpush.msrb.mxu3 %v6727_v54  ;;  %v6731_v60 = vld [vmem:[#allocation159_spill] sm:$0xff] }
  0xd8   :  { %884 = vmatpush.msrb.mxu2 %v6719_v58  ;;  %853 = vmatpush.msrb.mxu0 %v4364_v56  ;;  %v6732_v56 = vld [vmem:[#allocation160_spill] sm:$0xff] }
  0xd9   :  { %873 = vmatpush.msrb.mxu1 %v4368_v8  ;;  %913 = vmatpush.msrb.mxu3 %v6728_v13 }
  0xda   :  { %885 = vmatpush.msrb.mxu2 %v6723_v6  ;;  %854 = vmatpush.msrb.mxu0 %v6729_v57  ;;  %v6734_v57 = vld [vmem:[#allocation15_spill] sm:$0xff] }
  0xdb   :  { %874 = vmatpush.msrb.mxu1 %v4380_v3  ;;  %914 = vmatpush.msrb.mxu3 %v6730_v7 }
  0xdc   :  { %886 = vmatpush.msrb.mxu2 %v4374_v62  ;;  %855 = vmatpush.msrb.mxu0 %v4388_v4  ;;  %v6733_v4 = vld [vmem:[#allocation14_spill] sm:$0xff] }
  0xdd   :  { %875 = vmatpush.msrb.mxu1 %v6731_v60  ;;  %915 = vmatpush.msrb.mxu3 %v6732_v56 }
  0xde   :  { %887 = vmatpush.msrb.mxu2 %v4386_v1 }
  0xe0   :  { %888 = vmatpush.msrb.mxu2 %v4400_v61 }
  0xe2   :  { %889 = vmatpush.msrb.mxu2 %v4406_v2 }
  0xe4   :  { %890 = vmatpush.msrb.mxu2 %v4410_v0 }
  0xe5   :  { %v396_v7 = vpop.f32.mrf.mxu0 }
  0xe6   :  { %891 = vmatpush.msrb.mxu2 %v4416_v63  ;;  %v459_v3 = vadd.f32 %v396_v7, %v6733_v4  ;;  %v416_v60 = vpop.f32.mrf.mxu1 }
  0xe7   :  { %v460_v13 = vadd.f32 %v416_v60, %v6734_v57 }
  0xe8   :  { %892 = vmatpush.msrb.mxu2 %v4422_v5  ;;  %v2915_v8 = vmul.f32 -1.442695, %v459_v3 }
  0xe9   :  { %v2916_v56 = vmul.f32 -1.442695, %v460_v13 }
  0xea   :  { %893 = vmatpush.msrb.mxu2 %v4428_v33  ;;  %2982 = vpow2.f32 %v2915_v8 }
  0xeb   :  { %2984 = vpow2.f32 %v2916_v56  ;;  %v6736_v56 = vld [vmem:[#allocation16_spill] sm:$0xff] }
  0xec   :  { %894 = vmatpush.msrb.mxu2 %v4434_v31 }
  0xee   :  { %895 = vmatpush.msrb.mxu2 %v4440_v38  ;;  %v456_v54 = vpop.f32.mrf.mxu3 }
  0xef   :  { %v462_v63 = vadd.f32 %v456_v54, %v6735_v55 }
  0xf0   :  { %v2983_v5 = vpop.eup %2982 }
  0xf1   :  { %v2985_v53 = vpop.eup %2984  ;;  %v466_v33 = vadd.f32 1.0, %v2983_v5  ;;  %v2917_v0 = vmul.f32 -1.442695, %v462_v63 }
  0xf2   :  { %v485_v31 = vadd.f32 1.0, %v2985_v53 }
  0xf3   :  { %2986 = vrcp.f32 %v466_v33  ;;  %vm472_vm0 = vweird.f32 %v466_v33  ;;  %v476_v3 = vand.u32 2147483647, %v466_v33  ;;  %v478_v54 = vand.u32 2147483648, %v466_v33 }
  0xf4   :  { %2988 = vrcp.f32 %v485_v31  ;;  %vm491_vm1 = vweird.f32 %v485_v31  ;;  %v497_v60 = vand.u32 2147483648, %v485_v31  ;;  %v495_v63 = vand.u32 2147483647, %v485_v31 }
  0xf5   :  { %2990 = vpow2.f32 %v2917_v0  ;;  %v479_v2 = vor.u32 1.1754944e-38, %v478_v54  ;;  %vm477_vm5 = vcmp.eq.f32.partialorder %v476_v3, 8.507059e+37 }
  0xf6   :  { %v498_v61 = vor.u32 1.1754944e-38, %v497_v60  ;;  %vm496_vm7 = vcmp.eq.f32.partialorder %v495_v63, 8.507059e+37 }
  0xf9   :  { %v2987_v38 = vpop.eup %2986 }
  0xfa   :  { %v2989_v4 = vpop.eup %2988  ;;  %v468_v7 = vmul.f32 %v2987_v38, %v466_v33  ;;  %vm473_vm2 = vweird.f32 %v2987_v38 }
  0xfb   :  { %v2991_v13 = vpop.eup %2990  ;;  %v487_v8 = vmul.f32 %v2989_v4, %v485_v31  ;;  %vm492_vm3 = vweird.f32 %v2989_v4  ;;  %vm474_vm4 = vmor %vm472_vm0, %vm473_vm2 }
  0xfc   :  { %v469_v55 = vsub.f32 1.0, %v468_v7  ;;  %v505_v5 = vadd.f32 1.0, %v2991_v13  ;;  %vm493_vm6 = vmor %vm491_vm1, %vm492_vm3 }
  0xfd   :  { %v488_v53 = vsub.f32 1.0, %v487_v8 }
  0xfe   :  { %v470_v0 = vmul.f32 %v2987_v38, %v469_v55  ;;  %vm511_vm8 = vweird.f32 %v505_v5  ;;  %v517_v33 = vand.u32 2147483648, %v505_v5 }
  0xff   :  { %v489_v10 = vmul.f32 %v2989_v4, %v488_v53  ;;  %v515_v53 = vand.u32 2147483647, %v505_v5 }
 0x100   :  { %v471_v1 = vadd.f32 %v2987_v38, %v470_v0 }
 0x101   :  { %vm516_vm11 = vcmp.eq.f32.partialorder %v515_v53, 8.507059e+37  ;;  %v6741_v53 = vld [vmem:[#allocation79_spill] sm:$0xff] }
 0x102   :  { %v436_v9 = vpop.f32.mrf.mxu2  ;;  %v475_v7 = vsel %vm474_vm4, %v2987_v38, %v471_v1  ;;  %v6738_v1 = vld [vmem:[#allocation75_spill] sm:$0xff] }
 0x103   :  { %v461_v57 = vadd.f32 %v436_v9, %v6736_v56  ;;  %v490_v9 = vadd.f32 %v2989_v4, %v489_v10  ;;  %v480_v56 = vsel %vm477_vm5, %v479_v2, %v475_v7  ;;  %v6737_v10 = vld [vmem:[#allocation74_spill] sm:$0xff] }
 0x105   :  { %2992 = vtanh.f32 %v461_v57  ;;  %v494_v8 = vsel %vm493_vm6, %v2989_v4, %v490_v9 }
 0x106   :  { %2994 = vrcp.f32 %v505_v5  ;;  %v499_v6 = vsel %vm496_vm7, %v498_v61, %v494_v8 }
 0x107   :  { %v521_v55 = vmul.f32 0.0, %v499_v6  ;;  %v518_v6 = vor.u32 1.1754944e-38, %v517_v33 }
 0x10b   :  { %v2993_v13 = vpop.eup %2992 }
 0x10c   :  { %v2995_v62 = vpop.eup %2994  ;;  %v522_v57 = vmul.f32 %v2993_v13, %v480_v56 }
 0x10d   :  { %v507_v58 = vmul.f32 %v2995_v62, %v505_v5  ;;  %vm512_vm9 = vweird.f32 %v2995_v62 }
 0x10e   :  { %v4564_v31 = vadd.f32 %v522_v57, %v521_v55  ;;  %vm513_vm10 = vmor %vm511_vm8, %vm512_vm9 }
 0x10f   :  { %v508_v3 = vsub.f32 1.0, %v507_v58  ;;  %v6739_v58 = vld [vmem:[#allocation77_spill] sm:$0xff] }
 0x110   :  { %2996 = vtanh.f32 %v4564_v31 }
 0x111   :  { %v509_v2 = vmul.f32 %v2995_v62, %v508_v3 }
 0x113   :  { %v510_v0 = vadd.f32 %v2995_v62, %v509_v2  ;;  %v6751_v2 = vld [vmem:[#allocation86_spill] sm:$0xff] }
 0x115   :  { %v514_v5 = vsel %vm513_vm10, %v2995_v62, %v510_v0  ;;  %v6740_v62 = vld [vmem:[#allocation78_spill] sm:$0xff] }
 0x116   :  { %v519_v13 = vsel %vm516_vm11, %v518_v6, %v514_v5  ;;  %v2997_v56 = vpop.eup %2996  ;;  %v6753_v6 = vld [vmem:[#allocation87_spill] sm:$0xff]  ;;  %v6755_v5 = vld [vmem:[#allocation90_spill] sm:$0xff] }
 0x117   :  { %v549_v54 = vpop.f32.mrf.mxu0  ;;  %v525_v57 = vmul.f32 %v2997_v56, %v519_v13 }
 0x118   :  { %v569_v60 = vpop.f32.mrf.mxu1  ;;  %v612_v63 = vadd.f32 %v6737_v10, %v549_v54 }
 0x119   :  { %v613_v38 = vadd.f32 %v6738_v1, %v569_v60  ;;  %526 = vst [vmem:[%s6172_s4] sm:$0xff] %v525_v57  ;;  %702 = vmatmul.f32.vlgmr.msra.gmra.mxu0 %v525_v57  ;;  %722 = vmatmul.f32.vlgmr.msra.gmra.mxu1 %v525_v57 }
 0x11a   :  { %v2918_v61 = vmul.f32 -1.442695, %v612_v63  ;;  %762 = vmatmul.f32.vlgmr.msra.gmra.mxu3 %v525_v57  ;;  %742 = vmatmul.f32.vlgmr.msra.gmra.mxu2 %v525_v57  ;;  %v6759_v57 = vld [vmem:[#allocation94_spill] sm:$0xff] }
 0x11b   :  { %v2919_v4 = vmul.f32 -1.442695, %v613_v38  ;;  %994 = vmatpush.msra.mxu0 %v4038_v34  ;;  %1014 = vmatpush.msra.mxu1 %v4040_v35  ;;  %v6742_v35 = vld [vmem:[#allocation80_spill] sm:$0xff] }
 0x11c   :  { %2998 = vpow2.f32 %v2918_v61  ;;  %1034 = vmatpush.msra.mxu2 %v4084_v43  ;;  %1054 = vmatpush.msra.mxu3 %v6740_v62  ;;  %v6763_v62 = vld [vmem:[#allocation98_spill] sm:$0xff] }
 0x11d   :  { %3000 = vpow2.f32 %v2919_v4  ;;  %995 = vmatpush.msra.mxu0 %v4046_v32  ;;  %1015 = vmatpush.msra.mxu1 %v4048_v30  ;;  %v6752_v4 = vld [vmem:[#allocation111_spill] sm:$0xff] }
 0x11e   :  { %1035 = vmatpush.msra.mxu2 %v4090_v40  ;;  %1055 = vmatpush.msra.mxu3 %v6741_v53  ;;  %v6764_v53 = vld [vmem:[#allocation123_spill] sm:$0xff] }
 0x11f   :  { %v609_v9 = vpop.f32.mrf.mxu3  ;;  %996 = vmatpush.msra.mxu0 %v4053_v29  ;;  %1016 = vmatpush.msra.mxu1 %v4055_v28 }
 0x120   :  { %v615_v7 = vadd.f32 %v6739_v58, %v609_v9  ;;  %1036 = vmatpush.msra.mxu2 %v4102_v20  ;;  %1056 = vmatpush.msra.mxu3 %v6742_v35  ;;  %v6754_v9 = vld [vmem:[#allocation89_spill] sm:$0xff]  ;;  %v6756_v58 = vld [vmem:[#allocation115_spill] sm:$0xff] }
 0x121   :  { %997 = vmatpush.msra.mxu0 %v4062_v39  ;;  %1017 = vmatpush.msra.mxu1 %v4064_v37  ;;  %v6743_v39 = vld [vmem:[#allocation76_spill] sm:$0xff]  ;;  %v6767_v35 = vld [vmem:[#allocation101_spill] sm:$0xff] }
 0x122   :  { %v2920_v8 = vmul.f32 -1.442695, %v615_v7  ;;  %v2999_v55 = vpop.eup %2998  ;;  %1037 = vmatpush.msra.mxu2 %v4114_v44  ;;  %1057 = vmatpush.msra.mxu3 %v4068_v36  ;;  %v6757_v7 = vld [vmem:[#allocation91_spill] sm:$0xff] }
 0x123   :  { %v3001_v54 = vpop.eup %3000  ;;  %v4570_v60 = vadd.f32 1.0, %v2999_v55  ;;  %998 = vmatpush.msra.mxu0 %v4071_v26  ;;  %1018 = vmatpush.msra.mxu1 %v4073_v27 }
 0x124   :  { %3002 = vpow2.f32 %v2920_v8  ;;  %v4575_v33 = vadd.f32 1.0, %v3001_v54  ;;  %1038 = vmatpush.msra.mxu2 %v4126_v16  ;;  %1058 = vmatpush.msra.mxu3 %v4077_v25  ;;  %v6758_v8 = vld [vmem:[#allocation93_spill] sm:$0xff]  ;;  %v6760_v54 = vld [vmem:[#allocation119_spill] sm:$0xff] }
 0x125   :  { %3004 = vrcp.f32 %v4570_v60  ;;  %v629_v10 = vand.u32 2147483647, %v4570_v60  ;;  %v631_v44 = vand.u32 2147483648, %v4570_v60  ;;  %999 = vmatpush.msra.mxu0 %v4080_v24  ;;  %1019 = vmatpush.msra.mxu1 %v4082_v42  ;;  %vm625_vm14 = vweird.f32 %v4570_v60 }
 0x126   :  { %3006 = vrcp.f32 %v4575_v33  ;;  %v650_v26 = vand.u32 2147483648, %v4575_v33  ;;  %1039 = vmatpush.msra.mxu2 %v4138_v48  ;;  %1059 = vmatpush.msra.mxu3 %v4088_v41  ;;  %v648_v25 = vand.u32 2147483647, %v4575_v33  ;;  %vm644_vm15 = vweird.f32 %v4575_v33 }
 0x127   :  { %1000 = vmatpush.msra.mxu0 %v4093_v22  ;;  %1020 = vmatpush.msra.mxu1 %v4095_v23  ;;  %v632_v42 = vor.u32 1.1754944e-38, %v631_v44  ;;  %vm630_vm1 = vcmp.eq.f32.partialorder %v629_v10, 8.507059e+37  ;;  %v6777_v10 = vld [vmem:[#allocation109_spill] sm:$0xff]  ;;  %v6778_v44 = vld [vmem:[#allocation110_spill] sm:$0xff] }
 0x128   :  { %1040 = vmatpush.msra.mxu2 %v4150_v12  ;;  %1060 = vmatpush.msra.mxu3 %v4100_v21  ;;  %v651_v23 = vor.u32 1.1754944e-38, %v650_v26  ;;  %vm649_vm3 = vcmp.eq.f32.partialorder %v648_v25, 8.507059e+37  ;;  %v6779_v26 = vld [vmem:[#allocation112_spill] sm:$0xff]  ;;  %v6782_v25 = vld [vmem:[#allocation114_spill] sm:$0xff] }
 0x129   :  { %1001 = vmatpush.msra.mxu0 %v4105_v46  ;;  %1021 = vmatpush.msra.mxu1 %v4107_v47 }
 0x12a   :  { %v3003_v3 = vpop.eup %3002  ;;  %1041 = vmatpush.msra.mxu2 %v4162_v52  ;;  %1061 = vmatpush.msra.mxu3 %v4112_v45 }
 0x12b   :  { %v4589_v34 = vadd.f32 1.0, %v3003_v3  ;;  %v3005_v43 = vpop.eup %3004  ;;  %1002 = vmatpush.msra.mxu0 %v4117_v18  ;;  %1022 = vmatpush.msra.mxu1 %v4119_v19  ;;  %v6745_v19 = vld [vmem:[#allocation81_spill] sm:$0xff]  ;;  %v6765_v3 = vld [vmem:[#allocation99_spill] sm:$0xff] }
 0x12c   :  { %v3007_v30 = vpop.eup %3006  ;;  %v621_v32 = vmul.f32 %v3005_v43, %v4570_v60  ;;  %vm626_vm12 = vweird.f32 %v3005_v43  ;;  %1042 = vmatpush.msra.mxu2 %v6673_v11  ;;  %1062 = vmatpush.msra.mxu3 %v4124_v17  ;;  %v6744_v17 = vld [vmem:[#allocation96_spill] sm:$0xff]  ;;  %v6761_v60 = vld [vmem:[#allocation95_spill] sm:$0xff] }
 0x12d   :  { %3008 = vrcp.f32 %v4589_v34  ;;  %v640_v28 = vmul.f32 %v3007_v30, %v4575_v33  ;;  %vm645_vm13 = vweird.f32 %v3007_v30  ;;  %vm627_vm0 = vmor %vm625_vm14, %vm626_vm12  ;;  %1003 = vmatpush.msra.mxu0 %v4129_v50  ;;  %1023 = vmatpush.msra.mxu1 %v4131_v51  ;;  %v670_v45 = vand.u32 2147483648, %v4589_v34  ;;  %v6746_v50 = vld [vmem:[#allocation82_spill] sm:$0xff]  ;;  %v6749_v51 = vld [vmem:[#allocation84_spill] sm:$0xff] }
 0x12e   :  { %v622_v20 = vsub.f32 1.0, %v621_v32  ;;  %vm646_vm2 = vmor %vm644_vm15, %vm645_vm13  ;;  %1043 = vmatpush.msra.mxu2 %v6677_v59  ;;  %1063 = vmatpush.msra.mxu3 %v4136_v49  ;;  %v6747_v49 = vld [vmem:[#allocation83_spill] sm:$0xff]  ;;  %vm664_vm5 = vweird.f32 %v4589_v34  ;;  %v6750_v59 = vld [vmem:[#allocation85_spill] sm:$0xff] }
 0x12f   :  { %v641_v37 = vsub.f32 1.0, %v640_v28  ;;  %1004 = vmatpush.msra.mxu0 %v4141_v14  ;;  %1024 = vmatpush.msra.mxu1 %v4143_v15  ;;  %v668_v14 = vand.u32 2147483647, %v4589_v34  ;;  %v6748_v15 = vld [vmem:[#allocation107_spill] sm:$0xff]  ;;  %v671_v0 = vor.u32 1.1754944e-38, %v670_v45  ;;  %v6762_v33 = vld [vmem:[#allocation97_spill] sm:$0xff] }
 0x130   :  { %v623_v36 = vmul.f32 %v3005_v43, %v622_v20  ;;  %1044 = vmatpush.msra.mxu2 %v6744_v17  ;;  %1064 = vmatpush.msra.mxu3 %v6745_v19  ;;  %v6770_v32 = vld [vmem:[#allocation103_spill] sm:$0xff]  ;;  %v6771_v28 = vld [vmem:[#allocation104_spill] sm:$0xff]  ;;  %v6773_v20 = vld [vmem:[#allocation105_spill] sm:$0xff] }
 0x131   :  { %v642_v16 = vmul.f32 %v3007_v30, %v641_v37  ;;  %1005 = vmatpush.msra.mxu0 %v6746_v50  ;;  %1025 = vmatpush.msra.mxu1 %v6747_v49  ;;  %vm669_vm7 = vcmp.eq.f32.partialorder %v668_v14, 8.507059e+37  ;;  %v6776_v37 = vld [vmem:[#allocation137_spill] sm:$0xff]  ;;  %v6799_v17 = vld [vmem:[#allocation131_spill] sm:$0xff]  ;;  %v6801_v45 = vld [vmem:[#allocation132_spill] sm:$0xff] }
 0x132   :  { %v589_v29 = vpop.f32.mrf.mxu2  ;;  %v624_v27 = vadd.f32 %v3005_v43, %v623_v36  ;;  %1045 = vmatpush.msra.mxu2 %v6748_v15  ;;  %1065 = vmatpush.msra.mxu3 %v6749_v51  ;;  %v6780_v36 = vld [vmem:[#allocation141_spill] sm:$0xff]  ;;  %v6802_v50 = vld [vmem:[#allocation134_spill] sm:$0xff]  ;;  %v6803_v49 = vld [vmem:[#allocation135_spill] sm:$0xff] }
 0x133   :  { %v614_v40 = vadd.f32 %v6743_v39, %v589_v29  ;;  %v4615_v24 = vpop.eup %3008  ;;  %v643_v22 = vadd.f32 %v3007_v30, %v642_v16  ;;  %1006 = vmatpush.msra.mxu0 %v6750_v59  ;;  %1026 = vmatpush.msra.mxu1 %v6751_v2  ;;  %v6772_v29 = vld [vmem:[#allocation133_spill] sm:$0xff]  ;;  %v6774_v39 = vld [vmem:[#allocation106_spill] sm:$0xff]  ;;  %v6805_v15 = vld [vmem:[#allocation136_spill] sm:$0xff] }
 0x134   :  { %v660_v41 = vmul.f32 %v4615_v24, %v4589_v34  ;;  %v628_v48 = vsel %vm627_vm0, %v3005_v43, %v624_v27  ;;  %vm665_vm4 = vweird.f32 %v4615_v24  ;;  %1046 = vmatpush.msra.mxu2 %v6752_v4  ;;  %1066 = vmatpush.msra.mxu3 %v6753_v6  ;;  %v6766_v34 = vld [vmem:[#allocation100_spill] sm:$0xff]  ;;  %v6768_v43 = vld [vmem:[#allocation129_spill] sm:$0xff]  ;;  %v6804_v14 = vld [vmem:[#allocation162_spill] sm:$0xff] }
 0x135   :  { %3010 = vtanh.f32 %v614_v40  ;;  %v633_v21 = vsel %vm630_vm1, %v632_v42, %v628_v48  ;;  %v647_v63 = vsel %vm646_vm2, %v3007_v30, %v643_v22  ;;  %vm666_vm6 = vmor %vm664_vm5, %vm665_vm4  ;;  %1007 = vmatpush.msra.mxu0 %v6754_v9  ;;  %1027 = vmatpush.msra.mxu1 %v6755_v5  ;;  %v6769_v30 = vld [vmem:[#allocation102_spill] sm:$0xff]  ;;  %v6775_v40 = vld [vmem:[#allocation108_spill] sm:$0xff] }
 0x136   :  { %v661_v12 = vsub.f32 1.0, %v660_v41  ;;  %v652_v1 = vsel %vm649_vm3, %v651_v23, %v647_v63  ;;  %1047 = vmatpush.msra.mxu2 %v6756_v58  ;;  %1067 = vmatpush.msra.mxu3 %v6757_v7  ;;  %v6781_v16 = vld [vmem:[#allocation113_spill] sm:$0xff]  ;;  %v6786_v42 = vld [vmem:[#allocation118_spill] sm:$0xff]  ;;  %v6787_v22 = vld [vmem:[#allocation120_spill] sm:$0xff] }
 0x137   :  { %v674_v38 = vmul.f32 0.0, %v652_v1  ;;  %1008 = vmatpush.msra.mxu0 %v6758_v8  ;;  %1028 = vmatpush.msra.mxu1 %v6759_v57  ;;  %v6784_v27 = vld [vmem:[#allocation145_spill] sm:$0xff]  ;;  %v6794_v1 = vld [vmem:[#allocation126_spill] sm:$0xff]  ;;  %v6807_v59 = vld [vmem:[#allocation139_spill] sm:$0xff] }
 0x138   :  { %v662_v47 = vmul.f32 %v4615_v24, %v661_v12  ;;  %1048 = vmatpush.msra.mxu2 %v6760_v54  ;;  %1068 = vmatpush.msra.mxu3 %v6761_v60  ;;  %v6785_v41 = vld [vmem:[#allocation117_spill] sm:$0xff]  ;;  %v6790_v12 = vld [vmem:[#allocation122_spill] sm:$0xff]  ;;  %v6808_v2 = vld [vmem:[#allocation163_spill] sm:$0xff] }
 0x139   :  { %1009 = vmatpush.msra.mxu0 %v6762_v33  ;;  %1029 = vmatpush.msra.mxu1 %v6763_v62  ;;  %v6788_v23 = vld [vmem:[#allocation149_spill] sm:$0xff]  ;;  %v6806_v51 = vld [vmem:[#allocation138_spill] sm:$0xff]  ;;  %v6811_v6 = vld [vmem:[#allocation143_spill] sm:$0xff] }
 0x13a   :  { %v663_v11 = vadd.f32 %v4615_v24, %v662_v47  ;;  %1049 = vmatpush.msra.mxu2 %v6764_v53  ;;  %1069 = vmatpush.msra.mxu3 %v6765_v3  ;;  %v6789_v48 = vld [vmem:[#allocation121_spill] sm:$0xff]  ;;  %v6795_v47 = vld [vmem:[#allocation127_spill] sm:$0xff]  ;;  %v6810_v4 = vld [vmem:[#allocation142_spill] sm:$0xff] }
 0x13b   :  { %v3011_v46 = vpop.eup %3010  ;;  %v6792_v63 = vld [vmem:[#allocation153_spill] sm:$0xff]  ;;  %v6813_v9 = vld [vmem:[#allocation144_spill] sm:$0xff]  ;;  %v6814_v5 = vld [vmem:[#allocation146_spill] sm:$0xff] }
 0x13c   :  { %v675_v52 = vmul.f32 %v3011_v46, %v633_v21  ;;  %v667_v61 = vsel %vm666_vm6, %v4615_v24, %v663_v11  ;;  %v6783_v24 = vld [vmem:[#allocation116_spill] sm:$0xff]  ;;  %v6793_v46 = vld [vmem:[#allocation125_spill] sm:$0xff]  ;;  %v6798_v11 = vld [vmem:[#allocation130_spill] sm:$0xff] }
 0x13d   :  { %v672_v56 = vsel %vm669_vm7, %v671_v0, %v667_v61  ;;  %v6791_v21 = vld [vmem:[#allocation124_spill] sm:$0xff]  ;;  %v6800_v19 = vld [vmem:[#allocation161_spill] sm:$0xff]  ;;  %v6815_v58 = vld [vmem:[#allocation147_spill] sm:$0xff] }
 0x13e   :  { %v4638_v18 = vadd.f32 %v675_v52, %v674_v38  ;;  %v6796_v38 = vld [vmem:[#allocation157_spill] sm:$0xff]  ;;  %v6797_v52 = vld [vmem:[#allocation128_spill] sm:$0xff]  ;;  %v6819_v8 = vld [vmem:[#allocation151_spill] sm:$0xff] }
 0x13f   :  { %v6809_v61 = vld [vmem:[#allocation140_spill] sm:$0xff]  ;;  %v6816_v7 = vld [vmem:[#allocation165_spill] sm:$0xff]  ;;  %v6820_v57 = vld [vmem:[#allocation166_spill] sm:$0xff] }
 0x140   :  { %3012 = vtanh.f32 %v4638_v18  ;;  %v6812_v0 = vld [vmem:[#allocation164_spill] sm:$0xff]  ;;  %v6822_v54 = vld [vmem:[#allocation154_spill] sm:$0xff]  ;;  %v6823_v60 = vld [vmem:[#allocation155_spill] sm:$0xff] }
 0x141   :  { %v6824_v33 = vld [vmem:[#allocation167_spill] sm:$0xff]  ;;  %v6825_v62 = vld [vmem:[#allocation156_spill] sm:$0xff]  ;;  %v6826_v53 = vld [vmem:[#allocation158_spill] sm:$0xff] }
 0x142   :  { %v6827_v3 = vld [vmem:[#allocation159_spill] sm:$0xff] }
 0x146   :  { %v3013_v13 = vpop.eup %3012 }
 0x147   :  { %v678_v55 = vmul.f32 %v3013_v13, %v672_v56  ;;  %v6817_v13 = vld [vmem:[#allocation148_spill] sm:$0xff]  ;;  %v6818_v56 = vld [vmem:[#allocation150_spill] sm:$0xff] }
 0x149   :  { %2921 = vst [vmem:[%s6173_s5 + $0x38] sm:$0xff] %v678_v55  ;;  %856 = vmatmul.f32.vlgmr.msrb.gmra.mxu0 %v678_v55  ;;  %876 = vmatmul.f32.vlgmr.msrb.gmra.mxu1 %v678_v55 }
 0x14a   :  { %896 = vmatmul.f32.vlgmr.msrb.gmra.mxu2 %v678_v55  ;;  %916 = vmatmul.f32.vlgmr.msrb.gmra.mxu3 %v678_v55  ;;  %v6821_v55 = vld [vmem:[#allocation152_spill] sm:$0xff] }
 0x14b   :  { %1148 = vmatpush.msrb.mxu0 %v6766_v34  ;;  %1168 = vmatpush.msrb.mxu1 %v6767_v35  ;;  %v6828_v34 = vld [vmem:[#allocation168_spill] sm:$0xff] }
 0x14c   :  { %1188 = vmatpush.msrb.mxu2 %v6768_v43  ;;  %1208 = vmatpush.msrb.mxu3 %v6769_v30  ;;  %v6829_v35 = vld [vmem:[#allocation160_spill] sm:$0xff] }
 0x14d   :  { %1149 = vmatpush.msrb.mxu0 %v6770_v32  ;;  %1169 = vmatpush.msrb.mxu1 %v6771_v28  ;;  %v6830_v32 = vld [vmem:[#allocation18_spill] sm:$0xff] }
 0x14e   :  { %1189 = vmatpush.msrb.mxu2 %v6772_v29  ;;  %1209 = vmatpush.msrb.mxu3 %v6773_v20  ;;  %v6831_v29 = vld [vmem:[#allocation19_spill] sm:$0xff] }
 0x14f   :  { %1150 = vmatpush.msrb.mxu0 %v6774_v39  ;;  %1170 = vmatpush.msrb.mxu1 %v6775_v40 }
 0x150   :  { %1190 = vmatpush.msrb.mxu2 %v6776_v37  ;;  %1210 = vmatpush.msrb.mxu3 %v6777_v10  ;;  %v6832_v10 = vld [vmem:[#allocation21_spill] sm:$0xff] }
 0x151   :  { %1151 = vmatpush.msrb.mxu0 %v6778_v44  ;;  %1171 = vmatpush.msrb.mxu1 %v6779_v26 }
 0x152   :  { %1191 = vmatpush.msrb.mxu2 %v6780_v36  ;;  %1211 = vmatpush.msrb.mxu3 %v6781_v16 }
 0x153   :  { %1152 = vmatpush.msrb.mxu0 %v6782_v25  ;;  %1172 = vmatpush.msrb.mxu1 %v6783_v24 }
 0x154   :  { %1192 = vmatpush.msrb.mxu2 %v6784_v27  ;;  %1212 = vmatpush.msrb.mxu3 %v6785_v41 }
 0x155   :  { %1153 = vmatpush.msrb.mxu0 %v6786_v42  ;;  %1173 = vmatpush.msrb.mxu1 %v6787_v22 }
 0x156   :  { %1193 = vmatpush.msrb.mxu2 %v6788_v23  ;;  %1213 = vmatpush.msrb.mxu3 %v6789_v48  ;;  %v6833_v23 = vld [vmem:[#allocation20_spill] sm:$0xff] }
 0x157   :  { %1154 = vmatpush.msrb.mxu0 %v6790_v12  ;;  %1174 = vmatpush.msrb.mxu1 %v6791_v21 }
 0x158   :  { %1194 = vmatpush.msrb.mxu2 %v6792_v63  ;;  %1214 = vmatpush.msrb.mxu3 %v6793_v46 }
 0x159   :  { %1155 = vmatpush.msrb.mxu0 %v6794_v1  ;;  %1175 = vmatpush.msrb.mxu1 %v6795_v47 }
 0x15a   :  { %1195 = vmatpush.msrb.mxu2 %v6796_v38  ;;  %1215 = vmatpush.msrb.mxu3 %v6797_v52 }
 0x15b   :  { %1156 = vmatpush.msrb.mxu0 %v6798_v11  ;;  %1176 = vmatpush.msrb.mxu1 %v6799_v17 }
 0x15c   :  { %1196 = vmatpush.msrb.mxu2 %v6800_v19  ;;  %1216 = vmatpush.msrb.mxu3 %v6801_v45 }
 0x15d   :  { %1157 = vmatpush.msrb.mxu0 %v6802_v50  ;;  %1177 = vmatpush.msrb.mxu1 %v6803_v49 }
 0x15e   :  { %1197 = vmatpush.msrb.mxu2 %v6804_v14  ;;  %1217 = vmatpush.msrb.mxu3 %v6805_v15 }
 0x15f   :  { %1158 = vmatpush.msrb.mxu0 %v6806_v51  ;;  %1178 = vmatpush.msrb.mxu1 %v6807_v59 }
 0x160   :  { %1198 = vmatpush.msrb.mxu2 %v6808_v2  ;;  %1218 = vmatpush.msrb.mxu3 %v6809_v61 }
 0x161   :  { %1159 = vmatpush.msrb.mxu0 %v6810_v4  ;;  %1179 = vmatpush.msrb.mxu1 %v6811_v6 }
 0x162   :  { %1199 = vmatpush.msrb.mxu2 %v6812_v0  ;;  %1219 = vmatpush.msrb.mxu3 %v6813_v9 }
 0x163   :  { %1160 = vmatpush.msrb.mxu0 %v6814_v5  ;;  %1180 = vmatpush.msrb.mxu1 %v6815_v58 }
 0x164   :  { %1200 = vmatpush.msrb.mxu2 %v6816_v7  ;;  %1220 = vmatpush.msrb.mxu3 %v6817_v13 }
 0x165   :  { %1161 = vmatpush.msrb.mxu0 %v6818_v56  ;;  %1181 = vmatpush.msrb.mxu1 %v6819_v8  ;;  %v6834_v8 = vld [vmem:[#allocation70_spill] sm:$0xff] }
 0x166   :  { %1201 = vmatpush.msrb.mxu2 %v6820_v57  ;;  %1221 = vmatpush.msrb.mxu3 %v6821_v55  ;;  %v6835_v55 = vld [vmem:[#allocation71_spill] sm:$0xff] }
 0x167   :  { %1162 = vmatpush.msrb.mxu0 %v6822_v54  ;;  %1182 = vmatpush.msrb.mxu1 %v6823_v60 }
 0x168   :  { %1202 = vmatpush.msrb.mxu2 %v6824_v33  ;;  %1222 = vmatpush.msrb.mxu3 %v6825_v62 }
 0x169   :  { %1163 = vmatpush.msrb.mxu0 %v6826_v53  ;;  %1183 = vmatpush.msrb.mxu1 %v6827_v3 }
 0x16a   :  { %1203 = vmatpush.msrb.mxu2 %v6828_v34  ;;  %1223 = vmatpush.msrb.mxu3 %v6829_v35 }
 0x196   :  { %v703_v43 = vpop.f32.mrf.mxu0  ;;  %v723_v30 = vpop.f32.mrf.mxu1 }
 0x197   :  { %v766_v28 = vadd.f32 %v703_v43, %v6830_v32  ;;  %v767_v20 = vadd.f32 %v723_v30, %v6831_v29  ;;  %v6836_v43 = vld [vmem:[#allocation73_spill] sm:$0xff] }
 0x199   :  { %v2922_v39 = vmul.f32 -1.442695, %v766_v28  ;;  %v2923_v40 = vmul.f32 -1.442695, %v767_v20 }
 0x19b   :  { %3014 = vpow2.f32 %v2922_v39 }
 0x19c   :  { %3016 = vpow2.f32 %v2923_v40 }
 0x19d   :  { %v763_v37 = vpop.f32.mrf.mxu3  ;;  %v743_v27 = vpop.f32.mrf.mxu2 }
 0x19e   :  { %v769_v44 = vadd.f32 %v763_v37, %v6832_v10  ;;  %v768_v48 = vadd.f32 %v743_v27, %v6833_v23  ;;  %v4782_v23 = vld [vmem:[#allocation8 + $0x1a0] sm:$0xff] }
 0x1a0   :  { %v2924_v26 = vmul.f32 -1.442695, %v769_v44  ;;  %v4757_v44 = vld [vmem:[#allocation8 + $0x1e0] sm:$0xff] }
 0x1a1   :  { %v3015_v36 = vpop.eup %3014 }
 0x1a2   :  { %v3017_v16 = vpop.eup %3016  ;;  %v773_v25 = vadd.f32 1.0, %v3015_v36  ;;  %3018 = vpow2.f32 %v2924_v26  ;;  %v4760_v26 = vld [vmem:[#allocation8 + $0x1e8] sm:$0xff]  ;;  %v4764_v36 = vld [vmem:[#allocation8 + $0x1f0] sm:$0xff] }
 0x1a3   :  { %v792_v24 = vadd.f32 1.0, %v3017_v16  ;;  %v4767_v16 = vld [vmem:[#allocation8 + $0x1f8] sm:$0xff] }
 0x1a4   :  { %3020 = vrcp.f32 %v773_v25  ;;  %vm779_vm8 = vweird.f32 %v773_v25  ;;  %v785_v47 = vand.u32 2147483648, %v773_v25  ;;  %v783_v11 = vand.u32 2147483647, %v773_v25 }
 0x1a5   :  { %3022 = vrcp.f32 %v792_v24  ;;  %v804_v38 = vand.u32 2147483648, %v792_v24  ;;  %vm798_vm10 = vweird.f32 %v792_v24  ;;  %v802_v19 = vand.u32 2147483647, %v792_v24 }
 0x1a6   :  { %v786_v14 = vor.u32 1.1754944e-38, %v785_v47  ;;  %vm784_vm14 = vcmp.eq.f32.partialorder %v783_v11, 8.507059e+37 }
 0x1a7   :  { %v805_v51 = vor.u32 1.1754944e-38, %v804_v38  ;;  %vm803_vm15 = vcmp.eq.f32.partialorder %v802_v19, 8.507059e+37  ;;  %v4799_v38 = vld [vmem:[#allocation8 + $0x180] sm:$0xff]  ;;  %v4810_v19 = vld [vmem:[#allocation8 + $0x190] sm:$0xff] }
 0x1a8   :  { %v3019_v41 = vpop.eup %3018 }
 0x1a9   :  { %v812_v42 = vadd.f32 1.0, %v3019_v41  ;;  %v4776_v41 = vld [vmem:[#allocation8 + $0x1d0] sm:$0xff] }
 0x1aa   :  { %v3021_v22 = vpop.eup %3020 }
 0x1ab   :  { %v3023_v12 = vpop.eup %3022  ;;  %v775_v21 = vmul.f32 %v3021_v22, %v773_v25  ;;  %3024 = vrcp.f32 %v812_v42  ;;  %vm780_vm9 = vweird.f32 %v3021_v22  ;;  %vm818_vm0 = vweird.f32 %v812_v42  ;;  %v4770_v25 = vld [vmem:[#allocation8 + $0x1c0] sm:$0xff] }
 0x1ac   :  { %v794_v63 = vmul.f32 %v3023_v12, %v792_v24  ;;  %3026 = vtanh.f32 %v768_v48  ;;  %vm799_vm11 = vweird.f32 %v3023_v12  ;;  %vm781_vm12 = vmor %vm779_vm8, %vm780_vm9  ;;  %v824_v33 = vand.u32 2147483648, %v812_v42  ;;  %v4773_v24 = vld [vmem:[#allocation8 + $0x1c8] sm:$0xff] }
 0x1ad   :  { %v776_v46 = vsub.f32 1.0, %v775_v21  ;;  %vm800_vm13 = vmor %vm798_vm10, %vm799_vm11  ;;  %v822_v3 = vand.u32 2147483647, %v812_v42  ;;  %v4785_v48 = vld [vmem:[#allocation8 + $0x1a8] sm:$0xff]  ;;  %v4790_v21 = vld [vmem:[#allocation8 + $0x1b0] sm:$0xff] }
 0x1ae   :  { %v795_v1 = vsub.f32 1.0, %v794_v63  ;;  %v825_v34 = vor.u32 1.1754944e-38, %v824_v33  ;;  %v4793_v63 = vld [vmem:[#allocation8 + $0x1b8] sm:$0xff]  ;;  %v4860_v33 = vld [vmem:[#allocation8 + $0x130] sm:$0xff] }
 0x1af   :  { %v777_v52 = vmul.f32 %v3021_v22, %v776_v46  ;;  %vm823_vm3 = vcmp.eq.f32.partialorder %v822_v3, 8.507059e+37 }
 0x1b0   :  { %v796_v17 = vmul.f32 %v3023_v12, %v795_v1  ;;  %v6837_v1 = vld [vmem:[#allocation72_spill] sm:$0xff] }
 0x1b1   :  { %v3025_v45 = vpop.eup %3024  ;;  %v778_v50 = vadd.f32 %v3021_v22, %v777_v52  ;;  %v4802_v52 = vld [vmem:[#allocation8 + $0x188] sm:$0xff] }
 0x1b2   :  { %v814_v49 = vmul.f32 %v3025_v45, %v812_v42  ;;  %v797_v15 = vadd.f32 %v3023_v12, %v796_v17  ;;  %v3027_v2 = vpop.eup %3026  ;;  %vm819_vm1 = vweird.f32 %v3025_v45  ;;  %v4779_v42 = vld [vmem:[#allocation8 + $0x1d8] sm:$0xff] }
 0x1b3   :  { %v782_v59 = vsel %vm781_vm12, %v3021_v22, %v778_v50  ;;  %vm820_vm2 = vmor %vm818_vm0, %vm819_vm1 }
 0x1b4   :  { %v815_v61 = vsub.f32 1.0, %v814_v49  ;;  %v787_v4 = vsel %vm784_vm14, %v786_v14, %v782_v59  ;;  %v801_v6 = vsel %vm800_vm13, %v3023_v12, %v797_v15  ;;  %v4818_v49 = vld [vmem:[#allocation8 + $0x160] sm:$0xff]  ;;  %v4821_v14 = vld [vmem:[#allocation8 + $0x168] sm:$0xff]  ;;  %v4827_v59 = vld [vmem:[#allocation8 + $0x178] sm:$0xff] }
 0x1b5   :  { %v806_v0 = vsel %vm803_vm15, %v805_v51, %v801_v6  ;;  %v829_v9 = vmul.f32 %v3027_v2, %v787_v4  ;;  %v4824_v51 = vld [vmem:[#allocation8 + $0x170] sm:$0xff]  ;;  %v4831_v4 = vld [vmem:[#allocation8 + $0x140] sm:$0xff]  ;;  %v4834_v6 = vld [vmem:[#allocation8 + $0x148] sm:$0xff] }
 0x1b6   :  { %v816_v5 = vmul.f32 %v3025_v45, %v815_v61  ;;  %v828_v58 = vmul.f32 %v806_v0, %v4564_v31 }
 0x1b8   :  { %v4743_v56 = vadd.f32 %v829_v9, %v828_v58  ;;  %v817_v60 = vadd.f32 %v3025_v45, %v816_v5  ;;  %v4841_v58 = vld [vmem:[#allocation8 + $0x150] sm:$0xff] }
 0x1ba   :  { %3028 = vtanh.f32 %v4743_v56  ;;  %v821_v31 = vsel %vm820_vm2, %v3025_v45, %v817_v60  ;;  %v4813_v45 = vld [vmem:[#allocation8 + $0x198] sm:$0xff] }
 0x1bb   :  { %v826_v28 = vsel %vm823_vm3, %v825_v34, %v821_v31 }
 0x1c0   :  { %v3029_v32 = vpop.eup %3028 }
 0x1c1   :  { %v832_v20 = vmul.f32 %v3029_v32, %v826_v28 }
 0x1c3   :  { %2925 = vst [vmem:[%s6172_s4 + $0x8] sm:$0xff] %v832_v20  ;;  %1010 = vmatmul.f32.vlgmr.msra.gmra.mxu0 %v832_v20  ;;  %1030 = vmatmul.f32.vlgmr.msra.gmra.mxu1 %v832_v20 }
 0x1c4   :  { %1050 = vmatmul.f32.vlgmr.msra.gmra.mxu2 %v832_v20  ;;  %1070 = vmatmul.f32.vlgmr.msra.gmra.mxu3 %v832_v20  ;;  %v4894_v20 = vld [vmem:[#allocation8 + $0x118] sm:$0xff] }
 0x1c5   :  { %1302 = vmatpush.msra.mxu0 %v4757_v44  ;;  %1322 = vmatpush.msra.mxu1 %v4760_v26 }
 0x1c6   :  { %v857_v7 = vpop.f32.mrf.mxu0  ;;  %v877_v13 = vpop.f32.mrf.mxu1  ;;  %1342 = vmatpush.msra.mxu2 %v4764_v36  ;;  %1362 = vmatpush.msra.mxu3 %v4767_v16 }
 0x1c7   :  { %v920_v57 = vadd.f32 %v6834_v8, %v857_v7  ;;  %v921_v54 = vadd.f32 %v6835_v55, %v877_v13  ;;  %1303 = vmatpush.msra.mxu0 %v4770_v25  ;;  %1323 = vmatpush.msra.mxu1 %v4773_v24  ;;  %v4844_v7 = vld [vmem:[#allocation8 + $0x158] sm:$0xff]  ;;  %v4853_v55 = vld [vmem:[#allocation8 + $0x128] sm:$0xff] }
 0x1c8   :  { %1343 = vmatpush.msra.mxu2 %v4776_v41  ;;  %1363 = vmatpush.msra.mxu3 %v4779_v42 }
 0x1c9   :  { %v2926_v62 = vmul.f32 -1.442695, %v920_v57  ;;  %v2927_v53 = vmul.f32 -1.442695, %v921_v54  ;;  %1304 = vmatpush.msra.mxu0 %v4782_v23  ;;  %1324 = vmatpush.msra.mxu1 %v4785_v48  ;;  %v4850_v57 = vld [vmem:[#allocation8 + $0x120] sm:$0xff] }
 0x1ca   :  { %1344 = vmatpush.msra.mxu2 %v4790_v21  ;;  %1364 = vmatpush.msra.mxu3 %v4793_v63 }
 0x1cb   :  { %3030 = vpow2.f32 %v2926_v62  ;;  %1305 = vmatpush.msra.mxu0 %v4799_v38  ;;  %1325 = vmatpush.msra.mxu1 %v4802_v52  ;;  %v4863_v62 = vld [vmem:[#allocation8 + $0x138] sm:$0xff] }
 0x1cc   :  { %3032 = vpow2.f32 %v2927_v53  ;;  %1345 = vmatpush.msra.mxu2 %v4810_v19  ;;  %1365 = vmatpush.msra.mxu3 %v4813_v45 }
 0x1cd   :  { %v917_v35 = vpop.f32.mrf.mxu3  ;;  %v897_v27 = vpop.f32.mrf.mxu2  ;;  %1306 = vmatpush.msra.mxu0 %v4818_v49  ;;  %1326 = vmatpush.msra.mxu1 %v4821_v14 }
 0x1ce   :  { %v923_v30 = vadd.f32 %v6836_v43, %v917_v35  ;;  %v922_v47 = vadd.f32 %v6837_v1, %v897_v27  ;;  %1346 = vmatpush.msra.mxu2 %v4824_v51  ;;  %1366 = vmatpush.msra.mxu3 %v4827_v59  ;;  %v4876_v35 = vld [vmem:[#allocation8 + $0x100] sm:$0xff]  ;;  %v4879_v43 = vld [vmem:[#allocation8 + $0x108] sm:$0xff] }
 0x1cf   :  { %1307 = vmatpush.msra.mxu0 %v4831_v4  ;;  %1327 = vmatpush.msra.mxu1 %v4834_v6  ;;  %v4900_v27 = vld [vmem:[#allocation8 + $0xe0] sm:$0xff] }
 0x1d0   :  { %v2928_v29 = vmul.f32 -1.442695, %v923_v30  ;;  %1347 = vmatpush.msra.mxu2 %v4841_v58  ;;  %1367 = vmatpush.msra.mxu3 %v4844_v7  ;;  %v4952_v30 = vld [vmem:[#allocation8 + $0x90] sm:$0xff] }
 0x1d1   :  { %v3031_v39 = vpop.eup %3030  ;;  %1308 = vmatpush.msra.mxu0 %v4850_v57  ;;  %1328 = vmatpush.msra.mxu1 %v4853_v55  ;;  %6853 = vst [vmem:[#allocation80_spill] sm:$0xff] %v4952_v30 }
 0x1d2   :  { %v3033_v40 = vpop.eup %3032  ;;  %v4749_v37 = vadd.f32 1.0, %v3031_v39  ;;  %3034 = vpow2.f32 %v2928_v29  ;;  %1348 = vmatpush.msra.mxu2 %v4860_v33  ;;  %1368 = vmatpush.msra.mxu3 %v4863_v62  ;;  %v4891_v29 = vld [vmem:[#allocation8 + $0x110] sm:$0xff] }
 0x1d3   :  { %v4754_v10 = vadd.f32 1.0, %v3033_v40  ;;  %1309 = vmatpush.msra.mxu0 %v4876_v35  ;;  %1329 = vmatpush.msra.mxu1 %v4879_v43 }
 0x1d4   :  { %3036 = vrcp.f32 %v4749_v37  ;;  %v939_v61 = vand.u32 2147483648, %v4749_v37  ;;  %v937_v5 = vand.u32 2147483647, %v4749_v37  ;;  %vm933_vm6 = vweird.f32 %v4749_v37  ;;  %1349 = vmatpush.msra.mxu2 %v4891_v29  ;;  %1369 = vmatpush.msra.mxu3 %v4894_v20 }
 0x1d5   :  { %3038 = vrcp.f32 %v4754_v10  ;;  %v958_v0 = vand.u32 2147483648, %v4754_v10  ;;  %v956_v8 = vand.u32 2147483647, %v4754_v10  ;;  %vm952_vm7 = vweird.f32 %v4754_v10  ;;  %1310 = vmatpush.msra.mxu0 %v4900_v27 }
 0x1d6   :  { %v940_v3 = vor.u32 1.1754944e-38, %v939_v61  ;;  %vm938_vm10 = vcmp.eq.f32.partialorder %v937_v5, 8.507059e+37  ;;  %v4920_v61 = vld [vmem:[#allocation8 + $0xd0] sm:$0xff]  ;;  %v4931_v5 = vld [vmem:[#allocation8 + $0xa8] sm:$0xff] }
 0x1d7   :  { %v959_v32 = vor.u32 1.1754944e-38, %v958_v0  ;;  %vm957_vm11 = vcmp.eq.f32.partialorder %v956_v8, 8.507059e+37  ;;  %6844 = vst [vmem:[#allocation14_spill] sm:$0xff] %v4920_v61  ;;  %v4923_v0 = vld [vmem:[#allocation8 + $0xd8] sm:$0xff]  ;;  %v4936_v8 = vld [vmem:[#allocation8 + $0xb0] sm:$0xff] }
 0x1d8   :  { %v3035_v22 = vpop.eup %3034  ;;  %6845 = vst [vmem:[#allocation15_spill] sm:$0xff] %v4923_v0 }
 0x1d9   :  { %v4788_v12 = vadd.f32 1.0, %v3035_v22  ;;  %v4903_v22 = vld [vmem:[#allocation8 + $0xe8] sm:$0xff]  ;;  %6848 = vst [vmem:[#allocation74_spill] sm:$0xff] %v4931_v5 }
 0x1da   :  { %v4796_v46 = vpop.eup %3036  ;;  %1330 = vmatpush.msra.mxu1 %v4903_v22  ;;  %6849 = vst [vmem:[#allocation75_spill] sm:$0xff] %v4936_v8 }
 0x1db   :  { %v4805_v11 = vpop.eup %3038  ;;  %v929_v17 = vmul.f32 %v4796_v46, %v4749_v37  ;;  %3040 = vrcp.f32 %v4788_v12  ;;  %vm934_vm4 = vweird.f32 %v4796_v46  ;;  %v978_v53 = vand.u32 2147483648, %v4788_v12 }
 0x1dc   :  { %v948_v50 = vmul.f32 %v4805_v11, %v4754_v10  ;;  %3042 = vtanh.f32 %v922_v47  ;;  %vm953_vm5 = vweird.f32 %v4805_v11  ;;  %vm4869_vm8 = vmor %vm933_vm6, %vm934_vm4  ;;  %v4906_v47 = vld [vmem:[#allocation8 + $0xf0] sm:$0xff]  ;;  %vm972_vm13 = vweird.f32 %v4788_v12 }
 0x1dd   :  { %v930_v15 = vsub.f32 1.0, %v929_v17  ;;  %vm4884_vm9 = vmor %vm952_vm7, %vm953_vm5  ;;  %1350 = vmatpush.msra.mxu2 %v4906_v47  ;;  %v4909_v17 = vld [vmem:[#allocation8 + $0xf8] sm:$0xff] }
 0x1de   :  { %v949_v2 = vsub.f32 1.0, %v948_v50  ;;  %1370 = vmatpush.msra.mxu3 %v4909_v17 }
 0x1df   :  { %v931_v9 = vmul.f32 %v4796_v46, %v930_v15  ;;  %v4914_v15 = vld [vmem:[#allocation8 + $0xc0] sm:$0xff]  ;;  %1351 = vmatpush.msra.mxu2 %v4920_v61 }
 0x1e0   :  { %v950_v13 = vmul.f32 %v4805_v11, %v949_v2  ;;  %6842 = vst [vmem:[#allocation88_spill] sm:$0xff] %v4914_v15  ;;  %1311 = vmatpush.msra.mxu0 %v4914_v15  ;;  %v4917_v2 = vld [vmem:[#allocation8 + $0xc8] sm:$0xff]  ;;  %1371 = vmatpush.msra.mxu3 %v4923_v0 }
 0x1e1   :  { %v4856_v54 = vpop.eup %3040  ;;  %v932_v60 = vadd.f32 %v4796_v46, %v931_v9  ;;  %6843 = vst [vmem:[#allocation92_spill] sm:$0xff] %v4917_v2  ;;  %1331 = vmatpush.msra.mxu1 %v4917_v2  ;;  %1352 = vmatpush.msra.mxu2 %v4936_v8 }
 0x1e2   :  { %v951_v31 = vadd.f32 %v4805_v11, %v950_v13  ;;  %v968_v34 = vmul.f32 %v4856_v54, %v4788_v12  ;;  %v3043_v39 = vpop.eup %3042  ;;  %vm973_vm12 = vweird.f32 %v4856_v54 }
 0x1e3   :  { %v936_v28 = vsel %vm4869_vm8, %v4796_v46, %v932_v60  ;;  %1332 = vmatpush.msra.mxu1 %v4931_v5  ;;  %v4939_v60 = vld [vmem:[#allocation8 + $0xb8] sm:$0xff]  ;;  %1353 = vmatpush.msra.mxu2 %v4952_v30  ;;  %vm4960_vm14 = vmor %vm972_vm13, %vm973_vm12 }
 0x1e4   :  { %v941_v40 = vsel %vm938_vm10, %v940_v3, %v936_v28  ;;  %v955_v37 = vsel %vm4884_vm9, %v4805_v11, %v951_v31  ;;  %v969_v10 = vsub.f32 1.0, %v968_v34  ;;  %6850 = vst [vmem:[#allocation77_spill] sm:$0xff] %v4939_v60  ;;  %1372 = vmatpush.msra.mxu3 %v4939_v60  ;;  %v4944_v3 = vld [vmem:[#allocation8 + $0x80] sm:$0xff]  ;;  %v4947_v31 = vld [vmem:[#allocation8 + $0x88] sm:$0xff]  ;;  %v976_v34 = vand.u32 2147483647, %v4788_v12 }
 0x1e5   :  { %v960_v46 = vsel %vm957_vm11, %v959_v32, %v955_v37  ;;  %v983_v1 = vmul.f32 %v3043_v39, %v941_v40  ;;  %6851 = vst [vmem:[#allocation78_spill] sm:$0xff] %v4944_v3  ;;  %1333 = vmatpush.msra.mxu1 %v4947_v31  ;;  %v4955_v32 = vld [vmem:[#allocation8 + $0x98] sm:$0xff]  ;;  %v4964_v39 = vld [vmem:[#allocation8 + $0x60] sm:$0xff]  ;;  %v4967_v40 = vld [vmem:[#allocation8 + $0x68] sm:$0xff] }
 0x1e6   :  { %v982_v11 = vmul.f32 %v960_v46, %v4638_v18  ;;  %v970_v50 = vmul.f32 %v4856_v54, %v969_v10  ;;  %v4928_v18 = vld [vmem:[#allocation8 + $0xa0] sm:$0xff]  ;;  %6852 = vst [vmem:[#allocation79_spill] sm:$0xff] %v4947_v31  ;;  %1373 = vmatpush.msra.mxu3 %v4955_v32  ;;  %v4973_v37 = vld [vmem:[#allocation8 + $0x70] sm:$0xff]  ;;  %v4976_v10 = vld [vmem:[#allocation8 + $0x78] sm:$0xff]  ;;  %v979_v46 = vor.u32 1.1754944e-38, %v978_v53  ;;  %vm977_vm15 = vcmp.eq.f32.partialorder %v976_v34, 8.507059e+37 }
 0x1e7   :  { %6847 = vst [vmem:[#allocation16_spill] sm:$0xff] %v4928_v18  ;;  %1312 = vmatpush.msra.mxu0 %v4928_v18  ;;  %1334 = vmatpush.msra.mxu1 %v4967_v40  ;;  %v4991_v53 = vld [vmem:[#allocation8 + $0x20] sm:$0xff]  ;;  %v4997_v34 = vld [vmem:[#allocation8 + $0x30] sm:$0xff] }
 0x1e8   :  { %v4926_v9 = vadd.f32 %v983_v1, %v982_v11  ;;  %v971_v13 = vadd.f32 %v4856_v54, %v970_v50  ;;  %6854 = vst [vmem:[#allocation76_spill] sm:$0xff] %v4955_v32  ;;  %1354 = vmatpush.msra.mxu2 %v4973_v37  ;;  %1374 = vmatpush.msra.mxu3 %v4976_v10  ;;  %v4979_v1 = vld [vmem:[#allocation8 + $0x40] sm:$0xff]  ;;  %v4982_v11 = vld [vmem:[#allocation8 + $0x48] sm:$0xff]  ;;  %v4985_v50 = vld [vmem:[#allocation8 + $0x50] sm:$0xff] }
 0x1e9   :  { %1313 = vmatpush.msra.mxu0 %v4944_v3  ;;  %6857 = vst [vmem:[#allocation96_spill] sm:$0xff] %v4964_v39  ;;  %1335 = vmatpush.msra.mxu1 %v4982_v11 }
 0x1ea   :  { %6846 = vst [vmem:[#allocation17_spill] sm:$0xff] %v4926_v9  ;;  %3044 = vtanh.f32 %v4926_v9  ;;  %v975_v12 = vsel %vm4960_vm14, %v4856_v54, %v971_v13  ;;  %1355 = vmatpush.msra.mxu2 %v4985_v50  ;;  %v4988_v54 = vld [vmem:[#allocation8 + $0x58] sm:$0xff]  ;;  %v6942_v9 = vld [vmem:[#allocation67_spill] sm:$0xff] }
 0x1eb   :  { %1314 = vmatpush.msra.mxu0 %v4964_v39  ;;  %6858 = vst [vmem:[#allocation81_spill] sm:$0xff] %v4967_v40  ;;  %1375 = vmatpush.msra.mxu3 %v4988_v54  ;;  %v980_v28 = vsel %vm977_vm15, %v979_v46, %v975_v12  ;;  %v5006_v12 = vld [vmem:[#allocation8 + $0x8] sm:$0xff]  ;;  %v5012_v46 = vld [vmem:[#allocation8 + $0x10] sm:$0xff] }
 0x1ec   :  { %6859 = vst [vmem:[#allocation82_spill] sm:$0xff] %v4973_v37  ;;  %1356 = vmatpush.msra.mxu2 %v4997_v34 }
 0x1ed   :  { %6860 = vst [vmem:[#allocation83_spill] sm:$0xff] %v4976_v10  ;;  %1315 = vmatpush.msra.mxu0 %v4979_v1 }
 0x1ee   :  { %6861 = vst [vmem:[#allocation107_spill] sm:$0xff] %v4979_v1  ;;  %v4994_v1 = vld [vmem:[#allocation8 + $0x28] sm:$0xff]  ;;  %1357 = vmatpush.msra.mxu2 %v5012_v46 }
 0x1ef   :  { %6862 = vst [vmem:[#allocation84_spill] sm:$0xff] %v4982_v11  ;;  %1316 = vmatpush.msra.mxu0 %v4991_v53  ;;  %1336 = vmatpush.msra.mxu1 %v4994_v1 }
 0x1f0   :  { %6863 = vst [vmem:[#allocation85_spill] sm:$0xff] %v4985_v50  ;;  %v3045_v13 = vpop.eup %3044  ;;  %v5000_v50 = vld [vmem:[#allocation8 + $0x38] sm:$0xff] }
 0x1f1   :  { %6864 = vst [vmem:[#allocation86_spill] sm:$0xff] %v4988_v54  ;;  %v986_v11 = vmul.f32 %v3045_v13, %v980_v28  ;;  %1376 = vmatpush.msra.mxu3 %v5000_v50  ;;  %v5003_v54 = vld [vmem:[#allocation8] sm:$0xff]  ;;  %1337 = vmatpush.msra.mxu1 %v5006_v12  ;;  %v5015_v13 = vld [vmem:[#allocation8 + $0x18] sm:$0xff] }
 0x1f2   :  { %6865 = vst [vmem:[#allocation111_spill] sm:$0xff] %v4991_v53  ;;  %1317 = vmatpush.msra.mxu0 %v5003_v54  ;;  %v5018_v28 = vld [vmem:[#allocation10 + $0x1e0] sm:$0xff] }
 0x1f3   :  { %6866 = vst [vmem:[#allocation87_spill] sm:$0xff] %v4994_v1  ;;  %1164 = vmatmul.f32.vlgmr.msrb.gmra.mxu0 %v986_v11  ;;  %1184 = vmatmul.f32.vlgmr.msrb.gmra.mxu1 %v986_v11  ;;  %v6938_v1 = vld [vmem:[#allocation23_spill] sm:$0xff] }
 0x1f4   :  { %6867 = vst [vmem:[#allocation89_spill] sm:$0xff] %v4997_v34  ;;  %1204 = vmatmul.f32.vlgmr.msrb.gmra.mxu2 %v986_v11  ;;  %1224 = vmatmul.f32.vlgmr.msrb.gmra.mxu3 %v986_v11  ;;  %v6937_v34 = vld [vmem:[#allocation22_spill] sm:$0xff] }
 0x1f5   :  { %6868 = vst [vmem:[#allocation90_spill] sm:$0xff] %v5000_v50  ;;  %1377 = vmatpush.msra.mxu3 %v5015_v13  ;;  %1456 = vmatpush.msrb.mxu0 %v5018_v28 }
 0x1f6   :  { %6869 = vst [vmem:[#allocation115_spill] sm:$0xff] %v5003_v54  ;;  %v5024_v54 = vld [vmem:[#allocation10 + $0x1f0] sm:$0xff] }
 0x1f7   :  { %6870 = vst [vmem:[#allocation91_spill] sm:$0xff] %v5006_v12  ;;  %v5021_v12 = vld [vmem:[#allocation10 + $0x1e8] sm:$0xff]  ;;  %1496 = vmatpush.msrb.mxu2 %v5024_v54 }
 0x1f8   :  { %2929 = vst [vmem:[%s6173_s5 + $0x30] sm:$0xff] %v986_v11  ;;  %1476 = vmatpush.msrb.mxu1 %v5021_v12  ;;  %v5027_v11 = vld [vmem:[#allocation10 + $0x1f8] sm:$0xff] }
 0x1f9   :  { %6871 = vst [vmem:[#allocation93_spill] sm:$0xff] %v5012_v46  ;;  %1516 = vmatpush.msrb.mxu3 %v5027_v11  ;;  %v5030_v46 = vld [vmem:[#allocation10 + $0x1c0] sm:$0xff] }
 0x1fa   :  { %6872 = vst [vmem:[#allocation94_spill] sm:$0xff] %v5015_v13  ;;  %1457 = vmatpush.msrb.mxu0 %v5030_v46  ;;  %v5033_v13 = vld [vmem:[#allocation10 + $0x1c8] sm:$0xff] }
 0x1fb   :  { %6873 = vst [vmem:[#allocation119_spill] sm:$0xff] %v5018_v28  ;;  %1477 = vmatpush.msrb.mxu1 %v5033_v13  ;;  %v5036_v28 = vld [vmem:[#allocation10 + $0x1d0] sm:$0xff] }
 0x1fc   :  { %6874 = vst [vmem:[#allocation95_spill] sm:$0xff] %v5021_v12  ;;  %1497 = vmatpush.msrb.mxu2 %v5036_v28  ;;  %v5039_v12 = vld [vmem:[#allocation10 + $0x1d8] sm:$0xff] }
 0x1fd   :  { %6875 = vst [vmem:[#allocation97_spill] sm:$0xff] %v5024_v54  ;;  %1517 = vmatpush.msrb.mxu3 %v5039_v12  ;;  %v5042_v54 = vld [vmem:[#allocation10 + $0x1a0] sm:$0xff] }
 0x1fe   :  { %6876 = vst [vmem:[#allocation98_spill] sm:$0xff] %v5027_v11  ;;  %1458 = vmatpush.msrb.mxu0 %v5042_v54  ;;  %v5045_v11 = vld [vmem:[#allocation10 + $0x1a8] sm:$0xff] }
 0x1ff   :  { %6877 = vst [vmem:[#allocation123_spill] sm:$0xff] %v5030_v46  ;;  %1478 = vmatpush.msrb.mxu1 %v5045_v11  ;;  %v5048_v46 = vld [vmem:[#allocation10 + $0x1b0] sm:$0xff] }
 0x200   :  { %6878 = vst [vmem:[#allocation99_spill] sm:$0xff] %v5033_v13  ;;  %1498 = vmatpush.msrb.mxu2 %v5048_v46  ;;  %v5051_v13 = vld [vmem:[#allocation10 + $0x1b8] sm:$0xff] }
 0x201   :  { %6879 = vst [vmem:[#allocation100_spill] sm:$0xff] %v5036_v28  ;;  %1518 = vmatpush.msrb.mxu3 %v5051_v13  ;;  %v5054_v28 = vld [vmem:[#allocation10 + $0x180] sm:$0xff] }
 0x202   :  { %6880 = vst [vmem:[#allocation101_spill] sm:$0xff] %v5039_v12  ;;  %1459 = vmatpush.msrb.mxu0 %v5054_v28  ;;  %v5057_v12 = vld [vmem:[#allocation10 + $0x188] sm:$0xff] }
 0x203   :  { %6881 = vst [vmem:[#allocation129_spill] sm:$0xff] %v5042_v54  ;;  %1479 = vmatpush.msrb.mxu1 %v5057_v12  ;;  %v5060_v54 = vld [vmem:[#allocation10 + $0x190] sm:$0xff] }
 0x204   :  { %6882 = vst [vmem:[#allocation102_spill] sm:$0xff] %v5045_v11  ;;  %1499 = vmatpush.msrb.mxu2 %v5060_v54  ;;  %v5063_v11 = vld [vmem:[#allocation10 + $0x198] sm:$0xff] }
 0x205   :  { %6883 = vst [vmem:[#allocation103_spill] sm:$0xff] %v5048_v46  ;;  %1519 = vmatpush.msrb.mxu3 %v5063_v11  ;;  %v5066_v46 = vld [vmem:[#allocation10 + $0x160] sm:$0xff] }
 0x206   :  { %6884 = vst [vmem:[#allocation104_spill] sm:$0xff] %v5051_v13  ;;  %1460 = vmatpush.msrb.mxu0 %v5066_v46  ;;  %v5069_v13 = vld [vmem:[#allocation10 + $0x168] sm:$0xff] }
 0x207   :  { %6885 = vst [vmem:[#allocation133_spill] sm:$0xff] %v5054_v28  ;;  %1480 = vmatpush.msrb.mxu1 %v5069_v13  ;;  %v5072_v28 = vld [vmem:[#allocation10 + $0x170] sm:$0xff] }
 0x208   :  { %6886 = vst [vmem:[#allocation105_spill] sm:$0xff] %v5057_v12  ;;  %1500 = vmatpush.msrb.mxu2 %v5072_v28  ;;  %v5075_v12 = vld [vmem:[#allocation10 + $0x178] sm:$0xff] }
 0x209   :  { %6887 = vst [vmem:[#allocation106_spill] sm:$0xff] %v5060_v54  ;;  %1520 = vmatpush.msrb.mxu3 %v5075_v12  ;;  %v5078_v54 = vld [vmem:[#allocation10 + $0x140] sm:$0xff] }
 0x20a   :  { %6888 = vst [vmem:[#allocation108_spill] sm:$0xff] %v5063_v11  ;;  %1461 = vmatpush.msrb.mxu0 %v5078_v54  ;;  %v5081_v11 = vld [vmem:[#allocation10 + $0x148] sm:$0xff] }
 0x20b   :  { %6889 = vst [vmem:[#allocation137_spill] sm:$0xff] %v5066_v46  ;;  %1481 = vmatpush.msrb.mxu1 %v5081_v11  ;;  %v5084_v46 = vld [vmem:[#allocation10 + $0x150] sm:$0xff] }
 0x20c   :  { %6890 = vst [vmem:[#allocation109_spill] sm:$0xff] %v5069_v13  ;;  %1501 = vmatpush.msrb.mxu2 %v5084_v46  ;;  %v5087_v13 = vld [vmem:[#allocation10 + $0x158] sm:$0xff] }
 0x20d   :  { %6891 = vst [vmem:[#allocation110_spill] sm:$0xff] %v5072_v28  ;;  %1521 = vmatpush.msrb.mxu3 %v5087_v13  ;;  %v5090_v28 = vld [vmem:[#allocation10 + $0x120] sm:$0xff] }
 0x20e   :  { %6892 = vst [vmem:[#allocation112_spill] sm:$0xff] %v5075_v12  ;;  %1462 = vmatpush.msrb.mxu0 %v5090_v28  ;;  %v5093_v12 = vld [vmem:[#allocation10 + $0x128] sm:$0xff] }
 0x20f   :  { %6893 = vst [vmem:[#allocation141_spill] sm:$0xff] %v5078_v54  ;;  %1482 = vmatpush.msrb.mxu1 %v5093_v12  ;;  %v5096_v54 = vld [vmem:[#allocation10 + $0x130] sm:$0xff] }
 0x210   :  { %6894 = vst [vmem:[#allocation113_spill] sm:$0xff] %v5081_v11  ;;  %1502 = vmatpush.msrb.mxu2 %v5096_v54  ;;  %v5099_v11 = vld [vmem:[#allocation10 + $0x138] sm:$0xff] }
 0x211   :  { %6895 = vst [vmem:[#allocation114_spill] sm:$0xff] %v5084_v46  ;;  %1522 = vmatpush.msrb.mxu3 %v5099_v11  ;;  %v5102_v46 = vld [vmem:[#allocation10 + $0x100] sm:$0xff] }
 0x212   :  { %6896 = vst [vmem:[#allocation116_spill] sm:$0xff] %v5087_v13  ;;  %1463 = vmatpush.msrb.mxu0 %v5102_v46  ;;  %v5105_v13 = vld [vmem:[#allocation10 + $0x108] sm:$0xff] }
 0x213   :  { %6897 = vst [vmem:[#allocation145_spill] sm:$0xff] %v5090_v28  ;;  %1483 = vmatpush.msrb.mxu1 %v5105_v13  ;;  %v5108_v28 = vld [vmem:[#allocation10 + $0x110] sm:$0xff] }
 0x214   :  { %6898 = vst [vmem:[#allocation117_spill] sm:$0xff] %v5093_v12  ;;  %1503 = vmatpush.msrb.mxu2 %v5108_v28  ;;  %v5111_v12 = vld [vmem:[#allocation10 + $0x118] sm:$0xff] }
 0x215   :  { %6899 = vst [vmem:[#allocation118_spill] sm:$0xff] %v5096_v54  ;;  %1523 = vmatpush.msrb.mxu3 %v5111_v12  ;;  %v5114_v54 = vld [vmem:[#allocation10 + $0xe0] sm:$0xff] }
 0x216   :  { %6900 = vst [vmem:[#allocation120_spill] sm:$0xff] %v5099_v11  ;;  %1464 = vmatpush.msrb.mxu0 %v5114_v54  ;;  %v5117_v11 = vld [vmem:[#allocation10 + $0xe8] sm:$0xff] }
 0x217   :  { %6901 = vst [vmem:[#allocation149_spill] sm:$0xff] %v5102_v46  ;;  %1484 = vmatpush.msrb.mxu1 %v5117_v11  ;;  %v5120_v46 = vld [vmem:[#allocation10 + $0xf0] sm:$0xff] }
 0x218   :  { %6902 = vst [vmem:[#allocation121_spill] sm:$0xff] %v5105_v13  ;;  %1504 = vmatpush.msrb.mxu2 %v5120_v46  ;;  %v5123_v13 = vld [vmem:[#allocation10 + $0xf8] sm:$0xff] }
 0x219   :  { %6903 = vst [vmem:[#allocation122_spill] sm:$0xff] %v5108_v28  ;;  %1524 = vmatpush.msrb.mxu3 %v5123_v13  ;;  %v5126_v28 = vld [vmem:[#allocation10 + $0xc0] sm:$0xff] }
 0x21a   :  { %6904 = vst [vmem:[#allocation124_spill] sm:$0xff] %v5111_v12  ;;  %1465 = vmatpush.msrb.mxu0 %v5126_v28  ;;  %v5129_v12 = vld [vmem:[#allocation10 + $0xc8] sm:$0xff] }
 0x21b   :  { %6905 = vst [vmem:[#allocation153_spill] sm:$0xff] %v5114_v54  ;;  %1485 = vmatpush.msrb.mxu1 %v5129_v12  ;;  %v5132_v54 = vld [vmem:[#allocation10 + $0xd0] sm:$0xff] }
 0x21c   :  { %6906 = vst [vmem:[#allocation125_spill] sm:$0xff] %v5117_v11  ;;  %1505 = vmatpush.msrb.mxu2 %v5132_v54  ;;  %v5135_v11 = vld [vmem:[#allocation10 + $0xd8] sm:$0xff] }
 0x21d   :  { %6907 = vst [vmem:[#allocation126_spill] sm:$0xff] %v5120_v46  ;;  %1525 = vmatpush.msrb.mxu3 %v5135_v11  ;;  %v5138_v46 = vld [vmem:[#allocation10 + $0xa0] sm:$0xff] }
 0x21e   :  { %6908 = vst [vmem:[#allocation127_spill] sm:$0xff] %v5123_v13  ;;  %1466 = vmatpush.msrb.mxu0 %v5138_v46  ;;  %v5141_v13 = vld [vmem:[#allocation10 + $0xa8] sm:$0xff] }
 0x21f   :  { %6909 = vst [vmem:[#allocation157_spill] sm:$0xff] %v5126_v28  ;;  %1486 = vmatpush.msrb.mxu1 %v5141_v13  ;;  %v5144_v28 = vld [vmem:[#allocation10 + $0xb0] sm:$0xff] }
 0x220   :  { %6910 = vst [vmem:[#allocation128_spill] sm:$0xff] %v5129_v12  ;;  %1506 = vmatpush.msrb.mxu2 %v5144_v28  ;;  %v5147_v12 = vld [vmem:[#allocation10 + $0xb8] sm:$0xff] }
 0x221   :  { %6911 = vst [vmem:[#allocation130_spill] sm:$0xff] %v5132_v54  ;;  %1526 = vmatpush.msrb.mxu3 %v5147_v12  ;;  %v5150_v54 = vld [vmem:[#allocation10 + $0x80] sm:$0xff] }
 0x222   :  { %6912 = vst [vmem:[#allocation131_spill] sm:$0xff] %v5135_v11  ;;  %1467 = vmatpush.msrb.mxu0 %v5150_v54  ;;  %v5153_v11 = vld [vmem:[#allocation10 + $0x88] sm:$0xff] }
 0x223   :  { %6913 = vst [vmem:[#allocation161_spill] sm:$0xff] %v5138_v46  ;;  %1487 = vmatpush.msrb.mxu1 %v5153_v11  ;;  %v5156_v46 = vld [vmem:[#allocation10 + $0x90] sm:$0xff] }
 0x224   :  { %6914 = vst [vmem:[#allocation132_spill] sm:$0xff] %v5141_v13  ;;  %1507 = vmatpush.msrb.mxu2 %v5156_v46  ;;  %v5159_v13 = vld [vmem:[#allocation10 + $0x98] sm:$0xff] }
 0x225   :  { %6915 = vst [vmem:[#allocation134_spill] sm:$0xff] %v5144_v28  ;;  %1527 = vmatpush.msrb.mxu3 %v5159_v13  ;;  %v5162_v28 = vld [vmem:[#allocation10 + $0x60] sm:$0xff] }
 0x226   :  { %6916 = vst [vmem:[#allocation135_spill] sm:$0xff] %v5147_v12  ;;  %1468 = vmatpush.msrb.mxu0 %v5162_v28  ;;  %v5165_v12 = vld [vmem:[#allocation10 + $0x68] sm:$0xff] }
 0x227   :  { %6917 = vst [vmem:[#allocation162_spill] sm:$0xff] %v5150_v54  ;;  %1488 = vmatpush.msrb.mxu1 %v5165_v12  ;;  %v5168_v54 = vld [vmem:[#allocation10 + $0x70] sm:$0xff] }
 0x228   :  { %6918 = vst [vmem:[#allocation136_spill] sm:$0xff] %v5153_v11  ;;  %1508 = vmatpush.msrb.mxu2 %v5168_v54  ;;  %v5171_v11 = vld [vmem:[#allocation10 + $0x78] sm:$0xff] }
 0x229   :  { %6919 = vst [vmem:[#allocation138_spill] sm:$0xff] %v5156_v46  ;;  %1528 = vmatpush.msrb.mxu3 %v5171_v11  ;;  %v5174_v46 = vld [vmem:[#allocation10 + $0x40] sm:$0xff] }
 0x22a   :  { %6920 = vst [vmem:[#allocation139_spill] sm:$0xff] %v5159_v13  ;;  %1469 = vmatpush.msrb.mxu0 %v5174_v46  ;;  %v5177_v13 = vld [vmem:[#allocation10 + $0x48] sm:$0xff] }
 0x22b   :  { %6921 = vst [vmem:[#allocation163_spill] sm:$0xff] %v5162_v28  ;;  %1489 = vmatpush.msrb.mxu1 %v5177_v13  ;;  %v5180_v28 = vld [vmem:[#allocation10 + $0x50] sm:$0xff] }
 0x22c   :  { %6922 = vst [vmem:[#allocation140_spill] sm:$0xff] %v5165_v12  ;;  %1509 = vmatpush.msrb.mxu2 %v5180_v28  ;;  %v5183_v12 = vld [vmem:[#allocation10 + $0x58] sm:$0xff] }
 0x22d   :  { %6923 = vst [vmem:[#allocation142_spill] sm:$0xff] %v5168_v54  ;;  %1529 = vmatpush.msrb.mxu3 %v5183_v12  ;;  %v5186_v54 = vld [vmem:[#allocation10 + $0x20] sm:$0xff] }
 0x22e   :  { %6924 = vst [vmem:[#allocation143_spill] sm:$0xff] %v5171_v11  ;;  %1470 = vmatpush.msrb.mxu0 %v5186_v54  ;;  %v5189_v11 = vld [vmem:[#allocation10 + $0x28] sm:$0xff] }
 0x22f   :  { %6925 = vst [vmem:[#allocation164_spill] sm:$0xff] %v5174_v46  ;;  %1490 = vmatpush.msrb.mxu1 %v5189_v11  ;;  %v5192_v46 = vld [vmem:[#allocation10 + $0x30] sm:$0xff] }
 0x230   :  { %6926 = vst [vmem:[#allocation144_spill] sm:$0xff] %v5177_v13  ;;  %1510 = vmatpush.msrb.mxu2 %v5192_v46  ;;  %v5195_v13 = vld [vmem:[#allocation10 + $0x38] sm:$0xff] }
 0x231   :  { %6927 = vst [vmem:[#allocation146_spill] sm:$0xff] %v5180_v28  ;;  %1530 = vmatpush.msrb.mxu3 %v5195_v13  ;;  %v5198_v28 = vld [vmem:[#allocation10] sm:$0xff] }
 0x232   :  { %6928 = vst [vmem:[#allocation147_spill] sm:$0xff] %v5183_v12  ;;  %1471 = vmatpush.msrb.mxu0 %v5198_v28  ;;  %v5201_v12 = vld [vmem:[#allocation10 + $0x8] sm:$0xff] }
 0x233   :  { %6929 = vst [vmem:[#allocation165_spill] sm:$0xff] %v5186_v54  ;;  %1491 = vmatpush.msrb.mxu1 %v5201_v12  ;;  %v5204_v54 = vld [vmem:[#allocation10 + $0x10] sm:$0xff] }
 0x234   :  { %6930 = vst [vmem:[#allocation148_spill] sm:$0xff] %v5189_v11  ;;  %1511 = vmatpush.msrb.mxu2 %v5204_v54  ;;  %v5207_v11 = vld [vmem:[#allocation10 + $0x18] sm:$0xff] }
 0x235   :  { %6931 = vst [vmem:[#allocation150_spill] sm:$0xff] %v5192_v46  ;;  %1531 = vmatpush.msrb.mxu3 %v5207_v11 }
 0x236   :  { %6932 = vst [vmem:[#allocation151_spill] sm:$0xff] %v5195_v13 }
 0x237   :  { %6933 = vst [vmem:[#allocation166_spill] sm:$0xff] %v5198_v28 }
 0x238   :  { %6934 = vst [vmem:[#allocation152_spill] sm:$0xff] %v5201_v12  ;;  %v6939_v12 = vld [vmem:[#allocation25_spill] sm:$0xff] }
 0x239   :  { %6935 = vst [vmem:[#allocation154_spill] sm:$0xff] %v5204_v54 }
 0x23a   :  { %6936 = vst [vmem:[#allocation155_spill] sm:$0xff] %v5207_v11 }
 0x240   :  { %v1011_v46 = vpop.f32.mrf.mxu0  ;;  %v1031_v50 = vpop.f32.mrf.mxu1 }
 0x241   :  { %v1074_v13 = vadd.f32 %v1011_v46, %v6937_v34  ;;  %v1075_v53 = vadd.f32 %v1031_v50, %v6938_v1  ;;  %v6940_v1 = vld [vmem:[#allocation24_spill] sm:$0xff] }
 0x243   :  { %v2930_v10 = vmul.f32 -1.442695, %v1074_v13  ;;  %v2931_v28 = vmul.f32 -1.442695, %v1075_v53 }
 0x245   :  { %3046 = vpow2.f32 %v2930_v10 }
 0x246   :  { %3048 = vpow2.f32 %v2931_v28 }
 0x247   :  { %v1071_v37 = vpop.f32.mrf.mxu3  ;;  %v1051_v11 = vpop.f32.mrf.mxu2 }
 0x248   :  { %v1077_v40 = vadd.f32 %v1071_v37, %v6939_v12  ;;  %v1076_v50 = vadd.f32 %v1051_v11, %v6940_v1 }
 0x24a   :  { %v2932_v39 = vmul.f32 -1.442695, %v1077_v40 }
 0x24b   :  { %v3047_v32 = vpop.eup %3046 }
 0x24c   :  { %v3049_v54 = vpop.eup %3048  ;;  %v1081_v30 = vadd.f32 1.0, %v3047_v32  ;;  %3050 = vpow2.f32 %v2932_v39 }
 0x24d   :  { %v1100_v31 = vadd.f32 1.0, %v3049_v54 }
 0x24e   :  { %3052 = vrcp.f32 %v1081_v30  ;;  %v1093_v40 = vand.u32 2147483648, %v1081_v30  ;;  %v1091_v39 = vand.u32 2147483647, %v1081_v30  ;;  %vm1087_vm2 = vweird.f32 %v1081_v30 }
 0x24f   :  { %3054 = vrcp.f32 %v1100_v31  ;;  %v1112_v12 = vand.u32 2147483648, %v1100_v31  ;;  %v1110_v60 = vand.u32 2147483647, %v1100_v31  ;;  %vm1106_vm3 = vweird.f32 %v1100_v31 }
 0x250   :  { %v1094_v11 = vor.u32 1.1754944e-38, %v1093_v40  ;;  %vm1092_vm6 = vcmp.eq.f32.partialorder %v1091_v39, 8.507059e+37  ;;  %v6941_v40 = vld [vmem:[#allocation66_spill] sm:$0xff] }
 0x251   :  { %vm1111_vm7 = vcmp.eq.f32.partialorder %v1110_v60, 8.507059e+37 }
 0x252   :  { %v3051_v3 = vpop.eup %3050 }
 0x253   :  { %v1120_v34 = vadd.f32 1.0, %v3051_v3 }
 0x254   :  { %v3053_v46 = vpop.eup %3052 }
 0x255   :  { %v3055_v53 = vpop.eup %3054  ;;  %v1083_v10 = vmul.f32 %v3053_v46, %v1081_v30  ;;  %3056 = vrcp.f32 %v1120_v34  ;;  %vm1088_vm0 = vweird.f32 %v3053_v46  ;;  %vm1126_vm9 = vweird.f32 %v1120_v34 }
 0x256   :  { %v1102_v13 = vmul.f32 %v3055_v53, %v1100_v31  ;;  %3058 = vtanh.f32 %v1076_v50  ;;  %vm1107_vm1 = vweird.f32 %v3055_v53  ;;  %vm1089_vm4 = vmor %vm1087_vm2, %vm1088_vm0 }
 0x257   :  { %v1084_v28 = vsub.f32 1.0, %v1083_v10  ;;  %vm1108_vm5 = vmor %vm1106_vm3, %vm1107_vm1  ;;  %v1113_v10 = vor.u32 1.1754944e-38, %v1112_v12 }
 0x258   :  { %v1103_v37 = vsub.f32 1.0, %v1102_v13 }
 0x259   :  { %v1085_v32 = vmul.f32 %v3053_v46, %v1084_v28 }
 0x25a   :  { %v1104_v54 = vmul.f32 %v3055_v53, %v1103_v37 }
 0x25b   :  { %v3057_v8 = vpop.eup %3056  ;;  %v1086_v3 = vadd.f32 %v3053_v46, %v1085_v32 }
 0x25c   :  { %v1105_v1 = vadd.f32 %v3055_v53, %v1104_v54  ;;  %v1122_v5 = vmul.f32 %v3057_v8, %v1120_v34  ;;  %v3059_v50 = vpop.eup %3058  ;;  %vm1127_vm8 = vweird.f32 %v3057_v8 }
 0x25d   :  { %v1090_v13 = vsel %vm1089_vm4, %v3053_v46, %v1086_v3  ;;  %vm1128_vm10 = vmor %vm1126_vm9, %vm1127_vm8 }
 0x25e   :  { %v1095_v18 = vsel %vm1092_vm6, %v1094_v11, %v1090_v13  ;;  %v1109_v28 = vsel %vm1108_vm5, %v3055_v53, %v1105_v1  ;;  %v1123_v0 = vsub.f32 1.0, %v1122_v5  ;;  %v1132_v53 = vand.u32 2147483648, %v1120_v34 }
 0x25f   :  { %v1114_v37 = vsel %vm1111_vm7, %v1113_v10, %v1109_v28  ;;  %v1137_v61 = vmul.f32 %v3059_v50, %v1095_v18  ;;  %v1130_v18 = vand.u32 2147483647, %v1120_v34 }
 0x260   :  { %v1136_v2 = vmul.f32 %v1114_v37, %v4743_v56  ;;  %v1124_v32 = vmul.f32 %v3057_v8, %v1123_v0  ;;  %v1133_v0 = vor.u32 1.1754944e-38, %v1132_v53  ;;  %v6947_v37 = vld [vmem:[#allocation92_spill] sm:$0xff] }
 0x261   :  { %vm1131_vm11 = vcmp.eq.f32.partialorder %v1130_v18, 8.507059e+37  ;;  %v6958_v18 = vld [vmem:[#allocation96_spill] sm:$0xff] }
 0x262   :  { %v5215_v15 = vadd.f32 %v1137_v61, %v1136_v2  ;;  %v1125_v46 = vadd.f32 %v3057_v8, %v1124_v32  ;;  %v6943_v61 = vld [vmem:[#allocation69_spill] sm:$0xff]  ;;  %v6948_v32 = vld [vmem:[#allocation14_spill] sm:$0xff] }
 0x264   :  { %3060 = vtanh.f32 %v5215_v15  ;;  %v1129_v56 = vsel %vm1128_vm10, %v3057_v8, %v1125_v46  ;;  %v6955_v46 = vld [vmem:[#allocation79_spill] sm:$0xff] }
 0x26a   :  { %v3061_v3 = vpop.eup %3060 }
 0x270   :  { %v1165_v30 = vpop.f32.mrf.mxu0  ;;  %v1185_v31 = vpop.f32.mrf.mxu1 }
 0x271   :  { %v1228_v54 = vadd.f32 %v6941_v40, %v1165_v30  ;;  %v1229_v12 = vadd.f32 %v6942_v9, %v1185_v31  ;;  %v1134_v9 = vsel %vm1131_vm11, %v1133_v0, %v1129_v56  ;;  %v6949_v30 = vld [vmem:[#allocation15_spill] sm:$0xff]  ;;  %v6951_v31 = vld [vmem:[#allocation74_spill] sm:$0xff]  ;;  %v6953_v40 = vld [vmem:[#allocation77_spill] sm:$0xff] }
 0x272   :  { %v1140_v1 = vmul.f32 %v3061_v3, %v1134_v9  ;;  %v6959_v56 = vld [vmem:[#allocation81_spill] sm:$0xff]  ;;  %v6962_v3 = vld [vmem:[#allocation107_spill] sm:$0xff]  ;;  %v6963_v9 = vld [vmem:[#allocation84_spill] sm:$0xff] }
 0x273   :  { %v2934_v60 = vmul.f32 -1.442695, %v1228_v54  ;;  %v2935_v5 = vmul.f32 -1.442695, %v1229_v12  ;;  %v6954_v12 = vld [vmem:[#allocation78_spill] sm:$0xff] }
 0x274   :  { %2933 = vst [vmem:[%s6172_s4 + $0x10] sm:$0xff] %v1140_v1  ;;  %1318 = vmatmul.f32.vlgmr.msra.gmra.mxu0 %v1140_v1  ;;  %1338 = vmatmul.f32.vlgmr.msra.gmra.mxu1 %v1140_v1 }
 0x275   :  { %3062 = vpow2.f32 %v2934_v60  ;;  %1358 = vmatmul.f32.vlgmr.msra.gmra.mxu2 %v1140_v1  ;;  %1378 = vmatmul.f32.vlgmr.msra.gmra.mxu3 %v1140_v1  ;;  %v6956_v60 = vld [vmem:[#allocation80_spill] sm:$0xff]  ;;  %v6965_v1 = vld [vmem:[#allocation86_spill] sm:$0xff] }
 0x276   :  { %3064 = vpow2.f32 %v2935_v5  ;;  %1610 = vmatpush.msra.mxu0 %v4757_v44  ;;  %1630 = vmatpush.msra.mxu1 %v4760_v26  ;;  %v6957_v5 = vld [vmem:[#allocation76_spill] sm:$0xff] }
 0x277   :  { %v1225_v2 = vpop.f32.mrf.mxu3  ;;  %1650 = vmatpush.msra.mxu2 %v4764_v36  ;;  %1670 = vmatpush.msra.mxu3 %v4767_v16  ;;  %v1205_v34 = vpop.f32.mrf.mxu2  ;;  %v6944_v36 = vld [vmem:[#allocation68_spill] sm:$0xff] }
 0x278   :  { %v1231_v39 = vadd.f32 %v6943_v61, %v1225_v2  ;;  %1611 = vmatpush.msra.mxu0 %v4770_v25  ;;  %1631 = vmatpush.msra.mxu1 %v4773_v24  ;;  %v1230_v16 = vadd.f32 %v6944_v36, %v1205_v34  ;;  %v6960_v2 = vld [vmem:[#allocation82_spill] sm:$0xff]  ;;  %v6961_v61 = vld [vmem:[#allocation83_spill] sm:$0xff] }
 0x279   :  { %1651 = vmatpush.msra.mxu2 %v4776_v41  ;;  %1671 = vmatpush.msra.mxu3 %v4779_v42  ;;  %v6971_v36 = vld [vmem:[#allocation91_spill] sm:$0xff] }
 0x27a   :  { %v2936_v11 = vmul.f32 -1.442695, %v1231_v39  ;;  %1612 = vmatpush.msra.mxu0 %v4782_v23  ;;  %1632 = vmatpush.msra.mxu1 %v4785_v48 }
 0x27b   :  { %v3063_v10 = vpop.eup %3062  ;;  %1652 = vmatpush.msra.mxu2 %v4790_v21  ;;  %1672 = vmatpush.msra.mxu3 %v4793_v63 }
 0x27c   :  { %v3065_v13 = vpop.eup %3064  ;;  %v5221_v50 = vadd.f32 1.0, %v3063_v10  ;;  %3066 = vpow2.f32 %v2936_v11  ;;  %1613 = vmatpush.msra.mxu0 %v4799_v38  ;;  %1633 = vmatpush.msra.mxu1 %v4802_v52  ;;  %v6964_v11 = vld [vmem:[#allocation85_spill] sm:$0xff] }
 0x27d   :  { %v5226_v8 = vadd.f32 1.0, %v3065_v13  ;;  %1653 = vmatpush.msra.mxu2 %v4810_v19  ;;  %1673 = vmatpush.msra.mxu3 %v4813_v45 }
 0x27e   :  { %3068 = vrcp.f32 %v5221_v50  ;;  %1614 = vmatpush.msra.mxu0 %v4818_v49  ;;  %1634 = vmatpush.msra.mxu1 %v4821_v14  ;;  %v1247_v48 = vand.u32 2147483648, %v5221_v50  ;;  %v1245_v38 = vand.u32 2147483647, %v5221_v50  ;;  %vm1241_vm14 = vweird.f32 %v5221_v50 }
 0x27f   :  { %3070 = vrcp.f32 %v5226_v8  ;;  %1654 = vmatpush.msra.mxu2 %v4824_v51  ;;  %1674 = vmatpush.msra.mxu3 %v4827_v59  ;;  %v1266_v21 = vand.u32 2147483648, %v5226_v8  ;;  %v1264_v19 = vand.u32 2147483647, %v5226_v8  ;;  %vm1260_vm15 = vweird.f32 %v5226_v8 }
 0x280   :  { %1615 = vmatpush.msra.mxu0 %v4831_v4  ;;  %1635 = vmatpush.msra.mxu1 %v4834_v6  ;;  %v1248_v14 = vor.u32 1.1754944e-38, %v1247_v48  ;;  %vm1246_vm2 = vcmp.eq.f32.partialorder %v1245_v38, 8.507059e+37  ;;  %v6978_v48 = vld [vmem:[#allocation123_spill] sm:$0xff]  ;;  %v6981_v38 = vld [vmem:[#allocation101_spill] sm:$0xff] }
 0x281   :  { %1655 = vmatpush.msra.mxu2 %v4841_v58  ;;  %1675 = vmatpush.msra.mxu3 %v4844_v7  ;;  %v1267_v4 = vor.u32 1.1754944e-38, %v1266_v21  ;;  %vm1265_vm3 = vcmp.eq.f32.partialorder %v1264_v19, 8.507059e+37  ;;  %v6979_v21 = vld [vmem:[#allocation99_spill] sm:$0xff]  ;;  %v6983_v19 = vld [vmem:[#allocation102_spill] sm:$0xff] }
 0x282   :  { %v3067_v28 = vpop.eup %3066  ;;  %1616 = vmatpush.msra.mxu0 %v4850_v57  ;;  %1636 = vmatpush.msra.mxu1 %v4853_v55 }
 0x283   :  { %v5240_v44 = vadd.f32 1.0, %v3067_v28  ;;  %1656 = vmatpush.msra.mxu2 %v4860_v33  ;;  %1676 = vmatpush.msra.mxu3 %v4863_v62  ;;  %v6968_v28 = vld [vmem:[#allocation89_spill] sm:$0xff] }
 0x284   :  { %v3069_v26 = vpop.eup %3068  ;;  %1617 = vmatpush.msra.mxu0 %v4876_v35  ;;  %1637 = vmatpush.msra.mxu1 %v4879_v43  ;;  %v6945_v35 = vld [vmem:[#allocation17_spill] sm:$0xff] }
 0x285   :  { %v3071_v25 = vpop.eup %3070  ;;  %v1237_v24 = vmul.f32 %v3069_v26, %v5221_v50  ;;  %3072 = vrcp.f32 %v5240_v44  ;;  %vm1242_vm12 = vweird.f32 %v3069_v26  ;;  %1657 = vmatpush.msra.mxu2 %v4891_v29  ;;  %1677 = vmatpush.msra.mxu3 %v4894_v20  ;;  %v6946_v20 = vld [vmem:[#allocation88_spill] sm:$0xff]  ;;  %v1286_v54 = vand.u32 2147483648, %v5240_v44  ;;  %v6966_v50 = vld [vmem:[#allocation111_spill] sm:$0xff] }
 0x286   :  { %v1256_v41 = vmul.f32 %v3071_v25, %v5226_v8  ;;  %3074 = vtanh.f32 %v1230_v16  ;;  %vm1261_vm13 = vweird.f32 %v3071_v25  ;;  %vm1243_vm0 = vmor %vm1241_vm14, %vm1242_vm12  ;;  %1618 = vmatpush.msra.mxu0 %v4900_v27  ;;  %1638 = vmatpush.msra.mxu1 %v4903_v22  ;;  %v6950_v22 = vld [vmem:[#allocation16_spill] sm:$0xff]  ;;  %vm1280_vm5 = vweird.f32 %v5240_v44  ;;  %v6967_v8 = vld [vmem:[#allocation87_spill] sm:$0xff] }
 0x287   :  { %v1238_v42 = vsub.f32 1.0, %v1237_v24  ;;  %vm1262_vm1 = vmor %vm1260_vm15, %vm1261_vm13  ;;  %1658 = vmatpush.msra.mxu2 %v4906_v47  ;;  %1678 = vmatpush.msra.mxu3 %v4909_v17  ;;  %v6952_v17 = vld [vmem:[#allocation75_spill] sm:$0xff]  ;;  %v1284_v53 = vand.u32 2147483647, %v5240_v44  ;;  %v1287_v39 = vor.u32 1.1754944e-38, %v1286_v54  ;;  %v6972_v16 = vld [vmem:[#allocation93_spill] sm:$0xff] }
 0x288   :  { %v1257_v23 = vsub.f32 1.0, %v1256_v41  ;;  %1619 = vmatpush.msra.mxu0 %v6946_v20  ;;  %1639 = vmatpush.msra.mxu1 %v6947_v37  ;;  %v6974_v24 = vld [vmem:[#allocation119_spill] sm:$0xff]  ;;  %v7000_v20 = vld [vmem:[#allocation118_spill] sm:$0xff]  ;;  %v7001_v37 = vld [vmem:[#allocation120_spill] sm:$0xff] }
 0x289   :  { %v1239_v63 = vmul.f32 %v3069_v26, %v1238_v42  ;;  %1659 = vmatpush.msra.mxu2 %v6948_v32  ;;  %1679 = vmatpush.msra.mxu3 %v6949_v30  ;;  %vm1285_vm7 = vcmp.eq.f32.partialorder %v1284_v53, 8.507059e+37  ;;  %v6975_v41 = vld [vmem:[#allocation95_spill] sm:$0xff]  ;;  %v6976_v42 = vld [vmem:[#allocation97_spill] sm:$0xff]  ;;  %v7012_v53 = vld [vmem:[#allocation130_spill] sm:$0xff] }
 0x28a   :  { %v1258_v52 = vmul.f32 %v3071_v25, %v1257_v23  ;;  %1620 = vmatpush.msra.mxu0 %v6950_v22  ;;  %1640 = vmatpush.msra.mxu1 %v6951_v31  ;;  %v6977_v23 = vld [vmem:[#allocation98_spill] sm:$0xff]  ;;  %v7002_v32 = vld [vmem:[#allocation149_spill] sm:$0xff]  ;;  %v7005_v31 = vld [vmem:[#allocation124_spill] sm:$0xff] }
 0x28b   :  { %v5266_v45 = vpop.eup %3072  ;;  %v1240_v49 = vadd.f32 %v3069_v26, %v1239_v63  ;;  %1660 = vmatpush.msra.mxu2 %v6952_v17  ;;  %1680 = vmatpush.msra.mxu3 %v6953_v40  ;;  %v6980_v63 = vld [vmem:[#allocation100_spill] sm:$0xff]  ;;  %v7003_v30 = vld [vmem:[#allocation121_spill] sm:$0xff]  ;;  %v7004_v22 = vld [vmem:[#allocation122_spill] sm:$0xff] }
 0x28c   :  { %v1259_v51 = vadd.f32 %v3071_v25, %v1258_v52  ;;  %v1276_v59 = vmul.f32 %v5266_v45, %v5240_v44  ;;  %v3075_v58 = vpop.eup %3074  ;;  %vm1281_vm4 = vweird.f32 %v5266_v45  ;;  %1621 = vmatpush.msra.mxu0 %v6954_v12  ;;  %1641 = vmatpush.msra.mxu1 %v6955_v46  ;;  %v6969_v44 = vld [vmem:[#allocation90_spill] sm:$0xff]  ;;  %v6982_v52 = vld [vmem:[#allocation129_spill] sm:$0xff]  ;;  %v7009_v54 = vld [vmem:[#allocation127_spill] sm:$0xff] }
 0x28d   :  { %v1244_v6 = vsel %vm1243_vm0, %v3069_v26, %v1240_v49  ;;  %1661 = vmatpush.msra.mxu2 %v6956_v60  ;;  %1681 = vmatpush.msra.mxu3 %v6957_v5  ;;  %vm1282_vm6 = vmor %vm1280_vm5, %vm1281_vm4  ;;  %v6970_v26 = vld [vmem:[#allocation115_spill] sm:$0xff]  ;;  %v6985_v49 = vld [vmem:[#allocation104_spill] sm:$0xff] }
 0x28e   :  { %v1249_v7 = vsel %vm1246_vm2, %v1248_v14, %v1244_v6  ;;  %v1263_v57 = vsel %vm1262_vm1, %v3071_v25, %v1259_v51  ;;  %v1277_v55 = vsub.f32 1.0, %v1276_v59  ;;  %1622 = vmatpush.msra.mxu0 %v6958_v18  ;;  %1642 = vmatpush.msra.mxu1 %v6959_v56  ;;  %v6973_v25 = vld [vmem:[#allocation94_spill] sm:$0xff]  ;;  %v6986_v14 = vld [vmem:[#allocation133_spill] sm:$0xff]  ;;  %v7011_v46 = vld [vmem:[#allocation128_spill] sm:$0xff] }
 0x28f   :  { %v1268_v33 = vsel %vm1265_vm3, %v1267_v4, %v1263_v57  ;;  %v1291_v62 = vmul.f32 %v3075_v58, %v1249_v7  ;;  %1662 = vmatpush.msra.mxu2 %v6960_v2  ;;  %1682 = vmatpush.msra.mxu3 %v6961_v61  ;;  %v6987_v51 = vld [vmem:[#allocation105_spill] sm:$0xff]  ;;  %v6988_v59 = vld [vmem:[#allocation106_spill] sm:$0xff]  ;;  %v6989_v4 = vld [vmem:[#allocation108_spill] sm:$0xff] }
 0x290   :  { %v1290_v43 = vmul.f32 %v1268_v33, %v6945_v35  ;;  %v1278_v29 = vmul.f32 %v5266_v45, %v1277_v55  ;;  %1623 = vmatpush.msra.mxu0 %v6962_v3  ;;  %1643 = vmatpush.msra.mxu1 %v6963_v9  ;;  %v6990_v6 = vld [vmem:[#allocation137_spill] sm:$0xff]  ;;  %v6992_v7 = vld [vmem:[#allocation110_spill] sm:$0xff]  ;;  %v6993_v57 = vld [vmem:[#allocation112_spill] sm:$0xff] }
 0x291   :  { %1663 = vmatpush.msra.mxu2 %v6964_v11  ;;  %1683 = vmatpush.msra.mxu3 %v6965_v1  ;;  %v6991_v58 = vld [vmem:[#allocation109_spill] sm:$0xff]  ;;  %v6997_v35 = vld [vmem:[#allocation116_spill] sm:$0xff]  ;;  %v7008_v40 = vld [vmem:[#allocation126_spill] sm:$0xff] }
 0x292   :  { %v5290_v27 = vadd.f32 %v1291_v62, %v1290_v43  ;;  %v1279_v47 = vadd.f32 %v5266_v45, %v1278_v29  ;;  %1624 = vmatpush.msra.mxu0 %v6966_v50  ;;  %1644 = vmatpush.msra.mxu1 %v6967_v8  ;;  %v6994_v55 = vld [vmem:[#allocation141_spill] sm:$0xff]  ;;  %v6996_v62 = vld [vmem:[#allocation114_spill] sm:$0xff]  ;;  %v7013_v60 = vld [vmem:[#allocation131_spill] sm:$0xff] }
 0x293   :  { %1664 = vmatpush.msra.mxu2 %v6968_v28  ;;  %1684 = vmatpush.msra.mxu3 %v6969_v44  ;;  %v6995_v33 = vld [vmem:[#allocation113_spill] sm:$0xff]  ;;  %v7015_v18 = vld [vmem:[#allocation132_spill] sm:$0xff]  ;;  %v7016_v56 = vld [vmem:[#allocation134_spill] sm:$0xff] }
 0x294   :  { %3076 = vtanh.f32 %v5290_v27  ;;  %v1283_v0 = vsel %vm1282_vm6, %v5266_v45, %v1279_v47  ;;  %1625 = vmatpush.msra.mxu0 %v6970_v26  ;;  %1645 = vmatpush.msra.mxu1 %v6971_v36  ;;  %v6984_v45 = vld [vmem:[#allocation103_spill] sm:$0xff]  ;;  %v6998_v43 = vld [vmem:[#allocation145_spill] sm:$0xff]  ;;  %v7018_v2 = vld [vmem:[#allocation162_spill] sm:$0xff] }
 0x295   :  { %v1288_v13 = vsel %vm1285_vm7, %v1287_v39, %v1283_v0  ;;  %1665 = vmatpush.msra.mxu2 %v6972_v16  ;;  %1685 = vmatpush.msra.mxu3 %v6973_v25  ;;  %v6999_v29 = vld [vmem:[#allocation117_spill] sm:$0xff]  ;;  %v7017_v0 = vld [vmem:[#allocation135_spill] sm:$0xff]  ;;  %v7019_v61 = vld [vmem:[#allocation136_spill] sm:$0xff] }
 0x296   :  { %v7006_v47 = vld [vmem:[#allocation153_spill] sm:$0xff]  ;;  %v7020_v39 = vld [vmem:[#allocation138_spill] sm:$0xff]  ;;  %v7021_v3 = vld [vmem:[#allocation139_spill] sm:$0xff] }
 0x297   :  { %v7007_v17 = vld [vmem:[#allocation125_spill] sm:$0xff]  ;;  %v7022_v9 = vld [vmem:[#allocation163_spill] sm:$0xff]  ;;  %v7023_v11 = vld [vmem:[#allocation140_spill] sm:$0xff] }
 0x298   :  { %v7010_v12 = vld [vmem:[#allocation157_spill] sm:$0xff]  ;;  %v7024_v1 = vld [vmem:[#allocation142_spill] sm:$0xff]  ;;  %v7027_v50 = vld [vmem:[#allocation144_spill] sm:$0xff] }
 0x299   :  { %v7014_v5 = vld [vmem:[#allocation161_spill] sm:$0xff]  ;;  %v7028_v8 = vld [vmem:[#allocation146_spill] sm:$0xff]  ;;  %v7031_v44 = vld [vmem:[#allocation148_spill] sm:$0xff] }
 0x29a   :  { %v3077_v10 = vpop.eup %3076  ;;  %v7030_v28 = vld [vmem:[#allocation165_spill] sm:$0xff]  ;;  %v7032_v26 = vld [vmem:[#allocation150_spill] sm:$0xff]  ;;  %v7033_v36 = vld [vmem:[#allocation151_spill] sm:$0xff] }
 0x29b   :  { %v1294_v34 = vmul.f32 %v3077_v10, %v1288_v13  ;;  %v7025_v10 = vld [vmem:[#allocation143_spill] sm:$0xff]  ;;  %v7026_v13 = vld [vmem:[#allocation164_spill] sm:$0xff]  ;;  %v7034_v16 = vld [vmem:[#allocation166_spill] sm:$0xff] }
 0x29c   :  { %v7035_v25 = vld [vmem:[#allocation152_spill] sm:$0xff] }
 0x29d   :  { %2937 = vst [vmem:[%s6173_s5 + $0x28] sm:$0xff] %v1294_v34  ;;  %1472 = vmatmul.f32.vlgmr.msrb.gmra.mxu0 %v1294_v34  ;;  %1492 = vmatmul.f32.vlgmr.msrb.gmra.mxu1 %v1294_v34 }
 0x29e   :  { %1512 = vmatmul.f32.vlgmr.msrb.gmra.mxu2 %v1294_v34  ;;  %1532 = vmatmul.f32.vlgmr.msrb.gmra.mxu3 %v1294_v34  ;;  %v7029_v34 = vld [vmem:[#allocation147_spill] sm:$0xff] }
 0x29f   :  { %1764 = vmatpush.msrb.mxu0 %v6974_v24  ;;  %1784 = vmatpush.msrb.mxu1 %v6975_v41  ;;  %v7036_v24 = vld [vmem:[#allocation154_spill] sm:$0xff]  ;;  %v7037_v41 = vld [vmem:[#allocation155_spill] sm:$0xff] }
 0x2a0   :  { %1804 = vmatpush.msrb.mxu2 %v6976_v42  ;;  %1824 = vmatpush.msrb.mxu3 %v6977_v23 }
 0x2a1   :  { %1765 = vmatpush.msrb.mxu0 %v6978_v48  ;;  %1785 = vmatpush.msrb.mxu1 %v6979_v21  ;;  %v7038_v48 = vld [vmem:[#allocation26_spill] sm:$0xff] }
 0x2a2   :  { %1805 = vmatpush.msrb.mxu2 %v6980_v63  ;;  %1825 = vmatpush.msrb.mxu3 %v6981_v38  ;;  %v7039_v63 = vld [vmem:[#allocation27_spill] sm:$0xff] }
 0x2a3   :  { %1766 = vmatpush.msrb.mxu0 %v6982_v52  ;;  %1786 = vmatpush.msrb.mxu1 %v6983_v19 }
 0x2a4   :  { %1806 = vmatpush.msrb.mxu2 %v6984_v45  ;;  %1826 = vmatpush.msrb.mxu3 %v6985_v49  ;;  %v7040_v49 = vld [vmem:[#allocation29_spill] sm:$0xff] }
 0x2a5   :  { %1767 = vmatpush.msrb.mxu0 %v6986_v14  ;;  %1787 = vmatpush.msrb.mxu1 %v6987_v51 }
 0x2a6   :  { %1807 = vmatpush.msrb.mxu2 %v6988_v59  ;;  %1827 = vmatpush.msrb.mxu3 %v6989_v4 }
 0x2a7   :  { %1768 = vmatpush.msrb.mxu0 %v6990_v6  ;;  %1788 = vmatpush.msrb.mxu1 %v6991_v58 }
 0x2a8   :  { %1808 = vmatpush.msrb.mxu2 %v6992_v7  ;;  %1828 = vmatpush.msrb.mxu3 %v6993_v57 }
 0x2a9   :  { %1769 = vmatpush.msrb.mxu0 %v6994_v55  ;;  %1789 = vmatpush.msrb.mxu1 %v6995_v33 }
 0x2aa   :  { %1809 = vmatpush.msrb.mxu2 %v6996_v62  ;;  %1829 = vmatpush.msrb.mxu3 %v6997_v35  ;;  %v7041_v62 = vld [vmem:[#allocation28_spill] sm:$0xff] }
 0x2ab   :  { %1770 = vmatpush.msrb.mxu0 %v6998_v43  ;;  %1790 = vmatpush.msrb.mxu1 %v6999_v29 }
 0x2ac   :  { %1810 = vmatpush.msrb.mxu2 %v7000_v20  ;;  %1830 = vmatpush.msrb.mxu3 %v7001_v37 }
 0x2ad   :  { %1771 = vmatpush.msrb.mxu0 %v7002_v32  ;;  %1791 = vmatpush.msrb.mxu1 %v7003_v30 }
 0x2ae   :  { %1811 = vmatpush.msrb.mxu2 %v7004_v22  ;;  %1831 = vmatpush.msrb.mxu3 %v7005_v31 }
 0x2af   :  { %1772 = vmatpush.msrb.mxu0 %v7006_v47  ;;  %1792 = vmatpush.msrb.mxu1 %v7007_v17 }
 0x2b0   :  { %1812 = vmatpush.msrb.mxu2 %v7008_v40  ;;  %1832 = vmatpush.msrb.mxu3 %v7009_v54 }
 0x2b1   :  { %1773 = vmatpush.msrb.mxu0 %v7010_v12  ;;  %1793 = vmatpush.msrb.mxu1 %v7011_v46 }
 0x2b2   :  { %1813 = vmatpush.msrb.mxu2 %v7012_v53  ;;  %1833 = vmatpush.msrb.mxu3 %v7013_v60 }
 0x2b3   :  { %1774 = vmatpush.msrb.mxu0 %v7014_v5  ;;  %1794 = vmatpush.msrb.mxu1 %v7015_v18 }
 0x2b4   :  { %1814 = vmatpush.msrb.mxu2 %v7016_v56  ;;  %1834 = vmatpush.msrb.mxu3 %v7017_v0 }
 0x2b5   :  { %1775 = vmatpush.msrb.mxu0 %v7018_v2  ;;  %1795 = vmatpush.msrb.mxu1 %v7019_v61 }
 0x2b6   :  { %1815 = vmatpush.msrb.mxu2 %v7020_v39  ;;  %1835 = vmatpush.msrb.mxu3 %v7021_v3 }
 0x2b7   :  { %1776 = vmatpush.msrb.mxu0 %v7022_v9  ;;  %1796 = vmatpush.msrb.mxu1 %v7023_v11 }
 0x2b8   :  { %1816 = vmatpush.msrb.mxu2 %v7024_v1  ;;  %1836 = vmatpush.msrb.mxu3 %v7025_v10 }
 0x2b9   :  { %1777 = vmatpush.msrb.mxu0 %v7026_v13  ;;  %1797 = vmatpush.msrb.mxu1 %v7027_v50  ;;  %v7042_v50 = vld [vmem:[#allocation62_spill] sm:$0xff] }
 0x2ba   :  { %1817 = vmatpush.msrb.mxu2 %v7028_v8  ;;  %1837 = vmatpush.msrb.mxu3 %v7029_v34  ;;  %v7043_v34 = vld [vmem:[#allocation63_spill] sm:$0xff] }
 0x2bb   :  { %1778 = vmatpush.msrb.mxu0 %v7030_v28  ;;  %1798 = vmatpush.msrb.mxu1 %v7031_v44 }
 0x2bc   :  { %1818 = vmatpush.msrb.mxu2 %v7032_v26  ;;  %1838 = vmatpush.msrb.mxu3 %v7033_v36 }
 0x2bd   :  { %1779 = vmatpush.msrb.mxu0 %v7034_v16  ;;  %1799 = vmatpush.msrb.mxu1 %v7035_v25 }
 0x2be   :  { %1819 = vmatpush.msrb.mxu2 %v7036_v24  ;;  %1839 = vmatpush.msrb.mxu3 %v7037_v41 }
 0x2f1   :  { %v1319_v42 = vpop.f32.mrf.mxu0  ;;  %v1339_v23 = vpop.f32.mrf.mxu1 }
 0x2f2   :  { %v1382_v21 = vadd.f32 %v1319_v42, %v7038_v48  ;;  %v1383_v38 = vadd.f32 %v1339_v23, %v7039_v63  ;;  %v7044_v42 = vld [vmem:[#allocation65_spill] sm:$0xff] }
 0x2f4   :  { %v2938_v52 = vmul.f32 -1.442695, %v1382_v21  ;;  %v2939_v19 = vmul.f32 -1.442695, %v1383_v38 }
 0x2f6   :  { %3078 = vpow2.f32 %v2938_v52 }
 0x2f7   :  { %3080 = vpow2.f32 %v2939_v19 }
 0x2f8   :  { %v1379_v45 = vpop.f32.mrf.mxu3  ;;  %v1359_v7 = vpop.f32.mrf.mxu2 }
 0x2f9   :  { %v1385_v14 = vadd.f32 %v1379_v45, %v7040_v49  ;;  %v1384_v35 = vadd.f32 %v1359_v7, %v7041_v62  ;;  %v5434_v62 = vld [vmem:[#allocation8 + $0x1a0] sm:$0xff] }
 0x2fb   :  { %v2940_v51 = vmul.f32 -1.442695, %v1385_v14  ;;  %v5409_v14 = vld [vmem:[#allocation8 + $0x1e0] sm:$0xff] }
 0x2fc   :  { %v3079_v59 = vpop.eup %3078 }
 0x2fd   :  { %v3081_v4 = vpop.eup %3080  ;;  %v1389_v6 = vadd.f32 1.0, %v3079_v59  ;;  %3082 = vpow2.f32 %v2940_v51  ;;  %v5412_v51 = vld [vmem:[#allocation8 + $0x1e8] sm:$0xff]  ;;  %v5416_v59 = vld [vmem:[#allocation8 + $0x1f0] sm:$0xff] }
 0x2fe   :  { %v1408_v58 = vadd.f32 1.0, %v3081_v4  ;;  %v5419_v4 = vld [vmem:[#allocation8 + $0x1f8] sm:$0xff] }
 0x2ff   :  { %3084 = vrcp.f32 %v1389_v6  ;;  %v1401_v30 = vand.u32 2147483648, %v1389_v6  ;;  %v1399_v47 = vand.u32 2147483647, %v1389_v6  ;;  %vm1395_vm10 = vweird.f32 %v1389_v6 }
 0x300   :  { %3086 = vrcp.f32 %v1408_v58  ;;  %v1420_v22 = vand.u32 2147483648, %v1408_v58  ;;  %v1418_v40 = vand.u32 2147483647, %v1408_v58  ;;  %vm1414_vm11 = vweird.f32 %v1408_v58 }
 0x301   :  { %v1402_v46 = vor.u32 1.1754944e-38, %v1401_v30  ;;  %vm1400_vm14 = vcmp.eq.f32.partialorder %v1399_v47, 8.507059e+37 }
 0x302   :  { %v1421_v5 = vor.u32 1.1754944e-38, %v1420_v22  ;;  %vm1419_vm15 = vcmp.eq.f32.partialorder %v1418_v40, 8.507059e+37  ;;  %v5451_v22 = vld [vmem:[#allocation8 + $0x180] sm:$0xff]  ;;  %v5462_v40 = vld [vmem:[#allocation8 + $0x190] sm:$0xff] }
 0x303   :  { %v3083_v57 = vpop.eup %3082 }
 0x304   :  { %v1428_v55 = vadd.f32 1.0, %v3083_v57  ;;  %v5428_v57 = vld [vmem:[#allocation8 + $0x1d0] sm:$0xff] }
 0x305   :  { %v3085_v33 = vpop.eup %3084 }
 0x306   :  { %v3087_v43 = vpop.eup %3086  ;;  %v1391_v29 = vmul.f32 %v3085_v33, %v1389_v6  ;;  %3088 = vrcp.f32 %v1428_v55  ;;  %vm1396_vm8 = vweird.f32 %v3085_v33  ;;  %v1440_v26 = vand.u32 2147483648, %v1428_v55  ;;  %v5422_v6 = vld [vmem:[#allocation8 + $0x1c0] sm:$0xff] }
 0x307   :  { %v1410_v20 = vmul.f32 %v3087_v43, %v1408_v58  ;;  %3090 = vtanh.f32 %v1384_v35  ;;  %vm1415_vm9 = vweird.f32 %v3087_v43  ;;  %vm1397_vm12 = vmor %vm1395_vm10, %vm1396_vm8  ;;  %vm1434_vm1 = vweird.f32 %v1428_v55  ;;  %v5425_v58 = vld [vmem:[#allocation8 + $0x1c8] sm:$0xff] }
 0x308   :  { %v1392_v37 = vsub.f32 1.0, %v1391_v29  ;;  %vm1416_vm13 = vmor %vm1414_vm11, %vm1415_vm9  ;;  %v1438_v25 = vand.u32 2147483647, %v1428_v55  ;;  %v1441_v24 = vor.u32 1.1754944e-38, %v1440_v26  ;;  %v5437_v35 = vld [vmem:[#allocation8 + $0x1a8] sm:$0xff]  ;;  %v5442_v29 = vld [vmem:[#allocation8 + $0x1b0] sm:$0xff] }
 0x309   :  { %v1411_v32 = vsub.f32 1.0, %v1410_v20  ;;  %v5445_v20 = vld [vmem:[#allocation8 + $0x1b8] sm:$0xff]  ;;  %v5512_v26 = vld [vmem:[#allocation8 + $0x130] sm:$0xff] }
 0x30a   :  { %v1393_v31 = vmul.f32 %v3085_v33, %v1392_v37  ;;  %vm1439_vm3 = vcmp.eq.f32.partialorder %v1438_v25, 8.507059e+37 }
 0x30b   :  { %v1412_v17 = vmul.f32 %v3087_v43, %v1411_v32  ;;  %v7045_v32 = vld [vmem:[#allocation64_spill] sm:$0xff] }
 0x30c   :  { %v3089_v54 = vpop.eup %3088  ;;  %v1394_v12 = vadd.f32 %v3085_v33, %v1393_v31  ;;  %v5454_v31 = vld [vmem:[#allocation8 + $0x188] sm:$0xff] }
 0x30d   :  { %v1413_v53 = vadd.f32 %v3087_v43, %v1412_v17  ;;  %v1430_v60 = vmul.f32 %v3089_v54, %v1428_v55  ;;  %v3091_v56 = vpop.eup %3090  ;;  %vm1435_vm0 = vweird.f32 %v3089_v54  ;;  %v5431_v55 = vld [vmem:[#allocation8 + $0x1d8] sm:$0xff] }
 0x30e   :  { %v1398_v18 = vsel %vm1397_vm12, %v3085_v33, %v1394_v12  ;;  %vm1436_vm2 = vmor %vm1434_vm1, %vm1435_vm0 }
 0x30f   :  { %v1403_v0 = vsel %vm1400_vm14, %v1402_v46, %v1398_v18  ;;  %v1417_v2 = vsel %vm1416_vm13, %v3087_v43, %v1413_v53  ;;  %v1431_v61 = vsub.f32 1.0, %v1430_v60  ;;  %v5470_v46 = vld [vmem:[#allocation8 + $0x160] sm:$0xff]  ;;  %v5473_v53 = vld [vmem:[#allocation8 + $0x168] sm:$0xff]  ;;  %v5479_v18 = vld [vmem:[#allocation8 + $0x178] sm:$0xff] }
 0x310   :  { %v1422_v39 = vsel %vm1419_vm15, %v1421_v5, %v1417_v2  ;;  %v1445_v3 = vmul.f32 %v3091_v56, %v1403_v0  ;;  %v5476_v5 = vld [vmem:[#allocation8 + $0x170] sm:$0xff]  ;;  %v5483_v2 = vld [vmem:[#allocation8 + $0x140] sm:$0xff] }
 0x311   :  { %v1444_v9 = vmul.f32 %v1422_v39, %v5215_v15  ;;  %v1432_v11 = vmul.f32 %v3089_v54, %v1431_v61  ;;  %v5486_v61 = vld [vmem:[#allocation8 + $0x148] sm:$0xff] }
 0x313   :  { %v5395_v13 = vadd.f32 %v1445_v3, %v1444_v9  ;;  %v1433_v44 = vadd.f32 %v3089_v54, %v1432_v11  ;;  %v5493_v11 = vld [vmem:[#allocation8 + $0x150] sm:$0xff] }
 0x315   :  { %3092 = vtanh.f32 %v5395_v13  ;;  %v1437_v15 = vsel %vm1436_vm2, %v3089_v54, %v1433_v44  ;;  %v5465_v54 = vld [vmem:[#allocation8 + $0x198] sm:$0xff] }
 0x316   :  { %v1442_v21 = vsel %vm1439_vm3, %v1441_v24, %v1437_v15 }
 0x31a   :  { %v1473_v1 = vpop.f32.mrf.mxu0  ;;  %v1493_v10 = vpop.f32.mrf.mxu1 }
 0x31b   :  { %v1536_v8 = vadd.f32 %v7042_v50, %v1473_v1  ;;  %v1537_v28 = vadd.f32 %v7043_v34, %v1493_v10  ;;  %v3093_v48 = vpop.eup %3092  ;;  %v5496_v1 = vld [vmem:[#allocation8 + $0x158] sm:$0xff]  ;;  %v5505_v34 = vld [vmem:[#allocation8 + $0x128] sm:$0xff] }
 0x31c   :  { %v1448_v38 = vmul.f32 %v3093_v48, %v1442_v21 }
 0x31d   :  { %v2942_v36 = vmul.f32 -1.442695, %v1536_v8  ;;  %v2943_v16 = vmul.f32 -1.442695, %v1537_v28  ;;  %v5502_v8 = vld [vmem:[#allocation8 + $0x120] sm:$0xff] }
 0x31e   :  { %2941 = vst [vmem:[%s6172_s4 + $0x18] sm:$0xff] %v1448_v38  ;;  %1626 = vmatmul.f32.vlgmr.msra.gmra.mxu0 %v1448_v38  ;;  %1646 = vmatmul.f32.vlgmr.msra.gmra.mxu1 %v1448_v38 }
 0x31f   :  { %3094 = vpow2.f32 %v2942_v36  ;;  %1666 = vmatmul.f32.vlgmr.msra.gmra.mxu2 %v1448_v38  ;;  %1686 = vmatmul.f32.vlgmr.msra.gmra.mxu3 %v1448_v38  ;;  %v5515_v36 = vld [vmem:[#allocation8 + $0x138] sm:$0xff] }
 0x320   :  { %3096 = vpow2.f32 %v2943_v16  ;;  %1918 = vmatpush.msra.mxu0 %v5409_v14  ;;  %1938 = vmatpush.msra.mxu1 %v5412_v51  ;;  %v5546_v38 = vld [vmem:[#allocation8 + $0x118] sm:$0xff] }
 0x321   :  { %v1533_v41 = vpop.f32.mrf.mxu3  ;;  %1958 = vmatpush.msra.mxu2 %v5416_v59  ;;  %1978 = vmatpush.msra.mxu3 %v5419_v4  ;;  %v1513_v7 = vpop.f32.mrf.mxu2 }
 0x322   :  { %v1539_v23 = vadd.f32 %v7044_v42, %v1533_v41  ;;  %1919 = vmatpush.msra.mxu0 %v5422_v6  ;;  %1939 = vmatpush.msra.mxu1 %v5425_v58  ;;  %v1538_v30 = vadd.f32 %v7045_v32, %v1513_v7  ;;  %v5528_v41 = vld [vmem:[#allocation8 + $0x100] sm:$0xff]  ;;  %v5531_v42 = vld [vmem:[#allocation8 + $0x108] sm:$0xff] }
 0x323   :  { %1959 = vmatpush.msra.mxu2 %v5428_v57  ;;  %1979 = vmatpush.msra.mxu3 %v5431_v55  ;;  %v5552_v7 = vld [vmem:[#allocation8 + $0xe0] sm:$0xff] }
 0x324   :  { %v2944_v63 = vmul.f32 -1.442695, %v1539_v23  ;;  %1920 = vmatpush.msra.mxu0 %v5434_v62  ;;  %1940 = vmatpush.msra.mxu1 %v5437_v35  ;;  %v5604_v23 = vld [vmem:[#allocation8 + $0x90] sm:$0xff] }
 0x325   :  { %v3095_v52 = vpop.eup %3094  ;;  %1960 = vmatpush.msra.mxu2 %v5442_v29  ;;  %1980 = vmatpush.msra.mxu3 %v5445_v20  ;;  %7061 = vst [vmem:[#allocation71_spill] sm:$0xff] %v5604_v23 }
 0x326   :  { %v3097_v19 = vpop.eup %3096  ;;  %v5401_v45 = vadd.f32 1.0, %v3095_v52  ;;  %3098 = vpow2.f32 %v2944_v63  ;;  %1921 = vmatpush.msra.mxu0 %v5451_v22  ;;  %1941 = vmatpush.msra.mxu1 %v5454_v31  ;;  %v5543_v63 = vld [vmem:[#allocation8 + $0x110] sm:$0xff] }
 0x327   :  { %v5406_v49 = vadd.f32 1.0, %v3097_v19  ;;  %1961 = vmatpush.msra.mxu2 %v5462_v40  ;;  %1981 = vmatpush.msra.mxu3 %v5465_v54 }
 0x328   :  { %3100 = vrcp.f32 %v5401_v45  ;;  %1922 = vmatpush.msra.mxu0 %v5470_v46  ;;  %1942 = vmatpush.msra.mxu1 %v5473_v53  ;;  %v1555_v0 = vand.u32 2147483648, %v5401_v45  ;;  %v1553_v9 = vand.u32 2147483647, %v5401_v45  ;;  %vm1549_vm6 = vweird.f32 %v5401_v45 }
 0x329   :  { %3102 = vrcp.f32 %v5406_v49  ;;  %1962 = vmatpush.msra.mxu2 %v5476_v5  ;;  %1982 = vmatpush.msra.mxu3 %v5479_v18  ;;  %v1574_v39 = vand.u32 2147483648, %v5406_v49  ;;  %v1572_v50 = vand.u32 2147483647, %v5406_v49  ;;  %vm1568_vm7 = vweird.f32 %v5406_v49 }
 0x32a   :  { %1923 = vmatpush.msra.mxu0 %v5483_v2  ;;  %1943 = vmatpush.msra.mxu1 %v5486_v61  ;;  %v1556_v25 = vor.u32 1.1754944e-38, %v1555_v0  ;;  %vm1554_vm10 = vcmp.eq.f32.partialorder %v1553_v9, 8.507059e+37  ;;  %v5572_v0 = vld [vmem:[#allocation8 + $0xd0] sm:$0xff]  ;;  %v5583_v9 = vld [vmem:[#allocation8 + $0xa8] sm:$0xff] }
 0x32b   :  { %1963 = vmatpush.msra.mxu2 %v5493_v11  ;;  %1983 = vmatpush.msra.mxu3 %v5496_v1  ;;  %v1575_v48 = vor.u32 1.1754944e-38, %v1574_v39  ;;  %vm1573_vm11 = vcmp.eq.f32.partialorder %v1572_v50, 8.507059e+37  ;;  %7052 = vst [vmem:[#allocation158_spill] sm:$0xff] %v5572_v0  ;;  %v5575_v39 = vld [vmem:[#allocation8 + $0xd8] sm:$0xff]  ;;  %v5588_v50 = vld [vmem:[#allocation8 + $0xb0] sm:$0xff] }
 0x32c   :  { %v3099_v33 = vpop.eup %3098  ;;  %1924 = vmatpush.msra.mxu0 %v5502_v8  ;;  %1944 = vmatpush.msra.mxu1 %v5505_v34  ;;  %7053 = vst [vmem:[#allocation159_spill] sm:$0xff] %v5575_v39 }
 0x32d   :  { %v5440_v43 = vadd.f32 1.0, %v3099_v33  ;;  %1964 = vmatpush.msra.mxu2 %v5512_v26  ;;  %1984 = vmatpush.msra.mxu3 %v5515_v36  ;;  %v5555_v33 = vld [vmem:[#allocation8 + $0xe8] sm:$0xff]  ;;  %7056 = vst [vmem:[#allocation18_spill] sm:$0xff] %v5583_v9 }
 0x32e   :  { %v5448_v37 = vpop.eup %3100  ;;  %1925 = vmatpush.msra.mxu0 %v5528_v41  ;;  %1945 = vmatpush.msra.mxu1 %v5531_v42  ;;  %7057 = vst [vmem:[#allocation19_spill] sm:$0xff] %v5588_v50 }
 0x32f   :  { %v5457_v47 = vpop.eup %3102  ;;  %v1545_v17 = vmul.f32 %v5448_v37, %v5401_v45  ;;  %3104 = vrcp.f32 %v5440_v43  ;;  %vm1550_vm4 = vweird.f32 %v5448_v37  ;;  %1965 = vmatpush.msra.mxu2 %v5543_v63  ;;  %1985 = vmatpush.msra.mxu3 %v5546_v38  ;;  %v1594_v16 = vand.u32 2147483648, %v5440_v43 }
 0x330   :  { %v1564_v12 = vmul.f32 %v5457_v47, %v5406_v49  ;;  %3106 = vtanh.f32 %v1538_v30  ;;  %vm1569_vm5 = vweird.f32 %v5457_v47  ;;  %vm5521_vm8 = vmor %vm1549_vm6, %vm1550_vm4  ;;  %1926 = vmatpush.msra.mxu0 %v5552_v7  ;;  %1946 = vmatpush.msra.mxu1 %v5555_v33  ;;  %v5558_v30 = vld [vmem:[#allocation8 + $0xf0] sm:$0xff]  ;;  %vm1588_vm13 = vweird.f32 %v5440_v43 }
 0x331   :  { %v1546_v60 = vsub.f32 1.0, %v1545_v17  ;;  %vm5536_vm9 = vmor %vm1568_vm7, %vm1569_vm5  ;;  %1966 = vmatpush.msra.mxu2 %v5558_v30  ;;  %v5561_v17 = vld [vmem:[#allocation8 + $0xf8] sm:$0xff] }
 0x332   :  { %v1565_v56 = vsub.f32 1.0, %v1564_v12  ;;  %1986 = vmatpush.msra.mxu3 %v5561_v17 }
 0x333   :  { %v1547_v3 = vmul.f32 %v5448_v37, %v1546_v60  ;;  %v5566_v60 = vld [vmem:[#allocation8 + $0xc0] sm:$0xff]  ;;  %1967 = vmatpush.msra.mxu2 %v5572_v0 }
 0x334   :  { %v1566_v10 = vmul.f32 %v5457_v47, %v1565_v56  ;;  %7050 = vst [vmem:[#allocation167_spill] sm:$0xff] %v5566_v60  ;;  %1927 = vmatpush.msra.mxu0 %v5566_v60  ;;  %v5569_v56 = vld [vmem:[#allocation8 + $0xc8] sm:$0xff]  ;;  %1987 = vmatpush.msra.mxu3 %v5575_v39 }
 0x335   :  { %v5508_v28 = vpop.eup %3104  ;;  %v1548_v44 = vadd.f32 %v5448_v37, %v1547_v3  ;;  %7051 = vst [vmem:[#allocation156_spill] sm:$0xff] %v5569_v56  ;;  %1947 = vmatpush.msra.mxu1 %v5569_v56  ;;  %1968 = vmatpush.msra.mxu2 %v5588_v50 }
 0x336   :  { %v1567_v15 = vadd.f32 %v5457_v47, %v1566_v10  ;;  %v1584_v24 = vmul.f32 %v5508_v28, %v5440_v43  ;;  %v3107_v52 = vpop.eup %3106  ;;  %vm1589_vm12 = vweird.f32 %v5508_v28 }
 0x337   :  { %v1552_v21 = vsel %vm5521_vm8, %v5448_v37, %v1548_v44  ;;  %1948 = vmatpush.msra.mxu1 %v5583_v9  ;;  %v5591_v44 = vld [vmem:[#allocation8 + $0xb8] sm:$0xff]  ;;  %1969 = vmatpush.msra.mxu2 %v5604_v23  ;;  %vm5612_vm14 = vmor %vm1588_vm13, %vm1589_vm12 }
 0x338   :  { %v1557_v19 = vsel %vm1554_vm10, %v1556_v25, %v1552_v21  ;;  %v1571_v45 = vsel %vm5536_vm9, %v5457_v47, %v1567_v15  ;;  %v1585_v49 = vsub.f32 1.0, %v1584_v24  ;;  %7058 = vst [vmem:[#allocation21_spill] sm:$0xff] %v5591_v44  ;;  %1988 = vmatpush.msra.mxu3 %v5591_v44  ;;  %v5596_v25 = vld [vmem:[#allocation8 + $0x80] sm:$0xff]  ;;  %v5599_v15 = vld [vmem:[#allocation8 + $0x88] sm:$0xff]  ;;  %v1592_v24 = vand.u32 2147483647, %v5440_v43 }
 0x339   :  { %v1576_v37 = vsel %vm1573_vm11, %v1575_v48, %v1571_v45  ;;  %v1599_v32 = vmul.f32 %v3107_v52, %v1557_v19  ;;  %7059 = vst [vmem:[#allocation20_spill] sm:$0xff] %v5596_v25  ;;  %1949 = vmatpush.msra.mxu1 %v5599_v15  ;;  %v5607_v48 = vld [vmem:[#allocation8 + $0x98] sm:$0xff]  ;;  %v5616_v52 = vld [vmem:[#allocation8 + $0x60] sm:$0xff]  ;;  %v5619_v19 = vld [vmem:[#allocation8 + $0x68] sm:$0xff] }
 0x33a   :  { %v1598_v47 = vmul.f32 %v1576_v37, %v5290_v27  ;;  %v1586_v12 = vmul.f32 %v5508_v28, %v1585_v49  ;;  %v5580_v27 = vld [vmem:[#allocation8 + $0xa0] sm:$0xff]  ;;  %7060 = vst [vmem:[#allocation70_spill] sm:$0xff] %v5599_v15  ;;  %1989 = vmatpush.msra.mxu3 %v5607_v48  ;;  %v5625_v45 = vld [vmem:[#allocation8 + $0x70] sm:$0xff]  ;;  %v5628_v49 = vld [vmem:[#allocation8 + $0x78] sm:$0xff]  ;;  %v1595_v37 = vor.u32 1.1754944e-38, %v1594_v16  ;;  %vm1593_vm15 = vcmp.eq.f32.partialorder %v1592_v24, 8.507059e+37 }
 0x33b   :  { %7055 = vst [vmem:[#allocation160_spill] sm:$0xff] %v5580_v27  ;;  %1928 = vmatpush.msra.mxu0 %v5580_v27  ;;  %1950 = vmatpush.msra.mxu1 %v5619_v19  ;;  %v5643_v16 = vld [vmem:[#allocation8 + $0x20] sm:$0xff]  ;;  %v5649_v24 = vld [vmem:[#allocation8 + $0x30] sm:$0xff] }
 0x33c   :  { %v5578_v3 = vadd.f32 %v1599_v32, %v1598_v47  ;;  %v1587_v10 = vadd.f32 %v5508_v28, %v1586_v12  ;;  %7062 = vst [vmem:[#allocation73_spill] sm:$0xff] %v5607_v48  ;;  %1970 = vmatpush.msra.mxu2 %v5625_v45  ;;  %1990 = vmatpush.msra.mxu3 %v5628_v49  ;;  %v5631_v32 = vld [vmem:[#allocation8 + $0x40] sm:$0xff]  ;;  %v5634_v47 = vld [vmem:[#allocation8 + $0x48] sm:$0xff]  ;;  %v5637_v12 = vld [vmem:[#allocation8 + $0x50] sm:$0xff] }
 0x33d   :  { %1929 = vmatpush.msra.mxu0 %v5596_v25  ;;  %7065 = vst [vmem:[#allocation72_spill] sm:$0xff] %v5616_v52  ;;  %1951 = vmatpush.msra.mxu1 %v5634_v47 }
 0x33e   :  { %7054 = vst [vmem:[#allocation168_spill] sm:$0xff] %v5578_v3  ;;  %3108 = vtanh.f32 %v5578_v3  ;;  %v1591_v43 = vsel %vm5612_vm14, %v5508_v28, %v1587_v10  ;;  %1971 = vmatpush.msra.mxu2 %v5637_v12  ;;  %v5640_v28 = vld [vmem:[#allocation8 + $0x58] sm:$0xff]  ;;  %v7150_v3 = vld [vmem:[#allocation59_spill] sm:$0xff] }
 0x33f   :  { %1930 = vmatpush.msra.mxu0 %v5616_v52  ;;  %7066 = vst [vmem:[#allocation22_spill] sm:$0xff] %v5619_v19  ;;  %1991 = vmatpush.msra.mxu3 %v5640_v28  ;;  %v1596_v21 = vsel %vm1593_vm15, %v1595_v37, %v1591_v43  ;;  %v5658_v43 = vld [vmem:[#allocation8 + $0x8] sm:$0xff]  ;;  %v5664_v37 = vld [vmem:[#allocation8 + $0x10] sm:$0xff] }
 0x340   :  { %7067 = vst [vmem:[#allocation23_spill] sm:$0xff] %v5625_v45  ;;  %1972 = vmatpush.msra.mxu2 %v5649_v24 }
 0x341   :  { %7068 = vst [vmem:[#allocation25_spill] sm:$0xff] %v5628_v49  ;;  %1931 = vmatpush.msra.mxu0 %v5631_v32 }
 0x342   :  { %7069 = vst [vmem:[#allocation24_spill] sm:$0xff] %v5631_v32  ;;  %v5646_v32 = vld [vmem:[#allocation8 + $0x28] sm:$0xff]  ;;  %1973 = vmatpush.msra.mxu2 %v5664_v37 }
 0x343   :  { %7070 = vst [vmem:[#allocation66_spill] sm:$0xff] %v5634_v47  ;;  %1932 = vmatpush.msra.mxu0 %v5643_v16  ;;  %1952 = vmatpush.msra.mxu1 %v5646_v32 }
 0x344   :  { %7071 = vst [vmem:[#allocation67_spill] sm:$0xff] %v5637_v12  ;;  %v3109_v10 = vpop.eup %3108  ;;  %v5652_v12 = vld [vmem:[#allocation8 + $0x38] sm:$0xff] }
 0x345   :  { %7072 = vst [vmem:[#allocation69_spill] sm:$0xff] %v5640_v28  ;;  %v1602_v47 = vmul.f32 %v3109_v10, %v1596_v21  ;;  %1992 = vmatpush.msra.mxu3 %v5652_v12  ;;  %v5655_v28 = vld [vmem:[#allocation8] sm:$0xff]  ;;  %1953 = vmatpush.msra.mxu1 %v5658_v43  ;;  %v5667_v10 = vld [vmem:[#allocation8 + $0x18] sm:$0xff] }
 0x346   :  { %7073 = vst [vmem:[#allocation68_spill] sm:$0xff] %v5643_v16  ;;  %1933 = vmatpush.msra.mxu0 %v5655_v28  ;;  %v5670_v21 = vld [vmem:[#allocation10 + $0x1e0] sm:$0xff] }
 0x347   :  { %7074 = vst [vmem:[#allocation17_spill] sm:$0xff] %v5646_v32  ;;  %1780 = vmatmul.f32.vlgmr.msrb.gmra.mxu0 %v1602_v47  ;;  %1800 = vmatmul.f32.vlgmr.msrb.gmra.mxu1 %v1602_v47  ;;  %v7146_v32 = vld [vmem:[#allocation31_spill] sm:$0xff] }
 0x348   :  { %7075 = vst [vmem:[#allocation88_spill] sm:$0xff] %v5649_v24  ;;  %1820 = vmatmul.f32.vlgmr.msrb.gmra.mxu2 %v1602_v47  ;;  %1840 = vmatmul.f32.vlgmr.msrb.gmra.mxu3 %v1602_v47  ;;  %v7145_v24 = vld [vmem:[#allocation30_spill] sm:$0xff] }
 0x349   :  { %7076 = vst [vmem:[#allocation92_spill] sm:$0xff] %v5652_v12  ;;  %1993 = vmatpush.msra.mxu3 %v5667_v10  ;;  %2072 = vmatpush.msrb.mxu0 %v5670_v21 }
 0x34a   :  { %7077 = vst [vmem:[#allocation14_spill] sm:$0xff] %v5655_v28  ;;  %v5676_v28 = vld [vmem:[#allocation10 + $0x1f0] sm:$0xff] }
 0x34b   :  { %7078 = vst [vmem:[#allocation15_spill] sm:$0xff] %v5658_v43  ;;  %v5673_v43 = vld [vmem:[#allocation10 + $0x1e8] sm:$0xff]  ;;  %2112 = vmatpush.msrb.mxu2 %v5676_v28 }
 0x34c   :  { %2945 = vst [vmem:[%s6173_s5 + $0x20] sm:$0xff] %v1602_v47  ;;  %2092 = vmatpush.msrb.mxu1 %v5673_v43  ;;  %v5679_v47 = vld [vmem:[#allocation10 + $0x1f8] sm:$0xff] }
 0x34d   :  { %7079 = vst [vmem:[#allocation16_spill] sm:$0xff] %v5664_v37  ;;  %2132 = vmatpush.msrb.mxu3 %v5679_v47  ;;  %v5682_v37 = vld [vmem:[#allocation10 + $0x1c0] sm:$0xff] }
 0x34e   :  { %7080 = vst [vmem:[#allocation74_spill] sm:$0xff] %v5667_v10  ;;  %2073 = vmatpush.msrb.mxu0 %v5682_v37  ;;  %v5685_v10 = vld [vmem:[#allocation10 + $0x1c8] sm:$0xff] }
 0x34f   :  { %7081 = vst [vmem:[#allocation75_spill] sm:$0xff] %v5670_v21  ;;  %2093 = vmatpush.msrb.mxu1 %v5685_v10  ;;  %v5688_v21 = vld [vmem:[#allocation10 + $0x1d0] sm:$0xff] }
 0x350   :  { %7082 = vst [vmem:[#allocation77_spill] sm:$0xff] %v5673_v43  ;;  %2113 = vmatpush.msrb.mxu2 %v5688_v21  ;;  %v5691_v43 = vld [vmem:[#allocation10 + $0x1d8] sm:$0xff] }
 0x351   :  { %7083 = vst [vmem:[#allocation78_spill] sm:$0xff] %v5676_v28  ;;  %2133 = vmatpush.msrb.mxu3 %v5691_v43  ;;  %v5694_v28 = vld [vmem:[#allocation10 + $0x1a0] sm:$0xff] }
 0x352   :  { %7084 = vst [vmem:[#allocation79_spill] sm:$0xff] %v5679_v47  ;;  %2074 = vmatpush.msrb.mxu0 %v5694_v28  ;;  %v5697_v47 = vld [vmem:[#allocation10 + $0x1a8] sm:$0xff] }
 0x353   :  { %7085 = vst [vmem:[#allocation80_spill] sm:$0xff] %v5682_v37  ;;  %2094 = vmatpush.msrb.mxu1 %v5697_v47  ;;  %v5700_v37 = vld [vmem:[#allocation10 + $0x1b0] sm:$0xff] }
 0x354   :  { %7086 = vst [vmem:[#allocation76_spill] sm:$0xff] %v5685_v10  ;;  %2114 = vmatpush.msrb.mxu2 %v5700_v37  ;;  %v5703_v10 = vld [vmem:[#allocation10 + $0x1b8] sm:$0xff] }
 0x355   :  { %7087 = vst [vmem:[#allocation96_spill] sm:$0xff] %v5688_v21  ;;  %2134 = vmatpush.msrb.mxu3 %v5703_v10  ;;  %v5706_v21 = vld [vmem:[#allocation10 + $0x180] sm:$0xff] }
 0x356   :  { %7088 = vst [vmem:[#allocation81_spill] sm:$0xff] %v5691_v43  ;;  %2075 = vmatpush.msrb.mxu0 %v5706_v21  ;;  %v5709_v43 = vld [vmem:[#allocation10 + $0x188] sm:$0xff] }
 0x357   :  { %7089 = vst [vmem:[#allocation82_spill] sm:$0xff] %v5694_v28  ;;  %2095 = vmatpush.msrb.mxu1 %v5709_v43  ;;  %v5712_v28 = vld [vmem:[#allocation10 + $0x190] sm:$0xff] }
 0x358   :  { %7090 = vst [vmem:[#allocation83_spill] sm:$0xff] %v5697_v47  ;;  %2115 = vmatpush.msrb.mxu2 %v5712_v28  ;;  %v5715_v47 = vld [vmem:[#allocation10 + $0x198] sm:$0xff] }
 0x359   :  { %7091 = vst [vmem:[#allocation107_spill] sm:$0xff] %v5700_v37  ;;  %2135 = vmatpush.msrb.mxu3 %v5715_v47  ;;  %v5718_v37 = vld [vmem:[#allocation10 + $0x160] sm:$0xff] }
 0x35a   :  { %7092 = vst [vmem:[#allocation84_spill] sm:$0xff] %v5703_v10  ;;  %2076 = vmatpush.msrb.mxu0 %v5718_v37  ;;  %v5721_v10 = vld [vmem:[#allocation10 + $0x168] sm:$0xff] }
 0x35b   :  { %7093 = vst [vmem:[#allocation85_spill] sm:$0xff] %v5706_v21  ;;  %2096 = vmatpush.msrb.mxu1 %v5721_v10  ;;  %v5724_v21 = vld [vmem:[#allocation10 + $0x170] sm:$0xff] }
 0x35c   :  { %7094 = vst [vmem:[#allocation86_spill] sm:$0xff] %v5709_v43  ;;  %2116 = vmatpush.msrb.mxu2 %v5724_v21  ;;  %v5727_v43 = vld [vmem:[#allocation10 + $0x178] sm:$0xff] }
 0x35d   :  { %7095 = vst [vmem:[#allocation111_spill] sm:$0xff] %v5712_v28  ;;  %2136 = vmatpush.msrb.mxu3 %v5727_v43  ;;  %v5730_v28 = vld [vmem:[#allocation10 + $0x140] sm:$0xff] }
 0x35e   :  { %7096 = vst [vmem:[#allocation87_spill] sm:$0xff] %v5715_v47  ;;  %2077 = vmatpush.msrb.mxu0 %v5730_v28  ;;  %v5733_v47 = vld [vmem:[#allocation10 + $0x148] sm:$0xff] }
 0x35f   :  { %7097 = vst [vmem:[#allocation89_spill] sm:$0xff] %v5718_v37  ;;  %2097 = vmatpush.msrb.mxu1 %v5733_v47  ;;  %v5736_v37 = vld [vmem:[#allocation10 + $0x150] sm:$0xff] }
 0x360   :  { %7098 = vst [vmem:[#allocation90_spill] sm:$0xff] %v5721_v10  ;;  %2117 = vmatpush.msrb.mxu2 %v5736_v37  ;;  %v5739_v10 = vld [vmem:[#allocation10 + $0x158] sm:$0xff] }
 0x361   :  { %7099 = vst [vmem:[#allocation115_spill] sm:$0xff] %v5724_v21  ;;  %2137 = vmatpush.msrb.mxu3 %v5739_v10  ;;  %v5742_v21 = vld [vmem:[#allocation10 + $0x120] sm:$0xff] }
 0x362   :  { %7100 = vst [vmem:[#allocation91_spill] sm:$0xff] %v5727_v43  ;;  %2078 = vmatpush.msrb.mxu0 %v5742_v21  ;;  %v5745_v43 = vld [vmem:[#allocation10 + $0x128] sm:$0xff] }
 0x363   :  { %7101 = vst [vmem:[#allocation93_spill] sm:$0xff] %v5730_v28  ;;  %2098 = vmatpush.msrb.mxu1 %v5745_v43  ;;  %v5748_v28 = vld [vmem:[#allocation10 + $0x130] sm:$0xff] }
 0x364   :  { %7102 = vst [vmem:[#allocation94_spill] sm:$0xff] %v5733_v47  ;;  %2118 = vmatpush.msrb.mxu2 %v5748_v28  ;;  %v5751_v47 = vld [vmem:[#allocation10 + $0x138] sm:$0xff] }
 0x365   :  { %7103 = vst [vmem:[#allocation119_spill] sm:$0xff] %v5736_v37  ;;  %2138 = vmatpush.msrb.mxu3 %v5751_v47  ;;  %v5754_v37 = vld [vmem:[#allocation10 + $0x100] sm:$0xff] }
 0x366   :  { %7104 = vst [vmem:[#allocation95_spill] sm:$0xff] %v5739_v10  ;;  %2079 = vmatpush.msrb.mxu0 %v5754_v37  ;;  %v5757_v10 = vld [vmem:[#allocation10 + $0x108] sm:$0xff] }
 0x367   :  { %7105 = vst [vmem:[#allocation97_spill] sm:$0xff] %v5742_v21  ;;  %2099 = vmatpush.msrb.mxu1 %v5757_v10  ;;  %v5760_v21 = vld [vmem:[#allocation10 + $0x110] sm:$0xff] }
 0x368   :  { %7106 = vst [vmem:[#allocation98_spill] sm:$0xff] %v5745_v43  ;;  %2119 = vmatpush.msrb.mxu2 %v5760_v21  ;;  %v5763_v43 = vld [vmem:[#allocation10 + $0x118] sm:$0xff] }
 0x369   :  { %7107 = vst [vmem:[#allocation123_spill] sm:$0xff] %v5748_v28  ;;  %2139 = vmatpush.msrb.mxu3 %v5763_v43  ;;  %v5766_v28 = vld [vmem:[#allocation10 + $0xe0] sm:$0xff] }
 0x36a   :  { %7108 = vst [vmem:[#allocation99_spill] sm:$0xff] %v5751_v47  ;;  %2080 = vmatpush.msrb.mxu0 %v5766_v28  ;;  %v5769_v47 = vld [vmem:[#allocation10 + $0xe8] sm:$0xff] }
 0x36b   :  { %7109 = vst [vmem:[#allocation100_spill] sm:$0xff] %v5754_v37  ;;  %2100 = vmatpush.msrb.mxu1 %v5769_v47  ;;  %v5772_v37 = vld [vmem:[#allocation10 + $0xf0] sm:$0xff] }
 0x36c   :  { %7110 = vst [vmem:[#allocation101_spill] sm:$0xff] %v5757_v10  ;;  %2120 = vmatpush.msrb.mxu2 %v5772_v37  ;;  %v5775_v10 = vld [vmem:[#allocation10 + $0xf8] sm:$0xff] }
 0x36d   :  { %7111 = vst [vmem:[#allocation129_spill] sm:$0xff] %v5760_v21  ;;  %2140 = vmatpush.msrb.mxu3 %v5775_v10  ;;  %v5778_v21 = vld [vmem:[#allocation10 + $0xc0] sm:$0xff] }
 0x36e   :  { %7112 = vst [vmem:[#allocation102_spill] sm:$0xff] %v5763_v43  ;;  %2081 = vmatpush.msrb.mxu0 %v5778_v21  ;;  %v5781_v43 = vld [vmem:[#allocation10 + $0xc8] sm:$0xff] }
 0x36f   :  { %7113 = vst [vmem:[#allocation103_spill] sm:$0xff] %v5766_v28  ;;  %2101 = vmatpush.msrb.mxu1 %v5781_v43  ;;  %v5784_v28 = vld [vmem:[#allocation10 + $0xd0] sm:$0xff] }
 0x370   :  { %7114 = vst [vmem:[#allocation104_spill] sm:$0xff] %v5769_v47  ;;  %2121 = vmatpush.msrb.mxu2 %v5784_v28  ;;  %v5787_v47 = vld [vmem:[#allocation10 + $0xd8] sm:$0xff] }
 0x371   :  { %7115 = vst [vmem:[#allocation133_spill] sm:$0xff] %v5772_v37  ;;  %2141 = vmatpush.msrb.mxu3 %v5787_v47  ;;  %v5790_v37 = vld [vmem:[#allocation10 + $0xa0] sm:$0xff] }
 0x372   :  { %7116 = vst [vmem:[#allocation105_spill] sm:$0xff] %v5775_v10  ;;  %2082 = vmatpush.msrb.mxu0 %v5790_v37  ;;  %v5793_v10 = vld [vmem:[#allocation10 + $0xa8] sm:$0xff] }
 0x373   :  { %7117 = vst [vmem:[#allocation106_spill] sm:$0xff] %v5778_v21  ;;  %2102 = vmatpush.msrb.mxu1 %v5793_v10  ;;  %v5796_v21 = vld [vmem:[#allocation10 + $0xb0] sm:$0xff] }
 0x374   :  { %7118 = vst [vmem:[#allocation108_spill] sm:$0xff] %v5781_v43  ;;  %2122 = vmatpush.msrb.mxu2 %v5796_v21  ;;  %v5799_v43 = vld [vmem:[#allocation10 + $0xb8] sm:$0xff] }
 0x375   :  { %7119 = vst [vmem:[#allocation137_spill] sm:$0xff] %v5784_v28  ;;  %2142 = vmatpush.msrb.mxu3 %v5799_v43  ;;  %v5802_v28 = vld [vmem:[#allocation10 + $0x80] sm:$0xff] }
 0x376   :  { %7120 = vst [vmem:[#allocation109_spill] sm:$0xff] %v5787_v47  ;;  %2083 = vmatpush.msrb.mxu0 %v5802_v28  ;;  %v5805_v47 = vld [vmem:[#allocation10 + $0x88] sm:$0xff] }
 0x377   :  { %7121 = vst [vmem:[#allocation110_spill] sm:$0xff] %v5790_v37  ;;  %2103 = vmatpush.msrb.mxu1 %v5805_v47  ;;  %v5808_v37 = vld [vmem:[#allocation10 + $0x90] sm:$0xff] }
 0x378   :  { %7122 = vst [vmem:[#allocation112_spill] sm:$0xff] %v5793_v10  ;;  %2123 = vmatpush.msrb.mxu2 %v5808_v37  ;;  %v5811_v10 = vld [vmem:[#allocation10 + $0x98] sm:$0xff] }
 0x379   :  { %7123 = vst [vmem:[#allocation141_spill] sm:$0xff] %v5796_v21  ;;  %2143 = vmatpush.msrb.mxu3 %v5811_v10  ;;  %v5814_v21 = vld [vmem:[#allocation10 + $0x60] sm:$0xff] }
 0x37a   :  { %7124 = vst [vmem:[#allocation113_spill] sm:$0xff] %v5799_v43  ;;  %2084 = vmatpush.msrb.mxu0 %v5814_v21  ;;  %v5817_v43 = vld [vmem:[#allocation10 + $0x68] sm:$0xff] }
 0x37b   :  { %7125 = vst [vmem:[#allocation114_spill] sm:$0xff] %v5802_v28  ;;  %2104 = vmatpush.msrb.mxu1 %v5817_v43  ;;  %v5820_v28 = vld [vmem:[#allocation10 + $0x70] sm:$0xff] }
 0x37c   :  { %7126 = vst [vmem:[#allocation116_spill] sm:$0xff] %v5805_v47  ;;  %2124 = vmatpush.msrb.mxu2 %v5820_v28  ;;  %v5823_v47 = vld [vmem:[#allocation10 + $0x78] sm:$0xff] }
 0x37d   :  { %7127 = vst [vmem:[#allocation145_spill] sm:$0xff] %v5808_v37  ;;  %2144 = vmatpush.msrb.mxu3 %v5823_v47  ;;  %v5826_v37 = vld [vmem:[#allocation10 + $0x40] sm:$0xff] }
 0x37e   :  { %7128 = vst [vmem:[#allocation117_spill] sm:$0xff] %v5811_v10  ;;  %2085 = vmatpush.msrb.mxu0 %v5826_v37  ;;  %v5829_v10 = vld [vmem:[#allocation10 + $0x48] sm:$0xff] }
 0x37f   :  { %7129 = vst [vmem:[#allocation118_spill] sm:$0xff] %v5814_v21  ;;  %2105 = vmatpush.msrb.mxu1 %v5829_v10  ;;  %v5832_v21 = vld [vmem:[#allocation10 + $0x50] sm:$0xff] }
 0x380   :  { %7130 = vst [vmem:[#allocation120_spill] sm:$0xff] %v5817_v43  ;;  %2125 = vmatpush.msrb.mxu2 %v5832_v21  ;;  %v5835_v43 = vld [vmem:[#allocation10 + $0x58] sm:$0xff] }
 0x381   :  { %7131 = vst [vmem:[#allocation149_spill] sm:$0xff] %v5820_v28  ;;  %2145 = vmatpush.msrb.mxu3 %v5835_v43  ;;  %v5838_v28 = vld [vmem:[#allocation10 + $0x20] sm:$0xff] }
 0x382   :  { %7132 = vst [vmem:[#allocation121_spill] sm:$0xff] %v5823_v47  ;;  %2086 = vmatpush.msrb.mxu0 %v5838_v28  ;;  %v5841_v47 = vld [vmem:[#allocation10 + $0x28] sm:$0xff] }
 0x383   :  { %7133 = vst [vmem:[#allocation122_spill] sm:$0xff] %v5826_v37  ;;  %2106 = vmatpush.msrb.mxu1 %v5841_v47  ;;  %v5844_v37 = vld [vmem:[#allocation10 + $0x30] sm:$0xff] }
 0x384   :  { %7134 = vst [vmem:[#allocation124_spill] sm:$0xff] %v5829_v10  ;;  %2126 = vmatpush.msrb.mxu2 %v5844_v37  ;;  %v5847_v10 = vld [vmem:[#allocation10 + $0x38] sm:$0xff] }
 0x385   :  { %7135 = vst [vmem:[#allocation153_spill] sm:$0xff] %v5832_v21  ;;  %2146 = vmatpush.msrb.mxu3 %v5847_v10  ;;  %v5850_v21 = vld [vmem:[#allocation10] sm:$0xff] }
 0x386   :  { %7136 = vst [vmem:[#allocation125_spill] sm:$0xff] %v5835_v43  ;;  %2087 = vmatpush.msrb.mxu0 %v5850_v21  ;;  %v5853_v43 = vld [vmem:[#allocation10 + $0x8] sm:$0xff] }
 0x387   :  { %7137 = vst [vmem:[#allocation126_spill] sm:$0xff] %v5838_v28  ;;  %2107 = vmatpush.msrb.mxu1 %v5853_v43  ;;  %v5856_v28 = vld [vmem:[#allocation10 + $0x10] sm:$0xff] }
 0x388   :  { %7138 = vst [vmem:[#allocation127_spill] sm:$0xff] %v5841_v47  ;;  %2127 = vmatpush.msrb.mxu2 %v5856_v28  ;;  %v5859_v47 = vld [vmem:[#allocation10 + $0x18] sm:$0xff] }
 0x389   :  { %7139 = vst [vmem:[#allocation157_spill] sm:$0xff] %v5844_v37  ;;  %2147 = vmatpush.msrb.mxu3 %v5859_v47 }
 0x38a   :  { %7140 = vst [vmem:[#allocation128_spill] sm:$0xff] %v5847_v10 }
 0x38b   :  { %7141 = vst [vmem:[#allocation130_spill] sm:$0xff] %v5850_v21 }
 0x38c   :  { %7142 = vst [vmem:[#allocation131_spill] sm:$0xff] %v5853_v43  ;;  %v7147_v43 = vld [vmem:[#allocation33_spill] sm:$0xff] }
 0x38d   :  { %7143 = vst [vmem:[#allocation161_spill] sm:$0xff] %v5856_v28 }
 0x38e   :  { %7144 = vst [vmem:[#allocation132_spill] sm:$0xff] %v5859_v47 }
 0x39b   :  { %v1627_v37 = vpop.f32.mrf.mxu0  ;;  %v1647_v12 = vpop.f32.mrf.mxu1 }
 0x39c   :  { %v1690_v10 = vadd.f32 %v1627_v37, %v7145_v24  ;;  %v1691_v16 = vadd.f32 %v1647_v12, %v7146_v32  ;;  %v7148_v32 = vld [vmem:[#allocation32_spill] sm:$0xff] }
 0x39e   :  { %v2946_v49 = vmul.f32 -1.442695, %v1690_v10  ;;  %v2947_v21 = vmul.f32 -1.442695, %v1691_v16 }
 0x3a0   :  { %3110 = vpow2.f32 %v2946_v49 }
 0x3a1   :  { %3112 = vpow2.f32 %v2947_v21 }
 0x3a2   :  { %v1687_v45 = vpop.f32.mrf.mxu3  ;;  %v1667_v47 = vpop.f32.mrf.mxu2 }
 0x3a3   :  { %v1693_v19 = vadd.f32 %v1687_v45, %v7147_v43  ;;  %v1692_v12 = vadd.f32 %v1667_v47, %v7148_v32 }
 0x3a5   :  { %v2948_v52 = vmul.f32 -1.442695, %v1693_v19 }
 0x3a6   :  { %v3111_v48 = vpop.eup %3110 }
 0x3a7   :  { %v3113_v28 = vpop.eup %3112  ;;  %v1697_v23 = vadd.f32 1.0, %v3111_v48  ;;  %3114 = vpow2.f32 %v2948_v52 }
 0x3a8   :  { %v1716_v15 = vadd.f32 1.0, %v3113_v28 }
 0x3a9   :  { %3116 = vrcp.f32 %v1697_v23  ;;  %v1709_v19 = vand.u32 2147483648, %v1697_v23  ;;  %v1707_v52 = vand.u32 2147483647, %v1697_v23  ;;  %vm1703_vm2 = vweird.f32 %v1697_v23 }
 0x3aa   :  { %3118 = vrcp.f32 %v1716_v15  ;;  %v1728_v43 = vand.u32 2147483648, %v1716_v15  ;;  %v1726_v44 = vand.u32 2147483647, %v1716_v15  ;;  %vm1722_vm3 = vweird.f32 %v1716_v15 }
 0x3ab   :  { %v1710_v47 = vor.u32 1.1754944e-38, %v1709_v19  ;;  %vm1708_vm6 = vcmp.eq.f32.partialorder %v1707_v52, 8.507059e+37  ;;  %v7149_v19 = vld [vmem:[#allocation58_spill] sm:$0xff] }
 0x3ac   :  { %vm1727_vm7 = vcmp.eq.f32.partialorder %v1726_v44, 8.507059e+37 }
 0x3ad   :  { %v3115_v25 = vpop.eup %3114 }
 0x3ae   :  { %v1736_v24 = vadd.f32 1.0, %v3115_v25 }
 0x3af   :  { %v3117_v37 = vpop.eup %3116 }
 0x3b0   :  { %v3119_v16 = vpop.eup %3118  ;;  %v1699_v49 = vmul.f32 %v3117_v37, %v1697_v23  ;;  %3120 = vrcp.f32 %v1736_v24  ;;  %vm1704_vm0 = vweird.f32 %v3117_v37  ;;  %vm1742_vm9 = vweird.f32 %v1736_v24 }
 0x3b1   :  { %v1718_v10 = vmul.f32 %v3119_v16, %v1716_v15  ;;  %3122 = vtanh.f32 %v1692_v12  ;;  %vm1723_vm1 = vweird.f32 %v3119_v16  ;;  %vm1705_vm4 = vmor %vm1703_vm2, %vm1704_vm0 }
 0x3b2   :  { %v1700_v21 = vsub.f32 1.0, %v1699_v49  ;;  %vm1724_vm5 = vmor %vm1722_vm3, %vm1723_vm1  ;;  %v1729_v49 = vor.u32 1.1754944e-38, %v1728_v43 }
 0x3b3   :  { %v1719_v45 = vsub.f32 1.0, %v1718_v10 }
 0x3b4   :  { %v1701_v48 = vmul.f32 %v3117_v37, %v1700_v21 }
 0x3b5   :  { %v1720_v28 = vmul.f32 %v3119_v16, %v1719_v45 }
 0x3b6   :  { %v3121_v50 = vpop.eup %3120  ;;  %v1702_v25 = vadd.f32 %v3117_v37, %v1701_v48 }
 0x3b7   :  { %v1721_v32 = vadd.f32 %v3119_v16, %v1720_v28  ;;  %v1738_v9 = vmul.f32 %v3121_v50, %v1736_v24  ;;  %v3123_v12 = vpop.eup %3122  ;;  %vm1743_vm8 = vweird.f32 %v3121_v50 }
 0x3b8   :  { %v1706_v10 = vsel %vm1705_vm4, %v3117_v37, %v1702_v25  ;;  %vm1744_vm10 = vmor %vm1742_vm9, %vm1743_vm8 }
 0x3b9   :  { %v1711_v27 = vsel %vm1708_vm6, %v1710_v47, %v1706_v10  ;;  %v1725_v21 = vsel %vm1724_vm5, %v3119_v16, %v1721_v32  ;;  %v1739_v39 = vsub.f32 1.0, %v1738_v9  ;;  %v1748_v16 = vand.u32 2147483648, %v1736_v24 }
 0x3ba   :  { %v1730_v45 = vsel %vm1727_vm7, %v1729_v49, %v1725_v21  ;;  %v1753_v0 = vmul.f32 %v3123_v12, %v1711_v27  ;;  %v1746_v27 = vand.u32 2147483647, %v1736_v24 }
 0x3bb   :  { %v1752_v56 = vmul.f32 %v1730_v45, %v5395_v13  ;;  %v1740_v48 = vmul.f32 %v3121_v50, %v1739_v39  ;;  %v1749_v39 = vor.u32 1.1754944e-38, %v1748_v16  ;;  %v7155_v45 = vld [vmem:[#allocation156_spill] sm:$0xff] }
 0x3bc   :  { %vm1747_vm11 = vcmp.eq.f32.partialorder %v1746_v27, 8.507059e+37  ;;  %v7166_v27 = vld [vmem:[#allocation72_spill] sm:$0xff] }
 0x3bd   :  { %v5867_v60 = vadd.f32 %v1753_v0, %v1752_v56  ;;  %v1741_v37 = vadd.f32 %v3121_v50, %v1740_v48  ;;  %v7151_v0 = vld [vmem:[#allocation61_spill] sm:$0xff]  ;;  %v7156_v48 = vld [vmem:[#allocation158_spill] sm:$0xff] }
 0x3bf   :  { %3124 = vtanh.f32 %v5867_v60  ;;  %v1745_v13 = vsel %vm1744_vm10, %v3121_v50, %v1741_v37  ;;  %v7163_v37 = vld [vmem:[#allocation70_spill] sm:$0xff] }
 0x3c4   :  { %v1781_v23 = vpop.f32.mrf.mxu0  ;;  %v1801_v15 = vpop.f32.mrf.mxu1 }
 0x3c5   :  { %v1844_v28 = vadd.f32 %v7149_v19, %v1781_v23  ;;  %v1845_v43 = vadd.f32 %v7150_v3, %v1801_v15  ;;  %v3125_v25 = vpop.eup %3124  ;;  %v1750_v3 = vsel %vm1747_vm11, %v1749_v39, %v1745_v13  ;;  %v7157_v23 = vld [vmem:[#allocation159_spill] sm:$0xff]  ;;  %v7159_v15 = vld [vmem:[#allocation18_spill] sm:$0xff]  ;;  %v7161_v19 = vld [vmem:[#allocation21_spill] sm:$0xff] }
 0x3c6   :  { %v1756_v32 = vmul.f32 %v3125_v25, %v1750_v3  ;;  %v7167_v13 = vld [vmem:[#allocation22_spill] sm:$0xff]  ;;  %v7170_v25 = vld [vmem:[#allocation24_spill] sm:$0xff] }
 0x3c7   :  { %v2950_v44 = vmul.f32 -1.442695, %v1844_v28  ;;  %v2951_v9 = vmul.f32 -1.442695, %v1845_v43  ;;  %v7162_v43 = vld [vmem:[#allocation20_spill] sm:$0xff]  ;;  %v7171_v3 = vld [vmem:[#allocation66_spill] sm:$0xff] }
 0x3c8   :  { %2949 = vst [vmem:[%s6172_s4 + $0x20] sm:$0xff] %v1756_v32  ;;  %1934 = vmatmul.f32.vlgmr.msra.gmra.mxu0 %v1756_v32  ;;  %1954 = vmatmul.f32.vlgmr.msra.gmra.mxu1 %v1756_v32 }
 0x3c9   :  { %3126 = vpow2.f32 %v2950_v44  ;;  %1974 = vmatmul.f32.vlgmr.msra.gmra.mxu2 %v1756_v32  ;;  %1994 = vmatmul.f32.vlgmr.msra.gmra.mxu3 %v1756_v32  ;;  %v7164_v44 = vld [vmem:[#allocation71_spill] sm:$0xff]  ;;  %v7173_v32 = vld [vmem:[#allocation69_spill] sm:$0xff] }
 0x3ca   :  { %3128 = vpow2.f32 %v2951_v9  ;;  %2226 = vmatpush.msra.mxu0 %v5409_v14  ;;  %2246 = vmatpush.msra.mxu1 %v5412_v51  ;;  %v7165_v9 = vld [vmem:[#allocation73_spill] sm:$0xff] }
 0x3cb   :  { %v1841_v56 = vpop.f32.mrf.mxu3  ;;  %2266 = vmatpush.msra.mxu2 %v5416_v59  ;;  %2286 = vmatpush.msra.mxu3 %v5419_v4  ;;  %v1821_v24 = vpop.f32.mrf.mxu2  ;;  %v7152_v59 = vld [vmem:[#allocation60_spill] sm:$0xff] }
 0x3cc   :  { %v1847_v52 = vadd.f32 %v7151_v0, %v1841_v56  ;;  %2227 = vmatpush.msra.mxu0 %v5422_v6  ;;  %2247 = vmatpush.msra.mxu1 %v5425_v58  ;;  %v1846_v4 = vadd.f32 %v7152_v59, %v1821_v24  ;;  %v7168_v56 = vld [vmem:[#allocation23_spill] sm:$0xff]  ;;  %v7169_v0 = vld [vmem:[#allocation25_spill] sm:$0xff] }
 0x3cd   :  { %2267 = vmatpush.msra.mxu2 %v5428_v57  ;;  %2287 = vmatpush.msra.mxu3 %v5431_v55  ;;  %v7179_v59 = vld [vmem:[#allocation15_spill] sm:$0xff] }
 0x3ce   :  { %v2952_v47 = vmul.f32 -1.442695, %v1847_v52  ;;  %2228 = vmatpush.msra.mxu0 %v5434_v62  ;;  %2248 = vmatpush.msra.mxu1 %v5437_v35 }
 0x3cf   :  { %v3127_v49 = vpop.eup %3126  ;;  %2268 = vmatpush.msra.mxu2 %v5442_v29  ;;  %2288 = vmatpush.msra.mxu3 %v5445_v20 }
 0x3d0   :  { %v3129_v10 = vpop.eup %3128  ;;  %v5873_v12 = vadd.f32 1.0, %v3127_v49  ;;  %3130 = vpow2.f32 %v2952_v47  ;;  %2229 = vmatpush.msra.mxu0 %v5451_v22  ;;  %2249 = vmatpush.msra.mxu1 %v5454_v31  ;;  %v7172_v47 = vld [vmem:[#allocation67_spill] sm:$0xff] }
 0x3d1   :  { %v5878_v50 = vadd.f32 1.0, %v3129_v10  ;;  %2269 = vmatpush.msra.mxu2 %v5462_v40  ;;  %2289 = vmatpush.msra.mxu3 %v5465_v54 }
 0x3d2   :  { %3132 = vrcp.f32 %v5873_v12  ;;  %2230 = vmatpush.msra.mxu0 %v5470_v46  ;;  %2250 = vmatpush.msra.mxu1 %v5473_v53  ;;  %v1863_v35 = vand.u32 2147483648, %v5873_v12  ;;  %v1861_v22 = vand.u32 2147483647, %v5873_v12  ;;  %vm1857_vm14 = vweird.f32 %v5873_v12 }
 0x3d3   :  { %3134 = vrcp.f32 %v5878_v50  ;;  %2270 = vmatpush.msra.mxu2 %v5476_v5  ;;  %2290 = vmatpush.msra.mxu3 %v5479_v18  ;;  %v1882_v29 = vand.u32 2147483648, %v5878_v50  ;;  %v1880_v40 = vand.u32 2147483647, %v5878_v50  ;;  %vm1876_vm15 = vweird.f32 %v5878_v50 }
 0x3d4   :  { %2231 = vmatpush.msra.mxu0 %v5483_v2  ;;  %2251 = vmatpush.msra.mxu1 %v5486_v61  ;;  %v1864_v53 = vor.u32 1.1754944e-38, %v1863_v35  ;;  %vm1862_vm2 = vcmp.eq.f32.partialorder %v1861_v22, 8.507059e+37  ;;  %v7186_v35 = vld [vmem:[#allocation80_spill] sm:$0xff]  ;;  %v7189_v22 = vld [vmem:[#allocation81_spill] sm:$0xff] }
 0x3d5   :  { %2271 = vmatpush.msra.mxu2 %v5493_v11  ;;  %2291 = vmatpush.msra.mxu3 %v5496_v1  ;;  %v1883_v2 = vor.u32 1.1754944e-38, %v1882_v29  ;;  %vm1881_vm3 = vcmp.eq.f32.partialorder %v1880_v40, 8.507059e+37  ;;  %v7187_v29 = vld [vmem:[#allocation76_spill] sm:$0xff]  ;;  %v7191_v40 = vld [vmem:[#allocation83_spill] sm:$0xff] }
 0x3d6   :  { %v3131_v21 = vpop.eup %3130  ;;  %2232 = vmatpush.msra.mxu0 %v5502_v8  ;;  %2252 = vmatpush.msra.mxu1 %v5505_v34 }
 0x3d7   :  { %v5892_v14 = vadd.f32 1.0, %v3131_v21  ;;  %2272 = vmatpush.msra.mxu2 %v5512_v26  ;;  %2292 = vmatpush.msra.mxu3 %v5515_v36  ;;  %v7176_v21 = vld [vmem:[#allocation88_spill] sm:$0xff] }
 0x3d8   :  { %v3133_v51 = vpop.eup %3132  ;;  %2233 = vmatpush.msra.mxu0 %v5528_v41  ;;  %2253 = vmatpush.msra.mxu1 %v5531_v42  ;;  %v7153_v41 = vld [vmem:[#allocation168_spill] sm:$0xff] }
 0x3d9   :  { %v3135_v6 = vpop.eup %3134  ;;  %v1853_v58 = vmul.f32 %v3133_v51, %v5873_v12  ;;  %3136 = vrcp.f32 %v5892_v14  ;;  %vm1858_vm12 = vweird.f32 %v3133_v51  ;;  %2273 = vmatpush.msra.mxu2 %v5543_v63  ;;  %2293 = vmatpush.msra.mxu3 %v5546_v38  ;;  %v7154_v38 = vld [vmem:[#allocation167_spill] sm:$0xff]  ;;  %v1902_v28 = vand.u32 2147483648, %v5892_v14  ;;  %v7174_v12 = vld [vmem:[#allocation68_spill] sm:$0xff] }
 0x3da   :  { %v1872_v57 = vmul.f32 %v3135_v6, %v5878_v50  ;;  %3138 = vtanh.f32 %v1846_v4  ;;  %vm1877_vm13 = vweird.f32 %v3135_v6  ;;  %vm1859_vm0 = vmor %vm1857_vm14, %vm1858_vm12  ;;  %2234 = vmatpush.msra.mxu0 %v5552_v7  ;;  %2254 = vmatpush.msra.mxu1 %v5555_v33  ;;  %v7158_v33 = vld [vmem:[#allocation160_spill] sm:$0xff]  ;;  %vm1896_vm5 = vweird.f32 %v5892_v14  ;;  %v7175_v50 = vld [vmem:[#allocation17_spill] sm:$0xff] }
 0x3db   :  { %v1854_v55 = vsub.f32 1.0, %v1853_v58  ;;  %vm1878_vm1 = vmor %vm1876_vm15, %vm1877_vm13  ;;  %2274 = vmatpush.msra.mxu2 %v5558_v30  ;;  %2294 = vmatpush.msra.mxu3 %v5561_v17  ;;  %v7160_v17 = vld [vmem:[#allocation19_spill] sm:$0xff]  ;;  %v1900_v16 = vand.u32 2147483647, %v5892_v14  ;;  %v1903_v52 = vor.u32 1.1754944e-38, %v1902_v28  ;;  %v7180_v4 = vld [vmem:[#allocation16_spill] sm:$0xff] }
 0x3dc   :  { %v1873_v62 = vsub.f32 1.0, %v1872_v57  ;;  %2235 = vmatpush.msra.mxu0 %v7154_v38  ;;  %2255 = vmatpush.msra.mxu1 %v7155_v45  ;;  %v7182_v58 = vld [vmem:[#allocation75_spill] sm:$0xff]  ;;  %v7183_v57 = vld [vmem:[#allocation77_spill] sm:$0xff] }
 0x3dd   :  { %v1855_v20 = vmul.f32 %v3133_v51, %v1854_v55  ;;  %2275 = vmatpush.msra.mxu2 %v7156_v48  ;;  %2295 = vmatpush.msra.mxu3 %v7157_v23  ;;  %vm1901_vm7 = vcmp.eq.f32.partialorder %v1900_v16, 8.507059e+37  ;;  %v7184_v55 = vld [vmem:[#allocation78_spill] sm:$0xff]  ;;  %v7208_v38 = vld [vmem:[#allocation123_spill] sm:$0xff]  ;;  %v7210_v48 = vld [vmem:[#allocation100_spill] sm:$0xff] }
 0x3de   :  { %v1874_v31 = vmul.f32 %v3135_v6, %v1873_v62  ;;  %2236 = vmatpush.msra.mxu0 %v7158_v33  ;;  %2256 = vmatpush.msra.mxu1 %v7159_v15  ;;  %v7185_v62 = vld [vmem:[#allocation79_spill] sm:$0xff]  ;;  %v7211_v23 = vld [vmem:[#allocation101_spill] sm:$0xff]  ;;  %v7213_v15 = vld [vmem:[#allocation102_spill] sm:$0xff] }
 0x3df   :  { %v5918_v54 = vpop.eup %3136  ;;  %v1856_v46 = vadd.f32 %v3133_v51, %v1855_v20  ;;  %2276 = vmatpush.msra.mxu2 %v7160_v17  ;;  %2296 = vmatpush.msra.mxu3 %v7161_v19  ;;  %v7188_v20 = vld [vmem:[#allocation96_spill] sm:$0xff]  ;;  %v7209_v45 = vld [vmem:[#allocation99_spill] sm:$0xff]  ;;  %v7212_v33 = vld [vmem:[#allocation129_spill] sm:$0xff] }
 0x3e0   :  { %v1875_v5 = vadd.f32 %v3135_v6, %v1874_v31  ;;  %v1892_v18 = vmul.f32 %v5918_v54, %v5892_v14  ;;  %v3139_v11 = vpop.eup %3138  ;;  %vm1897_vm4 = vweird.f32 %v5918_v54  ;;  %2237 = vmatpush.msra.mxu0 %v7162_v43  ;;  %2257 = vmatpush.msra.mxu1 %v7163_v37  ;;  %v7177_v14 = vld [vmem:[#allocation92_spill] sm:$0xff]  ;;  %v7190_v31 = vld [vmem:[#allocation82_spill] sm:$0xff]  ;;  %v7216_v19 = vld [vmem:[#allocation133_spill] sm:$0xff] }
 0x3e1   :  { %v1860_v61 = vsel %vm1859_vm0, %v3133_v51, %v1856_v46  ;;  %2277 = vmatpush.msra.mxu2 %v7164_v44  ;;  %2297 = vmatpush.msra.mxu3 %v7165_v9  ;;  %vm1898_vm6 = vmor %vm1896_vm5, %vm1897_vm4  ;;  %v7178_v51 = vld [vmem:[#allocation14_spill] sm:$0xff]  ;;  %v7193_v46 = vld [vmem:[#allocation84_spill] sm:$0xff] }
 0x3e2   :  { %v1865_v1 = vsel %vm1862_vm2, %v1864_v53, %v1860_v61  ;;  %v1879_v8 = vsel %vm1878_vm1, %v3135_v6, %v1875_v5  ;;  %v1893_v34 = vsub.f32 1.0, %v1892_v18  ;;  %2238 = vmatpush.msra.mxu0 %v7166_v27  ;;  %2258 = vmatpush.msra.mxu1 %v7167_v13  ;;  %v7181_v6 = vld [vmem:[#allocation74_spill] sm:$0xff]  ;;  %v7194_v53 = vld [vmem:[#allocation85_spill] sm:$0xff]  ;;  %v7196_v18 = vld [vmem:[#allocation111_spill] sm:$0xff] }
 0x3e3   :  { %v1884_v26 = vsel %vm1881_vm3, %v1883_v2, %v1879_v8  ;;  %v1907_v36 = vmul.f32 %v3139_v11, %v1865_v1  ;;  %2278 = vmatpush.msra.mxu2 %v7168_v56  ;;  %2298 = vmatpush.msra.mxu3 %v7169_v0  ;;  %v7195_v5 = vld [vmem:[#allocation86_spill] sm:$0xff]  ;;  %v7197_v2 = vld [vmem:[#allocation87_spill] sm:$0xff]  ;;  %v7198_v61 = vld [vmem:[#allocation89_spill] sm:$0xff] }
 0x3e4   :  { %v1906_v42 = vmul.f32 %v1884_v26, %v7153_v41  ;;  %v1894_v63 = vmul.f32 %v5918_v54, %v1893_v34  ;;  %2239 = vmatpush.msra.mxu0 %v7170_v25  ;;  %2259 = vmatpush.msra.mxu1 %v7171_v3  ;;  %v7199_v11 = vld [vmem:[#allocation90_spill] sm:$0xff]  ;;  %v7200_v1 = vld [vmem:[#allocation115_spill] sm:$0xff]  ;;  %v7202_v34 = vld [vmem:[#allocation93_spill] sm:$0xff] }
 0x3e5   :  { %2279 = vmatpush.msra.mxu2 %v7172_v47  ;;  %2299 = vmatpush.msra.mxu3 %v7173_v32  ;;  %v7201_v8 = vld [vmem:[#allocation91_spill] sm:$0xff]  ;;  %v7203_v26 = vld [vmem:[#allocation94_spill] sm:$0xff]  ;;  %v7215_v17 = vld [vmem:[#allocation104_spill] sm:$0xff] }
 0x3e6   :  { %v5942_v7 = vadd.f32 %v1907_v36, %v1906_v42  ;;  %v1895_v30 = vadd.f32 %v5918_v54, %v1894_v63  ;;  %2240 = vmatpush.msra.mxu0 %v7174_v12  ;;  %2260 = vmatpush.msra.mxu1 %v7175_v50  ;;  %v7204_v36 = vld [vmem:[#allocation119_spill] sm:$0xff]  ;;  %v7206_v42 = vld [vmem:[#allocation97_spill] sm:$0xff]  ;;  %v7207_v63 = vld [vmem:[#allocation98_spill] sm:$0xff] }
 0x3e7   :  { %2280 = vmatpush.msra.mxu2 %v7176_v21  ;;  %2300 = vmatpush.msra.mxu3 %v7177_v14  ;;  %v7205_v41 = vld [vmem:[#allocation95_spill] sm:$0xff]  ;;  %v7217_v28 = vld [vmem:[#allocation105_spill] sm:$0xff]  ;;  %v7218_v43 = vld [vmem:[#allocation106_spill] sm:$0xff] }
 0x3e8   :  { %3140 = vtanh.f32 %v5942_v7  ;;  %v1899_v39 = vsel %vm1898_vm6, %v5918_v54, %v1895_v30  ;;  %2241 = vmatpush.msra.mxu0 %v7178_v51  ;;  %2261 = vmatpush.msra.mxu1 %v7179_v59  ;;  %v7192_v54 = vld [vmem:[#allocation107_spill] sm:$0xff]  ;;  %v7219_v37 = vld [vmem:[#allocation108_spill] sm:$0xff]  ;;  %v7220_v16 = vld [vmem:[#allocation137_spill] sm:$0xff] }
 0x3e9   :  { %v1904_v10 = vsel %vm1901_vm7, %v1903_v52, %v1899_v39  ;;  %2281 = vmatpush.msra.mxu2 %v7180_v4  ;;  %2301 = vmatpush.msra.mxu3 %v7181_v6  ;;  %v7214_v30 = vld [vmem:[#allocation103_spill] sm:$0xff]  ;;  %v7221_v44 = vld [vmem:[#allocation109_spill] sm:$0xff]  ;;  %v7222_v9 = vld [vmem:[#allocation110_spill] sm:$0xff] }
 0x3ea   :  { %v7223_v27 = vld [vmem:[#allocation112_spill] sm:$0xff]  ;;  %v7224_v13 = vld [vmem:[#allocation141_spill] sm:$0xff]  ;;  %v7226_v56 = vld [vmem:[#allocation114_spill] sm:$0xff] }
 0x3eb   :  { %v7225_v39 = vld [vmem:[#allocation113_spill] sm:$0xff]  ;;  %v7227_v0 = vld [vmem:[#allocation116_spill] sm:$0xff]  ;;  %v7230_v3 = vld [vmem:[#allocation118_spill] sm:$0xff] }
 0x3ec   :  { %v7228_v52 = vld [vmem:[#allocation145_spill] sm:$0xff]  ;;  %v7231_v47 = vld [vmem:[#allocation120_spill] sm:$0xff]  ;;  %v7238_v21 = vld [vmem:[#allocation126_spill] sm:$0xff] }
 0x3ed   :  { %v7229_v25 = vld [vmem:[#allocation117_spill] sm:$0xff]  ;;  %v7235_v12 = vld [vmem:[#allocation124_spill] sm:$0xff]  ;;  %v7239_v14 = vld [vmem:[#allocation127_spill] sm:$0xff] }
 0x3ee   :  { %v3141_v49 = vpop.eup %3140  ;;  %v7232_v32 = vld [vmem:[#allocation149_spill] sm:$0xff]  ;;  %v7241_v59 = vld [vmem:[#allocation128_spill] sm:$0xff]  ;;  %v7242_v4 = vld [vmem:[#allocation130_spill] sm:$0xff] }
 0x3ef   :  { %v1910_v24 = vmul.f32 %v3141_v49, %v1904_v10  ;;  %v7233_v49 = vld [vmem:[#allocation121_spill] sm:$0xff]  ;;  %v7234_v10 = vld [vmem:[#allocation122_spill] sm:$0xff]  ;;  %v7243_v6 = vld [vmem:[#allocation131_spill] sm:$0xff] }
 0x3f0   :  { %v7236_v50 = vld [vmem:[#allocation153_spill] sm:$0xff] }
 0x3f1   :  { %2953 = vst [vmem:[%s6173_s5 + $0x18] sm:$0xff] %v1910_v24  ;;  %2088 = vmatmul.f32.vlgmr.msrb.gmra.mxu0 %v1910_v24  ;;  %2108 = vmatmul.f32.vlgmr.msrb.gmra.mxu1 %v1910_v24  ;;  %v7240_v51 = vld [vmem:[#allocation157_spill] sm:$0xff] }
 0x3f2   :  { %2128 = vmatmul.f32.vlgmr.msrb.gmra.mxu2 %v1910_v24  ;;  %2148 = vmatmul.f32.vlgmr.msrb.gmra.mxu3 %v1910_v24  ;;  %v7237_v24 = vld [vmem:[#allocation125_spill] sm:$0xff] }
 0x3f3   :  { %2380 = vmatpush.msrb.mxu0 %v7182_v58  ;;  %2400 = vmatpush.msrb.mxu1 %v7183_v57  ;;  %v7244_v58 = vld [vmem:[#allocation161_spill] sm:$0xff]  ;;  %v7245_v57 = vld [vmem:[#allocation132_spill] sm:$0xff] }
 0x3f4   :  { %2420 = vmatpush.msrb.mxu2 %v7184_v55  ;;  %2440 = vmatpush.msrb.mxu3 %v7185_v62 }
 0x3f5   :  { %2381 = vmatpush.msrb.mxu0 %v7186_v35  ;;  %2401 = vmatpush.msrb.mxu1 %v7187_v29  ;;  %v7246_v35 = vld [vmem:[#allocation34_spill] sm:$0xff] }
 0x3f6   :  { %2421 = vmatpush.msrb.mxu2 %v7188_v20  ;;  %2441 = vmatpush.msrb.mxu3 %v7189_v22  ;;  %v7247_v20 = vld [vmem:[#allocation35_spill] sm:$0xff] }
 0x3f7   :  { %2382 = vmatpush.msrb.mxu0 %v7190_v31  ;;  %2402 = vmatpush.msrb.mxu1 %v7191_v40 }
 0x3f8   :  { %2422 = vmatpush.msrb.mxu2 %v7192_v54  ;;  %2442 = vmatpush.msrb.mxu3 %v7193_v46  ;;  %v7248_v46 = vld [vmem:[#allocation37_spill] sm:$0xff] }
 0x3f9   :  { %2383 = vmatpush.msrb.mxu0 %v7194_v53  ;;  %2403 = vmatpush.msrb.mxu1 %v7195_v5 }
 0x3fa   :  { %2423 = vmatpush.msrb.mxu2 %v7196_v18  ;;  %2443 = vmatpush.msrb.mxu3 %v7197_v2 }
 0x3fb   :  { %2384 = vmatpush.msrb.mxu0 %v7198_v61  ;;  %2404 = vmatpush.msrb.mxu1 %v7199_v11 }
 0x3fc   :  { %2424 = vmatpush.msrb.mxu2 %v7200_v1  ;;  %2444 = vmatpush.msrb.mxu3 %v7201_v8 }
 0x3fd   :  { %2385 = vmatpush.msrb.mxu0 %v7202_v34  ;;  %2405 = vmatpush.msrb.mxu1 %v7203_v26 }
 0x3fe   :  { %2425 = vmatpush.msrb.mxu2 %v7204_v36  ;;  %2445 = vmatpush.msrb.mxu3 %v7205_v41  ;;  %v7249_v36 = vld [vmem:[#allocation36_spill] sm:$0xff] }
 0x3ff   :  { %2386 = vmatpush.msrb.mxu0 %v7206_v42  ;;  %2406 = vmatpush.msrb.mxu1 %v7207_v63 }
 0x400   :  { %2426 = vmatpush.msrb.mxu2 %v7208_v38  ;;  %2446 = vmatpush.msrb.mxu3 %v7209_v45 }
 0x401   :  { %2387 = vmatpush.msrb.mxu0 %v7210_v48  ;;  %2407 = vmatpush.msrb.mxu1 %v7211_v23 }
 0x402   :  { %2427 = vmatpush.msrb.mxu2 %v7212_v33  ;;  %2447 = vmatpush.msrb.mxu3 %v7213_v15 }
 0x403   :  { %2388 = vmatpush.msrb.mxu0 %v7214_v30  ;;  %2408 = vmatpush.msrb.mxu1 %v7215_v17 }
 0x404   :  { %2428 = vmatpush.msrb.mxu2 %v7216_v19  ;;  %2448 = vmatpush.msrb.mxu3 %v7217_v28 }
 0x405   :  { %2389 = vmatpush.msrb.mxu0 %v7218_v43  ;;  %2409 = vmatpush.msrb.mxu1 %v7219_v37 }
 0x406   :  { %2429 = vmatpush.msrb.mxu2 %v7220_v16  ;;  %2449 = vmatpush.msrb.mxu3 %v7221_v44 }
 0x407   :  { %2390 = vmatpush.msrb.mxu0 %v7222_v9  ;;  %2410 = vmatpush.msrb.mxu1 %v7223_v27 }
 0x408   :  { %2430 = vmatpush.msrb.mxu2 %v7224_v13  ;;  %2450 = vmatpush.msrb.mxu3 %v7225_v39 }
 0x409   :  { %2391 = vmatpush.msrb.mxu0 %v7226_v56  ;;  %2411 = vmatpush.msrb.mxu1 %v7227_v0 }
 0x40a   :  { %2431 = vmatpush.msrb.mxu2 %v7228_v52  ;;  %2451 = vmatpush.msrb.mxu3 %v7229_v25 }
 0x40b   :  { %2392 = vmatpush.msrb.mxu0 %v7230_v3  ;;  %2412 = vmatpush.msrb.mxu1 %v7231_v47 }
 0x40c   :  { %2432 = vmatpush.msrb.mxu2 %v7232_v32  ;;  %2452 = vmatpush.msrb.mxu3 %v7233_v49 }
 0x40d   :  { %2393 = vmatpush.msrb.mxu0 %v7234_v10  ;;  %2413 = vmatpush.msrb.mxu1 %v7235_v12  ;;  %v7250_v12 = vld [vmem:[#allocation54_spill] sm:$0xff] }
 0x40e   :  { %2433 = vmatpush.msrb.mxu2 %v7236_v50  ;;  %2453 = vmatpush.msrb.mxu3 %v7237_v24  ;;  %v7251_v24 = vld [vmem:[#allocation55_spill] sm:$0xff] }
 0x40f   :  { %2394 = vmatpush.msrb.mxu0 %v7238_v21  ;;  %2414 = vmatpush.msrb.mxu1 %v7239_v14 }
 0x410   :  { %2434 = vmatpush.msrb.mxu2 %v7240_v51  ;;  %2454 = vmatpush.msrb.mxu3 %v7241_v59 }
 0x411   :  { %2395 = vmatpush.msrb.mxu0 %v7242_v4  ;;  %2415 = vmatpush.msrb.mxu1 %v7243_v6 }
 0x412   :  { %2435 = vmatpush.msrb.mxu2 %v7244_v58  ;;  %2455 = vmatpush.msrb.mxu3 %v7245_v57 }
 0x445   :  { %v1935_v55 = vpop.f32.mrf.mxu0  ;;  %v1955_v62 = vpop.f32.mrf.mxu1 }
 0x446   :  { %v1998_v29 = vadd.f32 %v1935_v55, %v7246_v35  ;;  %v1999_v22 = vadd.f32 %v1955_v62, %v7247_v20  ;;  %v7252_v55 = vld [vmem:[#allocation57_spill] sm:$0xff] }
 0x448   :  { %v2954_v31 = vmul.f32 -1.442695, %v1998_v29  ;;  %v2955_v40 = vmul.f32 -1.442695, %v1999_v22 }
 0x44a   :  { %3142 = vpow2.f32 %v2954_v31 }
 0x44b   :  { %3144 = vpow2.f32 %v2955_v40 }
 0x44c   :  { %v1995_v54 = vpop.f32.mrf.mxu3  ;;  %v1975_v1 = vpop.f32.mrf.mxu2 }
 0x44d   :  { %v2001_v53 = vadd.f32 %v1995_v54, %v7248_v46  ;;  %v2000_v41 = vadd.f32 %v1975_v1, %v7249_v36  ;;  %v3502_v36 = vld [vmem:[#allocation8 + $0x1a0] sm:$0xff] }
 0x44f   :  { %v2956_v5 = vmul.f32 -1.442695, %v2001_v53  ;;  %v3494_v53 = vld [vmem:[#allocation8 + $0x1e0] sm:$0xff] }
 0x450   :  { %v3143_v18 = vpop.eup %3142 }
 0x451   :  { %v3145_v2 = vpop.eup %3144  ;;  %v2005_v61 = vadd.f32 1.0, %v3143_v18  ;;  %3146 = vpow2.f32 %v2956_v5  ;;  %v3495_v5 = vld [vmem:[#allocation8 + $0x1e8] sm:$0xff]  ;;  %v3496_v18 = vld [vmem:[#allocation8 + $0x1f0] sm:$0xff] }
 0x452   :  { %v2024_v11 = vadd.f32 1.0, %v3145_v2  ;;  %v3497_v2 = vld [vmem:[#allocation8 + $0x1f8] sm:$0xff] }
 0x453   :  { %3148 = vrcp.f32 %v2005_v61  ;;  %v2017_v23 = vand.u32 2147483648, %v2005_v61  ;;  %v2015_v30 = vand.u32 2147483647, %v2005_v61  ;;  %vm2011_vm10 = vweird.f32 %v2005_v61 }
 0x454   :  { %3150 = vrcp.f32 %v2024_v11  ;;  %v2036_v33 = vand.u32 2147483648, %v2024_v11  ;;  %v2034_v19 = vand.u32 2147483647, %v2024_v11  ;;  %vm2030_vm11 = vweird.f32 %v2024_v11 }
 0x455   :  { %v2018_v37 = vor.u32 1.1754944e-38, %v2017_v23  ;;  %vm2016_vm14 = vcmp.eq.f32.partialorder %v2015_v30, 8.507059e+37 }
 0x456   :  { %v2037_v9 = vor.u32 1.1754944e-38, %v2036_v33  ;;  %vm2035_vm15 = vcmp.eq.f32.partialorder %v2034_v19, 8.507059e+37  ;;  %v3506_v33 = vld [vmem:[#allocation8 + $0x180] sm:$0xff]  ;;  %v3508_v19 = vld [vmem:[#allocation8 + $0x190] sm:$0xff] }
 0x457   :  { %v3147_v8 = vpop.eup %3146 }
 0x458   :  { %v2044_v34 = vadd.f32 1.0, %v3147_v8  ;;  %v3500_v8 = vld [vmem:[#allocation8 + $0x1d0] sm:$0xff] }
 0x459   :  { %v3149_v26 = vpop.eup %3148 }
 0x45a   :  { %v3151_v42 = vpop.eup %3150  ;;  %v2007_v63 = vmul.f32 %v3149_v26, %v2005_v61  ;;  %3152 = vrcp.f32 %v2044_v34  ;;  %vm2012_vm8 = vweird.f32 %v3149_v26  ;;  %v2056_v51 = vand.u32 2147483648, %v2044_v34  ;;  %v3498_v61 = vld [vmem:[#allocation8 + $0x1c0] sm:$0xff] }
 0x45b   :  { %v2026_v38 = vmul.f32 %v3151_v42, %v2024_v11  ;;  %3154 = vtanh.f32 %v2000_v41  ;;  %vm2031_vm9 = vweird.f32 %v3151_v42  ;;  %vm2013_vm12 = vmor %vm2011_vm10, %vm2012_vm8  ;;  %vm2050_vm1 = vweird.f32 %v2044_v34  ;;  %v3499_v11 = vld [vmem:[#allocation8 + $0x1c8] sm:$0xff] }
 0x45c   :  { %v2008_v45 = vsub.f32 1.0, %v2007_v63  ;;  %vm2032_vm13 = vmor %vm2030_vm11, %vm2031_vm9  ;;  %v2054_v6 = vand.u32 2147483647, %v2044_v34  ;;  %v2057_v58 = vor.u32 1.1754944e-38, %v2056_v51  ;;  %v3503_v41 = vld [vmem:[#allocation8 + $0x1a8] sm:$0xff]  ;;  %v3504_v63 = vld [vmem:[#allocation8 + $0x1b0] sm:$0xff] }
 0x45d   :  { %v2027_v48 = vsub.f32 1.0, %v2026_v38  ;;  %v3505_v38 = vld [vmem:[#allocation8 + $0x1b8] sm:$0xff]  ;;  %v3520_v51 = vld [vmem:[#allocation8 + $0x130] sm:$0xff] }
 0x45e   :  { %v2009_v15 = vmul.f32 %v3149_v26, %v2008_v45  ;;  %vm2055_vm3 = vcmp.eq.f32.partialorder %v2054_v6, 8.507059e+37 }
 0x45f   :  { %v2028_v17 = vmul.f32 %v3151_v42, %v2027_v48  ;;  %v7253_v48 = vld [vmem:[#allocation56_spill] sm:$0xff] }
 0x460   :  { %v3153_v28 = vpop.eup %3152  ;;  %v2010_v43 = vadd.f32 %v3149_v26, %v2009_v15  ;;  %v3507_v15 = vld [vmem:[#allocation8 + $0x188] sm:$0xff] }
 0x461   :  { %v2029_v16 = vadd.f32 %v3151_v42, %v2028_v17  ;;  %v2046_v44 = vmul.f32 %v3153_v28, %v2044_v34  ;;  %v3155_v13 = vpop.eup %3154  ;;  %vm2051_vm0 = vweird.f32 %v3153_v28  ;;  %v3501_v34 = vld [vmem:[#allocation8 + $0x1d8] sm:$0xff] }
 0x462   :  { %v2014_v27 = vsel %vm2013_vm12, %v3149_v26, %v2010_v43  ;;  %vm2052_vm2 = vmor %vm2050_vm1, %vm2051_vm0 }
 0x463   :  { %v2019_v39 = vsel %vm2016_vm14, %v2018_v37, %v2014_v27  ;;  %v2033_v56 = vsel %vm2032_vm13, %v3151_v42, %v2029_v16  ;;  %v2047_v0 = vsub.f32 1.0, %v2046_v44  ;;  %v3510_v37 = vld [vmem:[#allocation8 + $0x160] sm:$0xff]  ;;  %v3511_v16 = vld [vmem:[#allocation8 + $0x168] sm:$0xff]  ;;  %v3513_v27 = vld [vmem:[#allocation8 + $0x178] sm:$0xff] }
 0x464   :  { %v2038_v52 = vsel %vm2035_vm15, %v2037_v9, %v2033_v56  ;;  %v2061_v25 = vmul.f32 %v3155_v13, %v2019_v39  ;;  %v3512_v9 = vld [vmem:[#allocation8 + $0x170] sm:$0xff]  ;;  %v3514_v56 = vld [vmem:[#allocation8 + $0x140] sm:$0xff] }
 0x465   :  { %v2060_v3 = vmul.f32 %v2038_v52, %v5867_v60  ;;  %v2048_v47 = vmul.f32 %v3153_v28, %v2047_v0  ;;  %v3515_v0 = vld [vmem:[#allocation8 + $0x148] sm:$0xff] }
 0x467   :  { %v6047_v10 = vadd.f32 %v2061_v25, %v2060_v3  ;;  %v2049_v14 = vadd.f32 %v3153_v28, %v2048_v47  ;;  %v3516_v47 = vld [vmem:[#allocation8 + $0x150] sm:$0xff] }
 0x469   :  { %3156 = vtanh.f32 %v6047_v10  ;;  %v2053_v60 = vsel %vm2052_vm2, %v3153_v28, %v2049_v14  ;;  %v3509_v28 = vld [vmem:[#allocation8 + $0x198] sm:$0xff] }
 0x46a   :  { %v2058_v29 = vsel %vm2055_vm3, %v2057_v58, %v2053_v60 }
 0x46e   :  { %v2089_v32 = vpop.f32.mrf.mxu0  ;;  %v2109_v49 = vpop.f32.mrf.mxu1 }
 0x46f   :  { %v2152_v50 = vadd.f32 %v7250_v12, %v2089_v32  ;;  %v2153_v21 = vadd.f32 %v7251_v24, %v2109_v49  ;;  %v3157_v35 = vpop.eup %3156  ;;  %v3517_v32 = vld [vmem:[#allocation8 + $0x158] sm:$0xff]  ;;  %v3519_v24 = vld [vmem:[#allocation8 + $0x128] sm:$0xff] }
 0x470   :  { %v2064_v22 = vmul.f32 %v3157_v35, %v2058_v29 }
 0x471   :  { %v2958_v59 = vmul.f32 -1.442695, %v2152_v50  ;;  %v2959_v4 = vmul.f32 -1.442695, %v2153_v21  ;;  %v3518_v50 = vld [vmem:[#allocation8 + $0x120] sm:$0xff] }
 0x472   :  { %2957 = vst [vmem:[%s6172_s4 + $0x28] sm:$0xff] %v2064_v22  ;;  %2242 = vmatmul.f32.vlgmr.msra.gmra.mxu0 %v2064_v22  ;;  %2262 = vmatmul.f32.vlgmr.msra.gmra.mxu1 %v2064_v22 }
 0x473   :  { %3158 = vpow2.f32 %v2958_v59  ;;  %2282 = vmatmul.f32.vlgmr.msra.gmra.mxu2 %v2064_v22  ;;  %2302 = vmatmul.f32.vlgmr.msra.gmra.mxu3 %v2064_v22  ;;  %v3521_v59 = vld [vmem:[#allocation8 + $0x138] sm:$0xff] }
 0x474   :  { %3160 = vpow2.f32 %v2959_v4  ;;  %2534 = vmatpush.msra.mxu0 %v3494_v53  ;;  %2554 = vmatpush.msra.mxu1 %v3495_v5  ;;  %v3525_v22 = vld [vmem:[#allocation8 + $0x118] sm:$0xff]  ;;  %v3526_v53 = vld [vmem:[#allocation8 + $0xe0] sm:$0xff]  ;;  %v3527_v5 = vld [vmem:[#allocation8 + $0xe8] sm:$0xff] }
 0x475   :  { %v2149_v57 = vpop.f32.mrf.mxu3  ;;  %2574 = vmatpush.msra.mxu2 %v3496_v18  ;;  %2594 = vmatpush.msra.mxu3 %v3497_v2  ;;  %v2129_v1 = vpop.f32.mrf.mxu2  ;;  %v3560_v4 = vld [vmem:[#allocation10 + $0x1f0] sm:$0xff] }
 0x476   :  { %v2155_v62 = vadd.f32 %v7252_v55, %v2149_v57  ;;  %2535 = vmatpush.msra.mxu0 %v3498_v61  ;;  %2555 = vmatpush.msra.mxu1 %v3499_v11  ;;  %v2154_v23 = vadd.f32 %v7253_v48, %v2129_v1  ;;  %v3522_v57 = vld [vmem:[#allocation8 + $0x100] sm:$0xff]  ;;  %v3523_v55 = vld [vmem:[#allocation8 + $0x108] sm:$0xff]  ;;  %v3528_v61 = vld [vmem:[#allocation8 + $0xf0] sm:$0xff] }
 0x477   :  { %2575 = vmatpush.msra.mxu2 %v3500_v8  ;;  %2595 = vmatpush.msra.mxu3 %v3501_v34  ;;  %v3529_v11 = vld [vmem:[#allocation8 + $0xf8] sm:$0xff]  ;;  %v3530_v34 = vld [vmem:[#allocation8 + $0xc0] sm:$0xff]  ;;  %v3536_v48 = vld [vmem:[#allocation8 + $0xb0] sm:$0xff] }
 0x478   :  { %v2960_v20 = vmul.f32 -1.442695, %v2155_v62  ;;  %2536 = vmatpush.msra.mxu0 %v3502_v36  ;;  %2556 = vmatpush.msra.mxu1 %v3503_v41  ;;  %v3532_v36 = vld [vmem:[#allocation8 + $0xd0] sm:$0xff]  ;;  %v3533_v41 = vld [vmem:[#allocation8 + $0xd8] sm:$0xff]  ;;  %v3566_v62 = vld [vmem:[#allocation10 + $0x1a0] sm:$0xff] }
 0x479   :  { %v3159_v31 = vpop.eup %3158  ;;  %2576 = vmatpush.msra.mxu2 %v3504_v63  ;;  %2596 = vmatpush.msra.mxu3 %v3505_v38  ;;  %v3534_v38 = vld [vmem:[#allocation8 + $0xa0] sm:$0xff] }
 0x47a   :  { %v3161_v40 = vpop.eup %3160  ;;  %v6053_v54 = vadd.f32 1.0, %v3159_v31  ;;  %3162 = vpow2.f32 %v2960_v20  ;;  %2537 = vmatpush.msra.mxu0 %v3506_v33  ;;  %2557 = vmatpush.msra.mxu1 %v3507_v15  ;;  %v3524_v20 = vld [vmem:[#allocation8 + $0x110] sm:$0xff]  ;;  %v3538_v15 = vld [vmem:[#allocation8 + $0x80] sm:$0xff] }
 0x47b   :  { %v6058_v46 = vadd.f32 1.0, %v3161_v40  ;;  %2577 = vmatpush.msra.mxu2 %v3508_v19  ;;  %2597 = vmatpush.msra.mxu3 %v3509_v28  ;;  %v3540_v19 = vld [vmem:[#allocation8 + $0x90] sm:$0xff]  ;;  %v3541_v28 = vld [vmem:[#allocation8 + $0x98] sm:$0xff] }
 0x47c   :  { %3164 = vrcp.f32 %v6053_v54  ;;  %2538 = vmatpush.msra.mxu0 %v3510_v37  ;;  %2558 = vmatpush.msra.mxu1 %v3511_v16  ;;  %v2171_v39 = vand.u32 2147483648, %v6053_v54  ;;  %v2169_v3 = vand.u32 2147483647, %v6053_v54  ;;  %vm2165_vm6 = vweird.f32 %v6053_v54  ;;  %v3542_v37 = vld [vmem:[#allocation8 + $0x60] sm:$0xff]  ;;  %v3543_v16 = vld [vmem:[#allocation8 + $0x68] sm:$0xff] }
 0x47d   :  { %3166 = vrcp.f32 %v6058_v46  ;;  %2578 = vmatpush.msra.mxu2 %v3512_v9  ;;  %2598 = vmatpush.msra.mxu3 %v3513_v27  ;;  %v2190_v52 = vand.u32 2147483648, %v6058_v46  ;;  %v2188_v12 = vand.u32 2147483647, %v6058_v46  ;;  %vm2184_vm7 = vweird.f32 %v6058_v46  ;;  %v3544_v9 = vld [vmem:[#allocation8 + $0x70] sm:$0xff] }
 0x47e   :  { %2539 = vmatpush.msra.mxu0 %v3514_v56  ;;  %2559 = vmatpush.msra.mxu1 %v3515_v0  ;;  %v2172_v6 = vor.u32 1.1754944e-38, %v2171_v39  ;;  %vm2170_vm10 = vcmp.eq.f32.partialorder %v2169_v3, 8.507059e+37  ;;  %v3547_v39 = vld [vmem:[#allocation8 + $0x48] sm:$0xff]  ;;  %v3548_v56 = vld [vmem:[#allocation8 + $0x50] sm:$0xff]  ;;  %v3549_v0 = vld [vmem:[#allocation8 + $0x58] sm:$0xff] }
 0x47f   :  { %2579 = vmatpush.msra.mxu2 %v3516_v47  ;;  %2599 = vmatpush.msra.mxu3 %v3517_v32  ;;  %v2191_v35 = vor.u32 1.1754944e-38, %v2190_v52  ;;  %vm2189_vm11 = vcmp.eq.f32.partialorder %v2188_v12, 8.507059e+37  ;;  %v3550_v3 = vld [vmem:[#allocation8 + $0x20] sm:$0xff]  ;;  %v3551_v47 = vld [vmem:[#allocation8 + $0x28] sm:$0xff]  ;;  %v3553_v12 = vld [vmem:[#allocation8 + $0x38] sm:$0xff] }
 0x480   :  { %v3163_v26 = vpop.eup %3162  ;;  %2540 = vmatpush.msra.mxu0 %v3518_v50  ;;  %2560 = vmatpush.msra.mxu1 %v3519_v24  ;;  %v3554_v50 = vld [vmem:[#allocation8] sm:$0xff]  ;;  %v3555_v24 = vld [vmem:[#allocation8 + $0x8] sm:$0xff] }
 0x481   :  { %v6062_v42 = vadd.f32 1.0, %v3163_v26  ;;  %2580 = vmatpush.msra.mxu2 %v3520_v51  ;;  %2600 = vmatpush.msra.mxu3 %v3521_v59  ;;  %v3531_v26 = vld [vmem:[#allocation8 + $0xc8] sm:$0xff]  ;;  %v3558_v51 = vld [vmem:[#allocation10 + $0x1e0] sm:$0xff] }
 0x482   :  { %v6064_v45 = vpop.eup %3164  ;;  %2541 = vmatpush.msra.mxu0 %v3522_v57  ;;  %2561 = vmatpush.msra.mxu1 %v3523_v55  ;;  %v3559_v59 = vld [vmem:[#allocation10 + $0x1e8] sm:$0xff]  ;;  %v3564_v57 = vld [vmem:[#allocation10 + $0x1d0] sm:$0xff]  ;;  %v3565_v55 = vld [vmem:[#allocation10 + $0x1d8] sm:$0xff] }
 0x483   :  { %v6067_v30 = vpop.eup %3166  ;;  %v2161_v17 = vmul.f32 %v6064_v45, %v6053_v54  ;;  %3168 = vrcp.f32 %v6062_v42  ;;  %vm2166_vm4 = vweird.f32 %v6064_v45  ;;  %2581 = vmatpush.msra.mxu2 %v3524_v20  ;;  %2601 = vmatpush.msra.mxu3 %v3525_v22  ;;  %v2210_v33 = vand.u32 2147483648, %v6062_v42  ;;  %v3569_v20 = vld [vmem:[#allocation10 + $0x1b8] sm:$0xff]  ;;  %v3570_v22 = vld [vmem:[#allocation10 + $0x180] sm:$0xff] }
 0x484   :  { %v2180_v43 = vmul.f32 %v6067_v30, %v6058_v46  ;;  %3170 = vtanh.f32 %v2154_v23  ;;  %vm2185_vm5 = vweird.f32 %v6067_v30  ;;  %vm6089_vm8 = vmor %vm2165_vm6, %vm2166_vm4  ;;  %2542 = vmatpush.msra.mxu0 %v3526_v53  ;;  %2562 = vmatpush.msra.mxu1 %v3527_v5  ;;  %v3537_v23 = vld [vmem:[#allocation8 + $0xb8] sm:$0xff]  ;;  %vm2204_vm13 = vweird.f32 %v6062_v42  ;;  %v3575_v53 = vld [vmem:[#allocation10 + $0x168] sm:$0xff] }
 0x485   :  { %v2162_v44 = vsub.f32 1.0, %v2161_v17  ;;  %vm6098_vm9 = vmor %vm2184_vm7, %vm2185_vm5  ;;  %2582 = vmatpush.msra.mxu2 %v3528_v61  ;;  %2602 = vmatpush.msra.mxu3 %v3529_v11  ;;  %v2208_v17 = vand.u32 2147483647, %v6062_v42  ;;  %v2211_v27 = vor.u32 1.1754944e-38, %v2210_v33  ;;  %v3576_v5 = vld [vmem:[#allocation10 + $0x170] sm:$0xff]  ;;  %v3579_v61 = vld [vmem:[#allocation10 + $0x148] sm:$0xff] }
 0x486   :  { %v2181_v13 = vsub.f32 1.0, %v2180_v43  ;;  %2543 = vmatpush.msra.mxu0 %v3530_v34  ;;  %2563 = vmatpush.msra.mxu1 %v3531_v26  ;;  %v3580_v11 = vld [vmem:[#allocation10 + $0x150] sm:$0xff]  ;;  %v3583_v34 = vld [vmem:[#allocation10 + $0x128] sm:$0xff]  ;;  %v3598_v43 = vld [vmem:[#allocation10 + $0xa0] sm:$0xff] }
 0x487   :  { %v2163_v25 = vmul.f32 %v6064_v45, %v2162_v44  ;;  %2583 = vmatpush.msra.mxu2 %v3532_v36  ;;  %2603 = vmatpush.msra.mxu3 %v3533_v41  ;;  %vm2209_vm15 = vcmp.eq.f32.partialorder %v2208_v17, 8.507059e+37  ;;  %v3584_v26 = vld [vmem:[#allocation10 + $0x130] sm:$0xff]  ;;  %v3585_v36 = vld [vmem:[#allocation10 + $0x138] sm:$0xff]  ;;  %v3586_v41 = vld [vmem:[#allocation10 + $0x100] sm:$0xff] }
 0x488   :  { %v2182_v49 = vmul.f32 %v6067_v30, %v2181_v13  ;;  %2544 = vmatpush.msra.mxu0 %v3534_v38  ;;  %v3546_v13 = vld [vmem:[#allocation8 + $0x40] sm:$0xff]  ;;  %v3587_v38 = vld [vmem:[#allocation10 + $0x108] sm:$0xff]  ;;  %v3592_v33 = vld [vmem:[#allocation10 + $0xf0] sm:$0xff] }
 0x489   :  { %v6082_v21 = vpop.eup %3168  ;;  %v2164_v14 = vadd.f32 %v6064_v45, %v2163_v25  ;;  %2584 = vmatpush.msra.mxu2 %v3536_v48  ;;  %2604 = vmatpush.msra.mxu3 %v3537_v23  ;;  %v3590_v48 = vld [vmem:[#allocation10 + $0xe0] sm:$0xff]  ;;  %v3591_v23 = vld [vmem:[#allocation10 + $0xe8] sm:$0xff] }
 0x48a   :  { %v2183_v60 = vadd.f32 %v6067_v30, %v2182_v49  ;;  %v2200_v58 = vmul.f32 %v6082_v21, %v6062_v42  ;;  %v3171_v31 = vpop.eup %3170  ;;  %vm2205_vm12 = vweird.f32 %v6082_v21  ;;  %2545 = vmatpush.msra.mxu0 %v3538_v15  ;;  %v3545_v42 = vld [vmem:[#allocation8 + $0x78] sm:$0xff]  ;;  %v3552_v49 = vld [vmem:[#allocation8 + $0x30] sm:$0xff]  ;;  %v3595_v17 = vld [vmem:[#allocation10 + $0xc8] sm:$0xff] }
 0x48b   :  { %v2168_v29 = vsel %vm6089_vm8, %v6064_v45, %v2164_v14  ;;  %v3535_v45 = vld [vmem:[#allocation8 + $0xa8] sm:$0xff]  ;;  %2585 = vmatpush.msra.mxu2 %v3540_v19  ;;  %2605 = vmatpush.msra.mxu3 %v3541_v28  ;;  %vm6120_vm14 = vmor %vm2204_vm13, %vm2205_vm12  ;;  %v3557_v14 = vld [vmem:[#allocation8 + $0x18] sm:$0xff] }
 0x48c   :  { %v2173_v40 = vsel %vm2170_vm10, %v2172_v6, %v2168_v29  ;;  %v2187_v54 = vsel %vm6098_vm9, %v6067_v30, %v2183_v60  ;;  %v2201_v46 = vsub.f32 1.0, %v2200_v58  ;;  %2564 = vmatpush.msra.mxu1 %v3535_v45  ;;  %v3539_v30 = vld [vmem:[#allocation8 + $0x88] sm:$0xff]  ;;  %2546 = vmatpush.msra.mxu0 %v3542_v37  ;;  %v3561_v6 = vld [vmem:[#allocation10 + $0x1f8] sm:$0xff]  ;;  %v3562_v60 = vld [vmem:[#allocation10 + $0x1c0] sm:$0xff] }
 0x48d   :  { %v2192_v18 = vsel %vm2189_vm11, %v2191_v35, %v2187_v54  ;;  %v2215_v2 = vmul.f32 %v3171_v31, %v2173_v40  ;;  %2586 = vmatpush.msra.mxu2 %v3544_v9  ;;  %2606 = vmatpush.msra.mxu3 %v3545_v42  ;;  %v3563_v58 = vld [vmem:[#allocation10 + $0x1c8] sm:$0xff]  ;;  %v3568_v29 = vld [vmem:[#allocation10 + $0x1b0] sm:$0xff]  ;;  %v3573_v54 = vld [vmem:[#allocation10 + $0x198] sm:$0xff] }
 0x48e   :  { %v2214_v1 = vmul.f32 %v2192_v18, %v5942_v7  ;;  %v2202_v8 = vmul.f32 %v6082_v21, %v2201_v46  ;;  %2565 = vmatpush.msra.mxu1 %v3539_v30  ;;  %2547 = vmatpush.msra.mxu0 %v3546_v13  ;;  %v3567_v35 = vld [vmem:[#allocation10 + $0x1a8] sm:$0xff]  ;;  %v3572_v40 = vld [vmem:[#allocation10 + $0x190] sm:$0xff]  ;;  %v3574_v46 = vld [vmem:[#allocation10 + $0x160] sm:$0xff] }
 0x48f   :  { %2587 = vmatpush.msra.mxu2 %v3548_v56  ;;  %2607 = vmatpush.msra.mxu3 %v3549_v0  ;;  %v3571_v31 = vld [vmem:[#allocation10 + $0x188] sm:$0xff]  ;;  %v3577_v18 = vld [vmem:[#allocation10 + $0x178] sm:$0xff]  ;;  %v3588_v45 = vld [vmem:[#allocation10 + $0x110] sm:$0xff] }
 0x490   :  { %v6110_v63 = vadd.f32 %v2215_v2, %v2214_v1  ;;  %v2203_v7 = vadd.f32 %v6082_v21, %v2202_v8  ;;  %2566 = vmatpush.msra.mxu1 %v3543_v16  ;;  %2548 = vmatpush.msra.mxu0 %v3550_v3  ;;  %v3578_v2 = vld [vmem:[#allocation10 + $0x140] sm:$0xff]  ;;  %v3581_v1 = vld [vmem:[#allocation10 + $0x158] sm:$0xff]  ;;  %v3596_v19 = vld [vmem:[#allocation10 + $0xd0] sm:$0xff] }
 0x491   :  { %2588 = vmatpush.msra.mxu2 %v3552_v49  ;;  %2608 = vmatpush.msra.mxu3 %v3553_v12  ;;  %v3582_v8 = vld [vmem:[#allocation10 + $0x120] sm:$0xff]  ;;  %v3593_v15 = vld [vmem:[#allocation10 + $0xf8] sm:$0xff]  ;;  %v3599_v37 = vld [vmem:[#allocation10 + $0xa8] sm:$0xff] }
 0x492   :  { %3172 = vtanh.f32 %v6110_v63  ;;  %v2207_v44 = vsel %vm6120_vm14, %v6082_v21, %v2203_v7  ;;  %2567 = vmatpush.msra.mxu1 %v3547_v39  ;;  %2549 = vmatpush.msra.mxu0 %v3554_v50  ;;  %v3556_v21 = vld [vmem:[#allocation8 + $0x10] sm:$0xff]  ;;  %v3589_v7 = vld [vmem:[#allocation10 + $0x118] sm:$0xff]  ;;  %v3594_v30 = vld [vmem:[#allocation10 + $0xc0] sm:$0xff] }
 0x493   :  { %v2212_v25 = vsel %vm2209_vm15, %v2211_v27, %v2207_v44  ;;  %2589 = vmatpush.msra.mxu2 %v3556_v21  ;;  %2609 = vmatpush.msra.mxu3 %v3557_v14  ;;  %v3597_v28 = vld [vmem:[#allocation10 + $0xd8] sm:$0xff]  ;;  %v3600_v16 = vld [vmem:[#allocation10 + $0xb0] sm:$0xff]  ;;  %v3602_v9 = vld [vmem:[#allocation10 + $0x80] sm:$0xff] }
 0x494   :  { %2568 = vmatpush.msra.mxu1 %v3551_v47  ;;  %v3601_v44 = vld [vmem:[#allocation10 + $0xb8] sm:$0xff]  ;;  %v3603_v42 = vld [vmem:[#allocation10 + $0x88] sm:$0xff]  ;;  %v3604_v27 = vld [vmem:[#allocation10 + $0x90] sm:$0xff] }
 0x495   :  { %v3605_v13 = vld [vmem:[#allocation10 + $0x98] sm:$0xff]  ;;  %v3606_v39 = vld [vmem:[#allocation10 + $0x60] sm:$0xff]  ;;  %v3607_v56 = vld [vmem:[#allocation10 + $0x68] sm:$0xff] }
 0x496   :  { %2569 = vmatpush.msra.mxu1 %v3555_v24  ;;  %v3608_v0 = vld [vmem:[#allocation10 + $0x70] sm:$0xff]  ;;  %v3611_v3 = vld [vmem:[#allocation10 + $0x48] sm:$0xff]  ;;  %v3614_v49 = vld [vmem:[#allocation10 + $0x20] sm:$0xff] }
 0x497   :  { %v3612_v47 = vld [vmem:[#allocation10 + $0x50] sm:$0xff]  ;;  %v3615_v12 = vld [vmem:[#allocation10 + $0x28] sm:$0xff]  ;;  %v3617_v24 = vld [vmem:[#allocation10 + $0x38] sm:$0xff] }
 0x498   :  { %v3173_v52 = vpop.eup %3172  ;;  %v3616_v50 = vld [vmem:[#allocation10 + $0x30] sm:$0xff]  ;;  %v3618_v21 = vld [vmem:[#allocation10] sm:$0xff]  ;;  %v3619_v14 = vld [vmem:[#allocation10 + $0x8] sm:$0xff] }
 0x499   :  { %v2218_v32 = vmul.f32 %v3173_v52, %v2212_v25  ;;  %v3609_v52 = vld [vmem:[#allocation10 + $0x78] sm:$0xff]  ;;  %v3610_v25 = vld [vmem:[#allocation10 + $0x40] sm:$0xff] }
 0x49b   :  { %2961 = vst [vmem:[%s6173_s5 + $0x10] sm:$0xff] %v2218_v32  ;;  %2396 = vmatmul.f32.vlgmr.msrb.gmra.mxu0 %v2218_v32  ;;  %2416 = vmatmul.f32.vlgmr.msrb.gmra.mxu1 %v2218_v32 }
 0x49c   :  { %2436 = vmatmul.f32.vlgmr.msrb.gmra.mxu2 %v2218_v32  ;;  %2456 = vmatmul.f32.vlgmr.msrb.gmra.mxu3 %v2218_v32  ;;  %v3613_v32 = vld [vmem:[#allocation10 + $0x58] sm:$0xff] }
 0x49d   :  { %2687 = vmatpush.msrb.mxu0 %v3558_v51  ;;  %2707 = vmatpush.msrb.mxu1 %v3559_v59  ;;  %v3620_v51 = vld [vmem:[#allocation10 + $0x10] sm:$0xff]  ;;  %v3621_v59 = vld [vmem:[#allocation10 + $0x18] sm:$0xff] }
 0x49e   :  { %2727 = vmatpush.msrb.mxu2 %v3560_v4  ;;  %2747 = vmatpush.msrb.mxu3 %v3561_v6 }
 0x49f   :  { %2688 = vmatpush.msrb.mxu0 %v3562_v60  ;;  %2708 = vmatpush.msrb.mxu1 %v3563_v58  ;;  %v7260_v60 = vld [vmem:[#allocation38_spill] sm:$0xff] }
 0x4a0   :  { %2728 = vmatpush.msrb.mxu2 %v3564_v57  ;;  %2748 = vmatpush.msrb.mxu3 %v3565_v55  ;;  %v7261_v57 = vld [vmem:[#allocation39_spill] sm:$0xff] }
 0x4a1   :  { %2689 = vmatpush.msrb.mxu0 %v3566_v62  ;;  %2709 = vmatpush.msrb.mxu1 %v3567_v35 }
 0x4a2   :  { %2729 = vmatpush.msrb.mxu2 %v3568_v29  ;;  %2749 = vmatpush.msrb.mxu3 %v3569_v20  ;;  %v7262_v20 = vld [vmem:[#allocation41_spill] sm:$0xff] }
 0x4a3   :  { %2690 = vmatpush.msrb.mxu0 %v3570_v22  ;;  %2710 = vmatpush.msrb.mxu1 %v3571_v31 }
 0x4a4   :  { %2730 = vmatpush.msrb.mxu2 %v3572_v40  ;;  %2750 = vmatpush.msrb.mxu3 %v3573_v54 }
 0x4a5   :  { %2691 = vmatpush.msrb.mxu0 %v3574_v46  ;;  %2711 = vmatpush.msrb.mxu1 %v3575_v53 }
 0x4a6   :  { %2731 = vmatpush.msrb.mxu2 %v3576_v5  ;;  %2751 = vmatpush.msrb.mxu3 %v3577_v18 }
 0x4a7   :  { %2692 = vmatpush.msrb.mxu0 %v3578_v2  ;;  %2712 = vmatpush.msrb.mxu1 %v3579_v61 }
 0x4a8   :  { %2732 = vmatpush.msrb.mxu2 %v3580_v11  ;;  %2752 = vmatpush.msrb.mxu3 %v3581_v1  ;;  %v7263_v11 = vld [vmem:[#allocation40_spill] sm:$0xff] }
 0x4a9   :  { %2693 = vmatpush.msrb.mxu0 %v3582_v8  ;;  %2713 = vmatpush.msrb.mxu1 %v3583_v34 }
 0x4aa   :  { %2733 = vmatpush.msrb.mxu2 %v3584_v26  ;;  %2753 = vmatpush.msrb.mxu3 %v3585_v36 }
 0x4ab   :  { %2694 = vmatpush.msrb.mxu0 %v3586_v41  ;;  %2714 = vmatpush.msrb.mxu1 %v3587_v38 }
 0x4ac   :  { %2734 = vmatpush.msrb.mxu2 %v3588_v45  ;;  %2754 = vmatpush.msrb.mxu3 %v3589_v7 }
 0x4ad   :  { %2695 = vmatpush.msrb.mxu0 %v3590_v48  ;;  %2715 = vmatpush.msrb.mxu1 %v3591_v23 }
 0x4ae   :  { %2735 = vmatpush.msrb.mxu2 %v3592_v33  ;;  %2755 = vmatpush.msrb.mxu3 %v3593_v15 }
 0x4af   :  { %2696 = vmatpush.msrb.mxu0 %v3594_v30  ;;  %2716 = vmatpush.msrb.mxu1 %v3595_v17 }
 0x4b0   :  { %2736 = vmatpush.msrb.mxu2 %v3596_v19  ;;  %2756 = vmatpush.msrb.mxu3 %v3597_v28 }
 0x4b1   :  { %2697 = vmatpush.msrb.mxu0 %v3598_v43  ;;  %2717 = vmatpush.msrb.mxu1 %v3599_v37 }
 0x4b2   :  { %2737 = vmatpush.msrb.mxu2 %v3600_v16  ;;  %2757 = vmatpush.msrb.mxu3 %v3601_v44 }
 0x4b3   :  { %2698 = vmatpush.msrb.mxu0 %v3602_v9  ;;  %2718 = vmatpush.msrb.mxu1 %v3603_v42 }
 0x4b4   :  { %2738 = vmatpush.msrb.mxu2 %v3604_v27  ;;  %2758 = vmatpush.msrb.mxu3 %v3605_v13 }
 0x4b5   :  { %2699 = vmatpush.msrb.mxu0 %v3606_v39  ;;  %2719 = vmatpush.msrb.mxu1 %v3607_v56 }
 0x4b6   :  { %2739 = vmatpush.msrb.mxu2 %v3608_v0  ;;  %2759 = vmatpush.msrb.mxu3 %v3609_v52 }
 0x4b7   :  { %2700 = vmatpush.msrb.mxu0 %v3610_v25  ;;  %2720 = vmatpush.msrb.mxu1 %v3611_v3  ;;  %v7264_v3 = vld [vmem:[#allocation50_spill] sm:$0xff] }
 0x4b8   :  { %2740 = vmatpush.msrb.mxu2 %v3612_v47  ;;  %2760 = vmatpush.msrb.mxu3 %v3613_v32  ;;  %v7265_v32 = vld [vmem:[#allocation51_spill] sm:$0xff] }
 0x4b9   :  { %2701 = vmatpush.msrb.mxu0 %v3614_v49  ;;  %2721 = vmatpush.msrb.mxu1 %v3615_v12 }
 0x4ba   :  { %2741 = vmatpush.msrb.mxu2 %v3616_v50  ;;  %2761 = vmatpush.msrb.mxu3 %v3617_v24 }
 0x4bb   :  { %2702 = vmatpush.msrb.mxu0 %v3618_v21  ;;  %2722 = vmatpush.msrb.mxu1 %v3619_v14 }
 0x4bc   :  { %2742 = vmatpush.msrb.mxu2 %v3620_v51  ;;  %2762 = vmatpush.msrb.mxu3 %v3621_v59 }
 0x4ef   :  { %v2243_v4 = vpop.f32.mrf.mxu0  ;;  %v2263_v6 = vpop.f32.mrf.mxu1 }
 0x4f0   :  { %v2306_v58 = vadd.f32 %v2243_v4, %v7260_v60  ;;  %v2307_v55 = vadd.f32 %v2263_v6, %v7261_v57  ;;  %v7266_v4 = vld [vmem:[#allocation53_spill] sm:$0xff] }
 0x4f2   :  { %v2962_v62 = vmul.f32 -1.442695, %v2306_v58  ;;  %v2963_v35 = vmul.f32 -1.442695, %v2307_v55 }
 0x4f4   :  { %3174 = vpow2.f32 %v2962_v62 }
 0x4f5   :  { %3176 = vpow2.f32 %v2963_v35 }
 0x4f6   :  { %v2303_v29 = vpop.f32.mrf.mxu3  ;;  %v2283_v5 = vpop.f32.mrf.mxu2 }
 0x4f7   :  { %v2309_v22 = vadd.f32 %v2303_v29, %v7262_v20  ;;  %v2308_v1 = vadd.f32 %v2283_v5, %v7263_v11 }
 0x4f9   :  { %v2964_v31 = vmul.f32 -1.442695, %v2309_v22 }
 0x4fa   :  { %v3175_v40 = vpop.eup %3174 }
 0x4fb   :  { %v3177_v54 = vpop.eup %3176  ;;  %v2313_v46 = vadd.f32 1.0, %v3175_v40  ;;  %3178 = vpow2.f32 %v2964_v31 }
 0x4fc   :  { %v2332_v53 = vadd.f32 1.0, %v3177_v54 }
 0x4fd   :  { %3180 = vrcp.f32 %v2313_v46  ;;  %v2325_v38 = vand.u32 2147483648, %v2313_v46  ;;  %v2323_v48 = vand.u32 2147483647, %v2313_v46  ;;  %vm2319_vm2 = vweird.f32 %v2313_v46 }
 0x4fe   :  { %3182 = vrcp.f32 %v2332_v53  ;;  %v2344_v45 = vand.u32 2147483648, %v2332_v53  ;;  %v2342_v33 = vand.u32 2147483647, %v2332_v53  ;;  %vm2338_vm3 = vweird.f32 %v2332_v53 }
 0x4ff   :  { %v2326_v17 = vor.u32 1.1754944e-38, %v2325_v38  ;;  %vm2324_vm6 = vcmp.eq.f32.partialorder %v2323_v48, 8.507059e+37 }
 0x500   :  { %v2345_v43 = vor.u32 1.1754944e-38, %v2344_v45  ;;  %vm2343_vm7 = vcmp.eq.f32.partialorder %v2342_v33, 8.507059e+37 }
 0x501   :  { %v3179_v18 = vpop.eup %3178 }
 0x502   :  { %v2352_v2 = vadd.f32 1.0, %v3179_v18 }
 0x503   :  { %v3181_v61 = vpop.eup %3180 }
 0x504   :  { %v3183_v8 = vpop.eup %3182  ;;  %v2315_v34 = vmul.f32 %v3181_v61, %v2313_v46  ;;  %3184 = vrcp.f32 %v2352_v2  ;;  %vm2320_vm0 = vweird.f32 %v3181_v61  ;;  %v2364_v50 = vand.u32 2147483648, %v2352_v2  ;;  %v7267_v46 = vld [vmem:[#allocation52_spill] sm:$0xff] }
 0x505   :  { %v2334_v26 = vmul.f32 %v3183_v8, %v2332_v53  ;;  %3186 = vtanh.f32 %v2308_v1  ;;  %vm2339_vm1 = vweird.f32 %v3183_v8  ;;  %vm2321_vm4 = vmor %vm2319_vm2, %vm2320_vm0  ;;  %vm2358_vm9 = vweird.f32 %v2352_v2 }
 0x506   :  { %v2316_v36 = vsub.f32 1.0, %v2315_v34  ;;  %vm2340_vm5 = vmor %vm2338_vm3, %vm2339_vm1  ;;  %v2362_v14 = vand.u32 2147483647, %v2352_v2  ;;  %v2365_v51 = vor.u32 1.1754944e-38, %v2364_v50 }
 0x507   :  { %v2335_v41 = vsub.f32 1.0, %v2334_v26 }
 0x508   :  { %v2317_v7 = vmul.f32 %v3181_v61, %v2316_v36  ;;  %vm2363_vm11 = vcmp.eq.f32.partialorder %v2362_v14, 8.507059e+37 }
 0x509   :  { %v2336_v23 = vmul.f32 %v3183_v8, %v2335_v41 }
 0x50a   :  { %v3185_v15 = vpop.eup %3184  ;;  %v2318_v30 = vadd.f32 %v3181_v61, %v2317_v7 }
 0x50b   :  { %v2337_v19 = vadd.f32 %v3183_v8, %v2336_v23  ;;  %v2354_v28 = vmul.f32 %v3185_v15, %v2352_v2  ;;  %v3187_v16 = vpop.eup %3186  ;;  %vm2359_vm8 = vweird.f32 %v3185_v15 }
 0x50c   :  { %v2322_v37 = vsel %vm2321_vm4, %v3181_v61, %v2318_v30  ;;  %vm2360_vm10 = vmor %vm2358_vm9, %vm2359_vm8 }
 0x50d   :  { %v2327_v44 = vsel %vm2324_vm6, %v2326_v17, %v2322_v37  ;;  %v2341_v9 = vsel %vm2340_vm5, %v3183_v8, %v2337_v19  ;;  %v2355_v42 = vsub.f32 1.0, %v2354_v28 }
 0x50e   :  { %v2346_v27 = vsel %vm2343_vm7, %v2345_v43, %v2341_v9  ;;  %v2369_v13 = vmul.f32 %v3187_v16, %v2327_v44 }
 0x50f   :  { %v2368_v39 = vmul.f32 %v2346_v27, %v6047_v10  ;;  %v2356_v56 = vmul.f32 %v3185_v15, %v2355_v42 }
 0x511   :  { %v6135_v25 = vadd.f32 %v2369_v13, %v2368_v39  ;;  %v2357_v12 = vadd.f32 %v3185_v15, %v2356_v56 }
 0x513   :  { %3188 = vtanh.f32 %v6135_v25  ;;  %v2361_v10 = vsel %vm2360_vm10, %v3185_v15, %v2357_v12  ;;  %v7269_v12 = vld [vmem:[#allocation43_spill] sm:$0xff] }
 0x514   :  { %v2366_v58 = vsel %vm2363_vm11, %v2365_v51, %v2361_v10  ;;  %v7270_v10 = vld [vmem:[#allocation45_spill] sm:$0xff] }
 0x518   :  { %v2397_v0 = vpop.f32.mrf.mxu0  ;;  %v2417_v52 = vpop.f32.mrf.mxu1 }
 0x519   :  { %v2460_v47 = vadd.f32 %v7264_v3, %v2397_v0  ;;  %v2461_v49 = vadd.f32 %v7265_v32, %v2417_v52  ;;  %v3189_v60 = vpop.eup %3188  ;;  %v7268_v32 = vld [vmem:[#allocation42_spill] sm:$0xff] }
 0x51a   :  { %v2372_v55 = vmul.f32 %v3189_v60, %v2366_v58 }
 0x51b   :  { %v2966_v24 = vmul.f32 -1.442695, %v2460_v47  ;;  %v2967_v21 = vmul.f32 -1.442695, %v2461_v49 }
 0x51c   :  { %2965 = vst [vmem:[%s6172_s4 + $0x30] sm:$0xff] %v2372_v55  ;;  %2550 = vmatmul.f32.vlgmr.msra.gmra.mxu0 %v2372_v55  ;;  %2570 = vmatmul.f32.vlgmr.msra.gmra.mxu1 %v2372_v55 }
 0x51d   :  { %3190 = vpow2.f32 %v2966_v24  ;;  %2590 = vmatmul.f32.vlgmr.msra.gmra.mxu2 %v2372_v55  ;;  %2610 = vmatmul.f32.vlgmr.msra.gmra.mxu3 %v2372_v55 }
 0x51e   :  { %3192 = vpow2.f32 %v2967_v21 }
 0x51f   :  { %v2457_v59 = vpop.f32.mrf.mxu3  ;;  %v2437_v22 = vpop.f32.mrf.mxu2 }
 0x520   :  { %v2463_v6 = vadd.f32 %v7266_v4, %v2457_v59  ;;  %v2462_v53 = vadd.f32 %v7267_v46, %v2437_v22 }
 0x522   :  { %v2968_v57 = vmul.f32 -1.442695, %v2463_v6 }
 0x523   :  { %v3191_v62 = vpop.eup %3190 }
 0x524   :  { %v3193_v35 = vpop.eup %3192  ;;  %v2467_v29 = vadd.f32 1.0, %v3191_v62  ;;  %3194 = vpow2.f32 %v2968_v57 }
 0x525   :  { %v2486_v20 = vadd.f32 1.0, %v3193_v35 }
 0x526   :  { %3196 = vrcp.f32 %v2467_v29  ;;  %v2479_v1 = vand.u32 2147483648, %v2467_v29  ;;  %v2477_v26 = vand.u32 2147483647, %v2467_v29  ;;  %vm2473_vm14 = vweird.f32 %v2467_v29 }
 0x527   :  { %3198 = vrcp.f32 %v2486_v20  ;;  %v2498_v8 = vand.u32 2147483648, %v2486_v20  ;;  %v2496_v41 = vand.u32 2147483647, %v2486_v20  ;;  %vm2492_vm15 = vweird.f32 %v2486_v20 }
 0x528   :  { %v2480_v7 = vor.u32 1.1754944e-38, %v2479_v1  ;;  %vm2478_vm2 = vcmp.eq.f32.partialorder %v2477_v26, 8.507059e+37 }
 0x529   :  { %v2499_v33 = vor.u32 1.1754944e-38, %v2498_v8  ;;  %vm2497_vm3 = vcmp.eq.f32.partialorder %v2496_v41, 8.507059e+37 }
 0x52a   :  { %v3195_v31 = vpop.eup %3194 }
 0x52b   :  { %v2506_v40 = vadd.f32 1.0, %v3195_v31 }
 0x52c   :  { %v3197_v54 = vpop.eup %3196 }
 0x52d   :  { %v3199_v5 = vpop.eup %3198  ;;  %v2469_v18 = vmul.f32 %v3197_v54, %v2467_v29  ;;  %3200 = vrcp.f32 %v2506_v40  ;;  %vm2474_vm12 = vweird.f32 %v3197_v54  ;;  %v2518_v27 = vand.u32 2147483648, %v2506_v40  ;;  %v7271_v29 = vld [vmem:[#allocation44_spill] sm:$0xff] }
 0x52e   :  { %v2488_v2 = vmul.f32 %v3199_v5, %v2486_v20  ;;  %3202 = vtanh.f32 %v2462_v53  ;;  %vm2493_vm13 = vweird.f32 %v3199_v5  ;;  %vm2475_vm0 = vmor %vm2473_vm14, %vm2474_vm12  ;;  %vm2512_vm5 = vweird.f32 %v2506_v40 }
 0x52f   :  { %v2470_v61 = vsub.f32 1.0, %v2469_v18  ;;  %vm2494_vm1 = vmor %vm2492_vm15, %vm2493_vm13  ;;  %v2516_v13 = vand.u32 2147483647, %v2506_v40  ;;  %v2519_v56 = vor.u32 1.1754944e-38, %v2518_v27 }
 0x530   :  { %v2489_v11 = vsub.f32 1.0, %v2488_v2 }
 0x531   :  { %v2471_v34 = vmul.f32 %v3197_v54, %v2470_v61  ;;  %vm2517_vm7 = vcmp.eq.f32.partialorder %v2516_v13, 8.507059e+37 }
 0x532   :  { %v2490_v36 = vmul.f32 %v3199_v5, %v2489_v11 }
 0x533   :  { %v3201_v38 = vpop.eup %3200  ;;  %v2472_v45 = vadd.f32 %v3197_v54, %v2471_v34 }
 0x534   :  { %v2491_v48 = vadd.f32 %v3199_v5, %v2490_v36  ;;  %v2508_v23 = vmul.f32 %v3201_v38, %v2506_v40  ;;  %v3203_v30 = vpop.eup %3202  ;;  %vm2513_vm4 = vweird.f32 %v3201_v38 }
 0x535   :  { %v2476_v15 = vsel %vm2475_vm0, %v3197_v54, %v2472_v45  ;;  %vm2514_vm6 = vmor %vm2512_vm5, %vm2513_vm4 }
 0x536   :  { %v2481_v17 = vsel %vm2478_vm2, %v2480_v7, %v2476_v15  ;;  %v2495_v19 = vsel %vm2494_vm1, %v3199_v5, %v2491_v48  ;;  %v2509_v28 = vsub.f32 1.0, %v2508_v23 }
 0x537   :  { %v2500_v43 = vsel %vm2497_vm3, %v2499_v33, %v2495_v19  ;;  %v2523_v37 = vmul.f32 %v3203_v30, %v2481_v17 }
 0x538   :  { %v2522_v16 = vmul.f32 %v2500_v43, %v6110_v63  ;;  %v2510_v44 = vmul.f32 %v3201_v38, %v2509_v28 }
 0x53a   :  { %v6146_v9 = vadd.f32 %v2523_v37, %v2522_v16  ;;  %v2511_v42 = vadd.f32 %v3201_v38, %v2510_v44  ;;  %v7272_v37 = vld [vmem:[#allocation46_spill] sm:$0xff]  ;;  %v7273_v44 = vld [vmem:[#allocation47_spill] sm:$0xff] }
 0x53c   :  { %3204 = vtanh.f32 %v6146_v9  ;;  %v2515_v39 = vsel %vm2514_vm6, %v3201_v38, %v2511_v42 }
 0x53d   :  { %v2520_v52 = vsel %vm2517_vm7, %v2519_v56, %v2515_v39 }
 0x542   :  { %v3205_v0 = vpop.eup %3204 }
 0x543   :  { %v2526_v3 = vmul.f32 %v3205_v0, %v2520_v52 }
 0x545   :  { %2969 = vst [vmem:[%s6173_s5 + $0x8] sm:$0xff] %v2526_v3  ;;  %2703 = vmatmul.f32.vlgmr.msrb.gmra.mxu0 %v2526_v3  ;;  %2723 = vmatmul.f32.vlgmr.msrb.gmra.mxu1 %v2526_v3 }
 0x546   :  { %2743 = vmatmul.f32.vlgmr.msrb.gmra.mxu2 %v2526_v3  ;;  %2763 = vmatmul.f32.vlgmr.msrb.gmra.mxu3 %v2526_v3 }
 0x599   :  { %v2551_v63 = vpop.f32.mrf.mxu0  ;;  %v2571_v47 = vpop.f32.mrf.mxu1 }
 0x59a   :  { %v2614_v49 = vadd.f32 %v2551_v63, %v7268_v32  ;;  %v2615_v50 = vadd.f32 %v2571_v47, %v7269_v12  ;;  %v7274_v63 = vld [vmem:[#allocation49_spill] sm:$0xff] }
 0x59c   :  { %v2970_v24 = vmul.f32 -1.442695, %v2614_v49  ;;  %v2971_v21 = vmul.f32 -1.442695, %v2615_v50 }
 0x59e   :  { %3206 = vpow2.f32 %v2970_v24 }
 0x59f   :  { %3208 = vpow2.f32 %v2971_v21 }
 0x5a0   :  { %v2611_v14 = vpop.f32.mrf.mxu3  ;;  %v2591_v57 = vpop.f32.mrf.mxu2 }
 0x5a1   :  { %v2617_v51 = vadd.f32 %v2611_v14, %v7270_v10  ;;  %v2616_v20 = vadd.f32 %v2591_v57, %v7271_v29 }
 0x5a3   :  { %v2972_v59 = vmul.f32 -1.442695, %v2617_v51 }
 0x5a4   :  { %v3207_v4 = vpop.eup %3206 }
 0x5a5   :  { %v3209_v6 = vpop.eup %3208  ;;  %v2621_v60 = vadd.f32 1.0, %v3207_v4  ;;  %3210 = vpow2.f32 %v2972_v59 }
 0x5a6   :  { %v2640_v58 = vadd.f32 1.0, %v3209_v6 }
 0x5a7   :  { %3212 = vrcp.f32 %v2621_v60  ;;  %v2633_v53 = vand.u32 2147483648, %v2621_v60  ;;  %v2631_v2 = vand.u32 2147483647, %v2621_v60  ;;  %vm2627_vm10 = vweird.f32 %v2621_v60 }
 0x5a8   :  { %3214 = vrcp.f32 %v2640_v58  ;;  %v2652_v5 = vand.u32 2147483648, %v2640_v58  ;;  %v2650_v11 = vand.u32 2147483647, %v2640_v58  ;;  %vm2646_vm11 = vweird.f32 %v2640_v58 }
 0x5a9   :  { %v2634_v34 = vor.u32 1.1754944e-38, %v2633_v53  ;;  %vm2632_vm14 = vcmp.eq.f32.partialorder %v2631_v2, 8.507059e+37 }
 0x5aa   :  { %v2653_v41 = vor.u32 1.1754944e-38, %v2652_v5  ;;  %vm2651_vm15 = vcmp.eq.f32.partialorder %v2650_v11, 8.507059e+37 }
 0x5ab   :  { %v3211_v55 = vpop.eup %3210 }
 0x5ac   :  { %v2660_v62 = vadd.f32 1.0, %v3211_v55 }
 0x5ad   :  { %v3213_v35 = vpop.eup %3212 }
 0x5ae   :  { %v3215_v22 = vpop.eup %3214  ;;  %v2623_v31 = vmul.f32 %v3213_v35, %v2621_v60  ;;  %3216 = vrcp.f32 %v2660_v62  ;;  %vm2628_vm8 = vweird.f32 %v3213_v35  ;;  %v2672_v13 = vand.u32 2147483648, %v2660_v62  ;;  %v7275_v60 = vld [vmem:[#allocation48_spill] sm:$0xff] }
 0x5af   :  { %v2642_v40 = vmul.f32 %v3215_v22, %v2640_v58  ;;  %3218 = vtanh.f32 %v2616_v20  ;;  %vm2647_vm9 = vweird.f32 %v3215_v22  ;;  %vm2629_vm12 = vmor %vm2627_vm10, %vm2628_vm8  ;;  %vm2666_vm1 = vweird.f32 %v2660_v62 }
 0x5b0   :  { %v2624_v54 = vsub.f32 1.0, %v2623_v31  ;;  %vm2648_vm13 = vmor %vm2646_vm11, %vm2647_vm9  ;;  %v2670_v0 = vand.u32 2147483647, %v2660_v62 }
 0x5b1   :  { %v2643_v46 = vsub.f32 1.0, %v2642_v40 }
 0x5b2   :  { %v2625_v18 = vmul.f32 %v3213_v35, %v2624_v54  ;;  %vm2671_vm3 = vcmp.eq.f32.partialorder %v2670_v0, 8.507059e+37 }
 0x5b3   :  { %v2644_v61 = vmul.f32 %v3215_v22, %v2643_v46 }
 0x5b4   :  { %v3217_v1 = vpop.eup %3216  ;;  %v2626_v8 = vadd.f32 %v3213_v35, %v2625_v18 }
 0x5b5   :  { %v2645_v26 = vadd.f32 %v3215_v22, %v2644_v61  ;;  %v2662_v36 = vmul.f32 %v3217_v1, %v2660_v62  ;;  %v3219_v45 = vpop.eup %3218  ;;  %vm2667_vm0 = vweird.f32 %v3217_v1 }
 0x5b6   :  { %v2630_v38 = vsel %vm2629_vm12, %v3213_v35, %v2626_v8  ;;  %vm2668_vm2 = vmor %vm2666_vm1, %vm2667_vm0 }
 0x5b7   :  { %v2635_v7 = vsel %vm2632_vm14, %v2634_v34, %v2630_v38  ;;  %v2649_v48 = vsel %vm2648_vm13, %v3215_v22, %v2645_v26  ;;  %v2663_v23 = vsub.f32 1.0, %v2662_v36 }
 0x5b8   :  { %v2654_v33 = vsel %vm2651_vm15, %v2653_v41, %v2649_v48  ;;  %v2677_v15 = vmul.f32 %v3219_v45, %v2635_v7 }
 0x5b9   :  { %v2676_v30 = vmul.f32 %v2654_v33, %v6135_v25  ;;  %v2664_v17 = vmul.f32 %v3217_v1, %v2663_v23  ;;  %v2673_v25 = vor.u32 1.1754944e-38, %v2672_v13 }
 0x5bb   :  { %v2678_v43 = vadd.f32 %v2677_v15, %v2676_v30  ;;  %v2665_v27 = vadd.f32 %v3217_v1, %v2664_v17 }
 0x5bd   :  { %3220 = vtanh.f32 %v2678_v43  ;;  %v2669_v52 = vsel %vm2668_vm2, %v3217_v1, %v2665_v27 }
 0x5be   :  { %v2674_v49 = vsel %vm2671_vm3, %v2673_v25, %v2669_v52 }
 0x5c2   :  { %v2704_v19 = vpop.f32.mrf.mxu0  ;;  %v2724_v28 = vpop.f32.mrf.mxu1 }
 0x5c3   :  { %v2767_v16 = vadd.f32 %v7272_v37, %v2704_v19  ;;  %v2768_v42 = vadd.f32 %v7273_v44, %v2724_v28  ;;  %v3221_v32 = vpop.eup %3220 }
 0x5c4   :  { %v2680_v12 = vmul.f32 %v3221_v32, %v2674_v49 }
 0x5c5   :  { %v2974_v39 = vmul.f32 -1.442695, %v2767_v16  ;;  %v2975_v56 = vmul.f32 -1.442695, %v2768_v42 }
 0x5c6   :  { %2973 = vst [vmem:[%s6172_s4 + $0x38] sm:$0xff] %v2680_v12 }
 0x5c7   :  { %3222 = vpow2.f32 %v2974_v39 }
 0x5c8   :  { %3224 = vpow2.f32 %v2975_v56 }
 0x5c9   :  { %v2764_v3 = vpop.f32.mrf.mxu3  ;;  %v2744_v51 = vpop.f32.mrf.mxu2 }
 0x5ca   :  { %v2770_v47 = vadd.f32 %v7274_v63, %v2764_v3  ;;  %v2769_v58 = vadd.f32 %v7275_v60, %v2744_v51 }
 0x5cc   :  { %v2976_v50 = vmul.f32 -1.442695, %v2770_v47 }
 0x5cd   :  { %v3223_v24 = vpop.eup %3222 }
 0x5ce   :  { %v3225_v21 = vpop.eup %3224  ;;  %v2774_v14 = vadd.f32 1.0, %v3223_v24  ;;  %3226 = vpow2.f32 %v2976_v50 }
 0x5cf   :  { %v2793_v10 = vadd.f32 1.0, %v3225_v21 }
 0x5d0   :  { %3228 = vrcp.f32 %v2774_v14  ;;  %v2786_v20 = vand.u32 2147483648, %v2774_v14  ;;  %v2784_v40 = vand.u32 2147483647, %v2774_v14  ;;  %vm2780_vm6 = vweird.f32 %v2774_v14 }
 0x5d1   :  { %3230 = vrcp.f32 %v2793_v10  ;;  %v2805_v22 = vand.u32 2147483648, %v2793_v10  ;;  %v2803_v46 = vand.u32 2147483647, %v2793_v10  ;;  %vm2799_vm7 = vweird.f32 %v2793_v10 }
 0x5d2   :  { %v2787_v18 = vor.u32 1.1754944e-38, %v2786_v20  ;;  %vm2785_vm10 = vcmp.eq.f32.partialorder %v2784_v40, 8.507059e+37 }
 0x5d3   :  { %v2806_v11 = vor.u32 1.1754944e-38, %v2805_v22  ;;  %vm2804_vm11 = vcmp.eq.f32.partialorder %v2803_v46, 8.507059e+37 }
 0x5d4   :  { %v3227_v59 = vpop.eup %3226 }
 0x5d5   :  { %v2813_v4 = vadd.f32 1.0, %v3227_v59 }
 0x5d6   :  { %v3229_v6 = vpop.eup %3228 }
 0x5d7   :  { %v3231_v57 = vpop.eup %3230  ;;  %v2776_v55 = vmul.f32 %v3229_v6, %v2774_v14  ;;  %3232 = vrcp.f32 %v2813_v4  ;;  %vm2781_vm4 = vweird.f32 %v3229_v6  ;;  %v2825_v33 = vand.u32 2147483648, %v2813_v4 }
 0x5d8   :  { %v2795_v62 = vmul.f32 %v3231_v57, %v2793_v10  ;;  %3234 = vtanh.f32 %v2769_v58  ;;  %vm2800_vm5 = vweird.f32 %v3231_v57  ;;  %vm2782_vm8 = vmor %vm2780_vm6, %vm2781_vm4  ;;  %vm2819_vm13 = vweird.f32 %v2813_v4 }
 0x5d9   :  { %v2777_v35 = vsub.f32 1.0, %v2776_v55  ;;  %vm2801_vm9 = vmor %vm2799_vm7, %vm2800_vm5  ;;  %v2823_v15 = vand.u32 2147483647, %v2813_v4  ;;  %v2826_v17 = vor.u32 1.1754944e-38, %v2825_v33 }
 0x5da   :  { %v2796_v29 = vsub.f32 1.0, %v2795_v62 }
 0x5db   :  { %v2778_v31 = vmul.f32 %v3229_v6, %v2777_v35  ;;  %vm2824_vm15 = vcmp.eq.f32.partialorder %v2823_v15, 8.507059e+37 }
 0x5dc   :  { %v2797_v54 = vmul.f32 %v3231_v57, %v2796_v29 }
 0x5dd   :  { %v3233_v53 = vpop.eup %3232  ;;  %v2779_v5 = vadd.f32 %v3229_v6, %v2778_v31 }
 0x5de   :  { %v2798_v2 = vadd.f32 %v3231_v57, %v2797_v54  ;;  %v2815_v61 = vmul.f32 %v3233_v53, %v2813_v4  ;;  %v3235_v8 = vpop.eup %3234  ;;  %vm2820_vm12 = vweird.f32 %v3233_v53 }
 0x5df   :  { %v2783_v1 = vsel %vm2782_vm8, %v3229_v6, %v2779_v5  ;;  %vm2821_vm14 = vmor %vm2819_vm13, %vm2820_vm12 }
 0x5e0   :  { %v2788_v34 = vsel %vm2785_vm10, %v2787_v18, %v2783_v1  ;;  %v2802_v26 = vsel %vm2801_vm9, %v3231_v57, %v2798_v2  ;;  %v2816_v36 = vsub.f32 1.0, %v2815_v61 }
 0x5e1   :  { %v2807_v41 = vsel %vm2804_vm11, %v2806_v11, %v2802_v26  ;;  %v2830_v38 = vmul.f32 %v3235_v8, %v2788_v34 }
 0x5e2   :  { %v2829_v45 = vmul.f32 %v2807_v41, %v6146_v9  ;;  %v2817_v7 = vmul.f32 %v3233_v53, %v2816_v36 }
 0x5e4   :  { %v2831_v48 = vadd.f32 %v2830_v38, %v2829_v45  ;;  %v2818_v23 = vadd.f32 %v3233_v53, %v2817_v7 }
 0x5e6   :  { %3236 = vtanh.f32 %v2831_v48  ;;  %v2822_v30 = vsel %vm2821_vm14, %v3233_v53, %v2818_v23 }
 0x5e7   :  { %v2827_v28 = vsel %vm2824_vm15, %v2826_v17, %v2822_v30 }
 0x5ec   :  { %v3237_v19 = vpop.eup %3236 }
 0x5ed   :  { %v2833_v43 = vmul.f32 %v3237_v19, %v2827_v28 }
 0x5ef   :  { %2834 = vst [vmem:[%s6173_s5] sm:$0xff] %v2833_v43 }
 0x5f0   :  { %2861 = vsyncpa [#allocation9], 1 }
 0x5f1   :  { %2862 = vsyncpa [#allocation11], 1 }

</bundles_post_ra>
